<compile_context>
chip_gen: v5e
topology: v5e:2x2
jax: 0.10.0
libtpu: 0.0.40
codegen_flags: <defaults>
</compile_context>

<pallas_src>
import functools

import jax
import jax.numpy as jnp
from jax.experimental import pallas as pl
from jax.experimental.pallas import tpu as pltpu

KSIZE = 4
STRIDE = 2
PAD = 1
BN_EPS = 1e-5


# ---------------------------------------------------------------------------
# Pallas kernels
# ---------------------------------------------------------------------------
def _epilogue(acc_f32, scale, shift, apply_relu, out_dtype):
    y = acc_f32 * scale + shift          # folded conv-bias + BN, f32
    if apply_relu:
        y = jnp.maximum(y, 0.0)
    return y.astype(out_dtype)


def _fused_matmul_kernel_single(x_ref, w_ref, scale_ref, shift_ref, o_ref,
                                *, apply_relu):
    """Whole K in one tile: dot -> epilogue -> store. No scratch, no pl.when."""
    acc = jnp.dot(x_ref[...], w_ref[...], preferred_element_type=jnp.float32)
    o_ref[...] = _epilogue(acc, scale_ref[...], shift_ref[...], apply_relu, o_ref.dtype)


def _fused_matmul_kernel_multi(x_ref, w_ref, scale_ref, shift_ref, o_ref, acc_ref,
                               *, apply_relu):
    """K reduced over grid axis 2 into an f32 VMEM accumulator; epilogue on last step."""
    @pl.when(pl.program_id(2) == 0)
    def _():
        acc_ref[...] = jnp.zeros_like(acc_ref)

    acc_ref[...] += jnp.dot(x_ref[...], w_ref[...],
                            preferred_element_type=jnp.float32)

    @pl.when(pl.program_id(2) == pl.num_programs(2) - 1)
    def _():
        o_ref[...] = _epilogue(acc_ref[...], scale_ref[...], shift_ref[...],
                               apply_relu, o_ref.dtype)


def fused_matmul(x, w, scale, shift, *, apply_relu, out_dtype,
                 tm_max=256, tn_max=256, tk_max=4096):
    """out = relu?((x @ w) * scale + shift); x:(M,K), w:(K,N) run on the MXU in bf16,
    scale/shift:(1,N) f32 broadcast over rows; accumulation/epilogue in f32."""
    M, K = x.shape
    Kw, N = w.shape
    assert K == Kw
    x = x.astype(jnp.bfloat16)
    w = w.astype(jnp.bfloat16)

    # Full-extent blocks when a dim is small (exempt from the (8,128) rule), otherwise
    # tile sizes that keep the double-buffered working set well under the smallest
    # scoped-VMEM default (16 MiB on v5e).
    tm = M if M <= tm_max else tm_max
    tn = N if N <= tn_max else tn_max
    tk = K if K <= tk_max else tk_max
    assert M % tm == 0 and N % tn == 0 and K % tk == 0, (M, N, K, tm, tn, tk)
    nk = K // tk

    cost = pl.CostEstimate(
        flops=2 * M * N * K,
        transcendentals=0,
        bytes_accessed=M * K * 2 + K * N * 2 + 2 * N * 4
        + M * N * jnp.dtype(out_dtype).itemsize,
    )

    if nk == 1:
        # Fast path: no accumulator scratch, 2-D (parallel, parallel) grid.
        return pl.pallas_call(
            functools.partial(_fused_matmul_kernel_single, apply_relu=apply_relu),
            out_shape=jax.ShapeDtypeStruct((M, N), out_dtype),
            grid=(M // tm, N // tn),
            in_specs=[
                pl.BlockSpec((tm, K), lambda i, j: (i, 0)),
                pl.BlockSpec((K, tn), lambda i, j: (0, j)),
                pl.BlockSpec((1, tn), lambda i, j: (0, j)),
                pl.BlockSpec((1, tn), lambda i, j: (0, j)),
            ],
            out_specs=pl.BlockSpec((tm, tn), lambda i, j: (i, j)),
            compiler_params=pltpu.CompilerParams(
                dimension_semantics=("parallel", "parallel")),
            cost_estimate=cost,
        )(x, w, scale, shift)

    # General path: reduction axis last ("arbitrary"), f32 accumulator in VMEM.
    return pl.pallas_call(
        functools.partial(_fused_matmul_kernel_multi, apply_relu=apply_relu),
        out_shape=jax.ShapeDtypeStruct((M, N), out_dtype),
        grid=(M // tm, N // tn, nk),
        in_specs=[
            pl.BlockSpec((tm, tk), lambda i, j, k: (i, k)),
            pl.BlockSpec((tk, tn), lambda i, j, k: (k, j)),
            pl.BlockSpec((1, tn), lambda i, j, k: (0, j)),
            pl.BlockSpec((1, tn), lambda i, j, k: (0, j)),
        ],
        out_specs=pl.BlockSpec((tm, tn), lambda i, j, k: (i, j)),
        scratch_shapes=[pltpu.VMEM((tm, tn), jnp.float32)],
        compiler_params=pltpu.CompilerParams(
            dimension_semantics=("parallel", "parallel", "arbitrary")),
        cost_estimate=cost,
    )(x, w, scale, shift)


def _pool_fc_kernel(x_ref, w_ref, b_ref, o_ref):
    # x: (N, HW, C) bf16 -> global average pool over HW (f32), then (N,C)@(C,nc)+b.
    pooled = jnp.mean(x_ref[...].astype(jnp.float32), axis=1)
    y = jnp.dot(pooled.astype(w_ref.dtype), w_ref[...],
                preferred_element_type=jnp.float32) + b_ref[...]
    o_ref[...] = y.astype(o_ref.dtype)


def pool_fc(x_nhwc, w, b):
    """AdaptiveAvgPool2d((1,1)) + Flatten + Linear fused in one Pallas call."""
    N, Ho, Wo, C = x_nhwc.shape
    x = x_nhwc.reshape(N, Ho * Wo, C)
    nc = w.shape[1]
    return pl.pallas_call(
        _pool_fc_kernel,
        out_shape=jax.ShapeDtypeStruct((N, nc), jnp.float32),
        grid=(1,),
        in_specs=[
            pl.BlockSpec((N, Ho * Wo, C), lambda i: (0, 0, 0)),
            pl.BlockSpec((C, nc), lambda i: (0, 0)),
            pl.BlockSpec((1, nc), lambda i: (0, 0)),
        ],
        out_specs=pl.BlockSpec((N, nc), lambda i: (0, 0)),
        compiler_params=pltpu.CompilerParams(dimension_semantics=("arbitrary",)),
    )(x, w, b)


# ---------------------------------------------------------------------------
# JAX glue: im2col (NHWC) + layer composition
# ---------------------------------------------------------------------------
def im2col_nhwc(x_nhwc, k=KSIZE, stride=STRIDE, pad=PAD):
    """Columns ordered (kh, kw, ci); rows ordered (n, ho, wo)."""
    N, H, W, C = x_nhwc.shape
    xp = jnp.pad(x_nhwc, ((0, 0), (pad, pad), (pad, pad), (0, 0)))
    Ho = (H + 2 * pad - k) // stride + 1
    Wo = (W + 2 * pad - k) // stride + 1
    patches = []
    for i in range(k):
        for j in range(k):
            patches.append(xp[:, i:i + stride * Ho:stride, j:j + stride * Wo:stride, :])
    p = jnp.stack(patches, axis=3)                       # (N, Ho, Wo, k*k, C)
    p = p.reshape(N * Ho * Wo, k * k * C)
    return p, Ho, Wo


def conv_block(x_nhwc, wmat, scale, shift, *, apply_relu=True):
    """Conv2d(k=4,s=2,p=1) (+ folded bias/BN) (+ ReLU) via im2col + fused Pallas GEMM.
    Activations stay NHWC / bf16 between layers."""
    N = x_nhwc.shape[0]
    cols, Ho, Wo = im2col_nhwc(x_nhwc)
    cout = wmat.shape[1]
    y = fused_matmul(cols, wmat, scale, shift, apply_relu=apply_relu,
                     out_dtype=jnp.bfloat16)             # (N*Ho*Wo, C_out)
    return y.reshape(N, Ho, Wo, cout)


def prepare_params(params):
    """One-time parameter prep (hoisted out of the forward path): fold BN into per-channel
    scale/shift, flatten OIHW conv weights to (kh*kw*ci, cout), cast weights to bf16."""
    prepped = {}
    for name, has_bn in (("conv1", False), ("conv2", True),
                         ("conv3", True), ("conv4", True)):
        w, b = params[name]                              # OIHW
        cout = w.shape[0]
        wmat = jnp.transpose(w, (2, 3, 1, 0)).reshape(-1, cout)   # (kh,kw,ci) x cout
        if has_bn:
            g, be, m, v = params[name + "_bn"]
            scale = g / jnp.sqrt(v + BN_EPS)
            shift = scale * (b - m) + be
        else:
            scale = jnp.ones_like(b)
            shift = b
        prepped[name] = (wmat.astype(jnp.bfloat16),
                         scale.astype(jnp.float32).reshape(1, cout),
                         shift.astype(jnp.float32).reshape(1, cout))
    wl, bl = params["fc"]                                # (num_classes, 512), (num_classes,)
    prepped["fc"] = (wl.T.astype(jnp.bfloat16),
                     bl.astype(jnp.float32).reshape(1, -1))
    return prepped


def image_classifier_forward(x_nchw, prepped):
    # single NCHW -> NHWC relayout + bf16 cast at the input boundary
    h = jnp.transpose(x_nchw, (0, 2, 3, 1)).astype(jnp.bfloat16)
    for name in ("conv1", "conv2", "conv3", "conv4"):
        wmat, scale, shift = prepped[name]
        h = conv_block(h, wmat, scale, shift, apply_relu=True)
    wl, bl = prepped["fc"]
    return pool_fc(h, wl, bl)                            # (N, num_classes) f32


# ---------------------------------------------------------------------------
# Pure-JAX reference (for correctness check)
# ---------------------------------------------------------------------------
def reference_forward(x, params):
    def conv(x, w, b):
        y = jax.lax.conv_general_dilated(
            x, w, window_strides=(STRIDE, STRIDE), padding=((PAD, PAD), (PAD, PAD)),
            dimension_numbers=("NCHW", "OIHW", "NCHW"),
            precision=jax.lax.Precision.HIGHEST)
        return y + b[None, :, None, None]

    def bn(x, g, be, m, v):
        return (g[None, :, None, None] * (x - m[None, :, None, None])
                / jnp.sqrt(v[None, :, None, None] + BN_EPS) + be[None, :, None, None])

    w1, b1 = params["conv1"]
    h = jax.nn.relu(conv(x, w1, b1))
    for name in ("conv2", "conv3", "conv4"):
        w, b = params[name]
        g, be, m, v = params[name + "_bn"]
        h = jax.nn.relu(bn(conv(h, w, b), g, be, m, v))
    pooled = jnp.mean(h, axis=(2, 3))
    wl, bl = params["fc"]
    return pooled @ wl.T + bl


# ---------------------------------------------------------------------------
# Deterministic parameter init (synthetic, matches PyTorch module shapes)
# ---------------------------------------------------------------------------
def init_params(key, num_classes):
    ks = jax.random.split(key, 24)      # 8 (convs) + 12 (bns) + 2 (fc) = 22 used
    it = iter(ks)

    def conv_params(cin, cout):
        w = 0.05 * jax.random.normal(next(it), (cout, cin, KSIZE, KSIZE), jnp.float32)
        b = 0.05 * jax.random.normal(next(it), (cout,), jnp.float32)
        return w, b

    def bn_params(c):
        g = 1.0 + 0.1 * jax.random.normal(next(it), (c,), jnp.float32)
        be = 0.1 * jax.random.normal(next(it), (c,), jnp.float32)
        m = 0.1 * jax.random.normal(next(it), (c,), jnp.float32)
        v = 0.5 + jax.random.uniform(next(it), (c,), jnp.float32)
        return g, be, m, v

    params = {
        "conv1": conv_params(3, 64),
        "conv2": conv_params(64, 128), "conv2_bn": bn_params(128),
        "conv3": conv_params(128, 256), "conv3_bn": bn_params(256),
        "conv4": conv_params(256, 512), "conv4_bn": bn_params(512),
    }
    wl = 0.05 * jax.random.normal(next(it), (num_classes, 512), jnp.float32)
    bl = 0.05 * jax.random.normal(next(it), (num_classes,), jnp.float32)
    params["fc"] = (wl, bl)
    return params


if __name__ == "__main__":
    num_classes = 10
    key = jax.random.PRNGKey(0)
    pkey, xkey = jax.random.split(key)
    params = init_params(pkey, num_classes)
    prepped = prepare_params(params)        # hoisted: BN fold, weight flatten, bf16 cast

    # small input consistent with the module: NCHW, 3 channels, spatial 32 (halved 4x -> 2x2)
    x = jax.random.normal(xkey, (2, 3, 32, 32), jnp.float32)

    fwd = jax.jit(image_classifier_forward)
    out = jax.block_until_ready(fwd(x, prepped))
    assert out.shape == (2, num_classes) and out.dtype == jnp.float32

    ref = jax.block_until_ready(reference_forward(x, params))
    assert bool(jnp.all(jnp.isfinite(out)))
    # bf16 MXU inputs / bf16 inter-layer activations (f32 accumulate + epilogue)
    assert bool(jnp.allclose(out, ref, rtol=3e-2, atol=3e-2)), (
        f"mismatch: max abs diff {float(jnp.max(jnp.abs(out - ref)))}")

    print("KERNEL_OK")
</pallas_src>

<mosaic_0001>
module attributes {stable_mosaic.version = 11 : i64} {
  func.func @_fused_matmul_kernel_single(%arg0: i32, %arg1: i32, %arg2: memref<256x48xbf16, #tpu.memory_space<vmem>>, %arg3: memref<48x64xbf16, #tpu.memory_space<vmem>>, %arg4: memref<1x64xf32, #tpu.memory_space<vmem>>, %arg5: memref<1x64xf32, #tpu.memory_space<vmem>>, %arg6: memref<256x64xbf16, #tpu.memory_space<vmem>>) attributes {dimension_semantics = [#tpu.dimension_semantics<parallel>, #tpu.dimension_semantics<parallel>], iteration_bounds = array<i64: 2, 1>, scalar_prefetch = 0 : i64, scratch_operands = 0 : i64, tpu.core_type = #tpu.core_type<tc>, window_params = [{transform_indices = @transform_0, window_bounds = array<i64: 256, 48>}, {transform_indices = @transform_1, window_bounds = array<i64: 48, 64>}, {transform_indices = @transform_2, window_bounds = array<i64: 1, 64>}, {transform_indices = @transform_3, window_bounds = array<i64: 1, 64>}, {transform_indices = @transform_4, window_bounds = array<i64: 256, 64>}]} {
    %c0 = arith.constant 0 : index
    %c0_0 = arith.constant 0 : index
    %0 = vector.load %arg2[%c0, %c0_0] : memref<256x48xbf16, #tpu.memory_space<vmem>>, vector<256x48xbf16>
    %c0_1 = arith.constant 0 : index
    %c0_2 = arith.constant 0 : index
    %1 = vector.load %arg3[%c0_1, %c0_2] : memref<48x64xbf16, #tpu.memory_space<vmem>>, vector<48x64xbf16>
    %cst = arith.constant dense<0.000000e+00> : vector<256x64xf32>
    %2 = tpu.matmul %0, %1, %cst {dimension_numbers = #tpu.dot_dimension_numbers<[1], [0], [0], [1], [0, 0, 1, 1], [], []>} : vector<256x48xbf16>, vector<48x64xbf16>, vector<256x64xf32> -> vector<256x64xf32>
    %c0_3 = arith.constant 0 : index
    %c0_4 = arith.constant 0 : index
    %3 = vector.load %arg4[%c0_3, %c0_4] : memref<1x64xf32, #tpu.memory_space<vmem>>, vector<1x64xf32>
    %c0_5 = arith.constant 0 : index
    %c0_6 = arith.constant 0 : index
    %4 = vector.load %arg5[%c0_5, %c0_6] : memref<1x64xf32, #tpu.memory_space<vmem>>, vector<1x64xf32>
    %5 = vector.broadcast %3 : vector<1x64xf32> to vector<256x64xf32>
    %6 = arith.mulf %2, %5 : vector<256x64xf32>
    %7 = vector.broadcast %4 : vector<1x64xf32> to vector<256x64xf32>
    %8 = arith.addf %6, %7 : vector<256x64xf32>
    %cst_7 = arith.constant 0.000000e+00 : f32
    %9 = vector.broadcast %cst_7 : f32 to vector<256x64xf32>
    %10 = arith.maximumf %8, %9 : vector<256x64xf32>
    %11 = arith.truncf %10 : vector<256x64xf32> to vector<256x64xbf16>
    %c0_8 = arith.constant 0 : index
    %c0_9 = arith.constant 0 : index
    %12 = vector.load %arg6[%c0_8, %c0_9] : memref<256x64xbf16, #tpu.memory_space<vmem>>, vector<256x64xbf16>
    tpu.vector_store %arg6[%c0_8, %c0_9], %11 {strides = array<i32>} : memref<256x64xbf16, #tpu.memory_space<vmem>>, vector<256x64xbf16>,
    return
  }
  func.func @transform_0(%arg0: i32, %arg1: i32) -> (i32, i32) {
    %c0_i32 = arith.constant 0 : i32
    %c0_i32_0 = arith.constant 0 : i32
    return %arg0, %c0_i32 : i32, i32
  }
  func.func @transform_1(%arg0: i32, %arg1: i32) -> (i32, i32) {
    %c0_i32 = arith.constant 0 : i32
    %c0_i32_0 = arith.constant 0 : i32
    return %c0_i32, %arg1 : i32, i32
  }
  func.func @transform_2(%arg0: i32, %arg1: i32) -> (i32, i32) {
    %c0_i32 = arith.constant 0 : i32
    %c0_i32_0 = arith.constant 0 : i32
    return %c0_i32, %arg1 : i32, i32
  }
  func.func @transform_3(%arg0: i32, %arg1: i32) -> (i32, i32) {
    %c0_i32 = arith.constant 0 : i32
    %c0_i32_0 = arith.constant 0 : i32
    return %c0_i32, %arg1 : i32, i32
  }
  func.func @transform_4(%arg0: i32, %arg1: i32) -> (i32, i32) {
    %c0_i32 = arith.constant 0 : i32
    return %arg0, %arg1 : i32, i32
  }
}

module attributes {stable_mosaic.version = 11 : i64} {
  func.func @_fused_matmul_kernel_single(%arg0: i32, %arg1: i32, %arg2: memref<128x1024xbf16, #tpu.memory_space<vmem>>, %arg3: memref<1024x128xbf16, #tpu.memory_space<vmem>>, %arg4: memref<1x128xf32, #tpu.memory_space<vmem>>, %arg5: memref<1x128xf32, #tpu.memory_space<vmem>>, %arg6: memref<128x128xbf16, #tpu.memory_space<vmem>>) attributes {dimension_semantics = [#tpu.dimension_semantics<parallel>, #tpu.dimension_semantics<parallel>], iteration_bounds = array<i64: 1, 1>, scalar_prefetch = 0 : i64, scratch_operands = 0 : i64, tpu.core_type = #tpu.core_type<tc>, window_params = [{transform_indices = @transform_0, window_bounds = array<i64: 128, 1024>}, {transform_indices = @transform_1, window_bounds = array<i64: 1024, 128>}, {transform_indices = @transform_2, window_bounds = array<i64: 1, 128>}, {transform_indices = @transform_3, window_bounds = array<i64: 1, 128>}, {transform_indices = @transform_4, window_bounds = array<i64: 128, 128>}]} {
    %c0 = arith.constant 0 : index
    %c0_0 = arith.constant 0 : index
    %0 = vector.load %arg2[%c0, %c0_0] : memref<128x1024xbf16, #tpu.memory_space<vmem>>, vector<128x1024xbf16>
    %c0_1 = arith.constant 0 : index
    %c0_2 = arith.constant 0 : index
    %1 = vector.load %arg3[%c0_1, %c0_2] : memref<1024x128xbf16, #tpu.memory_space<vmem>>, vector<1024x128xbf16>
    %cst = arith.constant dense<0.000000e+00> : vector<128x128xf32>
    %2 = tpu.matmul %0, %1, %cst {dimension_numbers = #tpu.dot_dimension_numbers<[1], [0], [0], [1], [0, 0, 1, 1], [], []>} : vector<128x1024xbf16>, vector<1024x128xbf16>, vector<128x128xf32> -> vector<128x128xf32>
    %c0_3 = arith.constant 0 : index
    %c0_4 = arith.constant 0 : index
    %3 = vector.load %arg4[%c0_3, %c0_4] : memref<1x128xf32, #tpu.memory_space<vmem>>, vector<1x128xf32>
    %c0_5 = arith.constant 0 : index
    %c0_6 = arith.constant 0 : index
    %4 = vector.load %arg5[%c0_5, %c0_6] : memref<1x128xf32, #tpu.memory_space<vmem>>, vector<1x128xf32>
    %5 = vector.broadcast %3 : vector<1x128xf32> to vector<128x128xf32>
    %6 = arith.mulf %2, %5 : vector<128x128xf32>
    %7 = vector.broadcast %4 : vector<1x128xf32> to vector<128x128xf32>
    %8 = arith.addf %6, %7 : vector<128x128xf32>
    %cst_7 = arith.constant 0.000000e+00 : f32
    %9 = vector.broadcast %cst_7 : f32 to vector<128x128xf32>
    %10 = arith.maximumf %8, %9 : vector<128x128xf32>
    %11 = arith.truncf %10 : vector<128x128xf32> to vector<128x128xbf16>
    %c0_8 = arith.constant 0 : index
    %c0_9 = arith.constant 0 : index
    %12 = vector.load %arg6[%c0_8, %c0_9] : memref<128x128xbf16, #tpu.memory_space<vmem>>, vector<128x128xbf16>
    tpu.vector_store %arg6[%c0_8, %c0_9], %11 {strides = array<i32>} : memref<128x128xbf16, #tpu.memory_space<vmem>>, vector<128x128xbf16>,
    return
  }
  func.func @transform_0(%arg0: i32, %arg1: i32) -> (i32, i32) {
    %c0_i32 = arith.constant 0 : i32
    %c0_i32_0 = arith.constant 0 : i32
    return %arg0, %c0_i32 : i32, i32
  }
  func.func @transform_1(%arg0: i32, %arg1: i32) -> (i32, i32) {
    %c0_i32 = arith.constant 0 : i32
    %c0_i32_0 = arith.constant 0 : i32
    return %c0_i32, %arg1 : i32, i32
  }
  func.func @transform_2(%arg0: i32, %arg1: i32) -> (i32, i32) {
    %c0_i32 = arith.constant 0 : i32
    %c0_i32_0 = arith.constant 0 : i32
    return %c0_i32, %arg1 : i32, i32
  }
  func.func @transform_3(%arg0: i32, %arg1: i32) -> (i32, i32) {
    %c0_i32 = arith.constant 0 : i32
    %c0_i32_0 = arith.constant 0 : i32
    return %c0_i32, %arg1 : i32, i32
  }
  func.func @transform_4(%arg0: i32, %arg1: i32) -> (i32, i32) {
    %c0_i32 = arith.constant 0 : i32
    return %arg0, %arg1 : i32, i32
  }
}

module attributes {stable_mosaic.version = 11 : i64} {
  func.func @_fused_matmul_kernel_single(%arg0: i32, %arg1: i32, %arg2: memref<32x2048xbf16, #tpu.memory_space<vmem>>, %arg3: memref<2048x256xbf16, #tpu.memory_space<vmem>>, %arg4: memref<1x256xf32, #tpu.memory_space<vmem>>, %arg5: memref<1x256xf32, #tpu.memory_space<vmem>>, %arg6: memref<32x256xbf16, #tpu.memory_space<vmem>>) attributes {dimension_semantics = [#tpu.dimension_semantics<parallel>, #tpu.dimension_semantics<parallel>], iteration_bounds = array<i64: 1, 1>, scalar_prefetch = 0 : i64, scratch_operands = 0 : i64, tpu.core_type = #tpu.core_type<tc>, window_params = [{transform_indices = @transform_0, window_bounds = array<i64: 32, 2048>}, {transform_indices = @transform_1, window_bounds = array<i64: 2048, 256>}, {transform_indices = @transform_2, window_bounds = array<i64: 1, 256>}, {transform_indices = @transform_3, window_bounds = array<i64: 1, 256>}, {transform_indices = @transform_4, window_bounds = array<i64: 32, 256>}]} {
    %c0 = arith.constant 0 : index
    %c0_0 = arith.constant 0 : index
    %0 = vector.load %arg2[%c0, %c0_0] : memref<32x2048xbf16, #tpu.memory_space<vmem>>, vector<32x2048xbf16>
    %c0_1 = arith.constant 0 : index
    %c0_2 = arith.constant 0 : index
    %1 = vector.load %arg3[%c0_1, %c0_2] : memref<2048x256xbf16, #tpu.memory_space<vmem>>, vector<2048x256xbf16>
    %cst = arith.constant dense<0.000000e+00> : vector<32x256xf32>
    %2 = tpu.matmul %0, %1, %cst {dimension_numbers = #tpu.dot_dimension_numbers<[1], [0], [0], [1], [0, 0, 1, 1], [], []>} : vector<32x2048xbf16>, vector<2048x256xbf16>, vector<32x256xf32> -> vector<32x256xf32>
    %c0_3 = arith.constant 0 : index
    %c0_4 = arith.constant 0 : index
    %3 = vector.load %arg4[%c0_3, %c0_4] : memref<1x256xf32, #tpu.memory_space<vmem>>, vector<1x256xf32>
    %c0_5 = arith.constant 0 : index
    %c0_6 = arith.constant 0 : index
    %4 = vector.load %arg5[%c0_5, %c0_6] : memref<1x256xf32, #tpu.memory_space<vmem>>, vector<1x256xf32>
    %5 = vector.broadcast %3 : vector<1x256xf32> to vector<32x256xf32>
    %6 = arith.mulf %2, %5 : vector<32x256xf32>
    %7 = vector.broadcast %4 : vector<1x256xf32> to vector<32x256xf32>
    %8 = arith.addf %6, %7 : vector<32x256xf32>
    %cst_7 = arith.constant 0.000000e+00 : f32
    %9 = vector.broadcast %cst_7 : f32 to vector<32x256xf32>
    %10 = arith.maximumf %8, %9 : vector<32x256xf32>
    %11 = arith.truncf %10 : vector<32x256xf32> to vector<32x256xbf16>
    %c0_8 = arith.constant 0 : index
    %c0_9 = arith.constant 0 : index
    %12 = vector.load %arg6[%c0_8, %c0_9] : memref<32x256xbf16, #tpu.memory_space<vmem>>, vector<32x256xbf16>
    tpu.vector_store %arg6[%c0_8, %c0_9], %11 {strides = array<i32>} : memref<32x256xbf16, #tpu.memory_space<vmem>>, vector<32x256xbf16>,
    return
  }
  func.func @transform_0(%arg0: i32, %arg1: i32) -> (i32, i32) {
    %c0_i32 = arith.constant 0 : i32
    %c0_i32_0 = arith.constant 0 : i32
    return %arg0, %c0_i32 : i32, i32
  }
  func.func @transform_1(%arg0: i32, %arg1: i32) -> (i32, i32) {
    %c0_i32 = arith.constant 0 : i32
    %c0_i32_0 = arith.constant 0 : i32
    return %c0_i32, %arg1 : i32, i32
  }
  func.func @transform_2(%arg0: i32, %arg1: i32) -> (i32, i32) {
    %c0_i32 = arith.constant 0 : i32
    %c0_i32_0 = arith.constant 0 : i32
    return %c0_i32, %arg1 : i32, i32
  }
  func.func @transform_3(%arg0: i32, %arg1: i32) -> (i32, i32) {
    %c0_i32 = arith.constant 0 : i32
    %c0_i32_0 = arith.constant 0 : i32
    return %c0_i32, %arg1 : i32, i32
  }
  func.func @transform_4(%arg0: i32, %arg1: i32) -> (i32, i32) {
    %c0_i32 = arith.constant 0 : i32
    return %arg0, %arg1 : i32, i32
  }
}

module attributes {stable_mosaic.version = 11 : i64} {
  func.func @_pool_fc_kernel(%arg0: i32, %arg1: memref<2x4x512xbf16, #tpu.memory_space<vmem>>, %arg2: memref<512x10xbf16, #tpu.memory_space<vmem>>, %arg3: memref<1x10xf32, #tpu.memory_space<vmem>>, %arg4: memref<2x10xf32, #tpu.memory_space<vmem>>) attributes {dimension_semantics = [#tpu.dimension_semantics<arbitrary>], iteration_bounds = array<i64: 1>, scalar_prefetch = 0 : i64, scratch_operands = 0 : i64, tpu.core_type = #tpu.core_type<tc>, window_params = [{pipeline_mode = #tpu.pipeline_mode<synchronous>, transform_indices = @transform_0, window_bounds = array<i64: 2, 4, 512>}, {pipeline_mode = #tpu.pipeline_mode<synchronous>, transform_indices = @transform_1, window_bounds = array<i64: 512, 10>}, {pipeline_mode = #tpu.pipeline_mode<synchronous>, transform_indices = @transform_2, window_bounds = array<i64: 1, 10>}, {pipeline_mode = #tpu.pipeline_mode<synchronous>, transform_indices = @transform_3, window_bounds = array<i64: 2, 10>}]} {
    %c0 = arith.constant 0 : index
    %c0_0 = arith.constant 0 : index
    %c0_1 = arith.constant 0 : index
    %0 = vector.load %arg1[%c0, %c0_0, %c0_1] : memref<2x4x512xbf16, #tpu.memory_space<vmem>>, vector<2x4x512xbf16>
    %1 = arith.extf %0 : vector<2x4x512xbf16> to vector<2x4x512xf32>
    %cst = arith.constant dense<0.000000e+00> : vector<2x512xf32>
    %2 = vector.multi_reduction <add>, %1, %cst [1] : vector<2x4x512xf32> to vector<2x512xf32>
    %cst_2 = arith.constant 4.000000e+00 : f32
    %3 = vector.broadcast %cst_2 : f32 to vector<2x512xf32>
    %4 = arith.divf %2, %3 : vector<2x512xf32>
    %5 = arith.truncf %4 : vector<2x512xf32> to vector<2x512xbf16>
    %c0_3 = arith.constant 0 : index
    %c0_4 = arith.constant 0 : index
    %6 = vector.load %arg2[%c0_3, %c0_4] : memref<512x10xbf16, #tpu.memory_space<vmem>>, vector<512x10xbf16>
    %cst_5 = arith.constant dense<0.000000e+00> : vector<2x10xf32>
    %7 = tpu.matmul %5, %6, %cst_5 {dimension_numbers = #tpu.dot_dimension_numbers<[1], [0], [0], [1], [0, 0, 1, 1], [], []>} : vector<2x512xbf16>, vector<512x10xbf16>, vector<2x10xf32> -> vector<2x10xf32>
    %c0_6 = arith.constant 0 : index
    %c0_7 = arith.constant 0 : index
    %8 = vector.load %arg3[%c0_6, %c0_7] : memref<1x10xf32, #tpu.memory_space<vmem>>, vector<1x10xf32>
    %9 = vector.broadcast %8 : vector<1x10xf32> to vector<2x10xf32>
    %10 = arith.addf %7, %9 : vector<2x10xf32>
    %c0_8 = arith.constant 0 : index
    %c0_9 = arith.constant 0 : index
    %11 = vector.load %arg4[%c0_8, %c0_9] : memref<2x10xf32, #tpu.memory_space<vmem>>, vector<2x10xf32>
    tpu.vector_store %arg4[%c0_8, %c0_9], %10 {strides = array<i32>} : memref<2x10xf32, #tpu.memory_space<vmem>>, vector<2x10xf32>,
    return
  }
  func.func @transform_0(%arg0: i32) -> (i32, i32, i32) {
    %c0_i32 = arith.constant 0 : i32
    %c0_i32_0 = arith.constant 0 : i32
    %c0_i32_1 = arith.constant 0 : i32
    %c0_i32_2 = arith.constant 0 : i32
    return %c0_i32, %c0_i32_0, %c0_i32_1 : i32, i32, i32
  }
  func.func @transform_1(%arg0: i32) -> (i32, i32) {
    %c0_i32 = arith.constant 0 : i32
    %c0_i32_0 = arith.constant 0 : i32
    %c0_i32_1 = arith.constant 0 : i32
    return %c0_i32, %c0_i32_0 : i32, i32
  }
  func.func @transform_2(%arg0: i32) -> (i32, i32) {
    %c0_i32 = arith.constant 0 : i32
    %c0_i32_0 = arith.constant 0 : i32
    %c0_i32_1 = arith.constant 0 : i32
    return %c0_i32, %c0_i32_0 : i32, i32
  }
  func.func @transform_3(%arg0: i32) -> (i32, i32) {
    %c0_i32 = arith.constant 0 : i32
    %c0_i32_0 = arith.constant 0 : i32
    %c0_i32_1 = arith.constant 0 : i32
    return %c0_i32, %c0_i32_0 : i32, i32
  }
}

module attributes {stable_mosaic.version = 11 : i64} {
  func.func @_fused_matmul_kernel_single(%arg0: i32, %arg1: i32, %arg2: memref<8x4096xbf16, #tpu.memory_space<vmem>>, %arg3: memref<4096x256xbf16, #tpu.memory_space<vmem>>, %arg4: memref<1x256xf32, #tpu.memory_space<vmem>>, %arg5: memref<1x256xf32, #tpu.memory_space<vmem>>, %arg6: memref<8x256xbf16, #tpu.memory_space<vmem>>) attributes {dimension_semantics = [#tpu.dimension_semantics<parallel>, #tpu.dimension_semantics<parallel>], iteration_bounds = array<i64: 1, 2>, scalar_prefetch = 0 : i64, scratch_operands = 0 : i64, tpu.core_type = #tpu.core_type<tc>, window_params = [{transform_indices = @transform_0, window_bounds = array<i64: 8, 4096>}, {transform_indices = @transform_1, window_bounds = array<i64: 4096, 256>}, {transform_indices = @transform_2, window_bounds = array<i64: 1, 256>}, {transform_indices = @transform_3, window_bounds = array<i64: 1, 256>}, {transform_indices = @transform_4, window_bounds = array<i64: 8, 256>}]} {
    %c0 = arith.constant 0 : index
    %c0_0 = arith.constant 0 : index
    %0 = vector.load %arg2[%c0, %c0_0] : memref<8x4096xbf16, #tpu.memory_space<vmem>>, vector<8x4096xbf16>
    %c0_1 = arith.constant 0 : index
    %c0_2 = arith.constant 0 : index
    %1 = vector.load %arg3[%c0_1, %c0_2] : memref<4096x256xbf16, #tpu.memory_space<vmem>>, vector<4096x256xbf16>
    %cst = arith.constant dense<0.000000e+00> : vector<8x256xf32>
    %2 = tpu.matmul %0, %1, %cst {dimension_numbers = #tpu.dot_dimension_numbers<[1], [0], [0], [1], [0, 0, 1, 1], [], []>} : vector<8x4096xbf16>, vector<4096x256xbf16>, vector<8x256xf32> -> vector<8x256xf32>
    %c0_3 = arith.constant 0 : index
    %c0_4 = arith.constant 0 : index
    %3 = vector.load %arg4[%c0_3, %c0_4] : memref<1x256xf32, #tpu.memory_space<vmem>>, vector<1x256xf32>
    %c0_5 = arith.constant 0 : index
    %c0_6 = arith.constant 0 : index
    %4 = vector.load %arg5[%c0_5, %c0_6] : memref<1x256xf32, #tpu.memory_space<vmem>>, vector<1x256xf32>
    %5 = vector.broadcast %3 : vector<1x256xf32> to vector<8x256xf32>
    %6 = arith.mulf %2, %5 : vector<8x256xf32>
    %7 = vector.broadcast %4 : vector<1x256xf32> to vector<8x256xf32>
    %8 = arith.addf %6, %7 : vector<8x256xf32>
    %cst_7 = arith.constant 0.000000e+00 : f32
    %9 = vector.broadcast %cst_7 : f32 to vector<8x256xf32>
    %10 = arith.maximumf %8, %9 : vector<8x256xf32>
    %11 = arith.truncf %10 : vector<8x256xf32> to vector<8x256xbf16>
    %c0_8 = arith.constant 0 : index
    %c0_9 = arith.constant 0 : index
    %12 = vector.load %arg6[%c0_8, %c0_9] : memref<8x256xbf16, #tpu.memory_space<vmem>>, vector<8x256xbf16>
    tpu.vector_store %arg6[%c0_8, %c0_9], %11 {strides = array<i32>} : memref<8x256xbf16, #tpu.memory_space<vmem>>, vector<8x256xbf16>,
    return
  }
  func.func @transform_0(%arg0: i32, %arg1: i32) -> (i32, i32) {
    %c0_i32 = arith.constant 0 : i32
    %c0_i32_0 = arith.constant 0 : i32
    return %arg0, %c0_i32 : i32, i32
  }
  func.func @transform_1(%arg0: i32, %arg1: i32) -> (i32, i32) {
    %c0_i32 = arith.constant 0 : i32
    %c0_i32_0 = arith.constant 0 : i32
    return %c0_i32, %arg1 : i32, i32
  }
  func.func @transform_2(%arg0: i32, %arg1: i32) -> (i32, i32) {
    %c0_i32 = arith.constant 0 : i32
    %c0_i32_0 = arith.constant 0 : i32
    return %c0_i32, %arg1 : i32, i32
  }
  func.func @transform_3(%arg0: i32, %arg1: i32) -> (i32, i32) {
    %c0_i32 = arith.constant 0 : i32
    %c0_i32_0 = arith.constant 0 : i32
    return %c0_i32, %arg1 : i32, i32
  }
  func.func @transform_4(%arg0: i32, %arg1: i32) -> (i32, i32) {
    %c0_i32 = arith.constant 0 : i32
    return %arg0, %arg1 : i32, i32
  }
}

</mosaic_0001>

<bundles_post_ra>
// kernel: image_classifier_forward.5
= control target key start
LH: loop header
LB: loop body
LE: loop exit
PB: predicated region body
PF: predicated region fallthrough
CT: control target
= control target key end

     0   :  { %9 = vsyncpa [#allocation3], 0  ;;  %s1441_s0 = inlined_call_operand.vmem [shape: bf16[512,48], index: 0, kind: input, shape index: {}]   ;;  %s1442_s1 = inlined_call_operand.hbm [shape: bf16[48,64], index: 1, kind: input, shape index: {}]   ;;  %s1443_s2 = inlined_call_operand.hbm [shape: f32[1,64], index: 2, kind: input, shape index: {}]   ;;  %s1444_s3 = inlined_call_operand.hbm [shape: f32[1,64], index: 3, kind: input, shape index: {}]   ;;  %s1445_s4 = inlined_call_operand.vmem [shape: bf16[512,64], index: 4, kind: output, shape index: {}]  }
   0x1   :  { %10 = vsyncpa [#allocation5], 0  ;;  %s1188_s15 = smov 0   ;;  %s1190_s16 = smov 0  }
   0x2   :  { %s1192_s17 = smov 0  }
   0x3 LB: > { %s194_s20 = sshll.u32 %s1443_s2, 4  ;;  %s840_s21 = sadd.s32 4294967295, %s1156_s17   ;;  %s1156_s17 = sphi %s1192_s17, %s16_s17   ;;  %s1152_s16 = sphi %s1190_s16, %s1450_s16   ;;  %s1148_s15 = sphi %s1188_s15, %s1449_s15   ;;  %s195_s20 = int_to_ptr.hbm [resolvable:$true] %s194_s20 }
   0x4   : > { %p842_p0 = scmp.ge.s32.totalorder %s1156_s17, 1  ;;  %p165_p1 = scmp.lt.s32.totalorder %s1156_s17, 3 }
   0x5   : > { %p1209_p2 = scmp.eq.s32.totalorder %s840_s21, 0  ;;  %s1158_s24 = smov [#allocation4]  }
   0x6   : > { %p1213_p3 = pnand %p842_p0, %p165_p1  ;;  %s196_s25 = sshll.u32 %s1158_s24, 4  ;;  %s197_s25 = int_to_ptr.vmem [resolvable:$true] %s196_s25 }
   0x7   : > { %s28_s27 = sadd.s32 1, %s1152_s16  ;;  %s178_s30 = sshll.u32 %s1442_s1, 4  ;;  %s179_s30 = int_to_ptr.hbm [resolvable:$true] %s178_s30 }
   0x8   : > { %p989_p4 = pneg %p1213_p3  ;;  %p30_p6 = scmp.ge.s32.totalorder %s28_s27, 2 }
   0x9   : > { %s1159_s5 = smov [#allocation2]   ;;  %s207_s9 = sshll.u32 %s1444_s3, 4  ;;  %s208_s9 = int_to_ptr.hbm [resolvable:$true] %s207_s9 }
   0xa   : > { %p1221_p5 = pnand %p1209_p2, %p989_p4  ;;  %s1452_s27 = smov (%p30_p6, %s28_s27), 0 }
   0xb   : > { %s180_s6 = sshll.u32 %s1159_s5, 4  ;;  %s1160_s10 = smov 64   ;;  %s181_s6 = int_to_ptr.vmem [resolvable:$true] %s180_s6 }
   0xc   : > { %995 = dma.hbm_to_vmem [thread:$0]  (!%p1221_p5), %s195_s20, 16, %s197_s25, [#allocation5]  }
   0xd   : > { %s1161_s11 = smov 4   ;;  %s1162_s12 = smov [#allocation6]  }
   0xe   : > { %992 = dma.hbm_to_vmem [thread:$0]  (!%p1221_p5), %s179_s30, 384, %s181_s6, [#allocation3], %s1160_s10, %s1160_s10, %s1161_s11  }
   0xf   : > { %s209_s13 = sshll.u32 %s1162_s12, 4  ;;  %231 = sbr.rel (%p1213_p3) target bundleno = 234 (0xea), region = 36  ;;  %s210_s13 = int_to_ptr.vmem [resolvable:$true] %s209_s13 }
  0x10   : > { %998 = dma.hbm_to_vmem [thread:$0]  (!%p1221_p5), %s208_s9, 16, %s210_s13, [#allocation5]  }
  0x14   : > { %1139 = dma.done.wait (%p1209_p2), [#allocation3], 384  }
  0x15   : > { %1141 = vsyncadd (%p1209_p2), [#allocation3], 4294966912 }
  0x16   : > { %1143 = dma.done.wait (%p1209_p2), [#allocation5], 32  }
  0x17   : > { %1145 = vsyncadd (%p1209_p2), [#allocation5], 4294967264  ;;  %s851_s14 = sshll.u32 %s1148_s15, 5  ;;  %v967_v0 = vld [vmem:[#allocation2 + $0x10] sm:$0xff]  ;;  %v966_v1 = vld [vmem:[#allocation2 + $0x8] sm:$0xff]  ;;  %vm423_vm0 = vcmask 392192  }
  0x18   : > { %p272_p7 = scmp.lt.s32.totalorder %s851_s14, 63  ;;  %477 = vmatpush.bf16.msra.mxu0 %v967_v0  ;;  %968 = vmatpush.bf16.msra.mxu1 %v967_v0  ;;  %v965_v2 = vld [vmem:[#allocation2] sm:$0xff]  ;;  %v1293_v19 = vld [vmem:[#allocation4] ss:$0 sm:$0xff]  ;;  %v1295_v20 = vld [vmem:[#allocation6] ss:$0 sm:$0xff] }
  0x19   : > { %969 = vmatpush.bf16.msra.mxu2 %v967_v0  ;;  %970 = vmatpush.bf16.msra.mxu3 %v967_v0  ;;  %vm697_vm1 = vcmask 519168  }
  0x1a   : > { %s1454_s14 = smov (!%p272_p7, %s851_s14), 63 }
  0x1b   : > { %s852_s18 = sshll.u32 %s1454_s14, 2 }
  0x1c   : > { %478 = vmatpush.bf16.msra.mxu0 %v966_v1  ;;  %971 = vmatpush.bf16.msra.mxu1 %v966_v1  ;;  %s1259_s15 = scalar_lea.vmem %s1441_s0, %s852_s18  ;;  %s1306_s23 = scalar_lea.vmem %s1445_s4, %s852_s18 }
  0x1d   : > { %972 = vmatpush.bf16.msra.mxu2 %v966_v1  ;;  %973 = vmatpush.bf16.msra.mxu3 %v966_v1  ;;  %v949_v3 = vld [vmem:[%s1259_s15] sm:$0xff]  ;;  %v950_v7 = vld [vmem:[%s1259_s15 + $0x8] sm:$0xff]  ;;  %v951_v11 = vld [vmem:[%s1259_s15 + $0x10] sm:$0xff] }
  0x1e   : > { %v953_v4 = vld [vmem:[%s1259_s15 + $0x20] sm:$0xff]  ;;  %v954_v8 = vld [vmem:[%s1259_s15 + $0x28] sm:$0xff]  ;;  %v955_v12 = vld [vmem:[%s1259_s15 + $0x30] sm:$0xff] }
  0x1f   : > { %v957_v5 = vld [vmem:[%s1259_s15 + $0x40] sm:$0xff]  ;;  %v958_v9 = vld [vmem:[%s1259_s15 + $0x48] sm:$0xff]  ;;  %v959_v13 = vld [vmem:[%s1259_s15 + $0x50] sm:$0xff] }
  0x20   : > { %479 = vmatpush.bf16.msra.mxu0 %v965_v2  ;;  %974 = vmatpush.bf16.msra.mxu1 %v965_v2  ;;  %v961_v6 = vld [vmem:[%s1259_s15 + $0x60] sm:$0xff]  ;;  %v962_v10 = vld [vmem:[%s1259_s15 + $0x68] sm:$0xff]  ;;  %v963_v14 = vld [vmem:[%s1259_s15 + $0x70] sm:$0xff] }
  0x21   : > { %975 = vmatpush.bf16.msra.mxu2 %v965_v2  ;;  %976 = vmatpush.bf16.msra.mxu3 %v965_v2  ;;  %v952_v15 = vld [vmem:[%s1259_s15 + $0x18] sm:$0xff] }
  0x22   : > { %v956_v16 = vld [vmem:[%s1259_s15 + $0x38] sm:$0xff] }
  0x23   : > { %931 = vmatmul.msk.bf16.vlgmr.msra.gmra.mxu0 %vm423_vm0, %v949_v3  ;;  %935 = vmatmul.msk.bf16.vlgmr.msra.gmra.mxu1 %vm423_vm0, %v953_v4  ;;  %v960_v17 = vld [vmem:[%s1259_s15 + $0x58] sm:$0xff] }
  0x24   : > { %939 = vmatmul.msk.bf16.vlgmr.msra.gmra.mxu2 %vm423_vm0, %v957_v5  ;;  %943 = vmatmul.msk.bf16.vlgmr.msra.gmra.mxu3 %vm423_vm0, %v961_v6  ;;  %v964_v18 = vld [vmem:[%s1259_s15 + $0x78] sm:$0xff] }
  0x33   : > { %932 = vmatmul.msk.bf16.gmra.mxu0 %vm423_vm0, %v950_v7  ;;  %936 = vmatmul.msk.bf16.gmra.mxu1 %vm423_vm0, %v954_v8 }
  0x34   : > { %940 = vmatmul.msk.bf16.gmra.mxu2 %vm423_vm0, %v958_v9  ;;  %944 = vmatmul.msk.bf16.gmra.mxu3 %vm423_vm0, %v962_v10 }
  0x43   : > { %933 = vmatmul.msk.bf16.gmra.mxu0 %vm423_vm0, %v951_v11  ;;  %937 = vmatmul.msk.bf16.gmra.mxu1 %vm423_vm0, %v955_v12 }
  0x44   : > { %941 = vmatmul.msk.bf16.gmra.mxu2 %vm423_vm0, %v959_v13  ;;  %945 = vmatmul.msk.bf16.gmra.mxu3 %vm423_vm0, %v963_v14 }
  0x53   : > { %934 = vmatmul.msk.bf16.gmra.mxu0 %vm423_vm0, %v952_v15  ;;  %938 = vmatmul.msk.bf16.gmra.mxu1 %vm423_vm0, %v956_v16 }
  0x54   : > { %942 = vmatmul.msk.bf16.gmra.mxu2 %vm423_vm0, %v960_v17  ;;  %946 = vmatmul.msk.bf16.gmra.mxu3 %vm423_vm0, %v964_v18 }
  0xa0   : > { %v481_v21 = vpop.f32.mrf.mxu0  ;;  %v501_v22 = vpop.f32.mrf.mxu1 }
  0xa1   : > { %v566_v23 = vmul.f32 %v1293_v19, %v481_v21  ;;  %v574_v24 = vmul.f32 %v1293_v19, %v501_v22 }
  0xa3   : > { %v601_v25 = vadd.f32 %v1295_v20, %v566_v23  ;;  %v609_v26 = vadd.f32 %v1295_v20, %v574_v24 }
  0xa5   : > { %v633_v27 = vmax.f32 %v601_v25, 0.0  ;;  %v641_v28 = vmax.f32 %v609_v26, 0.0 }
  0xa7   : > { %v665_v29 = vpack.c.bf16 %v633_v27, %v633_v27  ;;  %v673_v30 = vpack.c.bf16 %v641_v28, %v641_v28  ;;  %v521_v31 = vpop.f32.mrf.mxu2  ;;  %v541_v32 = vpop.f32.mrf.mxu3 }
  0xa8   : > { %v582_v33 = vmul.f32 %v1293_v19, %v521_v31  ;;  %v590_v34 = vmul.f32 %v1293_v19, %v541_v32  ;;  %v483_v35 = vpop.f32.mrf.mxu0  ;;  %v503_v36 = vpop.f32.mrf.mxu1 }
  0xa9   : > { %698 = vst.msk [vmem:[%s1306_s23] sm:$0xf] %vm697_vm1, %v665_v29  ;;  %v567_v37 = vmul.f32 %v1293_v19, %v483_v35  ;;  %v575_v38 = vmul.f32 %v1293_v19, %v503_v36 }
  0xaa   : > { %706 = vst.msk [vmem:[%s1306_s23 + $0x20] sm:$0xf] %vm697_vm1, %v673_v30  ;;  %v617_v39 = vadd.f32 %v1295_v20, %v582_v33  ;;  %v625_v40 = vadd.f32 %v1295_v20, %v590_v34 }
  0xab   : > { %v602_v41 = vadd.f32 %v1295_v20, %v567_v37  ;;  %v610_v42 = vadd.f32 %v1295_v20, %v575_v38 }
  0xac   : > { %v649_v43 = vmax.f32 %v617_v39, 0.0  ;;  %v657_v44 = vmax.f32 %v625_v40, 0.0 }
  0xad   : > { %v634_v45 = vmax.f32 %v602_v41, 0.0  ;;  %v642_v46 = vmax.f32 %v610_v42, 0.0 }
  0xae   : > { %v681_v47 = vpack.c.bf16 %v649_v43, %v649_v43  ;;  %v689_v48 = vpack.c.bf16 %v657_v44, %v657_v44 }
  0xaf   : > { %v666_v49 = vpack.c.bf16 %v634_v45, %v634_v45  ;;  %v674_v50 = vpack.c.bf16 %v642_v46, %v642_v46  ;;  %v523_v51 = vpop.f32.mrf.mxu2  ;;  %v543_v52 = vpop.f32.mrf.mxu3 }
  0xb0   : > { %714 = vst.msk [vmem:[%s1306_s23 + $0x40] sm:$0xf] %vm697_vm1, %v681_v47  ;;  %v583_v53 = vmul.f32 %v1293_v19, %v523_v51  ;;  %v591_v54 = vmul.f32 %v1293_v19, %v543_v52  ;;  %v486_v55 = vpop.f32.mrf.mxu0  ;;  %v506_v56 = vpop.f32.mrf.mxu1 }
  0xb1   : > { %722 = vst.msk [vmem:[%s1306_s23 + $0x60] sm:$0xf] %vm697_vm1, %v689_v48  ;;  %v568_v57 = vmul.f32 %v1293_v19, %v486_v55  ;;  %v576_v58 = vmul.f32 %v1293_v19, %v506_v56 }
  0xb2   : > { %699 = vst.msk [vmem:[%s1306_s23 + $0x4] sm:$0xf] %vm697_vm1, %v666_v49  ;;  %v618_v59 = vadd.f32 %v1295_v20, %v583_v53  ;;  %v626_v60 = vadd.f32 %v1295_v20, %v591_v54 }
  0xb3   : > { %707 = vst.msk [vmem:[%s1306_s23 + $0x24] sm:$0xf] %vm697_vm1, %v674_v50  ;;  %v603_v61 = vadd.f32 %v1295_v20, %v568_v57  ;;  %v611_v62 = vadd.f32 %v1295_v20, %v576_v58 }
  0xb4   : > { %v650_v63 = vmax.f32 %v618_v59, 0.0  ;;  %v658_v0 = vmax.f32 %v626_v60, 0.0 }
  0xb5   : > { %v635_v1 = vmax.f32 %v603_v61, 0.0  ;;  %v643_v2 = vmax.f32 %v611_v62, 0.0 }
  0xb6   : > { %v682_v3 = vpack.c.bf16 %v650_v63, %v650_v63  ;;  %v690_v4 = vpack.c.bf16 %v658_v0, %v658_v0 }
  0xb7   : > { %v667_v5 = vpack.c.bf16 %v635_v1, %v635_v1  ;;  %v675_v6 = vpack.c.bf16 %v643_v2, %v643_v2  ;;  %v526_v7 = vpop.f32.mrf.mxu2  ;;  %v546_v8 = vpop.f32.mrf.mxu3 }
  0xb8   : > { %715 = vst.msk [vmem:[%s1306_s23 + $0x44] sm:$0xf] %vm697_vm1, %v682_v3  ;;  %v584_v9 = vmul.f32 %v1293_v19, %v526_v7  ;;  %v592_v10 = vmul.f32 %v1293_v19, %v546_v8  ;;  %v488_v11 = vpop.f32.mrf.mxu0  ;;  %v508_v12 = vpop.f32.mrf.mxu1 }
  0xb9   : > { %723 = vst.msk [vmem:[%s1306_s23 + $0x64] sm:$0xf] %vm697_vm1, %v690_v4  ;;  %v569_v13 = vmul.f32 %v1293_v19, %v488_v11  ;;  %v577_v14 = vmul.f32 %v1293_v19, %v508_v12 }
  0xba   : > { %700 = vst.msk [vmem:[%s1306_s23 + $0x8] sm:$0xf] %vm697_vm1, %v667_v5  ;;  %v619_v15 = vadd.f32 %v1295_v20, %v584_v9  ;;  %v627_v16 = vadd.f32 %v1295_v20, %v592_v10 }
  0xbb   : > { %708 = vst.msk [vmem:[%s1306_s23 + $0x28] sm:$0xf] %vm697_vm1, %v675_v6  ;;  %v604_v17 = vadd.f32 %v1295_v20, %v569_v13  ;;  %v612_v18 = vadd.f32 %v1295_v20, %v577_v14 }
  0xbc   : > { %v651_v21 = vmax.f32 %v619_v15, 0.0  ;;  %v659_v22 = vmax.f32 %v627_v16, 0.0 }
  0xbd   : > { %v636_v23 = vmax.f32 %v604_v17, 0.0  ;;  %v644_v24 = vmax.f32 %v612_v18, 0.0 }
  0xbe   : > { %v683_v25 = vpack.c.bf16 %v651_v21, %v651_v21  ;;  %v691_v26 = vpack.c.bf16 %v659_v22, %v659_v22 }
  0xbf   : > { %v668_v27 = vpack.c.bf16 %v636_v23, %v636_v23  ;;  %v676_v28 = vpack.c.bf16 %v644_v24, %v644_v24  ;;  %v528_v29 = vpop.f32.mrf.mxu2  ;;  %v548_v30 = vpop.f32.mrf.mxu3 }
  0xc0   : > { %716 = vst.msk [vmem:[%s1306_s23 + $0x48] sm:$0xf] %vm697_vm1, %v683_v25  ;;  %v585_v31 = vmul.f32 %v1293_v19, %v528_v29  ;;  %v593_v32 = vmul.f32 %v1293_v19, %v548_v30  ;;  %v491_v33 = vpop.f32.mrf.mxu0  ;;  %v511_v34 = vpop.f32.mrf.mxu1 }
  0xc1   : > { %724 = vst.msk [vmem:[%s1306_s23 + $0x68] sm:$0xf] %vm697_vm1, %v691_v26  ;;  %v570_v35 = vmul.f32 %v1293_v19, %v491_v33  ;;  %v578_v36 = vmul.f32 %v1293_v19, %v511_v34 }
  0xc2   : > { %701 = vst.msk [vmem:[%s1306_s23 + $0xc] sm:$0xf] %vm697_vm1, %v668_v27  ;;  %v620_v37 = vadd.f32 %v1295_v20, %v585_v31  ;;  %v628_v38 = vadd.f32 %v1295_v20, %v593_v32 }
  0xc3   : > { %709 = vst.msk [vmem:[%s1306_s23 + $0x2c] sm:$0xf] %vm697_vm1, %v676_v28  ;;  %v605_v39 = vadd.f32 %v1295_v20, %v570_v35  ;;  %v613_v40 = vadd.f32 %v1295_v20, %v578_v36 }
  0xc4   : > { %v652_v41 = vmax.f32 %v620_v37, 0.0  ;;  %v660_v42 = vmax.f32 %v628_v38, 0.0 }
  0xc5   : > { %v637_v43 = vmax.f32 %v605_v39, 0.0  ;;  %v645_v44 = vmax.f32 %v613_v40, 0.0 }
  0xc6   : > { %v684_v45 = vpack.c.bf16 %v652_v41, %v652_v41  ;;  %v692_v46 = vpack.c.bf16 %v660_v42, %v660_v42 }
  0xc7   : > { %v669_v47 = vpack.c.bf16 %v637_v43, %v637_v43  ;;  %v677_v48 = vpack.c.bf16 %v645_v44, %v645_v44  ;;  %v531_v49 = vpop.f32.mrf.mxu2  ;;  %v551_v50 = vpop.f32.mrf.mxu3 }
  0xc8   : > { %717 = vst.msk [vmem:[%s1306_s23 + $0x4c] sm:$0xf] %vm697_vm1, %v684_v45  ;;  %v586_v51 = vmul.f32 %v1293_v19, %v531_v49  ;;  %v594_v52 = vmul.f32 %v1293_v19, %v551_v50  ;;  %v493_v53 = vpop.f32.mrf.mxu0  ;;  %v513_v54 = vpop.f32.mrf.mxu1 }
  0xc9   : > { %725 = vst.msk [vmem:[%s1306_s23 + $0x6c] sm:$0xf] %vm697_vm1, %v692_v46  ;;  %v571_v55 = vmul.f32 %v1293_v19, %v493_v53  ;;  %v579_v56 = vmul.f32 %v1293_v19, %v513_v54 }
  0xca   : > { %702 = vst.msk [vmem:[%s1306_s23 + $0x10] sm:$0xf] %vm697_vm1, %v669_v47  ;;  %v621_v57 = vadd.f32 %v1295_v20, %v586_v51  ;;  %v629_v58 = vadd.f32 %v1295_v20, %v594_v52 }
  0xcb   : > { %710 = vst.msk [vmem:[%s1306_s23 + $0x30] sm:$0xf] %vm697_vm1, %v677_v48  ;;  %v606_v59 = vadd.f32 %v1295_v20, %v571_v55  ;;  %v614_v60 = vadd.f32 %v1295_v20, %v579_v56 }
  0xcc   : > { %v653_v61 = vmax.f32 %v621_v57, 0.0  ;;  %v661_v62 = vmax.f32 %v629_v58, 0.0 }
  0xcd   : > { %v638_v63 = vmax.f32 %v606_v59, 0.0  ;;  %v646_v0 = vmax.f32 %v614_v60, 0.0 }
  0xce   : > { %v685_v1 = vpack.c.bf16 %v653_v61, %v653_v61  ;;  %v693_v2 = vpack.c.bf16 %v661_v62, %v661_v62 }
  0xcf   : > { %v670_v3 = vpack.c.bf16 %v638_v63, %v638_v63  ;;  %v678_v4 = vpack.c.bf16 %v646_v0, %v646_v0  ;;  %v533_v5 = vpop.f32.mrf.mxu2  ;;  %v553_v6 = vpop.f32.mrf.mxu3 }
  0xd0   : > { %718 = vst.msk [vmem:[%s1306_s23 + $0x50] sm:$0xf] %vm697_vm1, %v685_v1  ;;  %v587_v7 = vmul.f32 %v1293_v19, %v533_v5  ;;  %v595_v8 = vmul.f32 %v1293_v19, %v553_v6  ;;  %v496_v9 = vpop.f32.mrf.mxu0  ;;  %v516_v10 = vpop.f32.mrf.mxu1 }
  0xd1   : > { %726 = vst.msk [vmem:[%s1306_s23 + $0x70] sm:$0xf] %vm697_vm1, %v693_v2  ;;  %v572_v11 = vmul.f32 %v1293_v19, %v496_v9  ;;  %v580_v12 = vmul.f32 %v1293_v19, %v516_v10 }
  0xd2   : > { %703 = vst.msk [vmem:[%s1306_s23 + $0x14] sm:$0xf] %vm697_vm1, %v670_v3  ;;  %v622_v13 = vadd.f32 %v1295_v20, %v587_v7  ;;  %v630_v14 = vadd.f32 %v1295_v20, %v595_v8 }
  0xd3   : > { %711 = vst.msk [vmem:[%s1306_s23 + $0x34] sm:$0xf] %vm697_vm1, %v678_v4  ;;  %v607_v15 = vadd.f32 %v1295_v20, %v572_v11  ;;  %v615_v16 = vadd.f32 %v1295_v20, %v580_v12 }
  0xd4   : > { %v654_v17 = vmax.f32 %v622_v13, 0.0  ;;  %v662_v18 = vmax.f32 %v630_v14, 0.0 }
  0xd5   : > { %v639_v21 = vmax.f32 %v607_v15, 0.0  ;;  %v647_v22 = vmax.f32 %v615_v16, 0.0 }
  0xd6   : > { %v686_v23 = vpack.c.bf16 %v654_v17, %v654_v17  ;;  %v694_v24 = vpack.c.bf16 %v662_v18, %v662_v18 }
  0xd7   : > { %v671_v25 = vpack.c.bf16 %v639_v21, %v639_v21  ;;  %v679_v26 = vpack.c.bf16 %v647_v22, %v647_v22  ;;  %v536_v27 = vpop.f32.mrf.mxu2  ;;  %v556_v28 = vpop.f32.mrf.mxu3 }
  0xd8   : > { %719 = vst.msk [vmem:[%s1306_s23 + $0x54] sm:$0xf] %vm697_vm1, %v686_v23  ;;  %v588_v29 = vmul.f32 %v1293_v19, %v536_v27  ;;  %v596_v30 = vmul.f32 %v1293_v19, %v556_v28  ;;  %v498_v31 = vpop.f32.mrf.mxu0  ;;  %v518_v32 = vpop.f32.mrf.mxu1 }
  0xd9   : > { %727 = vst.msk [vmem:[%s1306_s23 + $0x74] sm:$0xf] %vm697_vm1, %v694_v24  ;;  %v573_v33 = vmul.f32 %v1293_v19, %v498_v31  ;;  %v581_v34 = vmul.f32 %v1293_v19, %v518_v32 }
  0xda   : > { %704 = vst.msk [vmem:[%s1306_s23 + $0x18] sm:$0xf] %vm697_vm1, %v671_v25  ;;  %v623_v35 = vadd.f32 %v1295_v20, %v588_v29  ;;  %v631_v36 = vadd.f32 %v1295_v20, %v596_v30 }
  0xdb   : > { %712 = vst.msk [vmem:[%s1306_s23 + $0x38] sm:$0xf] %vm697_vm1, %v679_v26  ;;  %v608_v37 = vadd.f32 %v1295_v20, %v573_v33  ;;  %v616_v38 = vadd.f32 %v1295_v20, %v581_v34 }
  0xdc   : > { %v655_v39 = vmax.f32 %v623_v35, 0.0  ;;  %v663_v40 = vmax.f32 %v631_v36, 0.0 }
  0xdd   : > { %v640_v41 = vmax.f32 %v608_v37, 0.0  ;;  %v648_v42 = vmax.f32 %v616_v38, 0.0 }
  0xde   : > { %v687_v43 = vpack.c.bf16 %v655_v39, %v655_v39  ;;  %v695_v44 = vpack.c.bf16 %v663_v40, %v663_v40 }
  0xdf   : > { %v672_v45 = vpack.c.bf16 %v640_v41, %v640_v41  ;;  %v680_v46 = vpack.c.bf16 %v648_v42, %v648_v42  ;;  %v538_v47 = vpop.f32.mrf.mxu2  ;;  %v558_v48 = vpop.f32.mrf.mxu3 }
  0xe0   : > { %720 = vst.msk [vmem:[%s1306_s23 + $0x58] sm:$0xf] %vm697_vm1, %v687_v43  ;;  %v589_v49 = vmul.f32 %v1293_v19, %v538_v47  ;;  %v597_v50 = vmul.f32 %v1293_v19, %v558_v48 }
  0xe1   : > { %728 = vst.msk [vmem:[%s1306_s23 + $0x78] sm:$0xf] %vm697_vm1, %v695_v44 }
  0xe2   : > { %705 = vst.msk [vmem:[%s1306_s23 + $0x1c] sm:$0xf] %vm697_vm1, %v672_v45  ;;  %v624_v51 = vadd.f32 %v1295_v20, %v589_v49  ;;  %v632_v52 = vadd.f32 %v1295_v20, %v597_v50 }
  0xe3   : > { %713 = vst.msk [vmem:[%s1306_s23 + $0x3c] sm:$0xf] %vm697_vm1, %v680_v46 }
  0xe4   : > { %v656_v53 = vmax.f32 %v624_v51, 0.0  ;;  %v664_v54 = vmax.f32 %v632_v52, 0.0 }
  0xe6   : > { %v688_v55 = vpack.c.bf16 %v656_v53, %v656_v53  ;;  %v696_v56 = vpack.c.bf16 %v664_v54, %v664_v54 }
  0xe8   : > { %721 = vst.msk [vmem:[%s1306_s23 + $0x5c] sm:$0xf] %vm697_vm1, %v688_v55 }
  0xe9   : > { %729 = vst.msk [vmem:[%s1306_s23 + $0x7c] sm:$0xf] %vm697_vm1, %v696_v56 }
  0xea PF: > { %s16_s17 = sadd.s32 1, %s1156_s17   ;;  %s1449_s15 = smov %s1152_s16 }
  0xeb   : > { %p13_p8 = scmp.ge.s32.totalorder %s16_s17, 4   ;;  %s1450_s16 = smov %s1452_s27 }
  0xed   :  { %15 = sbr.rel (!%p13_p8) target bundleno = 3 (0x3), region = 82 }
  0xf2   :  { %758 = vsyncpa [#allocation3], 1 }
  0xf3   :  { %760 = vsyncpa [#allocation3 + $0x1], 1 }
  0xf4   :  { %761 = vsyncpa [#allocation5], 1 }

// kernel: image_classifier_forward.6
= control target key start
LH: loop header
LB: loop body
LE: loop exit
PB: predicated region body
PF: predicated region fallthrough
CT: control target
= control target key end

     0   :  { %s2801_s1 = inlined_call_operand.vmem [shape: bf16[1024,128], index: 1, kind: input, shape index: {}]   ;;  %s2802_s0 = inlined_call_operand.vmem [shape: bf16[128,1024], index: 0, kind: input, shape index: {}]   ;;  %s2803_s2 = inlined_call_operand.vmem [shape: f32[1,128], index: 2, kind: input, shape index: {}]   ;;  %s2804_s3 = inlined_call_operand.vmem [shape: f32[1,128], index: 3, kind: input, shape index: {}]   ;;  %s2805_s4 = inlined_call_operand.vmem [shape: bf16[128,128], index: 4, kind: output, shape index: {}]  }
   0x1   :  { %v1980_v0 = vld [vmem:[%s2801_s1 + $0x38] sm:$0xff]  ;;  %v1979_v4 = vld [vmem:[%s2801_s1 + $0x30] sm:$0xff]  ;;  %v1978_v8 = vld [vmem:[%s2801_s1 + $0x28] sm:$0xff] }
   0x2   :  { %v1988_v1 = vld [vmem:[%s2801_s1 + $0x78] sm:$0xff]  ;;  %913 = vmatpush.bf16.msra.mxu0 %v1980_v0  ;;  %v1987_v5 = vld [vmem:[%s2801_s1 + $0x70] sm:$0xff]  ;;  %v1986_v9 = vld [vmem:[%s2801_s1 + $0x68] sm:$0xff] }
   0x3   :  { %v1996_v2 = vld [vmem:[%s2801_s1 + $0xb8] sm:$0xff]  ;;  %962 = vmatpush.bf16.msra.mxu1 %v1988_v1  ;;  %v1995_v6 = vld [vmem:[%s2801_s1 + $0xb0] sm:$0xff]  ;;  %v1994_v10 = vld [vmem:[%s2801_s1 + $0xa8] sm:$0xff] }
   0x4   :  { %v2004_v3 = vld [vmem:[%s2801_s1 + $0xf8] sm:$0xff]  ;;  %1011 = vmatpush.bf16.msra.mxu2 %v1996_v2  ;;  %v2003_v7 = vld [vmem:[%s2801_s1 + $0xf0] sm:$0xff]  ;;  %v2002_v11 = vld [vmem:[%s2801_s1 + $0xe8] sm:$0xff] }
   0x5   :  { %1060 = vmatpush.bf16.msra.mxu3 %v2004_v3  ;;  %v1977_v12 = vld [vmem:[%s2801_s1 + $0x20] sm:$0xff]  ;;  %v1976_v16 = vld [vmem:[%s2801_s1 + $0x18] sm:$0xff]  ;;  %v1975_v20 = vld [vmem:[%s2801_s1 + $0x10] sm:$0xff] }
   0x6   :  { %914 = vmatpush.bf16.msra.mxu0 %v1979_v4  ;;  %v1985_v13 = vld [vmem:[%s2801_s1 + $0x60] sm:$0xff]  ;;  %v1984_v17 = vld [vmem:[%s2801_s1 + $0x58] sm:$0xff]  ;;  %v1983_v21 = vld [vmem:[%s2801_s1 + $0x50] sm:$0xff] }
   0x7   :  { %963 = vmatpush.bf16.msra.mxu1 %v1987_v5  ;;  %v1993_v14 = vld [vmem:[%s2801_s1 + $0xa0] sm:$0xff]  ;;  %v1992_v18 = vld [vmem:[%s2801_s1 + $0x98] sm:$0xff]  ;;  %v1991_v22 = vld [vmem:[%s2801_s1 + $0x90] sm:$0xff] }
   0x8   :  { %1012 = vmatpush.bf16.msra.mxu2 %v1995_v6  ;;  %v2001_v15 = vld [vmem:[%s2801_s1 + $0xe0] sm:$0xff]  ;;  %v2000_v19 = vld [vmem:[%s2801_s1 + $0xd8] sm:$0xff]  ;;  %v1999_v23 = vld [vmem:[%s2801_s1 + $0xd0] sm:$0xff] }
   0x9   :  { %1061 = vmatpush.bf16.msra.mxu3 %v2003_v7  ;;  %v1974_v24 = vld [vmem:[%s2801_s1 + $0x8] sm:$0xff]  ;;  %v1973_v28 = vld [vmem:[%s2801_s1] sm:$0xff]  ;;  %v2028_v40 = vld [vmem:[%s2801_s1 + $0x1b8] sm:$0xff] }
   0xa   :  { %915 = vmatpush.bf16.msra.mxu0 %v1978_v8  ;;  %v1982_v25 = vld [vmem:[%s2801_s1 + $0x48] sm:$0xff]  ;;  %v1981_v29 = vld [vmem:[%s2801_s1 + $0x40] sm:$0xff]  ;;  %v2012_v41 = vld [vmem:[%s2801_s1 + $0x138] sm:$0xff] }
   0xb   :  { %964 = vmatpush.bf16.msra.mxu1 %v1986_v9  ;;  %v1990_v26 = vld [vmem:[%s2801_s1 + $0x88] sm:$0xff]  ;;  %v1989_v30 = vld [vmem:[%s2801_s1 + $0x80] sm:$0xff]  ;;  %v2036_v46 = vld [vmem:[%s2801_s1 + $0x1f8] sm:$0xff] }
   0xc   :  { %1013 = vmatpush.bf16.msra.mxu2 %v1994_v10  ;;  %v1998_v27 = vld [vmem:[%s2801_s1 + $0xc8] sm:$0xff]  ;;  %v1997_v31 = vld [vmem:[%s2801_s1 + $0xc0] sm:$0xff]  ;;  %v2020_v47 = vld [vmem:[%s2801_s1 + $0x178] sm:$0xff] }
   0xd   :  { %1062 = vmatpush.bf16.msra.mxu3 %v2002_v11  ;;  %v1399_v32 = vld [vmem:[%s2802_s0] sm:$0xf]  ;;  %v1909_v34 = vld [vmem:[%s2802_s0 + $0x4] sm:$0xf]  ;;  %v1407_v36 = vld [vmem:[%s2802_s0 + $0x8] sm:$0xf] }
   0xe   :  { %916 = vmatpush.bf16.msra.mxu0 %v1977_v12  ;;  %v1913_v33 = vld [vmem:[%s2802_s0 + $0x1c] sm:$0xf0]  ;;  %v1401_v35 = vld [vmem:[%s2802_s0 + $0x20] sm:$0xf0]  ;;  %v1914_v37 = vld [vmem:[%s2802_s0 + $0x24] sm:$0xf0] }
   0xf   :  { %965 = vmatpush.bf16.msra.mxu1 %v1985_v13  ;;  %v1910_v38 = vld [vmem:[%s2802_s0 + $0xc] sm:$0xf]  ;;  %v1400_v42 = vor.u32 %v1913_v33, %v1399_v32  ;;  %v1404_v43 = vor.u32 %v1909_v34, %v1401_v35  ;;  %v1408_v44 = vor.u32 %v1914_v37, %v1407_v36  ;;  %v2027_v48 = vld [vmem:[%s2801_s1 + $0x1b0] sm:$0xff]  ;;  %v1431_v56 = vld [vmem:[%s2802_s0 + $0x40] sm:$0xf] }
  0x10   :  { %1014 = vmatpush.bf16.msra.mxu2 %v1993_v14  ;;  %v1409_v39 = vld [vmem:[%s2802_s0 + $0x28] sm:$0xf0]  ;;  %v2011_v49 = vld [vmem:[%s2801_s1 + $0x130] sm:$0xff]  ;;  %v1921_v57 = vld [vmem:[%s2802_s0 + $0x5c] sm:$0xf0] }
  0x11   :  { %1063 = vmatpush.bf16.msra.mxu3 %v2001_v15  ;;  %v1412_v45 = vor.u32 %v1910_v38, %v1409_v39  ;;  %v2035_v50 = vld [vmem:[%s2801_s1 + $0x1f0] sm:$0xff]  ;;  %v2026_v52 = vld [vmem:[%s2801_s1 + $0x1a8] sm:$0xff]  ;;  %v1917_v58 = vld [vmem:[%s2802_s0 + $0x44] sm:$0xf]  ;;  %v1432_v0 = vor.u32 %v1921_v57, %v1431_v56 }
  0x12   :  { %917 = vmatpush.bf16.msra.mxu0 %v1976_v16  ;;  %v2019_v51 = vld [vmem:[%s2801_s1 + $0x170] sm:$0xff]  ;;  %v2010_v53 = vld [vmem:[%s2801_s1 + $0x128] sm:$0xff]  ;;  %v1433_v59 = vld [vmem:[%s2802_s0 + $0x60] sm:$0xf0] }
  0x13   :  { %966 = vmatpush.bf16.msra.mxu1 %v1984_v17  ;;  %v2034_v54 = vld [vmem:[%s2801_s1 + $0x1e8] sm:$0xff]  ;;  %v1436_v1 = vor.u32 %v1917_v58, %v1433_v59  ;;  %v2025_v4 = vld [vmem:[%s2801_s1 + $0x1a0] sm:$0xff]  ;;  %v2023_v36 = vld [vmem:[%s2801_s1 + $0x190] sm:$0xff] }
  0x14   :  { %1015 = vmatpush.bf16.msra.mxu2 %v1992_v18  ;;  %v2018_v55 = vld [vmem:[%s2801_s1 + $0x168] sm:$0xff]  ;;  %v2009_v5 = vld [vmem:[%s2801_s1 + $0x120] sm:$0xff]  ;;  %v2007_v37 = vld [vmem:[%s2801_s1 + $0x110] sm:$0xff] }
  0x15   :  { %1064 = vmatpush.bf16.msra.mxu3 %v2000_v19  ;;  %v1439_v60 = vld [vmem:[%s2802_s0 + $0x48] sm:$0xf]  ;;  %v1918_v62 = vld [vmem:[%s2802_s0 + $0x4c] sm:$0xf]  ;;  %v2033_v6 = vld [vmem:[%s2801_s1 + $0x1e0] sm:$0xff] }
  0x16   :  { %918 = vmatpush.bf16.msra.mxu0 %v1975_v20  ;;  %v1922_v61 = vld [vmem:[%s2802_s0 + $0x64] sm:$0xf0]  ;;  %v1441_v63 = vld [vmem:[%s2802_s0 + $0x68] sm:$0xf0]  ;;  %v2017_v7 = vld [vmem:[%s2801_s1 + $0x160] sm:$0xff] }
  0x17   :  { %967 = vmatpush.bf16.msra.mxu1 %v1983_v21  ;;  %v1440_v2 = vor.u32 %v1922_v61, %v1439_v60  ;;  %v1444_v3 = vor.u32 %v1918_v62, %v1441_v63  ;;  %v1463_v8 = vld [vmem:[%s2802_s0 + $0x80] sm:$0xf]  ;;  %v1925_v10 = vld [vmem:[%s2802_s0 + $0x84] sm:$0xf]  ;;  %v1471_v12 = vld [vmem:[%s2802_s0 + $0x88] sm:$0xf] }
  0x18   :  { %1016 = vmatpush.bf16.msra.mxu2 %v1991_v22  ;;  %v1929_v9 = vld [vmem:[%s2802_s0 + $0x9c] sm:$0xf0]  ;;  %v1465_v11 = vld [vmem:[%s2802_s0 + $0xa0] sm:$0xf0]  ;;  %v1930_v13 = vld [vmem:[%s2802_s0 + $0xa4] sm:$0xf0] }
  0x19   :  { %1065 = vmatpush.bf16.msra.mxu3 %v1999_v23  ;;  %v1926_v14 = vld [vmem:[%s2802_s0 + $0x8c] sm:$0xf]  ;;  %v1464_v16 = vor.u32 %v1929_v9, %v1463_v8  ;;  %v1468_v17 = vor.u32 %v1925_v10, %v1465_v11  ;;  %v1472_v18 = vor.u32 %v1930_v13, %v1471_v12  ;;  %v2024_v20 = vld [vmem:[%s2801_s1 + $0x198] sm:$0xff]  ;;  %v2031_v38 = vld [vmem:[%s2801_s1 + $0x1d0] sm:$0xff] }
  0x1a   :  { %919 = vmatpush.bf16.msra.mxu0 %v1974_v24  ;;  %v1473_v15 = vld [vmem:[%s2802_s0 + $0xa8] sm:$0xf0]  ;;  %v2008_v21 = vld [vmem:[%s2801_s1 + $0x118] sm:$0xff]  ;;  %v1495_v24 = vld [vmem:[%s2802_s0 + $0xc0] sm:$0xf] }
  0x1b   :  { %968 = vmatpush.bf16.msra.mxu1 %v1982_v25  ;;  %v1476_v19 = vor.u32 %v1926_v14, %v1473_v15  ;;  %v2032_v22 = vld [vmem:[%s2801_s1 + $0x1d8] sm:$0xff]  ;;  %v1937_v25 = vld [vmem:[%s2802_s0 + $0xdc] sm:$0xf0]  ;;  %v2015_v39 = vld [vmem:[%s2801_s1 + $0x150] sm:$0xff] }
  0x1c   :  { %1017 = vmatpush.bf16.msra.mxu2 %v1990_v26  ;;  %v2016_v23 = vld [vmem:[%s2801_s1 + $0x158] sm:$0xff]  ;;  %v1933_v26 = vld [vmem:[%s2802_s0 + $0xc4] sm:$0xf]  ;;  %v1496_v32 = vor.u32 %v1937_v25, %v1495_v24  ;;  %v1559_v56 = vld [vmem:[%s2802_s0 + $0x140] sm:$0xf] }
  0x1d   :  { %1066 = vmatpush.bf16.msra.mxu3 %v1998_v27  ;;  %v1497_v27 = vld [vmem:[%s2802_s0 + $0xe0] sm:$0xf0]  ;;  %v1953_v57 = vld [vmem:[%s2802_s0 + $0x15c] sm:$0xf0]  ;;  %v1567_v60 = vld [vmem:[%s2802_s0 + $0x148] sm:$0xf] }
  0x1e   :  { %920 = vmatpush.bf16.msra.mxu0 %v1973_v28  ;;  %v1503_v28 = vld [vmem:[%s2802_s0 + $0xc8] sm:$0xf]  ;;  %v1500_v33 = vor.u32 %v1933_v26, %v1497_v27  ;;  %v1949_v58 = vld [vmem:[%s2802_s0 + $0x144] sm:$0xf]  ;;  %v1950_v62 = vld [vmem:[%s2802_s0 + $0x14c] sm:$0xf] }
  0x1f   :  { %969 = vmatpush.bf16.msra.mxu1 %v1981_v29  ;;  %v1938_v29 = vld [vmem:[%s2802_s0 + $0xe4] sm:$0xf0]  ;;  %v1561_v59 = vld [vmem:[%s2802_s0 + $0x160] sm:$0xf0]  ;;  %v1569_v63 = vld [vmem:[%s2802_s0 + $0x168] sm:$0xf0] }
  0x20   :  { %1018 = vmatpush.bf16.msra.mxu2 %v1989_v30  ;;  %v1934_v30 = vld [vmem:[%s2802_s0 + $0xcc] sm:$0xf]  ;;  %v1504_v34 = vor.u32 %v1938_v29, %v1503_v28  ;;  %v1954_v61 = vld [vmem:[%s2802_s0 + $0x164] sm:$0xf0]  ;;  %v1591_v8 = vld [vmem:[%s2802_s0 + $0x180] sm:$0xf] }
  0x21   :  { %1067 = vmatpush.bf16.msra.mxu3 %v1997_v31  ;;  %921 = vmatmul.bf16.vlgmr.msra.gmra.mxu0 %v1400_v42  ;;  %v1505_v31 = vld [vmem:[%s2802_s0 + $0xe8] sm:$0xf0]  ;;  %v1941_v42 = vld [vmem:[%s2802_s0 + $0x104] sm:$0xf]  ;;  %v1961_v9 = vld [vmem:[%s2802_s0 + $0x19c] sm:$0xf0] }
  0x22   :  { %1109 = vmatpush.bf16.msrb.mxu0 %v2012_v41  ;;  %970 = vmatmul.bf16.vlgmr.msra.gmra.mxu1 %v1404_v43  ;;  %v1508_v35 = vor.u32 %v1934_v30, %v1505_v31  ;;  %v1945_v41 = vld [vmem:[%s2802_s0 + $0x11c] sm:$0xf0]  ;;  %v1529_v43 = vld [vmem:[%s2802_s0 + $0x120] sm:$0xf0]  ;;  %v1599_v12 = vld [vmem:[%s2802_s0 + $0x188] sm:$0xf] }
  0x23   :  { %1019 = vmatmul.bf16.vlgmr.msra.gmra.mxu2 %v1408_v44  ;;  %1158 = vmatpush.bf16.msrb.mxu1 %v2020_v47  ;;  %v1535_v44 = vld [vmem:[%s2802_s0 + $0x108] sm:$0xf]  ;;  %v1537_v47 = vld [vmem:[%s2802_s0 + $0x128] sm:$0xf0]  ;;  %v1957_v10 = vld [vmem:[%s2802_s0 + $0x184] sm:$0xf] }
  0x24   :  { %1207 = vmatpush.bf16.msrb.mxu2 %v2028_v40  ;;  %1068 = vmatmul.bf16.vlgmr.msra.gmra.mxu3 %v1412_v45  ;;  %v1527_v40 = vld [vmem:[%s2802_s0 + $0x100] sm:$0xf]  ;;  %v1946_v45 = vld [vmem:[%s2802_s0 + $0x124] sm:$0xf0]  ;;  %v1593_v11 = vld [vmem:[%s2802_s0 + $0x1a0] sm:$0xf0] }
  0x25   :  { %1256 = vmatpush.bf16.msrb.mxu3 %v2036_v46  ;;  %v1942_v46 = vld [vmem:[%s2802_s0 + $0x10c] sm:$0xf]  ;;  %v1962_v13 = vld [vmem:[%s2802_s0 + $0x1a4] sm:$0xf0] }
  0x26   :  { %1110 = vmatpush.bf16.msrb.mxu0 %v2011_v49  ;;  %v1532_v49 = vor.u32 %v1941_v42, %v1529_v43  ;;  %v1958_v14 = vld [vmem:[%s2802_s0 + $0x18c] sm:$0xf]  ;;  %v1631_v24 = vld [vmem:[%s2802_s0 + $0x1c8] sm:$0xf] }
  0x27   :  { %1159 = vmatpush.bf16.msrb.mxu1 %v2019_v51  ;;  %v1540_v51 = vor.u32 %v1942_v46, %v1537_v47  ;;  %v1601_v15 = vld [vmem:[%s2802_s0 + $0x1a8] sm:$0xf0]  ;;  %v1970_v25 = vld [vmem:[%s2802_s0 + $0x1e4] sm:$0xf0] }
  0x28   :  { %1208 = vmatpush.bf16.msrb.mxu2 %v2027_v48  ;;  %v1528_v48 = vor.u32 %v1945_v41, %v1527_v40  ;;  %v1966_v26 = vld [vmem:[%s2802_s0 + $0x1cc] sm:$0xf]  ;;  %v1632_v30 = vor.u32 %v1970_v25, %v1631_v24 }
  0x29   :  { %1257 = vmatpush.bf16.msrb.mxu3 %v2035_v50  ;;  %v1536_v50 = vor.u32 %v1946_v45, %v1535_v44  ;;  %v1633_v27 = vld [vmem:[%s2802_s0 + $0x1e8] sm:$0xf0] }
  0x2a   :  { %1111 = vmatpush.bf16.msrb.mxu0 %v2010_v53  ;;  %v2006_v53 = vld [vmem:[%s2801_s1 + $0x108] sm:$0xff]  ;;  %v1636_v31 = vor.u32 %v1966_v26, %v1633_v27 }
  0x2b   :  { %1160 = vmatpush.bf16.msrb.mxu1 %v2018_v55  ;;  %v2014_v55 = vld [vmem:[%s2801_s1 + $0x148] sm:$0xff] }
  0x2c   :  { %1209 = vmatpush.bf16.msrb.mxu2 %v2026_v52  ;;  %v2022_v52 = vld [vmem:[%s2801_s1 + $0x188] sm:$0xff] }
  0x2d   :  { %1258 = vmatpush.bf16.msrb.mxu3 %v2034_v54  ;;  %v2030_v54 = vld [vmem:[%s2801_s1 + $0x1c8] sm:$0xff] }
  0x2e   :  { %1112 = vmatpush.bf16.msrb.mxu0 %v2009_v5  ;;  %v2005_v5 = vld [vmem:[%s2801_s1 + $0x100] sm:$0xff] }
  0x2f   :  { %1161 = vmatpush.bf16.msrb.mxu1 %v2017_v7  ;;  %v2013_v7 = vld [vmem:[%s2801_s1 + $0x140] sm:$0xff] }
  0x30   :  { %1210 = vmatpush.bf16.msrb.mxu2 %v2025_v4  ;;  %v2021_v4 = vld [vmem:[%s2801_s1 + $0x180] sm:$0xff] }
  0x31   :  { %926 = vmatmul.bf16.gmra.mxu0 %v1432_v0  ;;  %1259 = vmatpush.bf16.msrb.mxu3 %v2033_v6  ;;  %v1560_v0 = vor.u32 %v1953_v57, %v1559_v56  ;;  %v2029_v6 = vld [vmem:[%s2801_s1 + $0x1c0] sm:$0xff]  ;;  %v1919_v56 = vld [vmem:[%s2802_s0 + $0x54] sm:$0xf] }
  0x32   :  { %975 = vmatmul.bf16.gmra.mxu1 %v1436_v1  ;;  %1113 = vmatpush.bf16.msrb.mxu0 %v2008_v21  ;;  %v1564_v1 = vor.u32 %v1949_v58, %v1561_v59  ;;  %v1969_v21 = vld [vmem:[%s2802_s0 + $0x1dc] sm:$0xf0]  ;;  %v1449_v57 = vld [vmem:[%s2802_s0 + $0x70] sm:$0xf0]  ;;  %v1455_v58 = vld [vmem:[%s2802_s0 + $0x58] sm:$0xf] }
  0x33   :  { %1024 = vmatmul.bf16.gmra.mxu2 %v1440_v2  ;;  %1162 = vmatpush.bf16.msrb.mxu1 %v2016_v23  ;;  %v1568_v2 = vor.u32 %v1954_v61, %v1567_v60  ;;  %v1625_v23 = vld [vmem:[%s2802_s0 + $0x1e0] sm:$0xf0]  ;;  %v1924_v59 = vld [vmem:[%s2802_s0 + $0x74] sm:$0xf0]  ;;  %v1920_v60 = vld [vmem:[%s2802_s0 + $0x5c] sm:$0xf] }
  0x34   :  { %1073 = vmatmul.bf16.gmra.mxu3 %v1444_v3  ;;  %1211 = vmatpush.bf16.msrb.mxu2 %v2024_v20  ;;  %v1572_v3 = vor.u32 %v1950_v62, %v1569_v63  ;;  %v1623_v20 = vld [vmem:[%s2802_s0 + $0x1c0] sm:$0xf]  ;;  %v1457_v61 = vld [vmem:[%s2802_s0 + $0x78] sm:$0xf0] }
  0x35   :  { %1260 = vmatpush.bf16.msrb.mxu3 %v2032_v22  ;;  %v1965_v22 = vld [vmem:[%s2802_s0 + $0x1c4] sm:$0xf]  ;;  %v1624_v28 = vor.u32 %v1969_v21, %v1623_v20  ;;  %v1487_v20 = vld [vmem:[%s2802_s0 + $0x98] sm:$0xf] }
  0x36   :  { %1114 = vmatpush.bf16.msrb.mxu0 %v2007_v37  ;;  %v1628_v29 = vor.u32 %v1965_v22, %v1625_v23  ;;  %v1916_v37 = vld [vmem:[%s2802_s0 + $0x34] sm:$0xf0]  ;;  %v1928_v22 = vld [vmem:[%s2802_s0 + $0x9c] sm:$0xf] }
  0x37   :  { %1163 = vmatpush.bf16.msrb.mxu1 %v2015_v39  ;;  %v1425_v39 = vld [vmem:[%s2802_s0 + $0x38] sm:$0xf0]  ;;  %v1932_v21 = vld [vmem:[%s2802_s0 + $0xb4] sm:$0xf0] }
  0x38   :  { %1212 = vmatpush.bf16.msrb.mxu2 %v2023_v36  ;;  %v1423_v36 = vld [vmem:[%s2802_s0 + $0x18] sm:$0xf]  ;;  %v1489_v23 = vld [vmem:[%s2802_s0 + $0xb8] sm:$0xf0] }
  0x39   :  { %1261 = vmatpush.bf16.msrb.mxu3 %v2031_v38  ;;  %v1912_v38 = vld [vmem:[%s2802_s0 + $0x1c] sm:$0xf]  ;;  %v1424_v44 = vor.u32 %v1916_v37, %v1423_v36 }
  0x3a   :  { %1115 = vmatpush.bf16.msrb.mxu0 %v2006_v53  ;;  %v1428_v45 = vor.u32 %v1912_v38, %v1425_v39 }
  0x3b   :  { %1164 = vmatpush.bf16.msrb.mxu1 %v2014_v55  ;;  %v1923_v55 = vld [vmem:[%s2802_s0 + $0x6c] sm:$0xf0] }
  0x3c   :  { %1213 = vmatpush.bf16.msrb.mxu2 %v2022_v52 }
  0x3d   :  { %1262 = vmatpush.bf16.msrb.mxu3 %v2030_v54  ;;  %v1447_v54 = vld [vmem:[%s2802_s0 + $0x50] sm:$0xf] }
  0x3e   :  { %1116 = vmatpush.bf16.msrb.mxu0 %v2005_v5  ;;  %v1456_v5 = vor.u32 %v1924_v59, %v1455_v58 }
  0x3f   :  { %1165 = vmatpush.bf16.msrb.mxu1 %v2013_v7 }
  0x40   :  { %1214 = vmatpush.bf16.msrb.mxu2 %v2021_v4 }
  0x41   :  { %931 = vmatmul.bf16.gmra.mxu0 %v1464_v16  ;;  %1263 = vmatpush.bf16.msrb.mxu3 %v2029_v6  ;;  %v1592_v16 = vor.u32 %v1961_v9, %v1591_v8  ;;  %v1460_v6 = vor.u32 %v1920_v60, %v1457_v61 }
  0x42   :  { %980 = vmatmul.bf16.gmra.mxu1 %v1468_v17  ;;  %v1596_v17 = vor.u32 %v1957_v10, %v1593_v11 }
  0x43   :  { %1029 = vmatmul.bf16.gmra.mxu2 %v1472_v18  ;;  %v1600_v18 = vor.u32 %v1962_v13, %v1599_v12 }
  0x44   :  { %1078 = vmatmul.bf16.gmra.mxu3 %v1476_v19  ;;  %v1604_v19 = vor.u32 %v1958_v14, %v1601_v15 }
  0x51   :  { %936 = vmatmul.bf16.gmra.mxu0 %v1496_v32  ;;  %v1415_v32 = vld [vmem:[%s2802_s0 + $0x10] sm:$0xf] }
  0x52   :  { %985 = vmatmul.bf16.gmra.mxu1 %v1500_v33  ;;  %v1915_v33 = vld [vmem:[%s2802_s0 + $0x2c] sm:$0xf0] }
  0x53   :  { %1034 = vmatmul.bf16.gmra.mxu2 %v1504_v34  ;;  %v1911_v34 = vld [vmem:[%s2802_s0 + $0x14] sm:$0xf]  ;;  %v1416_v40 = vor.u32 %v1915_v33, %v1415_v32  ;;  %v1492_v32 = vor.u32 %v1928_v22, %v1489_v23 }
  0x54   :  { %1083 = vmatmul.bf16.gmra.mxu3 %v1508_v35  ;;  %v1417_v35 = vld [vmem:[%s2802_s0 + $0x30] sm:$0xf0] }
  0x55   :  { %v1420_v41 = vor.u32 %v1911_v34, %v1417_v35 }
  0x61   :  { %941 = vmatmul.bf16.gmra.mxu0 %v1528_v48 }
  0x62   :  { %990 = vmatmul.bf16.gmra.mxu1 %v1532_v49 }
  0x63   :  { %1039 = vmatmul.bf16.gmra.mxu2 %v1536_v50 }
  0x64   :  { %1088 = vmatmul.bf16.gmra.mxu3 %v1540_v51 }
  0x71   :  { %946 = vmatmul.bf16.gmra.mxu0 %v1560_v0  ;;  %v1448_v0 = vor.u32 %v1923_v55, %v1447_v54 }
  0x72   :  { %995 = vmatmul.bf16.gmra.mxu1 %v1564_v1  ;;  %v1452_v1 = vor.u32 %v1919_v56, %v1449_v57 }
  0x73   :  { %1044 = vmatmul.bf16.gmra.mxu2 %v1568_v2 }
  0x74   :  { %1093 = vmatmul.bf16.gmra.mxu3 %v1572_v3 }
  0x81   :  { %951 = vmatmul.bf16.gmra.mxu0 %v1592_v16  ;;  %v1479_v16 = vld [vmem:[%s2802_s0 + $0x90] sm:$0xf] }
  0x82   :  { %1000 = vmatmul.bf16.gmra.mxu1 %v1596_v17  ;;  %v1931_v17 = vld [vmem:[%s2802_s0 + $0xac] sm:$0xf0] }
  0x83   :  { %1049 = vmatmul.bf16.gmra.mxu2 %v1600_v18  ;;  %v1927_v18 = vld [vmem:[%s2802_s0 + $0x94] sm:$0xf]  ;;  %v1480_v26 = vor.u32 %v1931_v17, %v1479_v16 }
  0x84   :  { %1098 = vmatmul.bf16.gmra.mxu3 %v1604_v19  ;;  %v1481_v19 = vld [vmem:[%s2802_s0 + $0xb0] sm:$0xf0] }
  0x85   :  { %v1484_v27 = vor.u32 %v1927_v18, %v1481_v19 }
  0x91   :  { %956 = vmatmul.bf16.gmra.mxu0 %v1624_v28 }
  0x92   :  { %1005 = vmatmul.bf16.gmra.mxu1 %v1628_v29 }
  0x93   :  { %1054 = vmatmul.bf16.gmra.mxu2 %v1632_v30 }
  0x94   :  { %1103 = vmatmul.bf16.gmra.mxu3 %v1636_v31  ;;  %v1488_v31 = vor.u32 %v1932_v21, %v1487_v20 }
  0x9e   :  { %v922_v42 = vpop.f32.mrf.mxu0 }
  0x9f   :  { %v971_v43 = vpop.f32.mrf.mxu1 }
  0xa0   :  { %v972_v46 = vadd.f32 %v971_v43, %v922_v42  ;;  %v1511_v42 = vld [vmem:[%s2802_s0 + $0xd0] sm:$0xf] }
  0xa1   :  { %1117 = vmatmul.bf16.vlgmr.msrb.gmra.mxu0 %v1416_v40  ;;  %v1939_v43 = vld [vmem:[%s2802_s0 + $0xec] sm:$0xf0] }
  0xa2   :  { %1166 = vmatmul.bf16.vlgmr.msrb.gmra.mxu1 %v1420_v41 }
  0xa3   :  { %1215 = vmatmul.bf16.vlgmr.msrb.gmra.mxu2 %v1424_v44  ;;  %v1935_v44 = vld [vmem:[%s2802_s0 + $0xd4] sm:$0xf] }
  0xa4   :  { %1264 = vmatmul.bf16.vlgmr.msrb.gmra.mxu3 %v1428_v45  ;;  %v1513_v45 = vld [vmem:[%s2802_s0 + $0xf0] sm:$0xf0] }
  0xa5   :  { %v1516_v54 = vor.u32 %v1935_v44, %v1513_v45 }
  0xa6   :  { %v1020_v47 = vpop.f32.mrf.mxu2  ;;  %v924_v50 = vpop.f32.mrf.mxu0 }
  0xa7   :  { %v1069_v48 = vpop.f32.mrf.mxu3  ;;  %v1021_v49 = vadd.f32 %v1020_v47, %v972_v46  ;;  %v973_v51 = vpop.f32.mrf.mxu1  ;;  %v1519_v46 = vld [vmem:[%s2802_s0 + $0xd8] sm:$0xf] }
  0xa8   :  { %v974_v52 = vadd.f32 %v973_v51, %v924_v50  ;;  %v1940_v47 = vld [vmem:[%s2802_s0 + $0xf4] sm:$0xf0] }
  0xa9   :  { %v2519_v53 = vadd.f32 %v1069_v48, %v1021_v49  ;;  %v1936_v48 = vld [vmem:[%s2802_s0 + $0xdc] sm:$0xf]  ;;  %v1520_v58 = vor.u32 %v1940_v47, %v1519_v46 }
  0xaa   :  { %v1521_v49 = vld [vmem:[%s2802_s0 + $0xf8] sm:$0xf0] }
  0xab   :  { %v1524_v59 = vor.u32 %v1936_v48, %v1521_v49 }
  0xae   :  { %v1022_v62 = vpop.f32.mrf.mxu2  ;;  %v927_v3 = vpop.f32.mrf.mxu0 }
  0xaf   :  { %v1071_v63 = vpop.f32.mrf.mxu3  ;;  %v1023_v2 = vadd.f32 %v1022_v62, %v974_v52  ;;  %v976_v4 = vpop.f32.mrf.mxu1  ;;  %v1512_v52 = vor.u32 %v1939_v43, %v1511_v42  ;;  %v1585_v42 = vld [vmem:[%s2802_s0 + $0x178] sm:$0xf0] }
  0xb0   :  { %v977_v7 = vadd.f32 %v976_v4, %v927_v3 }
  0xb1   :  { %v2545_v8 = vadd.f32 %v1071_v63, %v1023_v2  ;;  %1122 = vmatmul.bf16.gmra.mxu0 %v1448_v0 }
  0xb2   :  { %1171 = vmatmul.bf16.gmra.mxu1 %v1452_v1 }
  0xb3   :  { %1220 = vmatmul.bf16.gmra.mxu2 %v1456_v5  ;;  %v1543_v5 = vld [vmem:[%s2802_s0 + $0x110] sm:$0xf] }
  0xb4   :  { %1269 = vmatmul.bf16.gmra.mxu3 %v1460_v6  ;;  %v1947_v6 = vld [vmem:[%s2802_s0 + $0x12c] sm:$0xf0] }
  0xb5   :  { %v1544_v17 = vor.u32 %v1947_v6, %v1543_v5  ;;  %v1964_v5 = vld [vmem:[%s2802_s0 + $0x1b4] sm:$0xf0]  ;;  %v1960_v6 = vld [vmem:[%s2802_s0 + $0x19c] sm:$0xf] }
  0xb6   :  { %v1025_v9 = vpop.f32.mrf.mxu2  ;;  %v929_v12 = vpop.f32.mrf.mxu0 }
  0xb7   :  { %v1074_v10 = vpop.f32.mrf.mxu3  ;;  %v1026_v11 = vadd.f32 %v1025_v9, %v977_v7  ;;  %v978_v13 = vpop.f32.mrf.mxu1  ;;  %v1943_v7 = vld [vmem:[%s2802_s0 + $0x114] sm:$0xf] }
  0xb8   :  { %v979_v14 = vadd.f32 %v978_v13, %v929_v12  ;;  %v1545_v9 = vld [vmem:[%s2802_s0 + $0x130] sm:$0xf0]  ;;  %v1944_v12 = vld [vmem:[%s2802_s0 + $0x11c] sm:$0xf] }
  0xb9   :  { %v2547_v15 = vadd.f32 %v1074_v10, %v1026_v11  ;;  %v1551_v10 = vld [vmem:[%s2802_s0 + $0x118] sm:$0xf]  ;;  %v1553_v13 = vld [vmem:[%s2802_s0 + $0x138] sm:$0xf0]  ;;  %v1548_v18 = vor.u32 %v1943_v7, %v1545_v9 }
  0xba   :  { %v1948_v11 = vld [vmem:[%s2802_s0 + $0x134] sm:$0xf0]  ;;  %v1556_v23 = vor.u32 %v1944_v12, %v1553_v13  ;;  %v1617_v7 = vld [vmem:[%s2802_s0 + $0x1b8] sm:$0xf0] }
  0xbb   :  { %v1552_v22 = vor.u32 %v1948_v11, %v1551_v10 }
  0xbe   :  { %v1027_v24 = vpop.f32.mrf.mxu2  ;;  %v932_v29 = vpop.f32.mrf.mxu0 }
  0xbf   :  { %v1076_v25 = vpop.f32.mrf.mxu3  ;;  %v1028_v28 = vadd.f32 %v1027_v24, %v979_v14  ;;  %v981_v30 = vpop.f32.mrf.mxu1 }
  0xc0   :  { %v982_v33 = vadd.f32 %v981_v30, %v932_v29 }
  0xc1   :  { %v2573_v34 = vadd.f32 %v1076_v25, %v1028_v28  ;;  %1127 = vmatmul.bf16.gmra.mxu0 %v1480_v26 }
  0xc2   :  { %1176 = vmatmul.bf16.gmra.mxu1 %v1484_v27 }
  0xc3   :  { %1225 = vmatmul.bf16.gmra.mxu2 %v1488_v31 }
  0xc4   :  { %1274 = vmatmul.bf16.gmra.mxu3 %v1492_v32 }
  0xc6   :  { %v1030_v35 = vpop.f32.mrf.mxu2  ;;  %v934_v38 = vpop.f32.mrf.mxu0 }
  0xc7   :  { %v1079_v36 = vpop.f32.mrf.mxu3  ;;  %v1031_v37 = vadd.f32 %v1030_v35, %v982_v33  ;;  %v983_v39 = vpop.f32.mrf.mxu1  ;;  %v1575_v33 = vld [vmem:[%s2802_s0 + $0x150] sm:$0xf] }
  0xc8   :  { %v984_v40 = vadd.f32 %v983_v39, %v934_v38  ;;  %v1955_v35 = vld [vmem:[%s2802_s0 + $0x16c] sm:$0xf0]  ;;  %v1583_v38 = vld [vmem:[%s2802_s0 + $0x158] sm:$0xf] }
  0xc9   :  { %v2575_v41 = vadd.f32 %v1079_v36, %v1031_v37  ;;  %v1951_v36 = vld [vmem:[%s2802_s0 + $0x154] sm:$0xf]  ;;  %v1956_v39 = vld [vmem:[%s2802_s0 + $0x174] sm:$0xf0]  ;;  %v1576_v45 = vor.u32 %v1955_v35, %v1575_v33 }
  0xca   :  { %v1577_v37 = vld [vmem:[%s2802_s0 + $0x170] sm:$0xf0]  ;;  %v1647_v35 = vld [vmem:[%s2802_s0 + $0x1d8] sm:$0xf] }
  0xcb   :  { %v1580_v46 = vor.u32 %v1951_v36, %v1577_v37  ;;  %v1641_v33 = vld [vmem:[%s2802_s0 + $0x1f0] sm:$0xf0]  ;;  %v1972_v36 = vld [vmem:[%s2802_s0 + $0x1f4] sm:$0xf0]  ;;  %v1968_v37 = vld [vmem:[%s2802_s0 + $0x1dc] sm:$0xf] }
  0xce   :  { %v1032_v50 = vpop.f32.mrf.mxu2  ;;  %v937_v56 = vpop.f32.mrf.mxu0 }
  0xcf   :  { %v1081_v51 = vpop.f32.mrf.mxu3  ;;  %v1033_v55 = vadd.f32 %v1032_v50, %v984_v40  ;;  %v986_v57 = vpop.f32.mrf.mxu1  ;;  %v1952_v40 = vld [vmem:[%s2802_s0 + $0x15c] sm:$0xf]  ;;  %v1584_v50 = vor.u32 %v1956_v39, %v1583_v38 }
  0xd0   :  { %v987_v60 = vadd.f32 %v986_v57, %v937_v56  ;;  %v1649_v38 = vld [vmem:[%s2802_s0 + $0x1f8] sm:$0xf0] }
  0xd1   :  { %v2601_v61 = vadd.f32 %v1081_v51, %v1033_v55  ;;  %1132 = vmatmul.bf16.gmra.mxu0 %v1512_v52  ;;  %v1588_v51 = vor.u32 %v1952_v40, %v1585_v42 }
  0xd2   :  { %1181 = vmatmul.bf16.gmra.mxu1 %v1516_v54 }
  0xd3   :  { %1230 = vmatmul.bf16.gmra.mxu2 %v1520_v58 }
  0xd4   :  { %1279 = vmatmul.bf16.gmra.mxu3 %v1524_v59 }
  0xd6   :  { %v1035_v62 = vpop.f32.mrf.mxu2  ;;  %v939_v1 = vpop.f32.mrf.mxu0 }
  0xd7   :  { %v1084_v63 = vpop.f32.mrf.mxu3  ;;  %v1036_v0 = vadd.f32 %v1035_v62, %v987_v60  ;;  %v988_v2 = vpop.f32.mrf.mxu1 }
  0xd8   :  { %v989_v3 = vadd.f32 %v988_v2, %v939_v1  ;;  %v1959_v1 = vld [vmem:[%s2802_s0 + $0x194] sm:$0xf] }
  0xd9   :  { %v2603_v4 = vadd.f32 %v1084_v63, %v1036_v0  ;;  %v1607_v63 = vld [vmem:[%s2802_s0 + $0x190] sm:$0xf]  ;;  %v1609_v2 = vld [vmem:[%s2802_s0 + $0x1b0] sm:$0xf0] }
  0xda   :  { %v1963_v0 = vld [vmem:[%s2802_s0 + $0x1ac] sm:$0xf0]  ;;  %v1612_v12 = vor.u32 %v1959_v1, %v1609_v2 }
  0xdb   :  { %v1608_v11 = vor.u32 %v1963_v0, %v1607_v63 }
  0xde   :  { %v1037_v14 = vpop.f32.mrf.mxu2  ;;  %v942_v20 = vpop.f32.mrf.mxu0 }
  0xdf   :  { %v1086_v16 = vpop.f32.mrf.mxu3  ;;  %v1038_v19 = vadd.f32 %v1037_v14, %v989_v3  ;;  %v991_v21 = vpop.f32.mrf.mxu1  ;;  %v1615_v3 = vld [vmem:[%s2802_s0 + $0x198] sm:$0xf] }
  0xe0   :  { %v992_v24 = vadd.f32 %v991_v21, %v942_v20 }
  0xe1   :  { %v2629_v25 = vadd.f32 %v1086_v16, %v1038_v19  ;;  %1137 = vmatmul.bf16.gmra.mxu0 %v1544_v17  ;;  %v1616_v17 = vor.u32 %v1964_v5, %v1615_v3 }
  0xe2   :  { %1186 = vmatmul.bf16.gmra.mxu1 %v1548_v18  ;;  %v1620_v18 = vor.u32 %v1960_v6, %v1617_v7 }
  0xe3   :  { %1235 = vmatmul.bf16.gmra.mxu2 %v1552_v22 }
  0xe4   :  { %1284 = vmatmul.bf16.gmra.mxu3 %v1556_v23 }
  0xe6   :  { %v1040_v26 = vpop.f32.mrf.mxu2  ;;  %v944_v29 = vpop.f32.mrf.mxu0 }
  0xe7   :  { %v1089_v27 = vpop.f32.mrf.mxu3  ;;  %v1041_v28 = vadd.f32 %v1040_v26, %v992_v24  ;;  %v993_v30 = vpop.f32.mrf.mxu1 }
  0xe8   :  { %v994_v31 = vadd.f32 %v993_v30, %v944_v29  ;;  %v1639_v29 = vld [vmem:[%s2802_s0 + $0x1d0] sm:$0xf] }
  0xe9   :  { %v2631_v32 = vadd.f32 %v1089_v27, %v1041_v28  ;;  %v1971_v30 = vld [vmem:[%s2802_s0 + $0x1ec] sm:$0xf0] }
  0xea   :  { %v1640_v42 = vor.u32 %v1971_v30, %v1639_v29 }
  0xee   :  { %v1042_v43 = vpop.f32.mrf.mxu2  ;;  %v947_v48 = vpop.f32.mrf.mxu0 }
  0xef   :  { %v1091_v44 = vpop.f32.mrf.mxu3  ;;  %v1043_v47 = vadd.f32 %v1042_v43, %v994_v31  ;;  %v996_v49 = vpop.f32.mrf.mxu1  ;;  %v1967_v31 = vld [vmem:[%s2802_s0 + $0x1d4] sm:$0xf] }
  0xf0   :  { %v997_v52 = vadd.f32 %v996_v49, %v947_v48  ;;  %v1644_v43 = vor.u32 %v1967_v31, %v1641_v33  ;;  %v1652_v48 = vor.u32 %v1968_v37, %v1649_v38 }
  0xf1   :  { %v2657_v54 = vadd.f32 %v1091_v44, %v1043_v47  ;;  %1142 = vmatmul.bf16.gmra.mxu0 %v1576_v45  ;;  %v1648_v47 = vor.u32 %v1972_v36, %v1647_v35 }
  0xf2   :  { %1191 = vmatmul.bf16.gmra.mxu1 %v1580_v46 }
  0xf3   :  { %1240 = vmatmul.bf16.gmra.mxu2 %v1584_v50 }
  0xf4   :  { %1289 = vmatmul.bf16.gmra.mxu3 %v1588_v51 }
  0xf6   :  { %v1045_v55 = vpop.f32.mrf.mxu2  ;;  %v949_v58 = vpop.f32.mrf.mxu0 }
  0xf7   :  { %v1094_v56 = vpop.f32.mrf.mxu3  ;;  %v1046_v57 = vadd.f32 %v1045_v55, %v997_v52  ;;  %v998_v59 = vpop.f32.mrf.mxu1 }
  0xf8   :  { %v999_v60 = vadd.f32 %v998_v59, %v949_v58 }
  0xf9   :  { %v2659_v62 = vadd.f32 %v1094_v56, %v1046_v57 }
  0xfe   :  { %v1047_v9 = vpop.f32.mrf.mxu2  ;;  %v952_v14 = vpop.f32.mrf.mxu0 }
  0xff   :  { %v1096_v10 = vpop.f32.mrf.mxu3  ;;  %v1048_v13 = vadd.f32 %v1047_v9, %v999_v60  ;;  %v1001_v16 = vpop.f32.mrf.mxu1 }
 0x100   :  { %v1002_v19 = vadd.f32 %v1001_v16, %v952_v14  ;;  %v2724_v16 = vld [vmem:[%s2803_s2] ss:$0 sm:$0xff] }
 0x101   :  { %v2685_v20 = vadd.f32 %v1096_v10, %v1048_v13  ;;  %1147 = vmatmul.bf16.gmra.mxu0 %v1608_v11 }
 0x102   :  { %1196 = vmatmul.bf16.gmra.mxu1 %v1612_v12 }
 0x103   :  { %1245 = vmatmul.bf16.gmra.mxu2 %v1616_v17 }
 0x104   :  { %1294 = vmatmul.bf16.gmra.mxu3 %v1620_v18 }
 0x106   :  { %v1050_v21 = vpop.f32.mrf.mxu2  ;;  %v954_v24 = vpop.f32.mrf.mxu0 }
 0x107   :  { %v1099_v22 = vpop.f32.mrf.mxu3  ;;  %v1051_v23 = vadd.f32 %v1050_v21, %v1002_v19  ;;  %v1003_v26 = vpop.f32.mrf.mxu1 }
 0x108   :  { %v1004_v27 = vadd.f32 %v1003_v26, %v954_v24 }
 0x109   :  { %v2687_v28 = vadd.f32 %v1099_v22, %v1051_v23 }
 0x10e   :  { %v1052_v39 = vpop.f32.mrf.mxu2  ;;  %v957_v45 = vpop.f32.mrf.mxu0 }
 0x10f   :  { %v1101_v40 = vpop.f32.mrf.mxu3  ;;  %v1053_v44 = vadd.f32 %v1052_v39, %v1004_v27  ;;  %v1006_v46 = vpop.f32.mrf.mxu1 }
 0x110   :  { %v1007_v49 = vadd.f32 %v1006_v46, %v957_v45 }
 0x111   :  { %v2713_v50 = vadd.f32 %v1101_v40, %v1053_v44  ;;  %1152 = vmatmul.bf16.gmra.mxu0 %v1640_v42 }
 0x112   :  { %1201 = vmatmul.bf16.gmra.mxu1 %v1644_v43 }
 0x113   :  { %1250 = vmatmul.bf16.gmra.mxu2 %v1648_v47 }
 0x114   :  { %1299 = vmatmul.bf16.gmra.mxu3 %v1652_v48 }
 0x116   :  { %v1055_v51 = vpop.f32.mrf.mxu2  ;;  %v959_v56 = vpop.f32.mrf.mxu0 }
 0x117   :  { %v1104_v52 = vpop.f32.mrf.mxu3  ;;  %v1056_v55 = vadd.f32 %v1055_v51, %v1007_v49  ;;  %v1008_v57 = vpop.f32.mrf.mxu1 }
 0x118   :  { %v1009_v58 = vadd.f32 %v1008_v57, %v959_v56 }
 0x119   :  { %v2715_v59 = vadd.f32 %v1104_v52, %v1056_v55 }
 0x11e   :  { %v1057_v60 = vpop.f32.mrf.mxu2  ;;  %v1118_v1 = vpop.f32.mrf.mxu0 }
 0x11f   :  { %v1106_v63 = vpop.f32.mrf.mxu3  ;;  %v1058_v0 = vadd.f32 %v1057_v60, %v1009_v58  ;;  %v1167_v2 = vpop.f32.mrf.mxu1  ;;  %v1119_v5 = vadd.f32 %v1118_v1, %v2519_v53  ;;  %v2730_v53 = vld [vmem:[%s2804_s3] ss:$0 sm:$0xff] }
 0x121   :  { %v2717_v3 = vadd.f32 %v1106_v63, %v1058_v0  ;;  %v1168_v6 = vadd.f32 %v1167_v2, %v1119_v5 }
 0x126   :  { %v1216_v7 = vpop.f32.mrf.mxu2  ;;  %v1120_v11 = vpop.f32.mrf.mxu0 }
 0x127   :  { %v1265_v9 = vpop.f32.mrf.mxu3  ;;  %v1217_v10 = vadd.f32 %v1216_v7, %v1168_v6  ;;  %v1169_v12 = vpop.f32.mrf.mxu1  ;;  %v1121_v13 = vadd.f32 %v1120_v11, %v2545_v8 }
 0x129   :  { %v1266_v14 = vadd.f32 %v1265_v9, %v1217_v10  ;;  %v1170_v17 = vadd.f32 %v1169_v12, %v1121_v13 }
 0x12b   :  { %v1310_v21 = vmul.f32 %v2724_v16, %v1266_v14 }
 0x12d   :  { %v1329_v27 = vadd.f32 %v2730_v53, %v1310_v21 }
 0x12e   :  { %v1218_v18 = vpop.f32.mrf.mxu2  ;;  %v1123_v23 = vpop.f32.mrf.mxu0 }
 0x12f   :  { %v1267_v19 = vpop.f32.mrf.mxu3  ;;  %v1219_v22 = vadd.f32 %v1218_v18, %v1170_v17  ;;  %v1172_v24 = vpop.f32.mrf.mxu1  ;;  %v1124_v26 = vadd.f32 %v1123_v23, %v2547_v15  ;;  %v1345_v36 = vmax.f32 %v1329_v27, 0.0 }
 0x131   :  { %v1268_v8 = vadd.f32 %v1267_v19, %v1219_v22  ;;  %v1173_v31 = vadd.f32 %v1172_v24, %v1124_v26 }
 0x133   :  { %v1311_v29 = vmul.f32 %v2724_v16, %v1268_v8 }
 0x135   :  { %v1330_v30 = vadd.f32 %v2730_v53, %v1311_v29 }
 0x136   :  { %v1221_v33 = vpop.f32.mrf.mxu2  ;;  %v1125_v39 = vpop.f32.mrf.mxu0 }
 0x137   :  { %v1270_v35 = vpop.f32.mrf.mxu3  ;;  %v1346_v37 = vmax.f32 %v1330_v30, 0.0  ;;  %v1222_v38 = vadd.f32 %v1221_v33, %v1173_v31  ;;  %v1174_v40 = vpop.f32.mrf.mxu1  ;;  %v1126_v43 = vadd.f32 %v1125_v39, %v2573_v34 }
 0x139   :  { %v2040_v42 = vpack.c.bf16 %v1346_v37, %v1345_v36  ;;  %v1271_v15 = vadd.f32 %v1270_v35, %v1222_v38  ;;  %v1175_v44 = vadd.f32 %v1174_v40, %v1126_v43 }
 0x13b   :  { %2041 = vst [vmem:[%s2805_s4] sm:$0xff] %v2040_v42   ;;  %v1312_v47 = vmul.f32 %v2724_v16, %v1271_v15 }
 0x13d   :  { %v1331_v56 = vadd.f32 %v2730_v53, %v1312_v47 }
 0x13e   :  { %v1223_v45 = vpop.f32.mrf.mxu2  ;;  %v1128_v49 = vpop.f32.mrf.mxu0 }
 0x13f   :  { %v1272_v46 = vpop.f32.mrf.mxu3  ;;  %v1224_v48 = vadd.f32 %v1223_v45, %v1175_v44  ;;  %v1177_v51 = vpop.f32.mrf.mxu1  ;;  %v1129_v55 = vadd.f32 %v1128_v49, %v2575_v41  ;;  %v1347_v0 = vmax.f32 %v1331_v56, 0.0 }
 0x141   :  { %v1273_v52 = vadd.f32 %v1272_v46, %v1224_v48  ;;  %v1178_v58 = vadd.f32 %v1177_v51, %v1129_v55 }
 0x143   :  { %v1313_v34 = vmul.f32 %v2724_v16, %v1273_v52 }
 0x145   :  { %v1332_v57 = vadd.f32 %v2730_v53, %v1313_v34 }
 0x146   :  { %v1226_v60 = vpop.f32.mrf.mxu2  ;;  %v1130_v5 = vpop.f32.mrf.mxu0 }
 0x147   :  { %v1275_v63 = vpop.f32.mrf.mxu3  ;;  %v1348_v1 = vmax.f32 %v1332_v57, 0.0  ;;  %v1227_v2 = vadd.f32 %v1226_v60, %v1178_v58  ;;  %v1179_v6 = vpop.f32.mrf.mxu1  ;;  %v1131_v9 = vadd.f32 %v1130_v5, %v2601_v61 }
 0x149   :  { %v2045_v7 = vpack.c.bf16 %v1348_v1, %v1347_v0  ;;  %v1276_v41 = vadd.f32 %v1275_v63, %v1227_v2  ;;  %v1180_v10 = vadd.f32 %v1179_v6, %v1131_v9 }
 0x14b   :  { %2077 = vst [vmem:[%s2805_s4 + $0x8] sm:$0xff] %v2045_v7   ;;  %v1314_v13 = vmul.f32 %v2724_v16, %v1276_v41 }
 0x14d   :  { %v1333_v22 = vadd.f32 %v2730_v53, %v1314_v13 }
 0x14e   :  { %v1228_v11 = vpop.f32.mrf.mxu2  ;;  %v1133_v17 = vpop.f32.mrf.mxu0 }
 0x14f   :  { %v1277_v12 = vpop.f32.mrf.mxu3  ;;  %v1229_v14 = vadd.f32 %v1228_v11, %v1180_v10  ;;  %v1182_v18 = vpop.f32.mrf.mxu1  ;;  %v1134_v21 = vadd.f32 %v1133_v17, %v2603_v4  ;;  %v1349_v27 = vmax.f32 %v1333_v22, 0.0 }
 0x151   :  { %v1278_v19 = vadd.f32 %v1277_v12, %v1229_v14  ;;  %v1183_v24 = vadd.f32 %v1182_v18, %v1134_v21 }
 0x153   :  { %v1315_v61 = vmul.f32 %v2724_v16, %v1278_v19 }
 0x155   :  { %v1334_v23 = vadd.f32 %v2730_v53, %v1315_v61 }
 0x156   :  { %v1231_v8 = vpop.f32.mrf.mxu2  ;;  %v1135_v31 = vpop.f32.mrf.mxu0 }
 0x157   :  { %v1280_v26 = vpop.f32.mrf.mxu3  ;;  %v1350_v29 = vmax.f32 %v1334_v23, 0.0  ;;  %v1232_v30 = vadd.f32 %v1231_v8, %v1183_v24  ;;  %v1184_v33 = vpop.f32.mrf.mxu1  ;;  %v1136_v36 = vadd.f32 %v1135_v31, %v2629_v25 }
 0x159   :  { %v2050_v35 = vpack.c.bf16 %v1350_v29, %v1349_v27  ;;  %v1281_v4 = vadd.f32 %v1280_v26, %v1232_v30  ;;  %v1185_v37 = vadd.f32 %v1184_v33, %v1136_v36 }
 0x15b   :  { %2078 = vst [vmem:[%s2805_s4 + $0x10] sm:$0xff] %v2050_v35   ;;  %v1316_v40 = vmul.f32 %v2724_v16, %v1281_v4 }
 0x15d   :  { %v1335_v46 = vadd.f32 %v2730_v53, %v1316_v40 }
 0x15e   :  { %v1233_v38 = vpop.f32.mrf.mxu2  ;;  %v1138_v43 = vpop.f32.mrf.mxu0 }
 0x15f   :  { %v1282_v39 = vpop.f32.mrf.mxu3  ;;  %v1234_v42 = vadd.f32 %v1233_v38, %v1185_v37  ;;  %v1187_v15 = vpop.f32.mrf.mxu1  ;;  %v1139_v45 = vadd.f32 %v1138_v43, %v2631_v32  ;;  %v1351_v52 = vmax.f32 %v1335_v46, 0.0 }
 0x161   :  { %v1283_v44 = vadd.f32 %v1282_v39, %v1234_v42  ;;  %v1188_v48 = vadd.f32 %v1187_v15, %v1139_v45 }
 0x163   :  { %v1317_v25 = vmul.f32 %v2724_v16, %v1283_v44 }
 0x165   :  { %v1336_v47 = vadd.f32 %v2730_v53, %v1317_v25 }
 0x166   :  { %v1236_v49 = vpop.f32.mrf.mxu2  ;;  %v1140_v34 = vpop.f32.mrf.mxu0 }
 0x167   :  { %v1285_v51 = vpop.f32.mrf.mxu3  ;;  %v1352_v55 = vmax.f32 %v1336_v47, 0.0  ;;  %v1237_v56 = vadd.f32 %v1236_v49, %v1188_v48  ;;  %v1189_v57 = vpop.f32.mrf.mxu1  ;;  %v1141_v60 = vadd.f32 %v1140_v34, %v2657_v54 }
 0x169   :  { %v2055_v58 = vpack.c.bf16 %v1352_v55, %v1351_v52  ;;  %v1286_v32 = vadd.f32 %v1285_v51, %v1237_v56  ;;  %v1190_v63 = vadd.f32 %v1189_v57, %v1141_v60 }
 0x16b   :  { %2079 = vst [vmem:[%s2805_s4 + $0x18] sm:$0xff] %v2055_v58   ;;  %v1318_v2 = vmul.f32 %v2724_v16, %v1286_v32 }
 0x16d   :  { %v1337_v10 = vadd.f32 %v2730_v53, %v1318_v2 }
 0x16e   :  { %v1238_v0 = vpop.f32.mrf.mxu2  ;;  %v1143_v6 = vpop.f32.mrf.mxu0 }
 0x16f   :  { %v1287_v1 = vpop.f32.mrf.mxu3  ;;  %v1239_v5 = vadd.f32 %v1238_v0, %v1190_v63  ;;  %v1192_v7 = vpop.f32.mrf.mxu1  ;;  %v1144_v41 = vadd.f32 %v1143_v6, %v2659_v62  ;;  %v1353_v17 = vmax.f32 %v1337_v10, 0.0 }
 0x171   :  { %v1288_v9 = vadd.f32 %v1287_v1, %v1239_v5  ;;  %v1193_v12 = vadd.f32 %v1192_v7, %v1144_v41 }
 0x173   :  { %v1319_v54 = vmul.f32 %v2724_v16, %v1288_v9 }
 0x175   :  { %v1338_v11 = vadd.f32 %v2730_v53, %v1319_v54 }
 0x176   :  { %v1241_v13 = vpop.f32.mrf.mxu2  ;;  %v1145_v21 = vpop.f32.mrf.mxu0 }
 0x177   :  { %v1290_v14 = vpop.f32.mrf.mxu3  ;;  %v1354_v18 = vmax.f32 %v1338_v11, 0.0  ;;  %v1242_v19 = vadd.f32 %v1241_v13, %v1193_v12  ;;  %v1194_v22 = vpop.f32.mrf.mxu1  ;;  %v1146_v23 = vadd.f32 %v1145_v21, %v2685_v20 }
 0x179   :  { %v2060_v61 = vpack.c.bf16 %v1354_v18, %v1353_v17  ;;  %v1291_v62 = vadd.f32 %v1290_v14, %v1242_v19  ;;  %v1195_v24 = vadd.f32 %v1194_v22, %v1146_v23 }
 0x17b   :  { %2080 = vst [vmem:[%s2805_s4 + $0x20] sm:$0xff] %v2060_v61   ;;  %v1320_v27 = vmul.f32 %v2724_v16, %v1291_v62 }
 0x17d   :  { %v1339_v36 = vadd.f32 %v2730_v53, %v1320_v27 }
 0x17e   :  { %v1243_v8 = vpop.f32.mrf.mxu2  ;;  %v1148_v30 = vpop.f32.mrf.mxu0 }
 0x17f   :  { %v1292_v26 = vpop.f32.mrf.mxu3  ;;  %v1244_v29 = vadd.f32 %v1243_v8, %v1195_v24  ;;  %v1197_v31 = vpop.f32.mrf.mxu1  ;;  %v1149_v35 = vadd.f32 %v1148_v30, %v2687_v28  ;;  %v1355_v40 = vmax.f32 %v1339_v36, 0.0 }
 0x181   :  { %v1293_v33 = vadd.f32 %v1292_v26, %v1244_v29  ;;  %v1198_v37 = vadd.f32 %v1197_v31, %v1149_v35 }
 0x183   :  { %v1321_v20 = vmul.f32 %v2724_v16, %v1293_v33 }
 0x185   :  { %v1340_v4 = vadd.f32 %v2730_v53, %v1321_v20 }
 0x186   :  { %v1246_v38 = vpop.f32.mrf.mxu2  ;;  %v1150_v15 = vpop.f32.mrf.mxu0 }
 0x187   :  { %v1295_v39 = vpop.f32.mrf.mxu3  ;;  %v1356_v42 = vmax.f32 %v1340_v4, 0.0  ;;  %v1247_v43 = vadd.f32 %v1246_v38, %v1198_v37  ;;  %v1199_v44 = vpop.f32.mrf.mxu1  ;;  %v1151_v46 = vadd.f32 %v1150_v15, %v2713_v50 }
 0x189   :  { %v2065_v45 = vpack.c.bf16 %v1356_v42, %v1355_v40  ;;  %v1296_v28 = vadd.f32 %v1295_v39, %v1247_v43  ;;  %v1200_v25 = vadd.f32 %v1199_v44, %v1151_v46 }
 0x18b   :  { %2081 = vst [vmem:[%s2805_s4 + $0x28] sm:$0xff] %v2065_v45   ;;  %v1322_v49 = vmul.f32 %v2724_v16, %v1296_v28 }
 0x18d   :  { %v1341_v57 = vadd.f32 %v2730_v53, %v1322_v49 }
 0x18e   :  { %v1248_v47 = vpop.f32.mrf.mxu2  ;;  %v1153_v52 = vpop.f32.mrf.mxu0 }
 0x18f   :  { %v1297_v48 = vpop.f32.mrf.mxu3  ;;  %v1249_v51 = vadd.f32 %v1248_v47, %v1200_v25  ;;  %v1154_v56 = vadd.f32 %v1153_v52, %v2715_v59  ;;  %v1202_v34 = vpop.f32.mrf.mxu1  ;;  %v1357_v0 = vmax.f32 %v1341_v57, 0.0 }
 0x191   :  { %v1298_v55 = vadd.f32 %v1297_v48, %v1249_v51  ;;  %v1203_v60 = vadd.f32 %v1202_v34, %v1154_v56 }
 0x193   :  { %v1323_v50 = vmul.f32 %v2724_v16, %v1298_v55 }
 0x195   :  { %v1342_v58 = vadd.f32 %v2730_v53, %v1323_v50 }
 0x196   :  { %v1251_v32 = vpop.f32.mrf.mxu2  ;;  %v1155_v5 = vpop.f32.mrf.mxu0 }
 0x197   :  { %v1300_v63 = vpop.f32.mrf.mxu3  ;;  %v1358_v1 = vmax.f32 %v1342_v58, 0.0  ;;  %v1252_v2 = vadd.f32 %v1251_v32, %v1203_v60  ;;  %v1156_v7 = vadd.f32 %v1155_v5, %v2717_v3  ;;  %v1204_v9 = vpop.f32.mrf.mxu1 }
 0x199   :  { %v2070_v6 = vpack.c.bf16 %v1358_v1, %v1357_v0  ;;  %v1301_v59 = vadd.f32 %v1300_v63, %v1252_v2  ;;  %v1205_v41 = vadd.f32 %v1204_v9, %v1156_v7 }
 0x19b   :  { %2082 = vst [vmem:[%s2805_s4 + $0x30] sm:$0xff] %v2070_v6   ;;  %v1324_v54 = vmul.f32 %v2724_v16, %v1301_v59 }
 0x19d   :  { %v1343_v14 = vadd.f32 %v2730_v53, %v1324_v54 }
 0x19e   :  { %v1253_v10 = vpop.f32.mrf.mxu2 }
 0x19f   :  { %v1254_v11 = vadd.f32 %v1253_v10, %v1205_v41  ;;  %v1302_v12 = vpop.f32.mrf.mxu3  ;;  %v1359_v3 = vmax.f32 %v1343_v14, 0.0 }
 0x1a1   :  { %v1303_v13 = vadd.f32 %v1302_v12, %v1254_v11 }
 0x1a3   :  { %v1325_v17 = vmul.f32 %v2724_v16, %v1303_v13 }
 0x1a5   :  { %v1344_v18 = vadd.f32 %v2730_v53, %v1325_v17 }
 0x1a7   :  { %v1360_v19 = vmax.f32 %v1344_v18, 0.0 }
 0x1a9   :  { %v2075_v21 = vpack.c.bf16 %v1360_v19, %v1359_v3 }
 0x1ab   :  { %2083 = vst [vmem:[%s2805_s4 + $0x38] sm:$0xff] %v2075_v21  }

// kernel: image_classifier_forward.7
= control target key start
LH: loop header
LB: loop body
LE: loop exit
PB: predicated region body
PF: predicated region fallthrough
CT: control target
= control target key end

     0   :  { %s5794_s1 = inlined_call_operand.vmem [shape: bf16[2048,256], index: 1, kind: input, shape index: {}]   ;;  %s5795_s0 = inlined_call_operand.vmem [shape: bf16[32,2048], index: 0, kind: input, shape index: {}]   ;;  %s5796_s2 = inlined_call_operand.vmem [shape: f32[1,256], index: 2, kind: input, shape index: {}]   ;;  %s5797_s3 = inlined_call_operand.vmem [shape: f32[1,256], index: 3, kind: input, shape index: {}]   ;;  %s5798_s4 = inlined_call_operand.vmem [shape: bf16[32,256], index: 4, kind: output, shape index: {}]  }
   0x1   :  { %v2587_v0 = vld [vmem:[%s5794_s1 + $0x70] sm:$0xf]  ;;  %v3600_v1 = vld [vmem:[%s5794_s1 + $0x74] sm:$0xf0]  ;;  %v2579_v11 = vld [vmem:[%s5794_s1 + $0x60] sm:$0xf] }
   0x2   :  { %v2651_v2 = vld [vmem:[%s5794_s1 + $0xf0] sm:$0xf]  ;;  %v2588_v3 = vor.u32 %v3600_v1, %v2587_v0  ;;  %v3616_v4 = vld [vmem:[%s5794_s1 + $0xf4] sm:$0xf0]  ;;  %v3598_v13 = vld [vmem:[%s5794_s1 + $0x64] sm:$0xf0] }
   0x3   :  { %v2715_v5 = vld [vmem:[%s5794_s1 + $0x170] sm:$0xf]  ;;  %v3632_v6 = vld [vmem:[%s5794_s1 + $0x174] sm:$0xf0]  ;;  %v2652_v7 = vor.u32 %v3616_v4, %v2651_v2  ;;  %v2643_v14 = vld [vmem:[%s5794_s1 + $0xe0] sm:$0xf]  ;;  %v2580_v16 = vor.u32 %v3598_v13, %v2579_v11 }
   0x4   :  { %v2716_v8 = vor.u32 %v3632_v6, %v2715_v5  ;;  %v2779_v9 = vld [vmem:[%s5794_s1 + $0x1f0] sm:$0xf]  ;;  %v3648_v10 = vld [vmem:[%s5794_s1 + $0x1f4] sm:$0xf0]  ;;  %1745 = vmatpush.bf16.msra.mxu0 %v2588_v3  ;;  %v3614_v15 = vld [vmem:[%s5794_s1 + $0xe4] sm:$0xf0] }
   0x5   :  { %v2780_v12 = vor.u32 %v3648_v10, %v2779_v9  ;;  %1764 = vmatpush.bf16.msra.mxu1 %v2652_v7  ;;  %v2644_v17 = vor.u32 %v3614_v15, %v2643_v14  ;;  %v2707_v18 = vld [vmem:[%s5794_s1 + $0x160] sm:$0xf]  ;;  %v3630_v19 = vld [vmem:[%s5794_s1 + $0x164] sm:$0xf0]  ;;  %v2571_v23 = vld [vmem:[%s5794_s1 + $0x50] sm:$0xf] }
   0x6   :  { %1783 = vmatpush.bf16.msra.mxu2 %v2716_v8  ;;  %v2771_v20 = vld [vmem:[%s5794_s1 + $0x1e0] sm:$0xf]  ;;  %v2708_v21 = vor.u32 %v3630_v19, %v2707_v18  ;;  %v3646_v22 = vld [vmem:[%s5794_s1 + $0x1e4] sm:$0xf0]  ;;  %v3596_v24 = vld [vmem:[%s5794_s1 + $0x54] sm:$0xf0] }
   0x7   :  { %1802 = vmatpush.bf16.msra.mxu3 %v2780_v12  ;;  %v2772_v25 = vor.u32 %v3646_v22, %v2771_v20  ;;  %v2635_v26 = vld [vmem:[%s5794_s1 + $0xd0] sm:$0xf]  ;;  %v3612_v27 = vld [vmem:[%s5794_s1 + $0xd4] sm:$0xf0]  ;;  %v2572_v29 = vor.u32 %v3596_v24, %v2571_v23  ;;  %v2563_v35 = vld [vmem:[%s5794_s1 + $0x40] sm:$0xf] }
   0x8   :  { %v2699_v28 = vld [vmem:[%s5794_s1 + $0x150] sm:$0xf]  ;;  %1746 = vmatpush.bf16.msra.mxu0 %v2580_v16  ;;  %v3628_v30 = vld [vmem:[%s5794_s1 + $0x154] sm:$0xf0]  ;;  %v2636_v33 = vor.u32 %v3612_v27, %v2635_v26  ;;  %v3594_v36 = vld [vmem:[%s5794_s1 + $0x44] sm:$0xf0] }
   0x9   :  { %v2763_v31 = vld [vmem:[%s5794_s1 + $0x1d0] sm:$0xf]  ;;  %v3644_v32 = vld [vmem:[%s5794_s1 + $0x1d4] sm:$0xf0]  ;;  %1765 = vmatpush.bf16.msra.mxu1 %v2644_v17  ;;  %v2700_v34 = vor.u32 %v3628_v30, %v2699_v28  ;;  %v2627_v37 = vld [vmem:[%s5794_s1 + $0xc0] sm:$0xf]  ;;  %v2564_v44 = vor.u32 %v3594_v36, %v2563_v35 }
   0xa   :  { %1784 = vmatpush.bf16.msra.mxu2 %v2708_v21  ;;  %v2764_v38 = vor.u32 %v3644_v32, %v2763_v31  ;;  %v3610_v39 = vld [vmem:[%s5794_s1 + $0xc4] sm:$0xf0]  ;;  %v2691_v40 = vld [vmem:[%s5794_s1 + $0x140] sm:$0xf]  ;;  %v2555_v47 = vld [vmem:[%s5794_s1 + $0x30] sm:$0xf] }
   0xb   :  { %1803 = vmatpush.bf16.msra.mxu3 %v2772_v25  ;;  %v3626_v41 = vld [vmem:[%s5794_s1 + $0x144] sm:$0xf0]  ;;  %v2755_v42 = vld [vmem:[%s5794_s1 + $0x1c0] sm:$0xf]  ;;  %v2628_v45 = vor.u32 %v3610_v39, %v2627_v37  ;;  %v3592_v48 = vld [vmem:[%s5794_s1 + $0x34] sm:$0xf0] }
   0xc   :  { %v3642_v43 = vld [vmem:[%s5794_s1 + $0x1c4] sm:$0xf0]  ;;  %1747 = vmatpush.bf16.msra.mxu0 %v2572_v29  ;;  %v2692_v46 = vor.u32 %v3626_v41, %v2691_v40  ;;  %v2619_v49 = vld [vmem:[%s5794_s1 + $0xb0] sm:$0xf]  ;;  %v3608_v51 = vld [vmem:[%s5794_s1 + $0xb4] sm:$0xf0]  ;;  %v2556_v56 = vor.u32 %v3592_v48, %v2555_v47 }
   0xd   :  { %1766 = vmatpush.bf16.msra.mxu1 %v2636_v33  ;;  %v2756_v50 = vor.u32 %v3642_v43, %v2755_v42  ;;  %v2683_v52 = vld [vmem:[%s5794_s1 + $0x130] sm:$0xf]  ;;  %v3624_v53 = vld [vmem:[%s5794_s1 + $0x134] sm:$0xf0]  ;;  %v2620_v57 = vor.u32 %v3608_v51, %v2619_v49  ;;  %v2547_v59 = vld [vmem:[%s5794_s1 + $0x20] sm:$0xf] }
   0xe   :  { %1785 = vmatpush.bf16.msra.mxu2 %v2700_v34  ;;  %v2747_v54 = vld [vmem:[%s5794_s1 + $0x1b0] sm:$0xf]  ;;  %v3640_v55 = vld [vmem:[%s5794_s1 + $0x1b4] sm:$0xf0]  ;;  %v2684_v58 = vor.u32 %v3624_v53, %v2683_v52  ;;  %v3590_v60 = vld [vmem:[%s5794_s1 + $0x24] sm:$0xf0] }
   0xf   :  { %1804 = vmatpush.bf16.msra.mxu3 %v2764_v38  ;;  %v2611_v61 = vld [vmem:[%s5794_s1 + $0xa0] sm:$0xf]  ;;  %v2748_v62 = vor.u32 %v3640_v55, %v2747_v54  ;;  %v3606_v63 = vld [vmem:[%s5794_s1 + $0xa4] sm:$0xf0]  ;;  %v2548_v4 = vor.u32 %v3590_v60, %v2547_v59  ;;  %v2539_v7 = vld [vmem:[%s5794_s1 + $0x10] sm:$0xf] }
  0x10   :  { %1748 = vmatpush.bf16.msra.mxu0 %v2564_v44  ;;  %v2675_v0 = vld [vmem:[%s5794_s1 + $0x120] sm:$0xf]  ;;  %v3622_v1 = vld [vmem:[%s5794_s1 + $0x124] sm:$0xf0]  ;;  %v2612_v5 = vor.u32 %v3606_v63, %v2611_v61  ;;  %v3588_v8 = vld [vmem:[%s5794_s1 + $0x14] sm:$0xf0] }
  0x11   :  { %1767 = vmatpush.bf16.msra.mxu1 %v2628_v45  ;;  %v2739_v2 = vld [vmem:[%s5794_s1 + $0x1a0] sm:$0xf]  ;;  %v3638_v3 = vld [vmem:[%s5794_s1 + $0x1a4] sm:$0xf0]  ;;  %v2676_v6 = vor.u32 %v3622_v1, %v2675_v0  ;;  %v2603_v9 = vld [vmem:[%s5794_s1 + $0x90] sm:$0xf]  ;;  %v2540_v17 = vor.u32 %v3588_v8, %v2539_v7 }
  0x12   :  { %1786 = vmatpush.bf16.msra.mxu2 %v2692_v46  ;;  %v2740_v10 = vor.u32 %v3638_v3, %v2739_v2  ;;  %v3604_v11 = vld [vmem:[%s5794_s1 + $0x94] sm:$0xf0]  ;;  %v2667_v12 = vld [vmem:[%s5794_s1 + $0x110] sm:$0xf]  ;;  %v2531_v16 = vld [vmem:[%s5794_s1] sm:$0xf] }
  0x13   :  { %1805 = vmatpush.bf16.msra.mxu3 %v2756_v50  ;;  %v3620_v13 = vld [vmem:[%s5794_s1 + $0x114] sm:$0xf0]  ;;  %v2731_v14 = vld [vmem:[%s5794_s1 + $0x190] sm:$0xf]  ;;  %v3586_v18 = vld [vmem:[%s5794_s1 + $0x4] sm:$0xf0]  ;;  %v2604_v21 = vor.u32 %v3604_v11, %v2603_v9 }
  0x14   :  { %1749 = vmatpush.bf16.msra.mxu0 %v2556_v56  ;;  %v3636_v15 = vld [vmem:[%s5794_s1 + $0x194] sm:$0xf0]  ;;  %v2595_v19 = vld [vmem:[%s5794_s1 + $0x80] sm:$0xf]  ;;  %v3602_v20 = vld [vmem:[%s5794_s1 + $0x84] sm:$0xf0]  ;;  %v2668_v22 = vor.u32 %v3620_v13, %v2667_v12  ;;  %v2532_v34 = vor.u32 %v3586_v18, %v2531_v16 }
  0x15   :  { %1768 = vmatpush.bf16.msra.mxu1 %v2620_v57  ;;  %v2659_v23 = vld [vmem:[%s5794_s1 + $0x100] sm:$0xf]  ;;  %v3618_v24 = vld [vmem:[%s5794_s1 + $0x104] sm:$0xf0]  ;;  %v2732_v26 = vor.u32 %v3636_v15, %v2731_v14  ;;  %v3553_v30 = vld [vmem:[%s5795_s0 + $0x4] sm:$0xf]  ;;  %v2596_v38 = vor.u32 %v3602_v20, %v2595_v19 }
  0x16   :  { %1787 = vmatpush.bf16.msra.mxu2 %v2684_v58  ;;  %v2723_v25 = vld [vmem:[%s5794_s1 + $0x180] sm:$0xf]  ;;  %v3634_v27 = vld [vmem:[%s5794_s1 + $0x184] sm:$0xf0]  ;;  %v2405_v31 = vld [vmem:[%s5795_s0 + $0x40] sm:$0xf0]  ;;  %v2660_v39 = vor.u32 %v3618_v24, %v2659_v23 }
  0x17   :  { %1806 = vmatpush.bf16.msra.mxu3 %v2748_v62  ;;  %v2403_v28 = vld [vmem:[%s5795_s0] sm:$0xf]  ;;  %v2971_v32 = vld [vmem:[%s5794_s1 + $0x370] sm:$0xf]  ;;  %v3696_v33 = vld [vmem:[%s5794_s1 + $0x374] sm:$0xf0]  ;;  %v2724_v43 = vor.u32 %v3634_v27, %v2723_v25  ;;  %v4114_v53 = vor.u32 %v3553_v30, %v2405_v31 }
  0x18   :  { %1750 = vmatpush.bf16.msra.mxu0 %v2548_v4  ;;  %v3561_v29 = vld [vmem:[%s5795_s0 + $0x3c] sm:$0xf0]  ;;  %v2411_v35 = vld [vmem:[%s5795_s0 + $0x8] sm:$0xf]  ;;  %v2907_v36 = vld [vmem:[%s5794_s1 + $0x2f0] sm:$0xf]  ;;  %v2972_v44 = vor.u32 %v3696_v33, %v2971_v32 }
  0x19   :  { %1769 = vmatpush.bf16.msra.mxu1 %v2612_v5  ;;  %v3680_v37 = vld [vmem:[%s5794_s1 + $0x2f4] sm:$0xf0]  ;;  %v3562_v40 = vld [vmem:[%s5795_s0 + $0x44] sm:$0xf0]  ;;  %v3554_v41 = vld [vmem:[%s5795_s0 + $0xc] sm:$0xf]  ;;  %v4103_v48 = vor.u32 %v3561_v29, %v2403_v28 }
  0x1a   :  { %1788 = vmatpush.bf16.msra.mxu2 %v2676_v6  ;;  %v2413_v42 = vld [vmem:[%s5795_s0 + $0x48] sm:$0xf0]  ;;  %v2843_v45 = vld [vmem:[%s5794_s1 + $0x270] sm:$0xf]  ;;  %v3664_v46 = vld [vmem:[%s5794_s1 + $0x274] sm:$0xf0]  ;;  %v2908_v49 = vor.u32 %v3680_v37, %v2907_v36  ;;  %v4116_v54 = vor.u32 %v3562_v40, %v2411_v35 }
  0x1b   :  { %1807 = vmatpush.bf16.msra.mxu3 %v2740_v10  ;;  %v3035_v47 = vld [vmem:[%s5794_s1 + $0x3f0] sm:$0xf]  ;;  %v3712_v50 = vld [vmem:[%s5794_s1 + $0x3f4] sm:$0xf0]  ;;  %v2963_v51 = vld [vmem:[%s5794_s1 + $0x360] sm:$0xf]  ;;  %v4124_v57 = vor.u32 %v3554_v41, %v2413_v42  ;;  %v2844_v58 = vor.u32 %v3664_v46, %v2843_v45 }
  0x1c   :  { %1751 = vmatpush.bf16.msra.mxu0 %v2540_v17  ;;  %v3694_v52 = vld [vmem:[%s5794_s1 + $0x364] sm:$0xf0]  ;;  %v2899_v55 = vld [vmem:[%s5794_s1 + $0x2e0] sm:$0xf]  ;;  %v3036_v59 = vor.u32 %v3712_v50, %v3035_v47  ;;  %v2955_v2 = vld [vmem:[%s5794_s1 + $0x350] sm:$0xf] }
  0x1d   :  { %1770 = vmatpush.bf16.msra.mxu1 %v2604_v21  ;;  %v3678_v56 = vld [vmem:[%s5794_s1 + $0x2e4] sm:$0xf0]  ;;  %v2964_v60 = vor.u32 %v3694_v52, %v2963_v51  ;;  %v2835_v61 = vld [vmem:[%s5794_s1 + $0x260] sm:$0xf]  ;;  %v3692_v3 = vld [vmem:[%s5794_s1 + $0x354] sm:$0xf0] }
  0x1e   :  { %1789 = vmatpush.bf16.msra.mxu2 %v2668_v22  ;;  %v3662_v62 = vld [vmem:[%s5794_s1 + $0x264] sm:$0xf0]  ;;  %v3027_v63 = vld [vmem:[%s5794_s1 + $0x3e0] sm:$0xf]  ;;  %v2900_v0 = vor.u32 %v3678_v56, %v2899_v55  ;;  %v2891_v4 = vld [vmem:[%s5794_s1 + $0x2d0] sm:$0xf]  ;;  %v2956_v8 = vor.u32 %v3692_v3, %v2955_v2 }
  0x1f   :  { %1808 = vmatpush.bf16.msra.mxu3 %v2732_v26  ;;  %v3710_v1 = vld [vmem:[%s5794_s1 + $0x3e4] sm:$0xf0]  ;;  %v3676_v5 = vld [vmem:[%s5794_s1 + $0x2d4] sm:$0xf0]  ;;  %v2836_v6 = vor.u32 %v3662_v62, %v2835_v61  ;;  %v2827_v9 = vld [vmem:[%s5794_s1 + $0x250] sm:$0xf] }
  0x20   :  { %1752 = vmatpush.bf16.msra.mxu0 %v2532_v34  ;;  %v3028_v7 = vor.u32 %v3710_v1, %v3027_v63  ;;  %v3660_v10 = vld [vmem:[%s5794_s1 + $0x254] sm:$0xf0]  ;;  %v3019_v11 = vld [vmem:[%s5794_s1 + $0x3d0] sm:$0xf]  ;;  %v2892_v12 = vor.u32 %v3676_v5, %v2891_v4  ;;  %v2947_v14 = vld [vmem:[%s5794_s1 + $0x340] sm:$0xf] }
  0x21   :  { %1771 = vmatpush.bf16.msra.mxu1 %v2596_v38  ;;  %v3708_v13 = vld [vmem:[%s5794_s1 + $0x3d4] sm:$0xf0]  ;;  %v3690_v15 = vld [vmem:[%s5794_s1 + $0x344] sm:$0xf0]  ;;  %v2883_v16 = vld [vmem:[%s5794_s1 + $0x2c0] sm:$0xf]  ;;  %v2828_v18 = vor.u32 %v3660_v10, %v2827_v9 }
  0x22   :  { %1790 = vmatpush.bf16.msra.mxu2 %v2660_v39  ;;  %v3674_v17 = vld [vmem:[%s5794_s1 + $0x2c4] sm:$0xf0]  ;;  %v2819_v19 = vld [vmem:[%s5794_s1 + $0x240] sm:$0xf]  ;;  %v3020_v22 = vor.u32 %v3708_v13, %v3019_v11  ;;  %v2948_v23 = vor.u32 %v3690_v15, %v2947_v14  ;;  %v3569_v28 = vld [vmem:[%s5795_s0 + $0x84] sm:$0xf] }
  0x23   :  { %1809 = vmatpush.bf16.msra.mxu3 %v2724_v43  ;;  %1753 = vmatmul.bf16.vlgmr.msra.gmra.mxu0 %v4103_v48  ;;  %v3658_v20 = vld [vmem:[%s5794_s1 + $0x244] sm:$0xf0]  ;;  %v3011_v21 = vld [vmem:[%s5794_s1 + $0x3c0] sm:$0xf]  ;;  %v2884_v27 = vor.u32 %v3674_v17, %v2883_v16  ;;  %v2469_v29 = vld [vmem:[%s5795_s0 + $0xc0] sm:$0xf0] }
  0x24   :  { %1772 = vmatmul.bf16.vlgmr.msra.gmra.mxu1 %v4114_v53  ;;  %1821 = vmatpush.bf16.msrb.mxu0 %v2844_v58  ;;  %v3706_v24 = vld [vmem:[%s5794_s1 + $0x3c4] sm:$0xf0]  ;;  %v2467_v25 = vld [vmem:[%s5795_s0 + $0x80] sm:$0xf]  ;;  %v2939_v30 = vld [vmem:[%s5794_s1 + $0x330] sm:$0xf]  ;;  %v2820_v35 = vor.u32 %v3658_v20, %v2819_v19  ;;  %v4246_v50 = vor.u32 %v3569_v28, %v2469_v29 }
  0x25   :  { %1840 = vmatpush.bf16.msrb.mxu1 %v2908_v49  ;;  %1791 = vmatmul.bf16.vlgmr.msra.gmra.mxu2 %v4116_v54  ;;  %v3577_v26 = vld [vmem:[%s5795_s0 + $0xbc] sm:$0xf0]  ;;  %v3688_v31 = vld [vmem:[%s5794_s1 + $0x334] sm:$0xf0]  ;;  %v2475_v32 = vld [vmem:[%s5795_s0 + $0x88] sm:$0xf]  ;;  %v3012_v39 = vor.u32 %v3706_v24, %v3011_v21 }
  0x26   :  { %1859 = vmatpush.bf16.msrb.mxu2 %v2972_v44  ;;  %1810 = vmatmul.bf16.vlgmr.msra.gmra.mxu3 %v4124_v57  ;;  %v2875_v33 = vld [vmem:[%s5794_s1 + $0x2b0] sm:$0xf]  ;;  %v3672_v34 = vld [vmem:[%s5794_s1 + $0x2b4] sm:$0xf0]  ;;  %v3578_v36 = vld [vmem:[%s5795_s0 + $0xc4] sm:$0xf0]  ;;  %v2940_v40 = vor.u32 %v3688_v31, %v2939_v30  ;;  %v4235_v44 = vor.u32 %v3577_v26, %v2467_v25 }
  0x27   :  { %1878 = vmatpush.bf16.msrb.mxu3 %v3036_v59  ;;  %v3570_v37 = vld [vmem:[%s5795_s0 + $0x8c] sm:$0xf]  ;;  %v2811_v41 = vld [vmem:[%s5794_s1 + $0x230] sm:$0xf]  ;;  %v3656_v42 = vld [vmem:[%s5794_s1 + $0x234] sm:$0xf0]  ;;  %v2876_v45 = vor.u32 %v3672_v34, %v2875_v33  ;;  %v4248_v51 = vor.u32 %v3578_v36, %v2475_v32 }
  0x28   :  { %1822 = vmatpush.bf16.msrb.mxu0 %v2836_v6  ;;  %v2477_v38 = vld [vmem:[%s5795_s0 + $0xc8] sm:$0xf0]  ;;  %v3003_v43 = vld [vmem:[%s5794_s1 + $0x3b0] sm:$0xf]  ;;  %v3704_v46 = vld [vmem:[%s5794_s1 + $0x3b4] sm:$0xf0]  ;;  %v2812_v58 = vor.u32 %v3656_v42, %v2811_v41 }
  0x29   :  { %1841 = vmatpush.bf16.msrb.mxu1 %v2900_v0  ;;  %v2931_v47 = vld [vmem:[%s5794_s1 + $0x320] sm:$0xf]  ;;  %v3686_v49 = vld [vmem:[%s5794_s1 + $0x324] sm:$0xf0]  ;;  %v4256_v56 = vor.u32 %v3570_v37, %v2477_v38  ;;  %v3004_v59 = vor.u32 %v3704_v46, %v3003_v43  ;;  %v2923_v2 = vld [vmem:[%s5794_s1 + $0x310] sm:$0xf] }
  0x2a   :  { %1860 = vmatpush.bf16.msrb.mxu2 %v2964_v60  ;;  %v2867_v52 = vld [vmem:[%s5794_s1 + $0x2a0] sm:$0xf]  ;;  %v3670_v55 = vld [vmem:[%s5794_s1 + $0x2a4] sm:$0xf0]  ;;  %v2932_v60 = vor.u32 %v3686_v49, %v2931_v47  ;;  %v3684_v3 = vld [vmem:[%s5794_s1 + $0x314] sm:$0xf0] }
  0x2b   :  { %1879 = vmatpush.bf16.msrb.mxu3 %v3028_v7  ;;  %v2803_v61 = vld [vmem:[%s5794_s1 + $0x220] sm:$0xf]  ;;  %v3654_v62 = vld [vmem:[%s5794_s1 + $0x224] sm:$0xf0]  ;;  %v2868_v0 = vor.u32 %v3670_v55, %v2867_v52  ;;  %v2859_v4 = vld [vmem:[%s5794_s1 + $0x290] sm:$0xf]  ;;  %v2924_v9 = vor.u32 %v3684_v3, %v2923_v2 }
  0x2c   :  { %1823 = vmatpush.bf16.msrb.mxu0 %v2828_v18  ;;  %v2995_v63 = vld [vmem:[%s5794_s1 + $0x3a0] sm:$0xf]  ;;  %v3702_v1 = vld [vmem:[%s5794_s1 + $0x3a4] sm:$0xf0]  ;;  %v3668_v5 = vld [vmem:[%s5794_s1 + $0x294] sm:$0xf0]  ;;  %v2804_v6 = vor.u32 %v3654_v62, %v2803_v61 }
  0x2d   :  { %1842 = vmatpush.bf16.msrb.mxu1 %v2892_v12  ;;  %v2795_v7 = vld [vmem:[%s5794_s1 + $0x210] sm:$0xf]  ;;  %v3652_v10 = vld [vmem:[%s5794_s1 + $0x214] sm:$0xf0]  ;;  %v2860_v13 = vor.u32 %v3668_v5, %v2859_v4  ;;  %v2915_v14 = vld [vmem:[%s5794_s1 + $0x300] sm:$0xf] }
  0x2e   :  { %1861 = vmatpush.bf16.msrb.mxu2 %v2956_v8  ;;  %v2996_v8 = vor.u32 %v3702_v1, %v2995_v63  ;;  %v2987_v11 = vld [vmem:[%s5794_s1 + $0x390] sm:$0xf]  ;;  %v3700_v12 = vld [vmem:[%s5794_s1 + $0x394] sm:$0xf0]  ;;  %v3682_v15 = vld [vmem:[%s5794_s1 + $0x304] sm:$0xf0]  ;;  %v2796_v20 = vor.u32 %v3652_v10, %v2795_v7 }
  0x2f   :  { %1880 = vmatpush.bf16.msrb.mxu3 %v3020_v22  ;;  %v2851_v16 = vld [vmem:[%s5794_s1 + $0x280] sm:$0xf]  ;;  %v3666_v17 = vld [vmem:[%s5794_s1 + $0x284] sm:$0xf0]  ;;  %v3227_v18 = vld [vmem:[%s5794_s1 + $0x570] sm:$0xf]  ;;  %v2988_v24 = vor.u32 %v3700_v12, %v2987_v11  ;;  %v2916_v25 = vor.u32 %v3682_v15, %v2915_v14 }
  0x30   :  { %1824 = vmatpush.bf16.msrb.mxu0 %v2820_v35  ;;  %v3760_v19 = vld [vmem:[%s5794_s1 + $0x574] sm:$0xf0]  ;;  %v2787_v21 = vld [vmem:[%s5794_s1 + $0x200] sm:$0xf]  ;;  %v3163_v22 = vld [vmem:[%s5794_s1 + $0x4f0] sm:$0xf]  ;;  %v2852_v29 = vor.u32 %v3666_v17, %v2851_v16 }
  0x31   :  { %1843 = vmatpush.bf16.msrb.mxu1 %v2884_v27  ;;  %v3650_v26 = vld [vmem:[%s5794_s1 + $0x204] sm:$0xf0]  ;;  %v2979_v27 = vld [vmem:[%s5794_s1 + $0x380] sm:$0xf]  ;;  %v2419_v30 = vld [vmem:[%s5795_s0 + $0x10] sm:$0xf]  ;;  %v3228_v34 = vor.u32 %v3760_v19, %v3227_v18 }
  0x32   :  { %1862 = vmatpush.bf16.msrb.mxu2 %v2948_v23  ;;  %v3744_v23 = vld [vmem:[%s5794_s1 + $0x4f4] sm:$0xf0]  ;;  %v3698_v28 = vld [vmem:[%s5794_s1 + $0x384] sm:$0xf0]  ;;  %v3563_v31 = vld [vmem:[%s5795_s0 + $0x4c] sm:$0xf0]  ;;  %v2788_v42 = vor.u32 %v3650_v26, %v2787_v21 }
  0x33   :  { %1881 = vmatpush.bf16.msrb.mxu3 %v3012_v39  ;;  %1758 = vmatmul.bf16.gmra.mxu0 %v4235_v44  ;;  %v3555_v32 = vld [vmem:[%s5795_s0 + $0x14] sm:$0xf]  ;;  %v3099_v35 = vld [vmem:[%s5794_s1 + $0x470] sm:$0xf]  ;;  %v3728_v36 = vld [vmem:[%s5794_s1 + $0x474] sm:$0xf0]  ;;  %v3164_v38 = vor.u32 %v3744_v23, %v3163_v22  ;;  %v2980_v47 = vor.u32 %v3698_v28, %v2979_v27 }
  0x34   :  { %1777 = vmatmul.bf16.gmra.mxu1 %v4246_v50  ;;  %1825 = vmatpush.bf16.msrb.mxu0 %v2812_v58  ;;  %v2421_v33 = vld [vmem:[%s5795_s0 + $0x50] sm:$0xf0]  ;;  %v3291_v37 = vld [vmem:[%s5794_s1 + $0x5f0] sm:$0xf]  ;;  %v3776_v39 = vld [vmem:[%s5794_s1 + $0x5f4] sm:$0xf0]  ;;  %v3100_v52 = vor.u32 %v3728_v36, %v3099_v35 }
  0x35   :  { %1844 = vmatpush.bf16.msrb.mxu1 %v2876_v45  ;;  %1796 = vmatmul.bf16.gmra.mxu2 %v4248_v51  ;;  %v3758_v41 = vld [vmem:[%s5794_s1 + $0x564] sm:$0xf0]  ;;  %v2427_v43 = vld [vmem:[%s5795_s0 + $0x18] sm:$0xf]  ;;  %v3556_v46 = vld [vmem:[%s5795_s0 + $0x1c] sm:$0xf]  ;;  %v4393_v1 = vor.u32 %v3555_v32, %v2421_v33 }
  0x36   :  { %1863 = vmatpush.bf16.msrb.mxu2 %v2940_v40  ;;  %1815 = vmatmul.bf16.gmra.mxu3 %v4256_v56  ;;  %v3219_v40 = vld [vmem:[%s5794_s1 + $0x560] sm:$0xf]  ;;  %v3564_v45 = vld [vmem:[%s5795_s0 + $0x54] sm:$0xf0]  ;;  %v2429_v49 = vld [vmem:[%s5795_s0 + $0x58] sm:$0xf0] }
  0x37   :  { %1882 = vmatpush.bf16.msrb.mxu3 %v3004_v59  ;;  %v3091_v55 = vld [vmem:[%s5794_s1 + $0x460] sm:$0xf]  ;;  %v3726_v58 = vld [vmem:[%s5794_s1 + $0x464] sm:$0xf0]  ;;  %v3292_v59 = vor.u32 %v3776_v39, %v3291_v37  ;;  %v3211_v3 = vld [vmem:[%s5794_s1 + $0x550] sm:$0xf]  ;;  %v4404_v5 = vor.u32 %v3564_v45, %v2427_v43 }
  0x38   :  { %1826 = vmatpush.bf16.msrb.mxu0 %v2804_v6  ;;  %v3155_v61 = vld [vmem:[%s5794_s1 + $0x4e0] sm:$0xf]  ;;  %v3742_v62 = vld [vmem:[%s5794_s1 + $0x4e4] sm:$0xf0]  ;;  %v3756_v4 = vld [vmem:[%s5794_s1 + $0x554] sm:$0xf0]  ;;  %v4406_v6 = vor.u32 %v3556_v46, %v2429_v49  ;;  %v3092_v7 = vor.u32 %v3726_v58, %v3091_v55 }
  0x39   :  { %1845 = vmatpush.bf16.msrb.mxu1 %v2868_v0  ;;  %v3283_v63 = vld [vmem:[%s5794_s1 + $0x5e0] sm:$0xf]  ;;  %v4391_v0 = vor.u32 %v3563_v31, %v2419_v30  ;;  %v3774_v2 = vld [vmem:[%s5794_s1 + $0x5e4] sm:$0xf0]  ;;  %v3724_v10 = vld [vmem:[%s5794_s1 + $0x454] sm:$0xf0]  ;;  %v3212_v12 = vor.u32 %v3756_v4, %v3211_v3 }
  0x3a   :  { %1864 = vmatpush.bf16.msrb.mxu2 %v2932_v60  ;;  %v3220_v60 = vor.u32 %v3758_v41, %v3219_v40  ;;  %v3284_v11 = vor.u32 %v3774_v2, %v3283_v63  ;;  %v3740_v14 = vld [vmem:[%s5794_s1 + $0x4d4] sm:$0xf0]  ;;  %v3275_v15 = vld [vmem:[%s5794_s1 + $0x5d0] sm:$0xf]  ;;  %v3203_v17 = vld [vmem:[%s5794_s1 + $0x540] sm:$0xf] }
  0x3b   :  { %1883 = vmatpush.bf16.msrb.mxu3 %v2996_v8  ;;  %v3156_v8 = vor.u32 %v3742_v62, %v3155_v61  ;;  %v3772_v16 = vld [vmem:[%s5794_s1 + $0x5d4] sm:$0xf0]  ;;  %v3754_v18 = vld [vmem:[%s5794_s1 + $0x544] sm:$0xf0]  ;;  %v3075_v21 = vld [vmem:[%s5794_s1 + $0x440] sm:$0xf] }
  0x3c   :  { %1827 = vmatpush.bf16.msrb.mxu0 %v2796_v20  ;;  %v3722_v22 = vld [vmem:[%s5794_s1 + $0x444] sm:$0xf0]  ;;  %v3276_v23 = vor.u32 %v3772_v16, %v3275_v15  ;;  %v3267_v27 = vld [vmem:[%s5794_s1 + $0x5c0] sm:$0xf]  ;;  %v3752_v30 = vld [vmem:[%s5794_s1 + $0x534] sm:$0xf0] }
  0x3d   :  { %1846 = vmatpush.bf16.msrb.mxu1 %v2860_v13  ;;  %v3147_v13 = vld [vmem:[%s5794_s1 + $0x4d0] sm:$0xf]  ;;  %v3738_v26 = vld [vmem:[%s5794_s1 + $0x4c4] sm:$0xf0]  ;;  %v3076_v31 = vor.u32 %v3722_v22, %v3075_v21  ;;  %v2485_v39 = vld [vmem:[%s5795_s0 + $0xd0] sm:$0xf0] }
  0x3e   :  { %1865 = vmatpush.bf16.msrb.mxu2 %v2924_v9  ;;  %v3083_v9 = vld [vmem:[%s5794_s1 + $0x450] sm:$0xf]  ;;  %v3148_v20 = vor.u32 %v3740_v14, %v3147_v13  ;;  %v3770_v28 = vld [vmem:[%s5794_s1 + $0x5c4] sm:$0xf0]  ;;  %v3768_v45 = vld [vmem:[%s5794_s1 + $0x5b4] sm:$0xf0] }
  0x3f   :  { %1884 = vmatpush.bf16.msrb.mxu3 %v2988_v24  ;;  %v3084_v19 = vor.u32 %v3724_v10, %v3083_v9  ;;  %v3204_v24 = vor.u32 %v3754_v18, %v3203_v17  ;;  %v3067_v33 = vld [vmem:[%s5794_s1 + $0x430] sm:$0xf]  ;;  %v3268_v35 = vor.u32 %v3770_v28, %v3267_v27  ;;  %v3187_v46 = vld [vmem:[%s5794_s1 + $0x520] sm:$0xf]  ;;  %v2491_v49 = vld [vmem:[%s5795_s0 + $0x98] sm:$0xf] }
  0x40   :  { %1828 = vmatpush.bf16.msrb.mxu0 %v2788_v42  ;;  %v2483_v36 = vld [vmem:[%s5795_s0 + $0x90] sm:$0xf]  ;;  %v3736_v42 = vld [vmem:[%s5794_s1 + $0x4b4] sm:$0xf0]  ;;  %v3572_v55 = vld [vmem:[%s5795_s0 + $0x9c] sm:$0xf] }
  0x41   :  { %1847 = vmatpush.bf16.msrb.mxu1 %v2852_v29  ;;  %v3195_v29 = vld [vmem:[%s5794_s1 + $0x530] sm:$0xf]  ;;  %v2493_v58 = vld [vmem:[%s5795_s0 + $0xd8] sm:$0xf0]  ;;  %v3059_v61 = vld [vmem:[%s5794_s1 + $0x420] sm:$0xf] }
  0x42   :  { %1866 = vmatpush.bf16.msrb.mxu2 %v2916_v25  ;;  %v3139_v25 = vld [vmem:[%s5794_s1 + $0x4c0] sm:$0xf]  ;;  %v3579_v37 = vld [vmem:[%s5795_s0 + $0xcc] sm:$0xf0]  ;;  %v3196_v40 = vor.u32 %v3752_v30, %v3195_v29  ;;  %v3718_v62 = vld [vmem:[%s5794_s1 + $0x424] sm:$0xf0]  ;;  %v4538_v14 = vor.u32 %v3572_v55, %v2493_v58 }
  0x43   :  { %1885 = vmatpush.bf16.msrb.mxu3 %v2980_v47  ;;  %1829 = vmatmul.bf16.vlgmr.msrb.gmra.mxu0 %v4391_v0  ;;  %v3140_v32 = vor.u32 %v3738_v26, %v3139_v25  ;;  %v3131_v41 = vld [vmem:[%s5794_s1 + $0x4b0] sm:$0xf]  ;;  %v3750_v47 = vld [vmem:[%s5794_s1 + $0x524] sm:$0xf0]  ;;  %v3123_v3 = vld [vmem:[%s5794_s1 + $0x4a0] sm:$0xf]  ;;  %v3060_v15 = vor.u32 %v3718_v62, %v3059_v61 }
  0x44   :  { %1897 = vmatpush.bf16.msra.mxu0 %v3100_v52  ;;  %1848 = vmatmul.bf16.vlgmr.msrb.gmra.mxu1 %v4393_v1  ;;  %v3259_v43 = vld [vmem:[%s5794_s1 + $0x5b0] sm:$0xf]  ;;  %v3580_v52 = vld [vmem:[%s5795_s0 + $0xd4] sm:$0xf0]  ;;  %v3188_v2 = vor.u32 %v3750_v47, %v3187_v46  ;;  %v3734_v4 = vld [vmem:[%s5794_s1 + $0x4a4] sm:$0xf0] }
  0x45   :  { %1916 = vmatpush.bf16.msra.mxu1 %v3164_v38  ;;  %1867 = vmatmul.bf16.vlgmr.msrb.gmra.mxu2 %v4404_v5  ;;  %v3571_v38 = vld [vmem:[%s5795_s0 + $0x94] sm:$0xf]  ;;  %v3260_v63 = vor.u32 %v3768_v45, %v3259_v43  ;;  %v3766_v10 = vld [vmem:[%s5794_s1 + $0x5a4] sm:$0xf0]  ;;  %v4536_v13 = vor.u32 %v3580_v52, %v2491_v49  ;;  %v3124_v16 = vor.u32 %v3734_v4, %v3123_v3  ;;  %v3051_v17 = vld [vmem:[%s5794_s1 + $0x410] sm:$0xf] }
  0x46   :  { %1935 = vmatpush.bf16.msra.mxu2 %v3228_v34  ;;  %1886 = vmatmul.bf16.vlgmr.msrb.gmra.mxu3 %v4406_v6  ;;  %v3720_v34 = vld [vmem:[%s5794_s1 + $0x434] sm:$0xf0]  ;;  %v4525_v9 = vor.u32 %v3571_v38, %v2485_v39  ;;  %v3115_v21 = vld [vmem:[%s5794_s1 + $0x490] sm:$0xf]  ;;  %v3171_v25 = vld [vmem:[%s5794_s1 + $0x500] sm:$0xf] }
  0x47   :  { %1954 = vmatpush.bf16.msra.mxu3 %v3292_v59  ;;  %v3068_v59 = vor.u32 %v3720_v34, %v3067_v33  ;;  %v3716_v18 = vld [vmem:[%s5794_s1 + $0x414] sm:$0xf0]  ;;  %v3746_v26 = vld [vmem:[%s5794_s1 + $0x504] sm:$0xf0]  ;;  %v3483_v27 = vld [vmem:[%s5794_s1 + $0x770] sm:$0xf] }
  0x48   :  { %1898 = vmatpush.bf16.msra.mxu0 %v3092_v7  ;;  %v3251_v7 = vld [vmem:[%s5794_s1 + $0x5a0] sm:$0xf]  ;;  %v3732_v22 = vld [vmem:[%s5794_s1 + $0x494] sm:$0xf0]  ;;  %v3052_v29 = vor.u32 %v3716_v18, %v3051_v17  ;;  %v3762_v38 = vld [vmem:[%s5794_s1 + $0x584] sm:$0xf0] }
  0x49   :  { %1917 = vmatpush.bf16.msra.mxu1 %v3156_v8  ;;  %v4523_v8 = vor.u32 %v3579_v37, %v2483_v36  ;;  %v3824_v28 = vld [vmem:[%s5794_s1 + $0x774] sm:$0xf0]  ;;  %v3116_v30 = vor.u32 %v3732_v22, %v3115_v21  ;;  %v3107_v33 = vld [vmem:[%s5794_s1 + $0x480] sm:$0xf]  ;;  %v3730_v36 = vld [vmem:[%s5794_s1 + $0x484] sm:$0xf0] }
  0x4a   :  { %1936 = vmatpush.bf16.msra.mxu2 %v3220_v60  ;;  %v3132_v60 = vor.u32 %v3736_v42, %v3131_v41  ;;  %v3235_v37 = vld [vmem:[%s5794_s1 + $0x580] sm:$0xf]  ;;  %v3484_v39 = vor.u32 %v3824_v28, %v3483_v27  ;;  %v3792_v41 = vld [vmem:[%s5794_s1 + $0x674] sm:$0xf0]  ;;  %v3419_v42 = vld [vmem:[%s5794_s1 + $0x6f0] sm:$0xf]  ;;  %v3108_v49 = vor.u32 %v3730_v36, %v3107_v33 }
  0x4b   :  { %1955 = vmatpush.bf16.msra.mxu3 %v3284_v11  ;;  %v3179_v11 = vld [vmem:[%s5794_s1 + $0x510] sm:$0xf]  ;;  %v3808_v43 = vld [vmem:[%s5794_s1 + $0x6f4] sm:$0xf0]  ;;  %v3475_v52 = vld [vmem:[%s5794_s1 + $0x760] sm:$0xf]  ;;  %v3236_v58 = vor.u32 %v3762_v38, %v3235_v37 }
  0x4c   :  { %1899 = vmatpush.bf16.msra.mxu0 %v3084_v19  ;;  %v3252_v19 = vor.u32 %v3766_v10, %v3251_v7  ;;  %v3547_v45 = vld [vmem:[%s5794_s1 + $0x7f0] sm:$0xf]  ;;  %v3840_v46 = vld [vmem:[%s5794_s1 + $0x7f4] sm:$0xf0]  ;;  %v3822_v55 = vld [vmem:[%s5794_s1 + $0x764] sm:$0xf0] }
  0x4d   :  { %1918 = vmatpush.bf16.msra.mxu1 %v3148_v20  ;;  %v3557_v61 = vld [vmem:[%s5795_s0 + $0x24] sm:$0xf]  ;;  %v3548_v3 = vor.u32 %v3840_v46, %v3547_v45  ;;  %v3347_v4 = vld [vmem:[%s5794_s1 + $0x660] sm:$0xf]  ;;  %v3790_v7 = vld [vmem:[%s5794_s1 + $0x664] sm:$0xf0] }
  0x4e   :  { %1937 = vmatpush.bf16.msra.mxu2 %v3212_v12  ;;  %v3748_v12 = vld [vmem:[%s5794_s1 + $0x514] sm:$0xf0]  ;;  %v2443_v10 = vld [vmem:[%s5795_s0 + $0x28] sm:$0xf]  ;;  %v3411_v17 = vld [vmem:[%s5794_s1 + $0x6e0] sm:$0xf] }
  0x4f   :  { %1956 = vmatpush.bf16.msra.mxu3 %v3276_v23  ;;  %v3180_v20 = vor.u32 %v3748_v12, %v3179_v11  ;;  %v3243_v23 = vld [vmem:[%s5794_s1 + $0x590] sm:$0xf]  ;;  %v3566_v11 = vld [vmem:[%s5795_s0 + $0x64] sm:$0xf0]  ;;  %v3558_v12 = vld [vmem:[%s5795_s0 + $0x2c] sm:$0xf] }
  0x50   :  { %1900 = vmatpush.bf16.msra.mxu0 %v3076_v31  ;;  %v3043_v31 = vld [vmem:[%s5794_s1 + $0x400] sm:$0xf]  ;;  %v3806_v18 = vld [vmem:[%s5794_s1 + $0x6e4] sm:$0xf0]  ;;  %v3467_v22 = vld [vmem:[%s5794_s1 + $0x750] sm:$0xf]  ;;  %v4674_v28 = vor.u32 %v3566_v11, %v2443_v10 }
  0x51   :  { %1919 = vmatpush.bf16.msra.mxu1 %v3140_v32  ;;  %v3714_v32 = vld [vmem:[%s5794_s1 + $0x404] sm:$0xf0]  ;;  %v3788_v27 = vld [vmem:[%s5794_s1 + $0x654] sm:$0xf0]  ;;  %v3531_v36 = vld [vmem:[%s5794_s1 + $0x7d0] sm:$0xf] }
  0x52   :  { %1938 = vmatpush.bf16.msra.mxu2 %v3204_v24  ;;  %v3764_v24 = vld [vmem:[%s5794_s1 + $0x594] sm:$0xf0]  ;;  %v3044_v47 = vor.u32 %v3714_v32, %v3043_v31  ;;  %v3838_v21 = vld [vmem:[%s5794_s1 + $0x7e4] sm:$0xf0]  ;;  %v3403_v32 = vld [vmem:[%s5794_s1 + $0x6d0] sm:$0xf] }
  0x53   :  { %1957 = vmatpush.bf16.msra.mxu3 %v3268_v35  ;;  %1834 = vmatmul.bf16.gmra.mxu0 %v4523_v8  ;;  %v3244_v34 = vor.u32 %v3764_v24, %v3243_v23  ;;  %v3172_v35 = vor.u32 %v3746_v26, %v3171_v25  ;;  %v3820_v25 = vld [vmem:[%s5794_s1 + $0x754] sm:$0xf0]  ;;  %v3339_v26 = vld [vmem:[%s5794_s1 + $0x650] sm:$0xf]  ;;  %v3459_v38 = vld [vmem:[%s5794_s1 + $0x740] sm:$0xf] }
  0x54   :  { %1901 = vmatpush.bf16.msra.mxu0 %v3068_v59  ;;  %1853 = vmatmul.bf16.gmra.mxu1 %v4525_v9  ;;  %v2435_v59 = vld [vmem:[%s5795_s0 + $0x20] sm:$0xf]  ;;  %v3804_v33 = vld [vmem:[%s5794_s1 + $0x6d4] sm:$0xf0]  ;;  %v3802_v46 = vld [vmem:[%s5794_s1 + $0x6c4] sm:$0xf0] }
  0x55   :  { %1920 = vmatpush.bf16.msra.mxu1 %v3132_v60  ;;  %1872 = vmatmul.bf16.gmra.mxu2 %v4536_v13  ;;  %v3565_v60 = vld [vmem:[%s5795_s0 + $0x5c] sm:$0xf0]  ;;  %v3836_v37 = vld [vmem:[%s5794_s1 + $0x7d4] sm:$0xf0]  ;;  %v3573_v10 = vld [vmem:[%s5795_s0 + $0xa4] sm:$0xf] }
  0x56   :  { %1939 = vmatpush.bf16.msra.mxu2 %v3196_v40  ;;  %1891 = vmatmul.bf16.gmra.mxu3 %v4538_v14  ;;  %v3355_v40 = vld [vmem:[%s5794_s1 + $0x670] sm:$0xf]  ;;  %v4661_v23 = vor.u32 %v3565_v60, %v2435_v59  ;;  %v3395_v45 = vld [vmem:[%s5794_s1 + $0x6c0] sm:$0xf]  ;;  %v3816_v59 = vld [vmem:[%s5794_s1 + $0x734] sm:$0xf0] }
  0x57   :  { %1958 = vmatpush.bf16.msra.mxu3 %v3260_v63  ;;  %v3356_v62 = vor.u32 %v3792_v41, %v3355_v40  ;;  %v2437_v63 = vld [vmem:[%s5795_s0 + $0x60] sm:$0xf0]  ;;  %v3331_v40 = vld [vmem:[%s5794_s1 + $0x640] sm:$0xf]  ;;  %v3786_v41 = vld [vmem:[%s5794_s1 + $0x644] sm:$0xf0] }
  0x58   :  { %1902 = vmatpush.bf16.msra.mxu0 %v3060_v15  ;;  %v3476_v15 = vor.u32 %v3822_v55, %v3475_v52  ;;  %v4663_v24 = vor.u32 %v3557_v61, %v2437_v63  ;;  %v3523_v52 = vld [vmem:[%s5794_s1 + $0x7c0] sm:$0xf]  ;;  %v3834_v55 = vld [vmem:[%s5794_s1 + $0x7c4] sm:$0xf0]  ;;  %v3323_v60 = vld [vmem:[%s5794_s1 + $0x630] sm:$0xf] }
  0x59   :  { %1921 = vmatpush.bf16.msra.mxu1 %v3124_v16  ;;  %v2445_v16 = vld [vmem:[%s5795_s0 + $0x68] sm:$0xf0]  ;;  %v3784_v61 = vld [vmem:[%s5794_s1 + $0x634] sm:$0xf0]  ;;  %v3524_v63 = vor.u32 %v3834_v55, %v3523_v52  ;;  %v2501_v11 = vld [vmem:[%s5795_s0 + $0xe0] sm:$0xf0] }
  0x5a   :  { %1940 = vmatpush.bf16.msra.mxu2 %v3188_v2  ;;  %v3420_v2 = vor.u32 %v3808_v43, %v3419_v42  ;;  %v3404_v42 = vor.u32 %v3804_v33, %v3403_v32  ;;  %v3532_v43 = vor.u32 %v3836_v37, %v3531_v36  ;;  %v3379_v32 = vld [vmem:[%s5794_s1 + $0x6a0] sm:$0xf]  ;;  %v3798_v33 = vld [vmem:[%s5794_s1 + $0x6a4] sm:$0xf0]  ;;  %v3371_v52 = vld [vmem:[%s5794_s1 + $0x690] sm:$0xf] }
  0x5b   :  { %1959 = vmatpush.bf16.msra.mxu3 %v3252_v19  ;;  %v3348_v19 = vor.u32 %v3790_v7, %v3347_v4  ;;  %v2499_v4 = vld [vmem:[%s5795_s0 + $0xa0] sm:$0xf]  ;;  %v3830_v37 = vld [vmem:[%s5794_s1 + $0x7a4] sm:$0xf0]  ;;  %v3796_v55 = vld [vmem:[%s5794_s1 + $0x694] sm:$0xf0] }
  0x5c   :  { %1903 = vmatpush.bf16.msra.mxu0 %v3052_v29  ;;  %v4676_v29 = vor.u32 %v3558_v12, %v2445_v16  ;;  %v3581_v7 = vld [vmem:[%s5795_s0 + $0xdc] sm:$0xf0]  ;;  %v3515_v16 = vld [vmem:[%s5794_s1 + $0x7b0] sm:$0xf] }
  0x5d   :  { %1922 = vmatpush.bf16.msra.mxu1 %v3116_v30  ;;  %v3412_v30 = vor.u32 %v3806_v18, %v3411_v17  ;;  %v3832_v17 = vld [vmem:[%s5794_s1 + $0x7b4] sm:$0xf0]  ;;  %v3443_v18 = vld [vmem:[%s5794_s1 + $0x720] sm:$0xf] }
  0x5e   :  { %1941 = vmatpush.bf16.msra.mxu2 %v3180_v20  ;;  %v3539_v20 = vld [vmem:[%s5794_s1 + $0x7e0] sm:$0xf] }
  0x5f   :  { %1960 = vmatpush.bf16.msra.mxu3 %v3244_v34  ;;  %v3540_v31 = vor.u32 %v3838_v21, %v3539_v20  ;;  %v3468_v34 = vor.u32 %v3820_v25, %v3467_v22  ;;  %v3315_v20 = vld [vmem:[%s5794_s1 + $0x620] sm:$0xf]  ;;  %v3782_v21 = vld [vmem:[%s5794_s1 + $0x624] sm:$0xf0] }
  0x60   :  { %1904 = vmatpush.bf16.msra.mxu0 %v3044_v47  ;;  %v2507_v22 = vld [vmem:[%s5795_s0 + $0xa8] sm:$0xf]  ;;  %v3507_v36 = vld [vmem:[%s5794_s1 + $0x7a0] sm:$0xf] }
  0x61   :  { %1923 = vmatpush.bf16.msra.mxu1 %v3108_v49  ;;  %v3332_v49 = vor.u32 %v3786_v41, %v3331_v40  ;;  %v3582_v25 = vld [vmem:[%s5795_s0 + $0xe4] sm:$0xf0]  ;;  %v4795_v40 = vor.u32 %v3573_v10, %v2501_v11  ;;  %v3812_v41 = vld [vmem:[%s5794_s1 + $0x714] sm:$0xf0]  ;;  %v3599_v10 = vld [vmem:[%s5794_s1 + $0x74] sm:$0xf] }
  0x62   :  { %1942 = vmatpush.bf16.msra.mxu2 %v3172_v35  ;;  %v3340_v35 = vor.u32 %v3788_v27, %v3339_v26  ;;  %v3574_v26 = vld [vmem:[%s5795_s0 + $0xac] sm:$0xf]  ;;  %v2589_v11 = vld [vmem:[%s5794_s1 + $0x78] sm:$0xf0] }
  0x63   :  { %1961 = vmatpush.bf16.msra.mxu3 %v3236_v58  ;;  %1905 = vmatmul.bf16.vlgmr.msra.gmra.mxu0 %v4661_v23  ;;  %v3451_v58 = vld [vmem:[%s5794_s1 + $0x730] sm:$0xf]  ;;  %v2509_v27 = vld [vmem:[%s5795_s0 + $0xe8] sm:$0xf0] }
  0x64   :  { %1973 = vmatpush.bf16.msrb.mxu0 %v3356_v62  ;;  %1924 = vmatmul.bf16.vlgmr.msra.gmra.mxu1 %v4663_v24  ;;  %v3396_v62 = vor.u32 %v3802_v46, %v3395_v45  ;;  %v3452_v12 = vor.u32 %v3816_v59, %v3451_v58  ;;  %v4806_v45 = vor.u32 %v3582_v25, %v2507_v22  ;;  %v3499_v58 = vld [vmem:[%s5794_s1 + $0x790] sm:$0xf]  ;;  %v3615_v22 = vld [vmem:[%s5794_s1 + $0xf4] sm:$0xf]  ;;  %v2653_v25 = vld [vmem:[%s5794_s1 + $0xf8] sm:$0xf0] }
  0x65   :  { %1992 = vmatpush.bf16.msrb.mxu1 %v3420_v2  ;;  %1943 = vmatmul.bf16.vlgmr.msra.gmra.mxu2 %v4674_v28  ;;  %v3387_v2 = vld [vmem:[%s5794_s1 + $0x6b0] sm:$0xf]  ;;  %v4808_v46 = vor.u32 %v3574_v26, %v2509_v27  ;;  %v2592_v27 = vor.u32 %v3599_v10, %v2589_v11 }
  0x66   :  { %2011 = vmatpush.bf16.msrb.mxu2 %v3484_v39  ;;  %v3818_v39 = vld [vmem:[%s5794_s1 + $0x744] sm:$0xf0]  ;;  %1962 = vmatmul.bf16.vlgmr.msra.gmra.mxu3 %v4676_v29 }
  0x67   :  { %2030 = vmatpush.bf16.msrb.mxu3 %v3548_v3  ;;  %v3460_v47 = vor.u32 %v3818_v39, %v3459_v38  ;;  %v3800_v3 = vld [vmem:[%s5794_s1 + $0x6b4] sm:$0xf0]  ;;  %v3435_v38 = vld [vmem:[%s5794_s1 + $0x710] sm:$0xf]  ;;  %v4793_v39 = vor.u32 %v3581_v7, %v2499_v4  ;;  %v3631_v4 = vld [vmem:[%s5794_s1 + $0x174] sm:$0xf] }
  0x68   :  { %1974 = vmatpush.bf16.msrb.mxu0 %v3348_v19  ;;  %v3814_v19 = vld [vmem:[%s5794_s1 + $0x724] sm:$0xf0]  ;;  %v3436_v59 = vor.u32 %v3812_v41, %v3435_v38  ;;  %v2717_v7 = vld [vmem:[%s5794_s1 + $0x178] sm:$0xf0]  ;;  %v2451_v38 = vld [vmem:[%s5795_s0 + $0x30] sm:$0xf] }
  0x69   :  { %1993 = vmatpush.bf16.msrb.mxu1 %v3412_v30  ;;  %v3388_v30 = vor.u32 %v3800_v3, %v3387_v2  ;;  %v3299_v2 = vld [vmem:[%s5794_s1 + $0x600] sm:$0xf]  ;;  %v3778_v3 = vld [vmem:[%s5794_s1 + $0x604] sm:$0xf0]  ;;  %v2720_v26 = vor.u32 %v3631_v4, %v2717_v7  ;;  %v3567_v41 = vld [vmem:[%s5795_s0 + $0x6c] sm:$0xf0] }
  0x6a   :  { %2012 = vmatpush.bf16.msrb.mxu2 %v3476_v15  ;;  %v3324_v15 = vor.u32 %v3784_v61, %v3323_v60  ;;  %v3828_v61 = vld [vmem:[%s5794_s1 + $0x794] sm:$0xf0]  ;;  %v3627_v4 = vld [vmem:[%s5794_s1 + $0x154] sm:$0xf]  ;;  %v2701_v7 = vld [vmem:[%s5794_s1 + $0x158] sm:$0xf0] }
  0x6b   :  { %2031 = vmatpush.bf16.msrb.mxu3 %v3540_v31  ;;  %v3516_v31 = vor.u32 %v3832_v17, %v3515_v16  ;;  %v3363_v16 = vld [vmem:[%s5794_s1 + $0x680] sm:$0xf]  ;;  %v3794_v17 = vld [vmem:[%s5794_s1 + $0x684] sm:$0xf0] }
  0x6c   :  { %1975 = vmatpush.bf16.msrb.mxu0 %v3340_v35  ;;  %v3316_v35 = vor.u32 %v3782_v21, %v3315_v20  ;;  %v3300_v20 = vor.u32 %v3778_v3, %v3299_v2  ;;  %v3826_v21 = vld [vmem:[%s5794_s1 + $0x784] sm:$0xf0]  ;;  %v3560_v2 = vld [vmem:[%s5795_s0 + $0x3c] sm:$0xf] }
  0x6d   :  { %1994 = vmatpush.bf16.msrb.mxu1 %v3404_v42  ;;  %v3307_v42 = vld [vmem:[%s5794_s1 + $0x610] sm:$0xf]  ;;  %v2461_v3 = vld [vmem:[%s5795_s0 + $0x78] sm:$0xf0] }
  0x6e   :  { %2013 = vmatpush.bf16.msrb.mxu2 %v3468_v34  ;;  %v3444_v34 = vor.u32 %v3814_v19, %v3443_v18  ;;  %v3491_v18 = vld [vmem:[%s5794_s1 + $0x780] sm:$0xf] }
  0x6f   :  { %2032 = vmatpush.bf16.msrb.mxu3 %v3532_v43  ;;  %v3780_v43 = vld [vmem:[%s5794_s1 + $0x614] sm:$0xf0] }
  0x70   :  { %1976 = vmatpush.bf16.msrb.mxu0 %v3332_v49  ;;  %v3508_v49 = vor.u32 %v3830_v37, %v3507_v36  ;;  %v3308_v60 = vor.u32 %v3780_v43, %v3307_v42  ;;  %v3364_v36 = vor.u32 %v3794_v17, %v3363_v16  ;;  %v3492_v37 = vor.u32 %v3826_v21, %v3491_v18  ;;  %v3559_v42 = vld [vmem:[%s5795_s0 + $0x34] sm:$0xf]  ;;  %v2765_v21 = vld [vmem:[%s5794_s1 + $0x1d8] sm:$0xf0] }
  0x71   :  { %1995 = vmatpush.bf16.msrb.mxu1 %v3396_v62  ;;  %v3427_v62 = vld [vmem:[%s5794_s1 + $0x700] sm:$0xf]  ;;  %v2453_v43 = vld [vmem:[%s5795_s0 + $0x70] sm:$0xf0]  ;;  %v4937_v17 = vor.u32 %v3567_v41, %v2451_v38  ;;  %v3641_v38 = vld [vmem:[%s5794_s1 + $0x1c4] sm:$0xf] }
  0x72   :  { %2014 = vmatpush.bf16.msrb.mxu2 %v3460_v47  ;;  %v3380_v47 = vor.u32 %v3798_v33, %v3379_v32  ;;  %v3629_v32 = vld [vmem:[%s5794_s1 + $0x164] sm:$0xf]  ;;  %v2709_v33 = vld [vmem:[%s5794_s1 + $0x168] sm:$0xf0]  ;;  %v3611_v16 = vld [vmem:[%s5794_s1 + $0xd4] sm:$0xf]  ;;  %v4939_v18 = vor.u32 %v3559_v42, %v2453_v43 }
  0x73   :  { %2033 = vmatpush.bf16.msrb.mxu3 %v3524_v63  ;;  %v3810_v63 = vld [vmem:[%s5794_s1 + $0x704] sm:$0xf0]  ;;  %1910 = vmatmul.bf16.gmra.mxu0 %v4793_v39  ;;  %v2757_v41 = vld [vmem:[%s5794_s1 + $0x1c8] sm:$0xf0] }
  0x74   :  { %1977 = vmatpush.bf16.msrb.mxu0 %v3324_v15  ;;  %1929 = vmatmul.bf16.gmra.mxu1 %v4795_v40  ;;  %v3500_v15 = vor.u32 %v3828_v61, %v3499_v58  ;;  %v3428_v19 = vor.u32 %v3810_v63, %v3427_v62  ;;  %v2773_v61 = vld [vmem:[%s5794_s1 + $0x1e8] sm:$0xf0]  ;;  %v2459_v62 = vld [vmem:[%s5795_s0 + $0x38] sm:$0xf] }
  0x75   :  { %1996 = vmatpush.bf16.msrb.mxu1 %v3388_v30  ;;  %1948 = vmatmul.bf16.gmra.mxu2 %v4806_v45  ;;  %v3647_v30 = vld [vmem:[%s5794_s1 + $0x1f4] sm:$0xf]  ;;  %v3568_v63 = vld [vmem:[%s5795_s0 + $0x74] sm:$0xf0] }
  0x76   :  { %2015 = vmatpush.bf16.msrb.mxu2 %v3452_v12  ;;  %1967 = vmatmul.bf16.gmra.mxu3 %v4808_v46  ;;  %v3372_v12 = vor.u32 %v3796_v55, %v3371_v52  ;;  %v3613_v52 = vld [vmem:[%s5794_s1 + $0xe4] sm:$0xf]  ;;  %v2712_v55 = vor.u32 %v3629_v32, %v2709_v33 }
  0x77   :  { %2034 = vmatpush.bf16.msrb.mxu3 %v3516_v31  ;;  %v2781_v31 = vld [vmem:[%s5794_s1 + $0x1f8] sm:$0xf0] }
  0x78   :  { %1978 = vmatpush.bf16.msrb.mxu0 %v3316_v35  ;;  %v2581_v35 = vld [vmem:[%s5794_s1 + $0x68] sm:$0xf0] }
  0x79   :  { %1997 = vmatpush.bf16.msrb.mxu1 %v3380_v47  ;;  %v2656_v47 = vor.u32 %v3615_v22, %v2653_v25  ;;  %v4950_v22 = vor.u32 %v3568_v63, %v2459_v62  ;;  %v4952_v25 = vor.u32 %v3560_v2, %v2461_v3  ;;  %v3639_v62 = vld [vmem:[%s5794_s1 + $0x1b4] sm:$0xf]  ;;  %v2749_v63 = vld [vmem:[%s5794_s1 + $0x1b8] sm:$0xf0] }
  0x7a   :  { %2016 = vmatpush.bf16.msrb.mxu2 %v3444_v34  ;;  %v3597_v34 = vld [vmem:[%s5794_s1 + $0x64] sm:$0xf] }
  0x7b   :  { %2035 = vmatpush.bf16.msrb.mxu3 %v3508_v49  ;;  %v2784_v49 = vor.u32 %v3647_v30, %v2781_v31  ;;  %v2584_v58 = vor.u32 %v3597_v34, %v2581_v35  ;;  %v3625_v30 = vld [vmem:[%s5794_s1 + $0x144] sm:$0xf]  ;;  %v2693_v31 = vld [vmem:[%s5794_s1 + $0x148] sm:$0xf0] }
  0x7c   :  { %1979 = vmatpush.bf16.msrb.mxu0 %v3308_v60  ;;  %v3645_v60 = vld [vmem:[%s5794_s1 + $0x1e4] sm:$0xf]  ;;  %v2565_v35 = vld [vmem:[%s5794_s1 + $0x48] sm:$0xf0]  ;;  %v2696_v42 = vor.u32 %v3625_v30, %v2693_v31 }
  0x7d   :  { %1998 = vmatpush.bf16.msrb.mxu1 %v3372_v12  ;;  %v2776_v11 = vor.u32 %v3645_v60, %v2773_v61  ;;  %v3595_v12 = vld [vmem:[%s5794_s1 + $0x54] sm:$0xf]  ;;  %v3593_v34 = vld [vmem:[%s5794_s1 + $0x44] sm:$0xf]  ;;  %v2621_v61 = vld [vmem:[%s5794_s1 + $0xb8] sm:$0xf0] }
  0x7e   :  { %2017 = vmatpush.bf16.msrb.mxu2 %v3436_v59  ;;  %v2645_v59 = vld [vmem:[%s5794_s1 + $0xe8] sm:$0xf0]  ;;  %v2568_v43 = vor.u32 %v3593_v34, %v2565_v35  ;;  %v3607_v60 = vld [vmem:[%s5794_s1 + $0xb4] sm:$0xf]  ;;  %v3637_v30 = vld [vmem:[%s5794_s1 + $0x1a4] sm:$0xf] }
  0x7f   :  { %2036 = vmatpush.bf16.msrb.mxu3 %v3500_v15  ;;  %v2648_v10 = vor.u32 %v3613_v52, %v2645_v59  ;;  %v2573_v15 = vld [vmem:[%s5794_s1 + $0x58] sm:$0xf0]  ;;  %v2741_v31 = vld [vmem:[%s5794_s1 + $0x1a8] sm:$0xf0] }
  0x80   :  { %1980 = vmatpush.bf16.msrb.mxu0 %v3300_v20  ;;  %v3643_v20 = vld [vmem:[%s5794_s1 + $0x1d4] sm:$0xf]  ;;  %v2557_v59 = vld [vmem:[%s5794_s1 + $0x38] sm:$0xf0] }
  0x81   :  { %1999 = vmatpush.bf16.msrb.mxu1 %v3364_v36  ;;  %v2768_v33 = vor.u32 %v3643_v20, %v2765_v21  ;;  %v3609_v36 = vld [vmem:[%s5794_s1 + $0xc4] sm:$0xf]  ;;  %v2549_v21 = vld [vmem:[%s5794_s1 + $0x28] sm:$0xf0]  ;;  %v3576_v34 = vld [vmem:[%s5795_s0 + $0xbc] sm:$0xf] }
  0x82   :  { %2018 = vmatpush.bf16.msrb.mxu2 %v3428_v19  ;;  %v2637_v19 = vld [vmem:[%s5794_s1 + $0xd8] sm:$0xf0]  ;;  %v3589_v20 = vld [vmem:[%s5794_s1 + $0x24] sm:$0xf] }
  0x83   :  { %2037 = vmatpush.bf16.msrb.mxu3 %v3492_v37  ;;  %v2640_v32 = vor.u32 %v3611_v16, %v2637_v19  ;;  %1981 = vmatmul.bf16.vlgmr.msrb.gmra.mxu0 %v4937_v17  ;;  %v2629_v37 = vld [vmem:[%s5794_s1 + $0xc8] sm:$0xf0]  ;;  %v2624_v16 = vor.u32 %v3607_v60, %v2621_v61  ;;  %v2752_v19 = vor.u32 %v3639_v62, %v2749_v63  ;;  %v2525_v35 = vld [vmem:[%s5795_s0 + $0xf8] sm:$0xf0]  ;;  %v3635_v60 = vld [vmem:[%s5794_s1 + $0x194] sm:$0xf] }
  0x84   :  { %2049 = vmatpush.bf16.msra.mxu0 %v2592_v27  ;;  %v2576_v27 = vor.u32 %v3595_v12, %v2573_v15  ;;  %2000 = vmatmul.bf16.vlgmr.msrb.gmra.mxu1 %v4939_v18  ;;  %v2632_v52 = vor.u32 %v3609_v36, %v2629_v37  ;;  %v3575_v12 = vld [vmem:[%s5795_s0 + $0xb4] sm:$0xf]  ;;  %v2552_v37 = vor.u32 %v3589_v20, %v2549_v21  ;;  %v2733_v61 = vld [vmem:[%s5794_s1 + $0x198] sm:$0xf0]  ;;  %v3633_v20 = vld [vmem:[%s5794_s1 + $0x184] sm:$0xf] }
  0x85   :  { %2068 = vmatpush.bf16.msra.mxu1 %v2656_v47  ;;  %2019 = vmatmul.bf16.vlgmr.msrb.gmra.mxu2 %v4950_v22  ;;  %v3623_v47 = vld [vmem:[%s5794_s1 + $0x134] sm:$0xf]  ;;  %v5084_v63 = vor.u32 %v3576_v34, %v2525_v35  ;;  %v2725_v21 = vld [vmem:[%s5794_s1 + $0x188] sm:$0xf0]  ;;  %v2909_v35 = vld [vmem:[%s5794_s1 + $0x2f8] sm:$0xf0] }
  0x86   :  { %2087 = vmatpush.bf16.msra.mxu2 %v2720_v26  ;;  %v2704_v26 = vor.u32 %v3627_v4, %v2701_v7  ;;  %2038 = vmatmul.bf16.vlgmr.msrb.gmra.mxu3 %v4952_v25  ;;  %v3621_v4 = vld [vmem:[%s5794_s1 + $0x124] sm:$0xf]  ;;  %v2677_v7 = vld [vmem:[%s5794_s1 + $0x128] sm:$0xf0]  ;;  %v2517_v15 = vld [vmem:[%s5795_s0 + $0xf0] sm:$0xf0] }
  0x87   :  { %2106 = vmatpush.bf16.msra.mxu3 %v2784_v49  ;;  %v2685_v49 = vld [vmem:[%s5794_s1 + $0x138] sm:$0xf0]  ;;  %v2680_v36 = vor.u32 %v3621_v4, %v2677_v7  ;;  %v2661_v7 = vld [vmem:[%s5794_s1 + $0x108] sm:$0xf0] }
  0x88   :  { %2050 = vmatpush.bf16.msra.mxu0 %v2584_v58  ;;  %v3591_v58 = vld [vmem:[%s5794_s1 + $0x34] sm:$0xf]  ;;  %v2688_v2 = vor.u32 %v3623_v47, %v2685_v49  ;;  %v2541_v49 = vld [vmem:[%s5794_s1 + $0x18] sm:$0xf0] }
  0x89   :  { %2069 = vmatpush.bf16.msra.mxu1 %v2648_v10  ;;  %v2560_v3 = vor.u32 %v3591_v58, %v2557_v59  ;;  %v2515_v10 = vld [vmem:[%s5795_s0 + $0xb0] sm:$0xf]  ;;  %v3587_v47 = vld [vmem:[%s5794_s1 + $0x14] sm:$0xf]  ;;  %v5071_v58 = vor.u32 %v3575_v12, %v2517_v15  ;;  %v2605_v59 = vld [vmem:[%s5794_s1 + $0x98] sm:$0xf0]  ;;  %v2736_v15 = vor.u32 %v3635_v60, %v2733_v61 }
  0x8a   :  { %2088 = vmatpush.bf16.msra.mxu2 %v2712_v55  ;;  %v2760_v55 = vor.u32 %v3641_v38, %v2757_v41  ;;  %v3619_v38 = vld [vmem:[%s5794_s1 + $0x114] sm:$0xf]  ;;  %v2669_v41 = vld [vmem:[%s5794_s1 + $0x118] sm:$0xf0]  ;;  %v2544_v4 = vor.u32 %v3587_v47, %v2541_v49  ;;  %v3693_v47 = vld [vmem:[%s5794_s1 + $0x364] sm:$0xf] }
  0x8b   :  { %2107 = vmatpush.bf16.msra.mxu3 %v2776_v11  ;;  %v3583_v11 = vld [vmem:[%s5795_s0 + $0xec] sm:$0xf0]  ;;  %v2965_v49 = vld [vmem:[%s5794_s1 + $0x368] sm:$0xf0]  ;;  %v3661_v60 = vld [vmem:[%s5794_s1 + $0x264] sm:$0xf] }
  0x8c   :  { %2051 = vmatpush.bf16.msra.mxu0 %v2576_v27  ;;  %v2613_v27 = vld [vmem:[%s5794_s1 + $0xa8] sm:$0xf0] }
  0x8d   :  { %2070 = vmatpush.bf16.msra.mxu1 %v2640_v32  ;;  %v2523_v32 = vld [vmem:[%s5795_s0 + $0xb8] sm:$0xf]  ;;  %v2837_v61 = vld [vmem:[%s5794_s1 + $0x268] sm:$0xf0] }
  0x8e   :  { %2089 = vmatpush.bf16.msra.mxu2 %v2704_v26  ;;  %v3605_v26 = vld [vmem:[%s5794_s1 + $0xa4] sm:$0xf] }
  0x8f   :  { %2108 = vmatpush.bf16.msra.mxu3 %v2768_v33  ;;  %v3584_v33 = vld [vmem:[%s5795_s0 + $0xf4] sm:$0xf0] }
  0x90   :  { %2052 = vmatpush.bf16.msra.mxu0 %v2568_v43  ;;  %v2744_v43 = vor.u32 %v3637_v30, %v2741_v31  ;;  %v5082_v62 = vor.u32 %v3584_v33, %v2523_v32  ;;  %v3663_v30 = vld [vmem:[%s5794_s1 + $0x274] sm:$0xf]  ;;  %v2845_v31 = vld [vmem:[%s5794_s1 + $0x278] sm:$0xf0] }
  0x91   :  { %2071 = vmatpush.bf16.msra.mxu1 %v2632_v52  ;;  %v3603_v52 = vld [vmem:[%s5794_s1 + $0x94] sm:$0xf] }
  0x92   :  { %2090 = vmatpush.bf16.msra.mxu2 %v2696_v42  ;;  %v2616_v42 = vor.u32 %v3605_v26, %v2613_v27  ;;  %v2608_v12 = vor.u32 %v3603_v52, %v2605_v59  ;;  %v3695_v26 = vld [vmem:[%s5794_s1 + $0x374] sm:$0xf]  ;;  %v2973_v27 = vld [vmem:[%s5794_s1 + $0x378] sm:$0xf0] }
  0x93   :  { %2109 = vmatpush.bf16.msra.mxu3 %v2760_v55  ;;  %v5069_v55 = vor.u32 %v3583_v11, %v2515_v10  ;;  %v3585_v10 = vld [vmem:[%s5794_s1 + $0x4] sm:$0xf]  ;;  %v2533_v11 = vld [vmem:[%s5794_s1 + $0x8] sm:$0xf0]  ;;  %v3679_v32 = vld [vmem:[%s5794_s1 + $0x2f4] sm:$0xf] }
  0x94   :  { %2053 = vmatpush.bf16.msra.mxu0 %v2560_v3  ;;  %v2672_v3 = vor.u32 %v3619_v38, %v2669_v41  ;;  %2005 = vmatmul.bf16.gmra.mxu1 %v5071_v58  ;;  %v2536_v34 = vor.u32 %v3585_v10, %v2533_v11  ;;  %v2728_v41 = vor.u32 %v3633_v20, %v2725_v21  ;;  %v3659_v20 = vld [vmem:[%s5794_s1 + $0x254] sm:$0xf]  ;;  %v2829_v21 = vld [vmem:[%s5794_s1 + $0x258] sm:$0xf0] }
  0x95   :  { %2072 = vmatpush.bf16.msra.mxu1 %v2624_v16  ;;  %v3601_v16 = vld [vmem:[%s5794_s1 + $0x84] sm:$0xf]  ;;  %1986 = vmatmul.bf16.gmra.mxu0 %v5069_v55  ;;  %v2912_v52 = vor.u32 %v3679_v32, %v2909_v35  ;;  %v2968_v10 = vor.u32 %v3693_v47, %v2965_v49  ;;  %v2840_v11 = vor.u32 %v3661_v60, %v2837_v61  ;;  %v3021_v32 = vld [vmem:[%s5794_s1 + $0x3d8] sm:$0xf0]  ;;  %v2821_v47 = vld [vmem:[%s5794_s1 + $0x248] sm:$0xf0] }
  0x96   :  { %2091 = vmatpush.bf16.msra.mxu2 %v2688_v2  ;;  %v3617_v2 = vld [vmem:[%s5794_s1 + $0x104] sm:$0xf]  ;;  %2043 = vmatmul.bf16.gmra.mxu3 %v5084_v63  ;;  %v3013_v60 = vld [vmem:[%s5794_s1 + $0x3c8] sm:$0xf0]  ;;  %v3687_v61 = vld [vmem:[%s5794_s1 + $0x334] sm:$0xf] }
  0x97   :  { %2110 = vmatpush.bf16.msra.mxu3 %v2752_v19  ;;  %v2597_v19 = vld [vmem:[%s5794_s1 + $0x88] sm:$0xf0]  ;;  %2024 = vmatmul.bf16.gmra.mxu2 %v5082_v62  ;;  %v2664_v33 = vor.u32 %v3617_v2, %v2661_v7  ;;  %v3677_v2 = vld [vmem:[%s5794_s1 + $0x2e4] sm:$0xf] }
  0x98   :  { %2054 = vmatpush.bf16.msra.mxu0 %v2552_v37  ;;  %v3037_v37 = vld [vmem:[%s5794_s1 + $0x3f8] sm:$0xf0]  ;;  %v2600_v38 = vor.u32 %v3601_v16, %v2597_v19  ;;  %v3029_v7 = vld [vmem:[%s5794_s1 + $0x3e8] sm:$0xf0]  ;;  %v3691_v16 = vld [vmem:[%s5794_s1 + $0x354] sm:$0xf] }
  0x99   :  { %2073 = vmatpush.bf16.msra.mxu1 %v2616_v42  ;;  %v2976_v42 = vor.u32 %v3695_v26, %v2973_v27  ;;  %v2957_v19 = vld [vmem:[%s5794_s1 + $0x358] sm:$0xf0]  ;;  %v3675_v26 = vld [vmem:[%s5794_s1 + $0x2d4] sm:$0xf]  ;;  %v3673_v49 = vld [vmem:[%s5794_s1 + $0x2c4] sm:$0xf] }
  0x9a   :  { %2092 = vmatpush.bf16.msra.mxu2 %v2680_v36  ;;  %v3711_v36 = vld [vmem:[%s5794_s1 + $0x3f4] sm:$0xf]  ;;  %v2960_v35 = vor.u32 %v3691_v16, %v2957_v19  ;;  %v2877_v16 = vld [vmem:[%s5794_s1 + $0x2b8] sm:$0xf0] }
  0x9b   :  { %2111 = vmatpush.bf16.msra.mxu3 %v2744_v43  ;;  %v2848_v43 = vor.u32 %v3663_v30, %v2845_v31  ;;  %v3040_v59 = vor.u32 %v3711_v36, %v3037_v37  ;;  %v2893_v30 = vld [vmem:[%s5794_s1 + $0x2d8] sm:$0xf0]  ;;  %v3707_v31 = vld [vmem:[%s5794_s1 + $0x3d4] sm:$0xf]  ;;  %v2832_v36 = vor.u32 %v3659_v20, %v2829_v21  ;;  %v3689_v37 = vld [vmem:[%s5794_s1 + $0x344] sm:$0xf] }
  0x9c   :  { %2055 = vmatpush.bf16.msra.mxu0 %v2544_v4  ;;  %v3709_v4 = vld [vmem:[%s5794_s1 + $0x3e4] sm:$0xf]  ;;  %v3703_v19 = vld [vmem:[%s5794_s1 + $0x3b4] sm:$0xf]  ;;  %v3005_v20 = vld [vmem:[%s5794_s1 + $0x3b8] sm:$0xf0] }
  0x9d   :  { %2074 = vmatpush.bf16.msra.mxu1 %v2608_v12 }
  0x9e   :  { %2093 = vmatpush.bf16.msra.mxu2 %v2672_v3  ;;  %v2901_v3 = vld [vmem:[%s5794_s1 + $0x2e8] sm:$0xf0] }
  0x9f   :  { %2112 = vmatpush.bf16.msra.mxu3 %v2736_v15  ;;  %v2904_v12 = vor.u32 %v3677_v2, %v2901_v3  ;;  %v3032_v15 = vor.u32 %v3709_v4, %v3029_v7  ;;  %v2941_v2 = vld [vmem:[%s5794_s1 + $0x338] sm:$0xf0] }
  0xa0   :  { %2056 = vmatpush.bf16.msra.mxu0 %v2536_v34  ;;  %v1754_v27 = vpop.f32.mrf.mxu0 }
  0xa1   :  { %2075 = vmatpush.bf16.msra.mxu1 %v2600_v38  ;;  %v2949_v38 = vld [vmem:[%s5794_s1 + $0x348] sm:$0xf0] }
  0xa2   :  { %2094 = vmatpush.bf16.msra.mxu2 %v2664_v33  ;;  %v1773_v33 = vpop.f32.mrf.mxu1 }
  0xa3   :  { %2113 = vmatpush.bf16.msra.mxu3 %v2728_v41  ;;  %v1774_v34 = vadd.f32 %v1773_v33, %v1754_v27  ;;  %v2896_v41 = vor.u32 %v3675_v26, %v2893_v30  ;;  %v2944_v26 = vor.u32 %v3687_v61, %v2941_v2  ;;  %v2933_v33 = vld [vmem:[%s5794_s1 + $0x328] sm:$0xf0]  ;;  %v3651_v61 = vld [vmem:[%s5794_s1 + $0x214] sm:$0xf]  ;;  %v2797_v2 = vld [vmem:[%s5794_s1 + $0x218] sm:$0xf0] }
  0xa4   :  { %2125 = vmatpush.bf16.msrb.mxu0 %v2848_v43  ;;  %v3657_v43 = vld [vmem:[%s5794_s1 + $0x244] sm:$0xf]  ;;  %2076 = vmatmul.bf16.vlgmr.msra.gmra.mxu1 %v4114_v53 }
  0xa5   :  { %2144 = vmatpush.bf16.msrb.mxu1 %v2912_v52  ;;  %2057 = vmatmul.bf16.vlgmr.msra.gmra.mxu0 %v4103_v48  ;;  %v2885_v52 = vld [vmem:[%s5794_s1 + $0x2c8] sm:$0xf0]  ;;  %v2952_v48 = vor.u32 %v3689_v37, %v2949_v38  ;;  %v2824_v53 = vor.u32 %v3657_v43, %v2821_v47  ;;  %v3669_v38 = vld [vmem:[%s5794_s1 + $0x2a4] sm:$0xf] }
  0xa6   :  { %2163 = vmatpush.bf16.msrb.mxu2 %v2976_v42  ;;  %v3024_v42 = vor.u32 %v3707_v31, %v3021_v32  ;;  %2114 = vmatmul.bf16.vlgmr.msra.gmra.mxu3 %v4124_v57  ;;  %v2888_v4 = vor.u32 %v3673_v49, %v2885_v52  ;;  %v2813_v57 = vld [vmem:[%s5794_s1 + $0x238] sm:$0xf0]  ;;  %v3685_v32 = vld [vmem:[%s5794_s1 + $0x324] sm:$0xf]  ;;  %v2805_v37 = vld [vmem:[%s5794_s1 + $0x228] sm:$0xf0] }
  0xa7   :  { %2182 = vmatpush.bf16.msrb.mxu3 %v3040_v59  ;;  %v3705_v59 = vld [vmem:[%s5794_s1 + $0x3c4] sm:$0xf]  ;;  %2095 = vmatmul.bf16.vlgmr.msra.gmra.mxu2 %v4116_v54  ;;  %v3655_v54 = vld [vmem:[%s5794_s1 + $0x234] sm:$0xf]  ;;  %v2997_v43 = vld [vmem:[%s5794_s1 + $0x3a8] sm:$0xf0]  ;;  %v2936_v47 = vor.u32 %v3685_v32, %v2933_v33 }
  0xa8   :  { %2126 = vmatpush.bf16.msrb.mxu0 %v2840_v11  ;;  %v1792_v3 = vpop.f32.mrf.mxu2  ;;  %v3016_v7 = vor.u32 %v3705_v59, %v3013_v60  ;;  %v2816_v31 = vor.u32 %v3655_v54, %v2813_v57  ;;  %v3683_v52 = vld [vmem:[%s5794_s1 + $0x314] sm:$0xf]  ;;  %v2925_v59 = vld [vmem:[%s5794_s1 + $0x318] sm:$0xf0] }
  0xa9   :  { %2145 = vmatpush.bf16.msrb.mxu1 %v2904_v12  ;;  %v1793_v11 = vadd.f32 %v1792_v3, %v1774_v34  ;;  %v1811_v12 = vpop.f32.mrf.mxu3  ;;  %v3667_v3 = vld [vmem:[%s5794_s1 + $0x294] sm:$0xf]  ;;  %v2861_v57 = vld [vmem:[%s5794_s1 + $0x298] sm:$0xf0] }
  0xaa   :  { %2164 = vmatpush.bf16.msrb.mxu2 %v2968_v10  ;;  %v3671_v10 = vld [vmem:[%s5794_s1 + $0x2b4] sm:$0xf]  ;;  %v1775_v21 = vpop.f32.mrf.mxu1  ;;  %v2864_v32 = vor.u32 %v3667_v3, %v2861_v57 }
  0xab   :  { %2183 = vmatpush.bf16.msrb.mxu3 %v3032_v15  ;;  %v1756_v15 = vpop.f32.mrf.mxu0  ;;  %v5238_v27 = vadd.f32 %v1811_v12, %v1793_v11  ;;  %v2880_v34 = vor.u32 %v3671_v10, %v2877_v16  ;;  %v3699_v10 = vld [vmem:[%s5794_s1 + $0x394] sm:$0xf]  ;;  %v2989_v11 = vld [vmem:[%s5794_s1 + $0x398] sm:$0xf0]  ;;  %v3681_v16 = vld [vmem:[%s5794_s1 + $0x304] sm:$0xf] }
  0xac   :  { %2127 = vmatpush.bf16.msrb.mxu0 %v2832_v36  ;;  %v1776_v30 = vadd.f32 %v1775_v21, %v1756_v15  ;;  %v3653_v36 = vld [vmem:[%s5794_s1 + $0x224] sm:$0xf]  ;;  %v2928_v15 = vor.u32 %v3683_v52, %v2925_v59  ;;  %v2800_v21 = vor.u32 %v3651_v61, %v2797_v2  ;;  %v2992_v33 = vor.u32 %v3699_v10, %v2989_v11 }
  0xad   :  { %2146 = vmatpush.bf16.msrb.mxu1 %v2896_v41  ;;  %v2869_v41 = vld [vmem:[%s5794_s1 + $0x2a8] sm:$0xf0]  ;;  %v2808_v49 = vor.u32 %v3653_v36, %v2805_v37  ;;  %v3697_v36 = vld [vmem:[%s5794_s1 + $0x384] sm:$0xf] }
  0xae   :  { %2165 = vmatpush.bf16.msrb.mxu2 %v2960_v35  ;;  %v3008_v35 = vor.u32 %v3703_v19, %v3005_v20  ;;  %v2981_v37 = vld [vmem:[%s5794_s1 + $0x388] sm:$0xf0]  ;;  %v3725_v11 = vld [vmem:[%s5794_s1 + $0x464] sm:$0xf] }
  0xaf   :  { %2184 = vmatpush.bf16.msrb.mxu3 %v3024_v42  ;;  %v3701_v42 = vld [vmem:[%s5794_s1 + $0x3a4] sm:$0xf] }
  0xb0   :  { %2128 = vmatpush.bf16.msrb.mxu0 %v2824_v53  ;;  %v1794_v60 = vpop.f32.mrf.mxu2  ;;  %v3000_v53 = vor.u32 %v3701_v42, %v2997_v43  ;;  %v3743_v42 = vld [vmem:[%s5794_s1 + $0x4f4] sm:$0xf] }
  0xb1   :  { %2147 = vmatpush.bf16.msrb.mxu1 %v2888_v4  ;;  %v1795_v4 = vadd.f32 %v1794_v60, %v1776_v30  ;;  %v3649_v30 = vld [vmem:[%s5794_s1 + $0x204] sm:$0xf]  ;;  %v2984_v60 = vor.u32 %v3697_v36, %v2981_v37  ;;  %v3213_v36 = vld [vmem:[%s5794_s1 + $0x558] sm:$0xf0] }
  0xb2   :  { %2166 = vmatpush.bf16.msrb.mxu2 %v2952_v48  ;;  %v2872_v48 = vor.u32 %v3669_v38, %v2869_v41  ;;  %v1778_v12 = vpop.f32.mrf.mxu1  ;;  %v3759_v38 = vld [vmem:[%s5794_s1 + $0x574] sm:$0xf]  ;;  %v3229_v41 = vld [vmem:[%s5794_s1 + $0x578] sm:$0xf0] }
  0xb3   :  { %2185 = vmatpush.bf16.msrb.mxu3 %v3016_v7  ;;  %v1813_v7 = vpop.f32.mrf.mxu3  ;;  %v1759_v54 = vpop.f32.mrf.mxu0  ;;  %v3232_v2 = vor.u32 %v3759_v38, %v3229_v41  ;;  %v3723_v38 = vld [vmem:[%s5794_s1 + $0x454] sm:$0xf]  ;;  %v3085_v41 = vld [vmem:[%s5794_s1 + $0x458] sm:$0xf0] }
  0xb4   :  { %2129 = vmatpush.bf16.msrb.mxu0 %v2816_v31  ;;  %v5291_v19 = vadd.f32 %v1813_v7, %v1795_v4  ;;  %v1779_v20 = vadd.f32 %v1778_v12, %v1759_v54  ;;  %v2789_v31 = vld [vmem:[%s5794_s1 + $0x208] sm:$0xf0]  ;;  %2081 = vmatmul.bf16.gmra.mxu1 %v4246_v50  ;;  %v3101_v50 = vld [vmem:[%s5794_s1 + $0x478] sm:$0xf0]  ;;  %v3757_v4 = vld [vmem:[%s5794_s1 + $0x564] sm:$0xf] }
  0xb5   :  { %2148 = vmatpush.bf16.msrb.mxu1 %v2880_v34  ;;  %v3665_v34 = vld [vmem:[%s5794_s1 + $0x284] sm:$0xf]  ;;  %2062 = vmatmul.bf16.gmra.mxu0 %v4235_v44  ;;  %v3727_v44 = vld [vmem:[%s5794_s1 + $0x474] sm:$0xf]  ;;  %v3221_v7 = vld [vmem:[%s5794_s1 + $0x568] sm:$0xf0] }
  0xb6   :  { %2167 = vmatpush.bf16.msrb.mxu2 %v2944_v26  ;;  %v2917_v26 = vld [vmem:[%s5794_s1 + $0x308] sm:$0xf0]  ;;  %2119 = vmatmul.bf16.gmra.mxu3 %v4256_v56  ;;  %v3775_v56 = vld [vmem:[%s5794_s1 + $0x5f4] sm:$0xf]  ;;  %v3104_v3 = vor.u32 %v3727_v44, %v3101_v50 }
  0xb7   :  { %2186 = vmatpush.bf16.msrb.mxu3 %v3008_v35  ;;  %v2853_v35 = vld [vmem:[%s5794_s1 + $0x288] sm:$0xf0]  ;;  %2100 = vmatmul.bf16.gmra.mxu2 %v4248_v51  ;;  %v2920_v43 = vor.u32 %v3681_v16, %v2917_v26  ;;  %v3165_v51 = vld [vmem:[%s5794_s1 + $0x4f8] sm:$0xf0]  ;;  %v3773_v26 = vld [vmem:[%s5794_s1 + $0x5e4] sm:$0xf] }
  0xb8   :  { %2130 = vmatpush.bf16.msrb.mxu0 %v2808_v49  ;;  %v3293_v49 = vld [vmem:[%s5794_s1 + $0x5f8] sm:$0xf0]  ;;  %v1797_v52 = vpop.f32.mrf.mxu2  ;;  %v2856_v59 = vor.u32 %v3665_v34, %v2853_v35  ;;  %v3168_v57 = vor.u32 %v3743_v42, %v3165_v51  ;;  %v3093_v12 = vld [vmem:[%s5794_s1 + $0x468] sm:$0xf0]  ;;  %v3755_v35 = vld [vmem:[%s5794_s1 + $0x554] sm:$0xf] }
  0xb9   :  { %2149 = vmatpush.bf16.msrb.mxu1 %v2872_v48  ;;  %v1798_v48 = vadd.f32 %v1797_v52, %v1779_v20  ;;  %v3296_v10 = vor.u32 %v3775_v56, %v3293_v49  ;;  %v3739_v44 = vld [vmem:[%s5794_s1 + $0x4d4] sm:$0xf]  ;;  %v3277_v51 = vld [vmem:[%s5794_s1 + $0x5d8] sm:$0xf0] }
  0xba   :  { %2168 = vmatpush.bf16.msrb.mxu2 %v2936_v47  ;;  %v2792_v47 = vor.u32 %v3649_v30, %v2789_v31  ;;  %v1780_v54 = vpop.f32.mrf.mxu1  ;;  %v3285_v30 = vld [vmem:[%s5794_s1 + $0x5e8] sm:$0xf0]  ;;  %v3224_v31 = vor.u32 %v3757_v4, %v3221_v7  ;;  %v3721_v4 = vld [vmem:[%s5794_s1 + $0x444] sm:$0xf] }
  0xbb   :  { %2187 = vmatpush.bf16.msrb.mxu3 %v3000_v53  ;;  %v1816_v53 = vpop.f32.mrf.mxu3  ;;  %v1761_v61 = vpop.f32.mrf.mxu0  ;;  %v3288_v34 = vor.u32 %v3773_v26, %v3285_v30  ;;  %v3737_v7 = vld [vmem:[%s5794_s1 + $0x4c4] sm:$0xf]  ;;  %v3735_v26 = vld [vmem:[%s5794_s1 + $0x4b4] sm:$0xf] }
  0xbc   :  { %2131 = vmatpush.bf16.msrb.mxu0 %v2800_v21  ;;  %v5357_v16 = vadd.f32 %v1816_v53, %v1798_v48  ;;  %v1781_v20 = vadd.f32 %v1780_v54, %v1761_v61  ;;  %v3157_v21 = vld [vmem:[%s5794_s1 + $0x4e8] sm:$0xf0]  ;;  %v3088_v48 = vor.u32 %v3723_v38, %v3085_v41  ;;  %v3753_v53 = vld [vmem:[%s5794_s1 + $0x544] sm:$0xf] }
  0xbd   :  { %2150 = vmatpush.bf16.msrb.mxu1 %v2864_v32  ;;  %v3096_v32 = vor.u32 %v3725_v11, %v3093_v12  ;;  %v3205_v61 = vld [vmem:[%s5794_s1 + $0x548] sm:$0xf0]  ;;  %v3751_v12 = vld [vmem:[%s5794_s1 + $0x534] sm:$0xf] }
  0xbe   :  { %2169 = vmatpush.bf16.msrb.mxu2 %v2928_v15  ;;  %v3741_v15 = vld [vmem:[%s5794_s1 + $0x4e4] sm:$0xf]  ;;  %v3269_v11 = vld [vmem:[%s5794_s1 + $0x5c8] sm:$0xf0] }
  0xbf   :  { %2188 = vmatpush.bf16.msrb.mxu3 %v2992_v33  ;;  %v3160_v33 = vor.u32 %v3741_v15, %v3157_v21  ;;  %v3197_v15 = vld [vmem:[%s5794_s1 + $0x538] sm:$0xf0] }
  0xc0   :  { %2132 = vmatpush.bf16.msrb.mxu0 %v2792_v47  ;;  %v1799_v37 = vpop.f32.mrf.mxu2  ;;  %v3771_v47 = vld [vmem:[%s5794_s1 + $0x5d4] sm:$0xf]  ;;  %v3200_v41 = vor.u32 %v3751_v12, %v3197_v15  ;;  %v3245_v15 = vld [vmem:[%s5794_s1 + $0x598] sm:$0xf0] }
  0xc1   :  { %2151 = vmatpush.bf16.msrb.mxu1 %v2856_v59  ;;  %v1800_v50 = vadd.f32 %v1799_v37, %v1781_v20  ;;  %v3763_v12 = vld [vmem:[%s5794_s1 + $0x594] sm:$0xf] }
  0xc2   :  { %2170 = vmatpush.bf16.msrb.mxu2 %v2920_v43  ;;  %v3149_v43 = vld [vmem:[%s5794_s1 + $0x4d8] sm:$0xf0]  ;;  %v1849_v49 = vpop.f32.mrf.mxu1 }
  0xc3   :  { %2189 = vmatpush.bf16.msrb.mxu3 %v2984_v60  ;;  %v1818_v42 = vpop.f32.mrf.mxu3  ;;  %v1830_v56 = vpop.f32.mrf.mxu0  ;;  %v3216_v60 = vor.u32 %v3755_v35, %v3213_v36 }
  0xc4   :  { %2201 = vmatpush.bf16.msra.mxu0 %v3104_v3  ;;  %v5392_v52 = vadd.f32 %v1818_v42, %v1800_v50  ;;  %v1831_v59 = vadd.f32 %v1830_v56, %v5238_v27  ;;  %v3280_v3 = vor.u32 %v3771_v47, %v3277_v51  ;;  %v3077_v27 = vld [vmem:[%s5794_s1 + $0x448] sm:$0xf0]  ;;  %2152 = vmatmul.bf16.vlgmr.msrb.gmra.mxu1 %v4393_v1  ;;  %v3749_v50 = vld [vmem:[%s5794_s1 + $0x524] sm:$0xf] }
  0xc5   :  { %2220 = vmatpush.bf16.msra.mxu1 %v3168_v57  ;;  %2133 = vmatmul.bf16.vlgmr.msrb.gmra.mxu0 %v4391_v0  ;;  %v3141_v57 = vld [vmem:[%s5794_s1 + $0x4c8] sm:$0xf0]  ;;  %v3208_v0 = vor.u32 %v3753_v53, %v3205_v61  ;;  %v3080_v1 = vor.u32 %v3721_v4, %v3077_v27  ;;  %v3181_v4 = vld [vmem:[%s5794_s1 + $0x518] sm:$0xf0] }
  0xc6   :  { %2239 = vmatpush.bf16.msra.mxu2 %v3232_v2  ;;  %v3152_v2 = vor.u32 %v3739_v44, %v3149_v43  ;;  %v1850_v54 = vadd.f32 %v1849_v49, %v1831_v59  ;;  %2190 = vmatmul.bf16.vlgmr.msrb.gmra.mxu3 %v4406_v6  ;;  %v3144_v20 = vor.u32 %v3737_v7, %v3141_v57  ;;  %v3069_v6 = vld [vmem:[%s5794_s1 + $0x438] sm:$0xf0]  ;;  %v3189_v42 = vld [vmem:[%s5794_s1 + $0x528] sm:$0xf0]  ;;  %v3733_v49 = vld [vmem:[%s5794_s1 + $0x4a4] sm:$0xf] }
  0xc7   :  { %2258 = vmatpush.bf16.msra.mxu3 %v3296_v10  ;;  %v3769_v10 = vld [vmem:[%s5794_s1 + $0x5c4] sm:$0xf]  ;;  %2171 = vmatmul.bf16.vlgmr.msrb.gmra.mxu2 %v4404_v5  ;;  %v3719_v5 = vld [vmem:[%s5794_s1 + $0x434] sm:$0xf]  ;;  %v3061_v56 = vld [vmem:[%s5794_s1 + $0x428] sm:$0xf0]  ;;  %v3192_v61 = vor.u32 %v3749_v50, %v3189_v42 }
  0xc8   :  { %2202 = vmatpush.bf16.msra.mxu0 %v3096_v32  ;;  %v3272_v21 = vor.u32 %v3769_v10, %v3269_v11  ;;  %v1868_v30 = vpop.f32.mrf.mxu2  ;;  %v3133_v32 = vld [vmem:[%s5794_s1 + $0x4b8] sm:$0xf0]  ;;  %v3072_v44 = vor.u32 %v3719_v5, %v3069_v6  ;;  %v3253_v53 = vld [vmem:[%s5794_s1 + $0x5a8] sm:$0xf0]  ;;  %v3731_v10 = vld [vmem:[%s5794_s1 + $0x494] sm:$0xf] }
  0xc9   :  { %2221 = vmatpush.bf16.msra.mxu1 %v3160_v33  ;;  %v3767_v33 = vld [vmem:[%s5794_s1 + $0x5b4] sm:$0xf]  ;;  %v1869_v35 = vadd.f32 %v1868_v30, %v1850_v54  ;;  %v3136_v47 = vor.u32 %v3735_v26, %v3133_v32  ;;  %v3053_v57 = vld [vmem:[%s5794_s1 + $0x418] sm:$0xf0]  ;;  %v3745_v6 = vld [vmem:[%s5794_s1 + $0x504] sm:$0xf] }
  0xca   :  { %2240 = vmatpush.bf16.msra.mxu2 %v3224_v31  ;;  %v1851_v37 = vpop.f32.mrf.mxu1  ;;  %v3715_v54 = vld [vmem:[%s5794_s1 + $0x414] sm:$0xf]  ;;  %v3173_v32 = vld [vmem:[%s5794_s1 + $0x508] sm:$0xf0] }
  0xcb   :  { %2259 = vmatpush.bf16.msra.mxu3 %v3288_v34  ;;  %v1887_v31 = vpop.f32.mrf.mxu3  ;;  %v3261_v34 = vld [vmem:[%s5794_s1 + $0x5b8] sm:$0xf0]  ;;  %v1832_v36 = vpop.f32.mrf.mxu0  ;;  %v3237_v50 = vld [vmem:[%s5794_s1 + $0x588] sm:$0xf0]  ;;  %v3823_v42 = vld [vmem:[%s5794_s1 + $0x774] sm:$0xf] }
  0xcc   :  { %2203 = vmatpush.bf16.msra.mxu0 %v3088_v48  ;;  %v1833_v38 = vadd.f32 %v1832_v36, %v5291_v19  ;;  %v5454_v43 = vadd.f32 %v1887_v31, %v1869_v35  ;;  %v3264_v51 = vor.u32 %v3767_v33, %v3261_v34  ;;  %v3717_v19 = vld [vmem:[%s5794_s1 + $0x424] sm:$0xf]  ;;  %v3056_v31 = vor.u32 %v3715_v54, %v3053_v57  ;;  %v3045_v34 = vld [vmem:[%s5794_s1 + $0x408] sm:$0xf0] }
  0xcd   :  { %2222 = vmatpush.bf16.msra.mxu1 %v3152_v2  ;;  %v3765_v48 = vld [vmem:[%s5794_s1 + $0x5a4] sm:$0xf]  ;;  %v3064_v2 = vor.u32 %v3717_v19, %v3061_v56  ;;  %v3248_v36 = vor.u32 %v3763_v12, %v3245_v15  ;;  %v3176_v19 = vor.u32 %v3745_v6, %v3173_v32  ;;  %v3413_v15 = vld [vmem:[%s5794_s1 + $0x6e8] sm:$0xf0]  ;;  %v3819_v32 = vld [vmem:[%s5794_s1 + $0x754] sm:$0xf] }
  0xce   :  { %2241 = vmatpush.bf16.msra.mxu2 %v3216_v60  ;;  %v1852_v59 = vadd.f32 %v1851_v37, %v1833_v38  ;;  %v3125_v60 = vld [vmem:[%s5794_s1 + $0x4a8] sm:$0xf0]  ;;  %v3256_v7 = vor.u32 %v3765_v48, %v3253_v53  ;;  %v3713_v33 = vld [vmem:[%s5794_s1 + $0x404] sm:$0xf] }
  0xcf   :  { %2260 = vmatpush.bf16.msra.mxu3 %v3280_v3  ;;  %v3747_v3 = vld [vmem:[%s5794_s1 + $0x514] sm:$0xf]  ;;  %v3128_v27 = vor.u32 %v3733_v49, %v3125_v60  ;;  %v3729_v37 = vld [vmem:[%s5794_s1 + $0x484] sm:$0xf]  ;;  %v3109_v38 = vld [vmem:[%s5794_s1 + $0x488] sm:$0xf0]  ;;  %v3048_v56 = vor.u32 %v3713_v33, %v3045_v34 }
  0xd0   :  { %2204 = vmatpush.bf16.msra.mxu0 %v3080_v1  ;;  %v1870_v11 = vpop.f32.mrf.mxu2  ;;  %v3117_v1 = vld [vmem:[%s5794_s1 + $0x498] sm:$0xf0]  ;;  %v3184_v30 = vor.u32 %v3747_v3, %v3181_v4  ;;  %v3821_v3 = vld [vmem:[%s5794_s1 + $0x764] sm:$0xf]  ;;  %v3477_v4 = vld [vmem:[%s5794_s1 + $0x768] sm:$0xf0] }
  0xd1   :  { %2223 = vmatpush.bf16.msra.mxu1 %v3144_v20  ;;  %v1871_v20 = vadd.f32 %v1870_v11, %v1852_v59  ;;  %v3549_v49 = vld [vmem:[%s5794_s1 + $0x7f8] sm:$0xf0]  ;;  %v3112_v59 = vor.u32 %v3729_v37, %v3109_v38  ;;  %v3789_v11 = vld [vmem:[%s5794_s1 + $0x664] sm:$0xf]  ;;  %v3787_v34 = vld [vmem:[%s5794_s1 + $0x654] sm:$0xf] }
  0xd2   :  { %2242 = vmatpush.bf16.msra.mxu2 %v3208_v0  ;;  %v1854_v5 = vpop.f32.mrf.mxu1  ;;  %v3469_v33 = vld [vmem:[%s5794_s1 + $0x758] sm:$0xf0] }
  0xd3   :  { %2261 = vmatpush.bf16.msra.mxu3 %v3272_v21  ;;  %v1889_v0 = vpop.f32.mrf.mxu3  ;;  %v1835_v21 = vpop.f32.mrf.mxu0 }
  0xd4   :  { %2205 = vmatpush.bf16.msra.mxu0 %v3072_v44  ;;  %v1836_v26 = vadd.f32 %v1835_v21, %v5357_v16  ;;  %v5511_v35 = vadd.f32 %v1889_v0, %v1871_v20  ;;  %v3120_v16 = vor.u32 %v3731_v10, %v3117_v1  ;;  %2157 = vmatmul.bf16.gmra.mxu1 %v4525_v9  ;;  %v3357_v9 = vld [vmem:[%s5794_s1 + $0x678] sm:$0xf0]  ;;  %v3349_v0 = vld [vmem:[%s5794_s1 + $0x668] sm:$0xf0]  ;;  %v3805_v1 = vld [vmem:[%s5794_s1 + $0x6e4] sm:$0xf] }
  0xd5   :  { %2224 = vmatpush.bf16.msra.mxu1 %v3136_v47  ;;  %2138 = vmatmul.bf16.gmra.mxu0 %v4523_v8  ;;  %v3485_v47 = vld [vmem:[%s5794_s1 + $0x778] sm:$0xf0]  ;;  %v3791_v8 = vld [vmem:[%s5794_s1 + $0x674] sm:$0xf]  ;;  %v3837_v20 = vld [vmem:[%s5794_s1 + $0x7e4] sm:$0xf] }
  0xd6   :  { %2243 = vmatpush.bf16.msra.mxu2 %v3200_v41  ;;  %v3761_v41 = vld [vmem:[%s5794_s1 + $0x584] sm:$0xf]  ;;  %v1855_v44 = vadd.f32 %v1854_v5, %v1836_v26  ;;  %2195 = vmatmul.bf16.gmra.mxu3 %v4538_v14  ;;  %v3839_v14 = vld [vmem:[%s5794_s1 + $0x7f4] sm:$0xf]  ;;  %v3541_v21 = vld [vmem:[%s5794_s1 + $0x7e8] sm:$0xf0]  ;;  %v3352_v26 = vor.u32 %v3789_v11, %v3349_v0 }
  0xd7   :  { %2262 = vmatpush.bf16.msra.mxu3 %v3264_v51  ;;  %2176 = vmatmul.bf16.gmra.mxu2 %v4536_v13  ;;  %v3807_v51 = vld [vmem:[%s5794_s1 + $0x6f4] sm:$0xf]  ;;  %v3421_v13 = vld [vmem:[%s5794_s1 + $0x6f8] sm:$0xf0]  ;;  %v3240_v60 = vor.u32 %v3761_v41, %v3237_v50  ;;  %v3552_v10 = vor.u32 %v3839_v14, %v3549_v49 }
  0xd8   :  { %2206 = vmatpush.bf16.msra.mxu0 %v3064_v2  ;;  %v1873_v48 = vpop.f32.mrf.mxu2  ;;  %v3360_v2 = vor.u32 %v3791_v8, %v3357_v9  ;;  %v3424_v57 = vor.u32 %v3807_v51, %v3421_v13  ;;  %v3405_v41 = vld [vmem:[%s5794_s1 + $0x6d8] sm:$0xf0]  ;;  %v3472_v51 = vor.u32 %v3819_v32, %v3469_v33  ;;  %v3461_v13 = vld [vmem:[%s5794_s1 + $0x748] sm:$0xf0] }
  0xd9   :  { %2225 = vmatpush.bf16.msra.mxu1 %v3128_v27  ;;  %v1874_v27 = vadd.f32 %v1873_v48, %v1855_v44  ;;  %v3835_v44 = vld [vmem:[%s5794_s1 + $0x7d4] sm:$0xf]  ;;  %v3533_v50 = vld [vmem:[%s5794_s1 + $0x7d8] sm:$0xf0]  ;;  %v3801_v48 = vld [vmem:[%s5794_s1 + $0x6c4] sm:$0xf] }
  0xda   :  { %2244 = vmatpush.bf16.msra.mxu2 %v3192_v61  ;;  %v3488_v61 = vor.u32 %v3823_v42, %v3485_v47  ;;  %v1856_v54 = vpop.f32.mrf.mxu1  ;;  %v3389_v0 = vld [vmem:[%s5794_s1 + $0x6b8] sm:$0xf0] }
  0xdb   :  { %2263 = vmatpush.bf16.msra.mxu3 %v3256_v7  ;;  %v1892_v53 = vpop.f32.mrf.mxu3  ;;  %v1837_v7 = vpop.f32.mrf.mxu0 }
  0xdc   :  { %2207 = vmatpush.bf16.msra.mxu0 %v3056_v31  ;;  %v1838_v12 = vadd.f32 %v1837_v7, %v5392_v52  ;;  %v5578_v5 = vadd.f32 %v1892_v53, %v1874_v27  ;;  %v3480_v52 = vor.u32 %v3821_v3, %v3477_v4  ;;  %v3544_v31 = vor.u32 %v3837_v20, %v3541_v21  ;;  %v3525_v3 = vld [vmem:[%s5794_s1 + $0x7c8] sm:$0xf0]  ;;  %v3815_v4 = vld [vmem:[%s5794_s1 + $0x734] sm:$0xf]  ;;  %v3453_v27 = vld [vmem:[%s5794_s1 + $0x738] sm:$0xf0] }
  0xdd   :  { %2226 = vmatpush.bf16.msra.mxu1 %v3120_v16  ;;  %v3341_v16 = vld [vmem:[%s5794_s1 + $0x658] sm:$0xf0] }
  0xde   :  { %2245 = vmatpush.bf16.msra.mxu2 %v3184_v30  ;;  %v1857_v6 = vadd.f32 %v1856_v54, %v1838_v12  ;;  %v3416_v30 = vor.u32 %v3805_v1, %v3413_v15  ;;  %v3831_v1 = vld [vmem:[%s5794_s1 + $0x7b4] sm:$0xf]  ;;  %v3517_v12 = vld [vmem:[%s5794_s1 + $0x7b8] sm:$0xf0] }
  0xdf   :  { %2264 = vmatpush.bf16.msra.mxu3 %v3248_v36  ;;  %v3803_v36 = vld [vmem:[%s5794_s1 + $0x6d4] sm:$0xf] }
  0xe0   :  { %2208 = vmatpush.bf16.msra.mxu0 %v3048_v56  ;;  %v1875_v37 = vpop.f32.mrf.mxu2  ;;  %v3817_v56 = vld [vmem:[%s5794_s1 + $0x744] sm:$0xf]  ;;  %v3408_v49 = vor.u32 %v3803_v36, %v3405_v41 }
  0xe1   :  { %2227 = vmatpush.bf16.msra.mxu1 %v3112_v59  ;;  %v1876_v42 = vadd.f32 %v1875_v37, %v1857_v6  ;;  %v3536_v59 = vor.u32 %v3835_v44, %v3533_v50  ;;  %v3797_v36 = vld [vmem:[%s5794_s1 + $0x6a4] sm:$0xf]  ;;  %v3509_v44 = vld [vmem:[%s5794_s1 + $0x7a8] sm:$0xf0] }
  0xe2   :  { %2246 = vmatpush.bf16.msra.mxu2 %v3176_v19  ;;  %v1925_v8 = vpop.f32.mrf.mxu1  ;;  %v3344_v19 = vor.u32 %v3787_v34, %v3341_v16  ;;  %v3520_v34 = vor.u32 %v3831_v1, %v3517_v12  ;;  %v3317_v16 = vld [vmem:[%s5794_s1 + $0x628] sm:$0xf0]  ;;  %v3829_v41 = vld [vmem:[%s5794_s1 + $0x7a4] sm:$0xf] }
  0xe3   :  { %2265 = vmatpush.bf16.msra.mxu3 %v3240_v60  ;;  %v1894_v38 = vpop.f32.mrf.mxu3  ;;  %v1906_v47 = vpop.f32.mrf.mxu0  ;;  %v3785_v60 = vld [vmem:[%s5794_s1 + $0x644] sm:$0xf]  ;;  %v3493_v1 = vld [vmem:[%s5794_s1 + $0x788] sm:$0xf0] }
  0xe4   :  { %2277 = vmatpush.bf16.msrb.mxu0 %v3360_v2  ;;  %v1907_v9 = vadd.f32 %v1906_v47, %v5454_v43  ;;  %v5611_v14 = vadd.f32 %v1894_v38, %v1876_v42  ;;  %v3333_v43 = vld [vmem:[%s5794_s1 + $0x648] sm:$0xf0]  ;;  %2228 = vmatmul.bf16.vlgmr.msra.gmra.mxu1 %v4663_v24  ;;  %v3833_v2 = vld [vmem:[%s5794_s1 + $0x7c4] sm:$0xf]  ;;  %v3811_v47 = vld [vmem:[%s5794_s1 + $0x714] sm:$0xf] }
  0xe5   :  { %2296 = vmatpush.bf16.msrb.mxu1 %v3424_v57  ;;  %2209 = vmatmul.bf16.vlgmr.msra.gmra.mxu0 %v4661_v23  ;;  %v3464_v23 = vor.u32 %v3817_v56, %v3461_v13  ;;  %v3336_v24 = vor.u32 %v3785_v60, %v3333_v43  ;;  %v3528_v54 = vor.u32 %v3833_v2, %v3525_v3  ;;  %v3799_v57 = vld [vmem:[%s5794_s1 + $0x6b4] sm:$0xf]  ;;  %v3381_v38 = vld [vmem:[%s5794_s1 + $0x6a8] sm:$0xf0]  ;;  %v3309_v56 = vld [vmem:[%s5794_s1 + $0x618] sm:$0xf0] }
  0xe6   :  { %2315 = vmatpush.bf16.msrb.mxu2 %v3488_v61  ;;  %v1926_v53 = vadd.f32 %v1925_v8, %v1907_v9  ;;  %v3397_v61 = vld [vmem:[%s5794_s1 + $0x6c8] sm:$0xf0]  ;;  %2266 = vmatmul.bf16.vlgmr.msra.gmra.mxu3 %v4676_v29  ;;  %v3325_v29 = vld [vmem:[%s5794_s1 + $0x638] sm:$0xf0]  ;;  %v3392_v33 = vor.u32 %v3799_v57, %v3389_v0  ;;  %v3384_v9 = vor.u32 %v3797_v36, %v3381_v38  ;;  %v3795_v13 = vld [vmem:[%s5794_s1 + $0x694] sm:$0xf] }
  0xe7   :  { %2334 = vmatpush.bf16.msrb.mxu3 %v3552_v10  ;;  %2247 = vmatmul.bf16.vlgmr.msra.gmra.mxu2 %v4674_v28  ;;  %v3400_v7 = vor.u32 %v3801_v48, %v3397_v61  ;;  %v3783_v28 = vld [vmem:[%s5794_s1 + $0x634] sm:$0xf]  ;;  %v3437_v8 = vld [vmem:[%s5794_s1 + $0x718] sm:$0xf0]  ;;  %v3793_v57 = vld [vmem:[%s5794_s1 + $0x684] sm:$0xf] }
  0xe8   :  { %2278 = vmatpush.bf16.msrb.mxu0 %v3352_v26  ;;  %v1944_v10 = vpop.f32.mrf.mxu2  ;;  %v3328_v26 = vor.u32 %v3783_v28, %v3325_v29  ;;  %v3373_v60 = vld [vmem:[%s5794_s1 + $0x698] sm:$0xf0]  ;;  %v3827_v43 = vld [vmem:[%s5794_s1 + $0x794] sm:$0xf]  ;;  %v3301_v29 = vld [vmem:[%s5794_s1 + $0x608] sm:$0xf0] }
  0xe9   :  { %2297 = vmatpush.bf16.msrb.mxu1 %v3416_v30  ;;  %v1945_v15 = vadd.f32 %v1944_v10, %v1926_v53  ;;  %v3813_v30 = vld [vmem:[%s5794_s1 + $0x724] sm:$0xf]  ;;  %v3501_v48 = vld [vmem:[%s5794_s1 + $0x798] sm:$0xf0] }
  0xea   :  { %2316 = vmatpush.bf16.msrb.mxu2 %v3480_v52  ;;  %v1927_v21 = vpop.f32.mrf.mxu1  ;;  %v3456_v52 = vor.u32 %v3815_v4, %v3453_v27  ;;  %v3809_v4 = vld [vmem:[%s5794_s1 + $0x704] sm:$0xf]  ;;  %v3429_v27 = vld [vmem:[%s5794_s1 + $0x708] sm:$0xf0]  ;;  %v3504_v28 = vor.u32 %v3827_v43, %v3501_v48 }
  0xeb   :  { %2335 = vmatpush.bf16.msrb.mxu3 %v3544_v31  ;;  %v1963_v11 = vpop.f32.mrf.mxu3  ;;  %v1908_v20 = vpop.f32.mrf.mxu0  ;;  %v3445_v31 = vld [vmem:[%s5794_s1 + $0x728] sm:$0xf0]  ;;  %v3825_v0 = vld [vmem:[%s5794_s1 + $0x784] sm:$0xf] }
  0xec   :  { %2279 = vmatpush.bf16.msrb.mxu0 %v3344_v19  ;;  %v1909_v6 = vadd.f32 %v1908_v20, %v5511_v35  ;;  %v5666_v32 = vadd.f32 %v1963_v11, %v1945_v15  ;;  %v3781_v35 = vld [vmem:[%s5794_s1 + $0x624] sm:$0xf]  ;;  %v3448_v50 = vor.u32 %v3813_v30, %v3445_v31  ;;  %v3779_v19 = vld [vmem:[%s5794_s1 + $0x614] sm:$0xf]  ;;  %v3365_v11 = vld [vmem:[%s5794_s1 + $0x688] sm:$0xf0]  ;;  %v3496_v15 = vor.u32 %v3825_v0, %v3493_v1 }
  0xed   :  { %2298 = vmatpush.bf16.msrb.mxu1 %v3408_v49  ;;  %v3320_v42 = vor.u32 %v3781_v35, %v3317_v16  ;;  %v3368_v12 = vor.u32 %v3793_v57, %v3365_v11 }
  0xee   :  { %2317 = vmatpush.bf16.msrb.mxu2 %v3472_v51  ;;  %v1928_v37 = vadd.f32 %v1927_v21, %v1909_v6  ;;  %v3512_v51 = vor.u32 %v3829_v41, %v3509_v44 }
  0xef   :  { %2336 = vmatpush.bf16.msrb.mxu3 %v3536_v59 }
  0xf0   :  { %2280 = vmatpush.bf16.msrb.mxu0 %v3336_v24  ;;  %v1946_v49 = vpop.f32.mrf.mxu2  ;;  %v3312_v24 = vor.u32 %v3779_v19, %v3309_v56 }
  0xf1   :  { %2299 = vmatpush.bf16.msrb.mxu1 %v3400_v7  ;;  %v1947_v53 = vadd.f32 %v1946_v49, %v1928_v37 }
  0xf2   :  { %2318 = vmatpush.bf16.msrb.mxu2 %v3464_v23  ;;  %v1930_v2 = vpop.f32.mrf.mxu1  ;;  %v3440_v23 = vor.u32 %v3811_v47, %v3437_v8 }
  0xf3   :  { %2337 = vmatpush.bf16.msrb.mxu3 %v3528_v54  ;;  %v1965_v59 = vpop.f32.mrf.mxu3  ;;  %v1911_v61 = vpop.f32.mrf.mxu0  ;;  %v3376_v54 = vor.u32 %v3795_v13, %v3373_v60 }
  0xf4   :  { %2281 = vmatpush.bf16.msrb.mxu0 %v3328_v26  ;;  %v1912_v3 = vadd.f32 %v1911_v61, %v5578_v5  ;;  %v1966_v7 = vadd.f32 %v1965_v59, %v1947_v53  ;;  %v3777_v5 = vld [vmem:[%s5794_s1 + $0x604] sm:$0xf]  ;;  %2233 = vmatmul.bf16.gmra.mxu1 %v4795_v40 }
  0xf5   :  { %2300 = vmatpush.bf16.msrb.mxu1 %v3392_v33  ;;  %2214 = vmatmul.bf16.gmra.mxu0 %v4793_v39  ;;  %v3432_v39 = vor.u32 %v3809_v4, %v3429_v27  ;;  %v3304_v40 = vor.u32 %v3777_v5, %v3301_v29 }
  0xf6   :  { %2319 = vmatpush.bf16.msrb.mxu2 %v3456_v52  ;;  %v1931_v10 = vadd.f32 %v1930_v2, %v1912_v3  ;;  %2271 = vmatmul.bf16.gmra.mxu3 %v4808_v46 }
  0xf7   :  { %2338 = vmatpush.bf16.msrb.mxu3 %v3520_v34  ;;  %2252 = vmatmul.bf16.gmra.mxu2 %v4806_v45 }
  0xf8   :  { %2282 = vmatpush.bf16.msrb.mxu0 %v3320_v42  ;;  %v1949_v20 = vpop.f32.mrf.mxu2 }
  0xf9   :  { %2301 = vmatpush.bf16.msrb.mxu1 %v3384_v9  ;;  %v1950_v6 = vadd.f32 %v1949_v20, %v1931_v10 }
  0xfa   :  { %2320 = vmatpush.bf16.msrb.mxu2 %v3448_v50  ;;  %v1932_v26 = vpop.f32.mrf.mxu1 }
  0xfb   :  { %2339 = vmatpush.bf16.msrb.mxu3 %v3512_v51  ;;  %v1968_v21 = vpop.f32.mrf.mxu3  ;;  %v1913_v52 = vpop.f32.mrf.mxu0 }
  0xfc   :  { %2283 = vmatpush.bf16.msrb.mxu0 %v3312_v24  ;;  %v1914_v30 = vadd.f32 %v1913_v52, %v5611_v14  ;;  %v1969_v45 = vadd.f32 %v1968_v21, %v1950_v6 }
  0xfd   :  { %2302 = vmatpush.bf16.msrb.mxu1 %v3376_v54 }
  0xfe   :  { %2321 = vmatpush.bf16.msrb.mxu2 %v3440_v23  ;;  %v1933_v46 = vadd.f32 %v1932_v26, %v1914_v30 }
  0xff   :  { %2340 = vmatpush.bf16.msrb.mxu3 %v3504_v28 }
 0x100   :  { %2284 = vmatpush.bf16.msrb.mxu0 %v3304_v40  ;;  %v1951_v31 = vpop.f32.mrf.mxu2 }
 0x101   :  { %2303 = vmatpush.bf16.msrb.mxu1 %v3368_v12  ;;  %v1952_v34 = vadd.f32 %v1951_v31, %v1933_v46 }
 0x102   :  { %2322 = vmatpush.bf16.msrb.mxu2 %v3432_v39  ;;  %v2001_v16 = vpop.f32.mrf.mxu1 }
 0x103   :  { %2341 = vmatpush.bf16.msrb.mxu3 %v3496_v15  ;;  %v1970_v33 = vpop.f32.mrf.mxu3  ;;  %v1982_v35 = vpop.f32.mrf.mxu0 }
 0x104   :  { %v1983_v36 = vadd.f32 %v1982_v35, %v5666_v32  ;;  %v1971_v37 = vadd.f32 %v1970_v33, %v1952_v34  ;;  %2304 = vmatmul.bf16.vlgmr.msrb.gmra.mxu1 %v4939_v18 }
 0x105   :  { %2285 = vmatmul.bf16.vlgmr.msrb.gmra.mxu0 %v4937_v17 }
 0x106   :  { %v2002_v38 = vadd.f32 %v2001_v16, %v1983_v36  ;;  %2342 = vmatmul.bf16.vlgmr.msrb.gmra.mxu3 %v4952_v25 }
 0x107   :  { %2323 = vmatmul.bf16.vlgmr.msrb.gmra.mxu2 %v4950_v22 }
 0x108   :  { %v2020_v14 = vpop.f32.mrf.mxu2 }
 0x109   :  { %v2021_v44 = vadd.f32 %v2020_v14, %v2002_v38 }
 0x10a   :  { %v2003_v42 = vpop.f32.mrf.mxu1 }
 0x10b   :  { %v2039_v41 = vpop.f32.mrf.mxu3  ;;  %v1984_v50 = vpop.f32.mrf.mxu0 }
 0x10c   :  { %v1985_v47 = vadd.f32 %v1984_v50, %v1966_v7  ;;  %v5745_v8 = vadd.f32 %v2039_v41, %v2021_v44 }
 0x10e   :  { %v2004_v9 = vadd.f32 %v2003_v42, %v1985_v47 }
 0x110   :  { %v2022_v32 = vpop.f32.mrf.mxu2 }
 0x111   :  { %v2023_v19 = vadd.f32 %v2022_v32, %v2004_v9 }
 0x112   :  { %v2006_v17 = vpop.f32.mrf.mxu1 }
 0x113   :  { %v2041_v51 = vpop.f32.mrf.mxu3  ;;  %v1987_v56 = vpop.f32.mrf.mxu0 }
 0x114   :  { %v1988_v13 = vadd.f32 %v1987_v56, %v1969_v45  ;;  %v5747_v18 = vadd.f32 %v2041_v51, %v2023_v19  ;;  %2309 = vmatmul.bf16.gmra.mxu1 %v5071_v58 }
 0x115   :  { %2290 = vmatmul.bf16.gmra.mxu0 %v5069_v55 }
 0x116   :  { %v2007_v22 = vadd.f32 %v2006_v17, %v1988_v13  ;;  %2347 = vmatmul.bf16.gmra.mxu3 %v5084_v63 }
 0x117   :  { %2328 = vmatmul.bf16.gmra.mxu2 %v5082_v62 }
 0x11a   :  { %v2025_v25 = vpop.f32.mrf.mxu2  ;;  %v2008_v43 = vpop.f32.mrf.mxu1 }
 0x11b   :  { %v2044_v49 = vpop.f32.mrf.mxu3  ;;  %v2026_v59 = vadd.f32 %v2025_v25, %v2007_v22  ;;  %v1989_v60 = vpop.f32.mrf.mxu0 }
 0x11c   :  { %v1990_v48 = vadd.f32 %v1989_v60, %v1971_v37 }
 0x11d   :  { %v5753_v53 = vadd.f32 %v2044_v49, %v2026_v59 }
 0x11e   :  { %v2009_v61 = vadd.f32 %v2008_v43, %v1990_v48 }
 0x122   :  { %v2027_v2 = vpop.f32.mrf.mxu2  ;;  %v2077_v55 = vpop.f32.mrf.mxu1 }
 0x123   :  { %v2046_v3 = vpop.f32.mrf.mxu3  ;;  %v2028_v23 = vadd.f32 %v2027_v2, %v2009_v61  ;;  %v2058_v24 = vpop.f32.mrf.mxu0 }
 0x124   :  { %v2078_v4 = vadd.f32 %v2077_v55, %v2058_v24 }
 0x125   :  { %v5755_v58 = vadd.f32 %v2046_v3, %v2028_v23 }
 0x12a   :  { %v2096_v62 = vpop.f32.mrf.mxu2  ;;  %v2079_v54 = vpop.f32.mrf.mxu1 }
 0x12b   :  { %v2115_v27 = vpop.f32.mrf.mxu3  ;;  %v2097_v63 = vadd.f32 %v2096_v62, %v2078_v4  ;;  %v2060_v7 = vpop.f32.mrf.mxu0 }
 0x12c   :  { %v2080_v28 = vadd.f32 %v2079_v54, %v2060_v7 }
 0x12d   :  { %v2116_v5 = vadd.f32 %v2115_v27, %v2097_v63 }
 0x132   :  { %v2098_v29 = vpop.f32.mrf.mxu2  ;;  %v2082_v0 = vpop.f32.mrf.mxu1 }
 0x133   :  { %v2117_v57 = vpop.f32.mrf.mxu3  ;;  %v2099_v10 = vadd.f32 %v2098_v29, %v2080_v28  ;;  %v2063_v11 = vpop.f32.mrf.mxu0 }
 0x134   :  { %v2083_v1 = vadd.f32 %v2082_v0, %v2063_v11  ;;  %v2353_v0 = vld [vmem:[%s5796_s2] sm:$0x3] }
 0x135   :  { %v2118_v39 = vadd.f32 %v2117_v57, %v2099_v10 }
 0x13a   :  { %v2101_v40 = vpop.f32.mrf.mxu2  ;;  %v2084_v21 = vpop.f32.mrf.mxu1 }
 0x13b   :  { %v2120_v12 = vpop.f32.mrf.mxu3  ;;  %v2102_v15 = vadd.f32 %v2101_v40, %v2083_v1  ;;  %v2065_v20 = vpop.f32.mrf.mxu0 }
 0x13c   :  { %v2085_v6 = vadd.f32 %v2084_v21, %v2065_v20 }
 0x13d   :  { %v2121_v52 = vadd.f32 %v2120_v12, %v2102_v15 }
 0x142   :  { %v2103_v26 = vpop.f32.mrf.mxu2  ;;  %v2153_v31 = vpop.f32.mrf.mxu1 }
 0x143   :  { %v2122_v30 = vpop.f32.mrf.mxu3  ;;  %v2104_v45 = vadd.f32 %v2103_v26, %v2085_v6  ;;  %v2134_v46 = vpop.f32.mrf.mxu0  ;;  %v5762_v6 = vperm.slane %v2353_v0, 0 }
 0x144   :  { %v2135_v25 = vadd.f32 %v2134_v46, %v2116_v5 }
 0x145   :  { %v2123_v33 = vadd.f32 %v2122_v30, %v2104_v45 }
 0x146   :  { %v2154_v49 = vadd.f32 %v2153_v31, %v2135_v25 }
 0x14a   :  { %v2172_v34 = vpop.f32.mrf.mxu2  ;;  %v2155_v36 = vpop.f32.mrf.mxu1 }
 0x14b   :  { %v2191_v35 = vpop.f32.mrf.mxu3  ;;  %v2136_v16 = vpop.f32.mrf.mxu0  ;;  %v2173_v43 = vadd.f32 %v2172_v34, %v2154_v49  ;;  %v2360_v34 = vmul.f32 %v5762_v6, %v5745_v8 }
 0x14c   :  { %v2137_v2 = vadd.f32 %v2136_v16, %v2118_v39 }
 0x14d   :  { %v2192_v3 = vadd.f32 %v2191_v35, %v2173_v43 }
 0x14e   :  { %v2156_v23 = vadd.f32 %v2155_v36, %v2137_v2 }
 0x152   :  { %v2174_v37 = vpop.f32.mrf.mxu2  ;;  %v2158_v41 = vpop.f32.mrf.mxu1 }
 0x153   :  { %v2193_v38 = vpop.f32.mrf.mxu3  ;;  %v2139_v14 = vpop.f32.mrf.mxu0  ;;  %v2175_v62 = vadd.f32 %v2174_v37, %v2156_v23 }
 0x154   :  { %v2140_v7 = vadd.f32 %v2139_v14, %v2121_v52  ;;  %v2354_v52 = vld [vmem:[%s5797_s3] sm:$0x3]  ;;  %v2357_v14 = vperm.slane %v2353_v0, 1 }
 0x155   :  { %v2194_v28 = vadd.f32 %v2193_v38, %v2175_v62  ;;  %v5769_v35 = vperm.slane %v2354_v52, 0 }
 0x156   :  { %v2159_v5 = vadd.f32 %v2158_v41, %v2140_v7 }
 0x15a   :  { %v2177_v44 = vpop.f32.mrf.mxu2  ;;  %v2160_v47 = vpop.f32.mrf.mxu1 }
 0x15b   :  { %v2196_v50 = vpop.f32.mrf.mxu3  ;;  %v2141_v42 = vpop.f32.mrf.mxu0  ;;  %v2178_v1 = vadd.f32 %v2177_v44, %v2159_v5 }
 0x15c   :  { %v2142_v15 = vadd.f32 %v2141_v42, %v2123_v33 }
 0x15d   :  { %v2197_v26 = vadd.f32 %v2196_v50, %v2178_v1  ;;  %v2370_v50 = vperm.slane %v2354_v52, 1 }
 0x15e   :  { %v2161_v45 = vadd.f32 %v2160_v47, %v2142_v15  ;;  %v2373_v47 = vadd.f32 %v5769_v35, %v2360_v34 }
 0x162   :  { %v2179_v9 = vpop.f32.mrf.mxu2  ;;  %v2229_v19 = vpop.f32.mrf.mxu1 }
 0x163   :  { %v5757_v32 = vpop.f32.mrf.mxu3  ;;  %v2210_v51 = vpop.f32.mrf.mxu0  ;;  %v2180_v36 = vadd.f32 %v2179_v9, %v2161_v45  ;;  %v2362_v9 = vmul.f32 %v5762_v6, %v5747_v18 }
 0x164   :  { %v2211_v24 = vadd.f32 %v2210_v51, %v2192_v3 }
 0x166   :  { %v2230_v54 = vadd.f32 %v2229_v19, %v2211_v24 }
 0x16a   :  { %v2248_v56 = vpop.f32.mrf.mxu2  ;;  %v2231_v22 = vpop.f32.mrf.mxu1 }
 0x16b   :  { %v2267_v17 = vpop.f32.mrf.mxu3  ;;  %v2212_v13 = vpop.f32.mrf.mxu0  ;;  %v2249_v29 = vadd.f32 %v2248_v56, %v2230_v54  ;;  %v2199_v56 = vadd.f32 %v5757_v32, %v2180_v36  ;;  %v2375_v32 = vadd.f32 %v5769_v35, %v2362_v9 }
 0x16c   :  { %v2213_v57 = vadd.f32 %v2212_v13, %v2194_v28 }
 0x16d   :  { %v2268_v39 = vadd.f32 %v2267_v17, %v2249_v29  ;;  %v2383_v28 = vmax.f32 %v2375_v32, 0.0 }
 0x16e   :  { %v2232_v20 = vadd.f32 %v2231_v22, %v2213_v57 }
 0x172   :  { %v2250_v59 = vpop.f32.mrf.mxu2  ;;  %v2234_v61 = vpop.f32.mrf.mxu1 }
 0x173   :  { %v2269_v60 = vpop.f32.mrf.mxu3  ;;  %v2215_v48 = vpop.f32.mrf.mxu0  ;;  %v2251_v30 = vadd.f32 %v2250_v59, %v2232_v20 }
 0x174   :  { %v2216_v46 = vadd.f32 %v2215_v48, %v2197_v26 }
 0x175   :  { %v2270_v37 = vadd.f32 %v2269_v60, %v2251_v30  ;;  %v2381_v60 = vmax.f32 %v2373_v47, 0.0 }
 0x176   :  { %v2235_v42 = vadd.f32 %v2234_v61, %v2216_v46 }
 0x17a   :  { %v2253_v55 = vpop.f32.mrf.mxu2  ;;  %v2236_v63 = vpop.f32.mrf.mxu1 }
 0x17b   :  { %v2272_v4 = vpop.f32.mrf.mxu3  ;;  %v2217_v27 = vpop.f32.mrf.mxu0  ;;  %v2254_v17 = vadd.f32 %v2253_v55, %v2235_v42 }
 0x17c   :  { %v2218_v13 = vadd.f32 %v2217_v27, %v2199_v56 }
 0x17d   :  { %v2273_v43 = vadd.f32 %v2272_v4, %v2254_v17 }
 0x17e   :  { %v2237_v3 = vadd.f32 %v2236_v63, %v2218_v13  ;;  %v2364_v63 = vmul.f32 %v5762_v6, %v5753_v53  ;;  %v2366_v53 = vmul.f32 %v5762_v6, %v5755_v58 }
 0x182   :  { %v2255_v10 = vpop.f32.mrf.mxu2  ;;  %v2305_v12 = vpop.f32.mrf.mxu1 }
 0x183   :  { %v2274_v11 = vpop.f32.mrf.mxu3  ;;  %v2286_v40 = vpop.f32.mrf.mxu0  ;;  %v2256_v27 = vadd.f32 %v2255_v10, %v2237_v3 }
 0x184   :  { %v2287_v21 = vadd.f32 %v2286_v40, %v2268_v39 }
 0x185   :  { %v2275_v5 = vadd.f32 %v2274_v11, %v2256_v27 }
 0x186   :  { %v2306_v31 = vadd.f32 %v2305_v12, %v2287_v21  ;;  %v2377_v12 = vadd.f32 %v5769_v35, %v2364_v63 }
 0x188   :  { %v2385_v30 = vmax.f32 %v2377_v12, 0.0 }
 0x18a   :  { %v2324_v16 = vpop.f32.mrf.mxu2  ;;  %v2307_v44 = vpop.f32.mrf.mxu1 }
 0x18b   :  { %v2343_v33 = vpop.f32.mrf.mxu3  ;;  %v2325_v38 = vadd.f32 %v2324_v16, %v2306_v31  ;;  %v2288_v41 = vpop.f32.mrf.mxu0  ;;  %v2379_v16 = vadd.f32 %v5769_v35, %v2366_v53 }
 0x18c   :  { %v2289_v19 = vadd.f32 %v2288_v41, %v2270_v37 }
 0x18d   :  { %v2344_v51 = vadd.f32 %v2343_v33, %v2325_v38  ;;  %v2387_v37 = vmax.f32 %v2379_v16, 0.0 }
 0x18e   :  { %v2308_v25 = vadd.f32 %v2307_v44, %v2289_v19 }
 0x18f   :  { %v2361_v8 = vmul.f32 %v2357_v14, %v2344_v51 }
 0x191   :  { %v2374_v22 = vadd.f32 %v2370_v50, %v2361_v8 }
 0x192   :  { %v2326_v49 = vpop.f32.mrf.mxu2  ;;  %v2310_v55 = vpop.f32.mrf.mxu1 }
 0x193   :  { %v2345_v59 = vpop.f32.mrf.mxu3  ;;  %v2382_v48 = vmax.f32 %v2374_v22, 0.0  ;;  %v2327_v61 = vadd.f32 %v2326_v49, %v2308_v25  ;;  %v2291_v2 = vpop.f32.mrf.mxu0 }
 0x194   :  { %v2292_v62 = vadd.f32 %v2291_v2, %v2273_v43 }
 0x195   :  { %v2389_v23 = vpack.c.bf16 %v2382_v48, %v2381_v60  ;;  %v2346_v24 = vadd.f32 %v2345_v59, %v2327_v61 }
 0x196   :  { %v2311_v54 = vadd.f32 %v2310_v55, %v2292_v62 }
 0x197   :  { %2393 = vst [vmem:[%s5798_s4] sm:$0xff] %v2389_v23  ;;  %v2363_v18 = vmul.f32 %v2357_v14, %v2346_v24 }
 0x199   :  { %v2376_v7 = vadd.f32 %v2370_v50, %v2363_v18 }
 0x19a   :  { %v2329_v4 = vpop.f32.mrf.mxu2  ;;  %v2312_v20 = vpop.f32.mrf.mxu1 }
 0x19b   :  { %v2348_v29 = vpop.f32.mrf.mxu3  ;;  %v2384_v57 = vmax.f32 %v2376_v7, 0.0  ;;  %v2330_v0 = vadd.f32 %v2329_v4, %v2311_v54  ;;  %v2293_v1 = vpop.f32.mrf.mxu0 }
 0x19c   :  { %v2294_v10 = vadd.f32 %v2293_v1, %v2275_v5 }
 0x19d   :  { %v2390_v39 = vpack.c.bf16 %v2384_v57, %v2383_v28  ;;  %v2349_v40 = vadd.f32 %v2348_v29, %v2330_v0 }
 0x19e   :  { %v2313_v52 = vadd.f32 %v2312_v20, %v2294_v10 }
 0x19f   :  { %2394 = vst [vmem:[%s5798_s4 + $0x8] sm:$0xff] %v2390_v39  ;;  %v2365_v15 = vmul.f32 %v2357_v14, %v2349_v40 }
 0x1a1   :  { %v2378_v21 = vadd.f32 %v2370_v50, %v2365_v15 }
 0x1a2   :  { %v2331_v26 = vpop.f32.mrf.mxu2 }
 0x1a3   :  { %v2386_v11 = vmax.f32 %v2378_v21, 0.0  ;;  %v2332_v45 = vadd.f32 %v2331_v26, %v2313_v52  ;;  %v2350_v46 = vpop.f32.mrf.mxu3 }
 0x1a5   :  { %v2391_v31 = vpack.c.bf16 %v2386_v11, %v2385_v30  ;;  %v2351_v34 = vadd.f32 %v2350_v46, %v2332_v45 }
 0x1a7   :  { %2395 = vst [vmem:[%s5798_s4 + $0x10] sm:$0xff] %v2391_v31  ;;  %v2367_v33 = vmul.f32 %v2357_v14, %v2351_v34 }
 0x1a9   :  { %v2380_v36 = vadd.f32 %v2370_v50, %v2367_v33 }
 0x1ab   :  { %v2388_v38 = vmax.f32 %v2380_v36, 0.0 }
 0x1ad   :  { %v2392_v41 = vpack.c.bf16 %v2388_v38, %v2387_v37 }
 0x1af   :  { %2396 = vst [vmem:[%s5798_s4 + $0x18] sm:$0xff] %v2392_v41 }

// kernel: image_classifier_forward.9
= control target key start
LH: loop header
LB: loop body
LE: loop exit
PB: predicated region body
PF: predicated region fallthrough
CT: control target
= control target key end

     0   :  { %v678_v4 = vmov 4.0   ;;  %s839_s0 = inlined_call_operand.vmem [shape: bf16[2,4,512], index: 0, kind: input, shape index: {}]   ;;  %s840_s1 = inlined_call_operand.vmem [shape: bf16[512,10], index: 1, kind: input, shape index: {}]   ;;  %s841_s2 = inlined_call_operand.vmem [shape: f32[1,10], index: 2, kind: input, shape index: {}]   ;;  %s842_s3 = inlined_call_operand.hbm [shape: f32[2,10], index: 3, kind: output, shape index: {}]  }
   0x1   :  { %v622_v0 = vld [vmem:[%s840_s1 + $0x38] sm:$0xff]  ;;  %650 = vrcp.f32 %v678_v4  ;;  %v621_v5 = vld [vmem:[%s840_s1 + $0x30] sm:$0xff]  ;;  %v620_v9 = vld [vmem:[%s840_s1 + $0x28] sm:$0xff] }
   0x2   :  { %v630_v1 = vld [vmem:[%s840_s1 + $0x78] sm:$0xff]  ;;  %417 = vmatpush.bf16.msra.mxu0 %v622_v0  ;;  %v629_v6 = vld [vmem:[%s840_s1 + $0x70] sm:$0xff]  ;;  %v628_v10 = vld [vmem:[%s840_s1 + $0x68] sm:$0xff] }
   0x3   :  { %v638_v2 = vld [vmem:[%s840_s1 + $0xb8] sm:$0xff]  ;;  %430 = vmatpush.bf16.msra.mxu1 %v630_v1  ;;  %v637_v7 = vld [vmem:[%s840_s1 + $0xb0] sm:$0xff]  ;;  %v636_v12 = vld [vmem:[%s840_s1 + $0xa8] sm:$0xff] }
   0x4   :  { %v646_v3 = vld [vmem:[%s840_s1 + $0xf8] sm:$0xff]  ;;  %443 = vmatpush.bf16.msra.mxu2 %v638_v2  ;;  %v645_v8 = vld [vmem:[%s840_s1 + $0xf0] sm:$0xff]  ;;  %v644_v13 = vld [vmem:[%s840_s1 + $0xe8] sm:$0xff] }
   0x5   :  { %456 = vmatpush.bf16.msra.mxu3 %v646_v3  ;;  %v619_v14 = vld [vmem:[%s840_s1 + $0x20] sm:$0xff]  ;;  %v16_v20 = vld [vmem:[%s839_s0 + $0x8] sm:$0xff] }
   0x6   :  { %418 = vmatpush.bf16.msra.mxu0 %v621_v5  ;;  %v627_v15 = vld [vmem:[%s840_s1 + $0x60] sm:$0xff] }
   0x7   :  { %431 = vmatpush.bf16.msra.mxu1 %v629_v6  ;;  %v730_v11 = vpop.eup %650  ;;  %v635_v17 = vld [vmem:[%s840_s1 + $0xa0] sm:$0xff] }
   0x8   :  { %444 = vmatpush.bf16.msra.mxu2 %v637_v7  ;;  %v106_v16 = vmul.f32 4.0, %v730_v11  ;;  %v643_v18 = vld [vmem:[%s840_s1 + $0xe0] sm:$0xff] }
   0x9   :  { %457 = vmatpush.bf16.msra.mxu3 %v645_v8  ;;  %v15_v19 = vld [vmem:[%s839_s0] sm:$0xff] }
   0xa   :  { %419 = vmatpush.bf16.msra.mxu0 %v620_v9  ;;  %v17_v21 = vunpack.c.l.bf16 %v15_v19  ;;  %v18_v22 = vunpack.c.h.bf16 %v15_v19 }
   0xb   :  { %432 = vmatpush.bf16.msra.mxu1 %v628_v10 }
   0xc   :  { %445 = vmatpush.bf16.msra.mxu2 %v636_v12 }
   0xd   :  { %458 = vmatpush.bf16.msra.mxu3 %v644_v13 }
   0xe   :  { %8 = vsyncpa [#allocation3], 0  ;;  %v19_v23 = vunpack.c.l.bf16 %v16_v20  ;;  %v20_v24 = vunpack.c.h.bf16 %v16_v20  ;;  %25 = vst [vmem:[#allocation1] ss:$2 sm:$0xff] %v17_v21  ;;  %v107_v25 = vsub.f32 1.0, %v106_v16  ;;  %420 = vmatpush.bf16.msra.mxu0 %v619_v14  ;;  %v618_v26 = vld [vmem:[%s840_s1 + $0x18] sm:$0xff]  ;;  %vm110_vm1 = vweird.f32 %v730_v11 }
   0xf   :  { %433 = vmatpush.bf16.msra.mxu1 %v627_v15  ;;  %v626_v27 = vld [vmem:[%s840_s1 + $0x58] sm:$0xff]  ;;  %27 = vst [vmem:[#allocation1 + $0x10] ss:$2 sm:$0xff] %v18_v22  ;;  %v617_v31 = vld [vmem:[%s840_s1 + $0x10] sm:$0xff]  ;;  %vm48_vm0 = vcmask 1043456   ;;  %v616_v35 = vld [vmem:[%s840_s1 + $0x8] sm:$0xff] }
  0x10   :  { %33 = vst [vmem:[#allocation1 + $0x20] ss:$2 sm:$0xff] %v19_v23  ;;  %446 = vmatpush.bf16.msra.mxu2 %v635_v17  ;;  %v634_v28 = vld [vmem:[%s840_s1 + $0x98] sm:$0xff]  ;;  %v108_v30 = vmul.f32 %v730_v11, %v107_v25  ;;  %v625_v32 = vld [vmem:[%s840_s1 + $0x50] sm:$0xff]  ;;  %v624_v36 = vld [vmem:[%s840_s1 + $0x48] sm:$0xff]  ;;  %vm212_vm2 = vcmask 1041409  }
  0x11   :  { %459 = vmatpush.bf16.msra.mxu3 %v643_v18  ;;  %v642_v29 = vld [vmem:[%s840_s1 + $0xd8] sm:$0xff]  ;;  %35 = vst [vmem:[#allocation1 + $0x30] ss:$2 sm:$0xff] %v20_v24  ;;  %v633_v33 = vld [vmem:[%s840_s1 + $0x90] sm:$0xff]  ;;  %v632_v39 = vld [vmem:[%s840_s1 + $0x88] sm:$0xff]  ;;  %s679_s25 = smov [#allocation2]  }
  0x12   :  { %421 = vmatpush.bf16.msra.mxu0 %v618_v26  ;;  %v641_v34 = vld [vmem:[%s840_s1 + $0xd0] sm:$0xff]  ;;  %v109_v42 = vadd.f32 %v730_v11, %v108_v30  ;;  %v640_v48 = vld [vmem:[%s840_s1 + $0xc8] sm:$0xff]  ;;  %v615_v52 = vld [vmem:[%s840_s1] sm:$0xff]  ;;  %s476_s26 = sshll.u32 %s679_s25, 4  ;;  %s478_s29 = sshll.u32 %s842_s3, 4  ;;  %vm469_vm3 = vcmask 74752   ;;  %s477_s26 = int_to_ptr.vmem [resolvable:$true] %s476_s26  ;;  %s479_s29 = int_to_ptr.hbm [resolvable:$true] %s478_s29 }
  0x13   :  { %434 = vmatpush.bf16.msra.mxu1 %v626_v27  ;;  %v623_v58 = vld [vmem:[%s840_s1 + $0x40] sm:$0xff] }
  0x14   :  { %447 = vmatpush.bf16.msra.mxu2 %v634_v28  ;;  %v810_v60 = vsel %vm110_vm1, %v730_v11, %v109_v42  ;;  %v631_v5 = vld [vmem:[%s840_s1 + $0x80] sm:$0xff] }
  0x15   :  { %460 = vmatpush.bf16.msra.mxu3 %v642_v29  ;;  %v28_v37 = vld.sshfl [vmem:[#allocation1] sm:$0xff pattern:$0x75316420]  ;;  %v29_v38 = vld.sshfl [vmem:[#allocation1 + $0x8] sm:$0xff pattern:$0x75316420] }
  0x16   :  { %v49_v41 = vsel %vm48_vm0, %v28_v37, 0.0  ;;  %v56_v43 = vsel %vm48_vm0, %v29_v38, 0.0  ;;  %422 = vmatpush.bf16.msra.mxu0 %v617_v31  ;;  %v30_v51 = vld.sshfl [vmem:[#allocation1 + $0x10] sm:$0xff pattern:$0x75316420]  ;;  %v639_v6 = vld [vmem:[%s840_s1 + $0xc0] sm:$0xff] }
  0x17   :  { %v36_v40 = vld.sshfl [vmem:[#allocation1 + $0x20] sm:$0xff pattern:$0x75316420]  ;;  %435 = vmatpush.bf16.msra.mxu1 %v625_v32  ;;  %v50_v44 = vrot.slane %v49_v41, 4  ;;  %v57_v47 = vrot.slane %v56_v43, 4  ;;  %v63_v57 = vsel %vm48_vm0, %v30_v51, 0.0 }
  0x18   :  { %v77_v45 = vsel %vm48_vm0, %v36_v40, 0.0  ;;  %v37_v46 = vld.sshfl [vmem:[#allocation1 + $0x28] sm:$0xff pattern:$0x75316420]  ;;  %448 = vmatpush.bf16.msra.mxu2 %v633_v33  ;;  %v64_v61 = vrot.slane %v63_v57, 4 }
  0x19   :  { %461 = vmatpush.bf16.msra.mxu3 %v641_v34  ;;  %v78_v49 = vrot.slane %v77_v45, 4  ;;  %v84_v50 = vsel %vm48_vm0, %v37_v46, 0.0  ;;  %v51_v53 = vadd.f32 %v50_v44, %v49_v41  ;;  %v58_v54 = vadd.f32 %v57_v47, %v56_v43  ;;  %v38_v56 = vld.sshfl [vmem:[#allocation1 + $0x30] sm:$0xff pattern:$0x75316420] }
  0x1a   :  { %v85_v55 = vrot.slane %v84_v50, 4  ;;  %v91_v62 = vsel %vm48_vm0, %v38_v56, 0.0  ;;  %v31_v63 = vld.sshfl [vmem:[#allocation1 + $0x18] sm:$0xff pattern:$0x75316420]  ;;  %423 = vmatpush.bf16.msra.mxu0 %v616_v35  ;;  %v65_v8 = vadd.f32 %v64_v61, %v63_v57 }
  0x1b   :  { %v79_v59 = vadd.f32 %v78_v49, %v77_v45  ;;  %436 = vmatpush.bf16.msra.mxu1 %v624_v36  ;;  %v52_v0 = vrot.slane %v51_v53, 2  ;;  %v59_v1 = vrot.slane %v58_v54, 2  ;;  %v92_v3 = vrot.slane %v91_v62, 4  ;;  %v39_v4 = vld.sshfl [vmem:[#allocation1 + $0x38] sm:$0xff pattern:$0x75316420] }
  0x1c   :  { %v86_v2 = vadd.f32 %v85_v55, %v84_v50  ;;  %449 = vmatpush.bf16.msra.mxu2 %v632_v39  ;;  %v70_v9 = vsel %vm48_vm0, %v31_v63, 0.0  ;;  %v98_v10 = vsel %vm48_vm0, %v39_v4, 0.0  ;;  %v66_v16 = vrot.slane %v65_v8, 2 }
  0x1d   :  { %462 = vmatpush.bf16.msra.mxu3 %v640_v48  ;;  %v80_v7 = vrot.slane %v79_v59, 2  ;;  %v53_v11 = vadd.f32 %v52_v0, %v51_v53  ;;  %v60_v12 = vadd.f32 %v59_v1, %v58_v54  ;;  %v93_v14 = vadd.f32 %v92_v3, %v91_v62 }
  0x1e   :  { %v87_v13 = vrot.slane %v86_v2, 2  ;;  %v71_v17 = vrot.slane %v70_v9, 4  ;;  %v99_v18 = vrot.slane %v98_v10, 4  ;;  %424 = vmatpush.bf16.msra.mxu0 %v615_v52  ;;  %v67_v24 = vadd.f32 %v66_v16, %v65_v8 }
  0x1f   :  { %v81_v15 = vadd.f32 %v80_v7, %v79_v59  ;;  %437 = vmatpush.bf16.msra.mxu1 %v623_v58  ;;  %v54_v19 = vrot.slane %v53_v11, 1  ;;  %v61_v20 = vrot.slane %v60_v12, 1  ;;  %v94_v22 = vrot.slane %v93_v14, 2 }
  0x20   :  { %v88_v21 = vadd.f32 %v87_v13, %v86_v2  ;;  %450 = vmatpush.bf16.msra.mxu2 %v631_v5  ;;  %v72_v25 = vadd.f32 %v71_v17, %v70_v9  ;;  %v100_v26 = vadd.f32 %v99_v18, %v98_v10  ;;  %v68_v32 = vrot.slane %v67_v24, 1 }
  0x21   :  { %463 = vmatpush.bf16.msra.mxu3 %v639_v6  ;;  %v82_v23 = vrot.slane %v81_v15, 1  ;;  %v55_v27 = vadd.f32 %v54_v19, %v53_v11  ;;  %v62_v28 = vadd.f32 %v61_v20, %v60_v12  ;;  %v95_v30 = vadd.f32 %v94_v22, %v93_v14 }
  0x22   :  { %v89_v29 = vrot.slane %v88_v21, 1  ;;  %v73_v33 = vrot.slane %v72_v25, 2  ;;  %v101_v34 = vrot.slane %v100_v26, 2  ;;  %v69_v40 = vadd.f32 %v68_v32, %v67_v24 }
  0x23   :  { %v83_v31 = vadd.f32 %v82_v23, %v81_v15  ;;  %v112_v35 = vmul.f32 %v810_v60, %v55_v27  ;;  %v113_v37 = vmul.f32 %v810_v60, %v62_v28  ;;  %v96_v38 = vrot.slane %v95_v30, 1 }
  0x24   :  { %v90_v36 = vadd.f32 %v89_v29, %v88_v21  ;;  %v74_v41 = vadd.f32 %v73_v33, %v72_v25  ;;  %v102_v42 = vadd.f32 %v101_v34, %v100_v26  ;;  %v114_v48 = vmul.f32 %v810_v60, %v69_v40 }
  0x25   :  { %v116_v39 = vmul.f32 %v810_v60, %v83_v31  ;;  %v120_v43 = vpack.c.bf16 %v112_v35, %v112_v35  ;;  %v121_v45 = vpack.c.bf16 %v113_v37, %v113_v37  ;;  %v97_v46 = vadd.f32 %v96_v38, %v95_v30 }
  0x26   :  { %v117_v44 = vmul.f32 %v810_v60, %v90_v36  ;;  %v75_v49 = vrot.slane %v74_v41, 1  ;;  %v103_v50 = vrot.slane %v102_v42, 1  ;;  %v122_v56 = vpack.c.bf16 %v114_v48, %v114_v48 }
  0x27   :  { %v124_v47 = vpack.c.bf16 %v116_v39, %v116_v39  ;;  %v204_v51 = vunpack.c.l.b16 %v120_v43  ;;  %v205_v53 = vunpack.c.l.b16 %v121_v45  ;;  %v118_v54 = vmul.f32 %v810_v60, %v97_v46 }
  0x28   :  { %v125_v52 = vpack.c.bf16 %v117_v44, %v117_v44  ;;  %v76_v57 = vadd.f32 %v75_v49, %v74_v41  ;;  %v104_v58 = vadd.f32 %v103_v50, %v102_v42  ;;  %v206_v63 = vunpack.c.l.b16 %v122_v56 }
  0x29   :  { %v208_v55 = vunpack.c.l.b16 %v124_v47  ;;  %v126_v61 = vpack.c.bf16 %v118_v54, %v118_v54 }
  0x2a   :  { %v209_v59 = vunpack.c.l.b16 %v125_v52  ;;  %v115_v0 = vmul.f32 %v810_v60, %v76_v57  ;;  %v119_v1 = vmul.f32 %v810_v60, %v104_v58  ;;  %v649_v60 = vld [vmem:[%s841_s2] ss:$0 sm:$0xff] }
  0x2b   :  { %v213_v62 = vsel %vm212_vm2, %v208_v55, %v204_v51  ;;  %v210_v4 = vunpack.c.l.b16 %v126_v61 }
  0x2c   :  { %v217_v2 = vpack.c.b16 %v213_v62, %v213_v62  ;;  %v214_v3 = vsel %vm212_vm2, %v209_v59, %v205_v53  ;;  %v123_v6 = vpack.c.bf16 %v115_v0, %v115_v0  ;;  %v127_v7 = vpack.c.bf16 %v119_v1, %v119_v1 }
  0x2d   :  { %v218_v5 = vpack.c.b16 %v214_v3, %v214_v3  ;;  %v215_v8 = vsel %vm212_vm2, %v210_v4, %v206_v63 }
  0x2e   :  { %425 = vmatmul.bf16.vlgmr.msra.gmra.mxu0 %v217_v2  ;;  %v219_v9 = vpack.c.b16 %v215_v8, %v215_v8  ;;  %v207_v10 = vunpack.c.l.b16 %v123_v6  ;;  %v211_v11 = vunpack.c.l.b16 %v127_v7 }
  0x2f   :  { %438 = vmatmul.bf16.vlgmr.msra.gmra.mxu1 %v218_v5 }
  0x30   :  { %451 = vmatmul.bf16.vlgmr.msra.gmra.mxu2 %v219_v9  ;;  %v216_v12 = vsel %vm212_vm2, %v211_v11, %v207_v10 }
  0x31   :  { %v220_v13 = vpack.c.b16 %v216_v12, %v216_v12 }
  0x33   :  { %464 = vmatmul.bf16.vlgmr.msra.gmra.mxu3 %v220_v13 }
  0xab   :  { %v426_v14 = vpop.f32.mrf.mxu0 }
  0xac   :  { %v439_v15 = vpop.f32.mrf.mxu1  ;;  %v427_v16 = vadd.f32 %v649_v60, %v426_v14 }
  0xae   :  { %v440_v17 = vadd.f32 %v439_v15, %v427_v16 }
  0xb3   :  { %v428_v18 = vpop.f32.mrf.mxu0  ;;  %v452_v19 = vpop.f32.mrf.mxu2 }
  0xb4   :  { %v441_v20 = vpop.f32.mrf.mxu1  ;;  %v453_v21 = vadd.f32 %v452_v19, %v440_v17 }
  0xb6   :  { %v465_v22 = vpop.f32.mrf.mxu3 }
  0xb7   :  { %v466_v23 = vadd.f32 %v465_v22, %v453_v21 }
  0xb9   :  { %470 = vst.msk [vmem:[#allocation2] sm:$0x3] %vm469_vm3, %v466_v23 }
  0xba   :  { %481 = dma.vmem_to_hbm [thread:$0]  %s477_s26, 32, %s479_s29, [#allocation3]  }
  0xbb   :  { %v454_v24 = vpop.f32.mrf.mxu2 }
  0xbe   :  { %v467_v25 = vpop.f32.mrf.mxu3 }
  0xbf   :  { %676 = dma.done.wait [#allocation3], 32  }
  0xc0   :  { %677 = vsyncadd [#allocation3], 4294967264 }
  0xc1   :  { %486 = vsyncpa [#allocation3], 1 }

// kernel: image_classifier_forward.8
= control target key start
LH: loop header
LB: loop body
LE: loop exit
PB: predicated region body
PF: predicated region fallthrough
CT: control target
= control target key end

     0   :  { %s11307_s15 = smov 0   ;;  %s11309_s16 = smov 0   ;;  %s13643_s0 = inlined_call_operand.vmem [shape: bf16[8,4096], index: 0, kind: input, shape index: {}]   ;;  %s13644_s1 = inlined_call_operand.vmem [shape: bf16[4096,512], index: 1, kind: input, shape index: {}]   ;;  %s13645_s2 = inlined_call_operand.vmem [shape: f32[1,512], index: 2, kind: input, shape index: {}]   ;;  %s13646_s3 = inlined_call_operand.vmem [shape: f32[1,512], index: 3, kind: input, shape index: {}]   ;;  %s13647_s4 = inlined_call_operand.vmem [shape: bf16[8,512], index: 4, kind: output, shape index: {}]  }
   0x1   :  { %s11311_s17 = smov 0   ;;  %s11313_s18 = smov 0  }
   0x2   :  { %s11315_s19 = smov 0  }
   0x3 LB: > { %s23_s20 = sadd.s32 1, %s11276_s18  ;;  %p66_p1 = scmp.ne.s32.totalorder %s11268_s16, %s11264_s15  ;;  %s11280_s19 = sphi %s11315_s19, %s14_s19   ;;  %s11276_s18 = sphi %s11313_s18, %s13651_s18   ;;  %s11272_s17 = sphi %s11311_s17, %s13650_s17   ;;  %s11268_s16 = sphi %s11309_s16, %s13649_s16   ;;  %s11264_s15 = sphi %s11307_s15, %s13648_s15  }
   0x4   : > { %p24_p0 = scmp.ge.s32.totalorder %s23_s20, 2  ;;  %p67_p2 = scmp.eq.s32.totalorder %s11280_s19, 0 }
   0x5   : > { %s59_s22 = sadd.s32 1, %s11268_s16  ;;  %p8629_p5 = scmp.ge.s32.totalorder %s11280_s19, 2 }
   0x6   : > { %s13653_s20 = smov (%p24_p0, %s23_s20), 0  ;;  %p68_p3 = por %p67_p2, %p66_p1 }
   0x7   : > { %s56_s21 = ssub.s32 %s11276_s18, %s13653_s20  ;;  %180 = sbr.rel (%p8629_p5) target bundleno = 528 (0x210), region = 20 }
   0x8   : > { %p57_p4 = scmp.eq.s32.totalorder %s56_s21, 0 }
   0xa   : > { %s11342_s23 = scalar_select %p57_p4, %s11268_s16, %s59_s22  }
   0xc   : > { %183 = sbr.rel (!%p68_p3) target bundleno = 528 (0x210), region = 24  ;;  %s185_s24 = sand.u32 (%p68_p3), 1, %s11268_s16  }
   0xd   : > { %s10689_s25 = sshll.u32 (%p68_p3), %s11276_s18, 3  ;;  %s8630_s26 = sshll.u32 (%p68_p3), %s185_s24, 12 }
   0xe   : > { %s11350_s29 = scalar_lea.vmem (%p68_p3), %s13644_s1, %s10689_s25  ;;  %s11355_s30 = scalar_lea.vmem (%p68_p3), [#allocation2], %s8630_s26 }
   0xf   : > { %v1242_v0 = vld [vmem:[%s11350_s29] sm:$0xff] (%p68_p3)  ;;  %v1244_v1 = vld [vmem:[%s11350_s29 + $0x10] sm:$0xff] (%p68_p3) }
  0x10   : > { %v1246_v2 = vld [vmem:[%s11350_s29 + $0x20] sm:$0xff] (%p68_p3)  ;;  %1243 = vst [vmem:[%s11355_s30] sm:$0xff] (%p68_p3), %v1242_v0  ;;  %v1248_v3 = vld [vmem:[%s11350_s29 + $0x30] sm:$0xff] (%p68_p3) }
  0x11   : > { %1245 = vst [vmem:[%s11355_s30 + $0x8] sm:$0xff] %v1244_v1  ;;  %v1250_v4 = vld [vmem:[%s11350_s29 + $0x40] sm:$0xff]  ;;  %v1252_v5 = vld [vmem:[%s11350_s29 + $0x50] sm:$0xff] }
  0x12   : > { %1247 = vst [vmem:[%s11355_s30 + $0x10] sm:$0xff] %v1246_v2  ;;  %v1254_v6 = vld [vmem:[%s11350_s29 + $0x60] sm:$0xff]  ;;  %v1256_v7 = vld [vmem:[%s11350_s29 + $0x70] sm:$0xff] }
  0x13   : > { %1249 = vst [vmem:[%s11355_s30 + $0x18] sm:$0xff] %v1248_v3  ;;  %v1258_v8 = vld [vmem:[%s11350_s29 + $0x80] sm:$0xff]  ;;  %v1260_v9 = vld [vmem:[%s11350_s29 + $0x90] sm:$0xff] }
  0x14   : > { %1251 = vst [vmem:[%s11355_s30 + $0x20] sm:$0xff] %v1250_v4  ;;  %v1262_v10 = vld [vmem:[%s11350_s29 + $0xa0] sm:$0xff]  ;;  %v1264_v11 = vld [vmem:[%s11350_s29 + $0xb0] sm:$0xff] }
  0x15   : > { %1253 = vst [vmem:[%s11355_s30 + $0x28] sm:$0xff] %v1252_v5  ;;  %v1266_v12 = vld [vmem:[%s11350_s29 + $0xc0] sm:$0xff]  ;;  %v1268_v13 = vld [vmem:[%s11350_s29 + $0xd0] sm:$0xff] }
  0x16   : > { %1255 = vst [vmem:[%s11355_s30 + $0x30] sm:$0xff] %v1254_v6  ;;  %v1270_v14 = vld [vmem:[%s11350_s29 + $0xe0] sm:$0xff]  ;;  %v1272_v15 = vld [vmem:[%s11350_s29 + $0xf0] sm:$0xff] }
  0x17   : > { %1257 = vst [vmem:[%s11355_s30 + $0x38] sm:$0xff] %v1256_v7  ;;  %v1274_v16 = vld [vmem:[%s11350_s29 + $0x100] sm:$0xff]  ;;  %v1276_v17 = vld [vmem:[%s11350_s29 + $0x110] sm:$0xff] }
  0x18   : > { %1259 = vst [vmem:[%s11355_s30 + $0x40] sm:$0xff] %v1258_v8  ;;  %v1278_v18 = vld [vmem:[%s11350_s29 + $0x120] sm:$0xff]  ;;  %v1280_v19 = vld [vmem:[%s11350_s29 + $0x130] sm:$0xff] }
  0x19   : > { %1261 = vst [vmem:[%s11355_s30 + $0x48] sm:$0xff] %v1260_v9  ;;  %v1282_v20 = vld [vmem:[%s11350_s29 + $0x140] sm:$0xff]  ;;  %v1284_v21 = vld [vmem:[%s11350_s29 + $0x150] sm:$0xff] }
  0x1a   : > { %1263 = vst [vmem:[%s11355_s30 + $0x50] sm:$0xff] %v1262_v10  ;;  %v1286_v22 = vld [vmem:[%s11350_s29 + $0x160] sm:$0xff]  ;;  %v1288_v23 = vld [vmem:[%s11350_s29 + $0x170] sm:$0xff] }
  0x1b   : > { %1265 = vst [vmem:[%s11355_s30 + $0x58] sm:$0xff] %v1264_v11  ;;  %v1290_v24 = vld [vmem:[%s11350_s29 + $0x180] sm:$0xff]  ;;  %v1292_v25 = vld [vmem:[%s11350_s29 + $0x190] sm:$0xff] }
  0x1c   : > { %1267 = vst [vmem:[%s11355_s30 + $0x60] sm:$0xff] %v1266_v12  ;;  %v1294_v26 = vld [vmem:[%s11350_s29 + $0x1a0] sm:$0xff]  ;;  %v1296_v27 = vld [vmem:[%s11350_s29 + $0x1b0] sm:$0xff] }
  0x1d   : > { %1269 = vst [vmem:[%s11355_s30 + $0x68] sm:$0xff] %v1268_v13  ;;  %v1298_v28 = vld [vmem:[%s11350_s29 + $0x1c0] sm:$0xff]  ;;  %v1300_v29 = vld [vmem:[%s11350_s29 + $0x1d0] sm:$0xff] }
  0x1e   : > { %1271 = vst [vmem:[%s11355_s30 + $0x70] sm:$0xff] %v1270_v14  ;;  %v1302_v30 = vld [vmem:[%s11350_s29 + $0x1e0] sm:$0xff]  ;;  %v1304_v31 = vld [vmem:[%s11350_s29 + $0x1f0] sm:$0xff] }
  0x1f   : > { %1273 = vst [vmem:[%s11355_s30 + $0x78] sm:$0xff] %v1272_v15  ;;  %v1306_v32 = vld [vmem:[%s11350_s29 + $0x200] sm:$0xff]  ;;  %v1308_v33 = vld [vmem:[%s11350_s29 + $0x210] sm:$0xff] }
  0x20   : > { %1275 = vst [vmem:[%s11355_s30 + $0x80] sm:$0xff] %v1274_v16  ;;  %v1310_v34 = vld [vmem:[%s11350_s29 + $0x220] sm:$0xff]  ;;  %v1312_v35 = vld [vmem:[%s11350_s29 + $0x230] sm:$0xff] }
  0x21   : > { %1277 = vst [vmem:[%s11355_s30 + $0x88] sm:$0xff] %v1276_v17  ;;  %v1314_v36 = vld [vmem:[%s11350_s29 + $0x240] sm:$0xff]  ;;  %v1316_v37 = vld [vmem:[%s11350_s29 + $0x250] sm:$0xff] }
  0x22   : > { %1279 = vst [vmem:[%s11355_s30 + $0x90] sm:$0xff] %v1278_v18  ;;  %v1318_v38 = vld [vmem:[%s11350_s29 + $0x260] sm:$0xff]  ;;  %v1320_v39 = vld [vmem:[%s11350_s29 + $0x270] sm:$0xff] }
  0x23   : > { %1281 = vst [vmem:[%s11355_s30 + $0x98] sm:$0xff] %v1280_v19  ;;  %v1322_v40 = vld [vmem:[%s11350_s29 + $0x280] sm:$0xff]  ;;  %v1324_v41 = vld [vmem:[%s11350_s29 + $0x290] sm:$0xff] }
  0x24   : > { %1283 = vst [vmem:[%s11355_s30 + $0xa0] sm:$0xff] %v1282_v20  ;;  %v1326_v42 = vld [vmem:[%s11350_s29 + $0x2a0] sm:$0xff]  ;;  %v1328_v43 = vld [vmem:[%s11350_s29 + $0x2b0] sm:$0xff] }
  0x25   : > { %1285 = vst [vmem:[%s11355_s30 + $0xa8] sm:$0xff] %v1284_v21  ;;  %v1330_v44 = vld [vmem:[%s11350_s29 + $0x2c0] sm:$0xff]  ;;  %v1332_v45 = vld [vmem:[%s11350_s29 + $0x2d0] sm:$0xff] }
  0x26   : > { %1287 = vst [vmem:[%s11355_s30 + $0xb0] sm:$0xff] %v1286_v22  ;;  %v1334_v46 = vld [vmem:[%s11350_s29 + $0x2e0] sm:$0xff]  ;;  %v1336_v47 = vld [vmem:[%s11350_s29 + $0x2f0] sm:$0xff] }
  0x27   : > { %1289 = vst [vmem:[%s11355_s30 + $0xb8] sm:$0xff] %v1288_v23  ;;  %v1338_v48 = vld [vmem:[%s11350_s29 + $0x300] sm:$0xff]  ;;  %v1340_v49 = vld [vmem:[%s11350_s29 + $0x310] sm:$0xff] }
  0x28   : > { %1291 = vst [vmem:[%s11355_s30 + $0xc0] sm:$0xff] %v1290_v24  ;;  %v1342_v50 = vld [vmem:[%s11350_s29 + $0x320] sm:$0xff]  ;;  %v1344_v51 = vld [vmem:[%s11350_s29 + $0x330] sm:$0xff] }
  0x29   : > { %1293 = vst [vmem:[%s11355_s30 + $0xc8] sm:$0xff] %v1292_v25  ;;  %v1346_v52 = vld [vmem:[%s11350_s29 + $0x340] sm:$0xff]  ;;  %v1348_v53 = vld [vmem:[%s11350_s29 + $0x350] sm:$0xff] }
  0x2a   : > { %1295 = vst [vmem:[%s11355_s30 + $0xd0] sm:$0xff] %v1294_v26  ;;  %v1350_v54 = vld [vmem:[%s11350_s29 + $0x360] sm:$0xff]  ;;  %v1352_v55 = vld [vmem:[%s11350_s29 + $0x370] sm:$0xff] }
  0x2b   : > { %1297 = vst [vmem:[%s11355_s30 + $0xd8] sm:$0xff] %v1296_v27  ;;  %v1354_v56 = vld [vmem:[%s11350_s29 + $0x380] sm:$0xff]  ;;  %v1356_v57 = vld [vmem:[%s11350_s29 + $0x390] sm:$0xff] }
  0x2c   : > { %1299 = vst [vmem:[%s11355_s30 + $0xe0] sm:$0xff] %v1298_v28  ;;  %v1358_v58 = vld [vmem:[%s11350_s29 + $0x3a0] sm:$0xff]  ;;  %v1360_v59 = vld [vmem:[%s11350_s29 + $0x3b0] sm:$0xff] }
  0x2d   : > { %1301 = vst [vmem:[%s11355_s30 + $0xe8] sm:$0xff] %v1300_v29  ;;  %v1362_v60 = vld [vmem:[%s11350_s29 + $0x3c0] sm:$0xff]  ;;  %v1364_v61 = vld [vmem:[%s11350_s29 + $0x3d0] sm:$0xff] }
  0x2e   : > { %1303 = vst [vmem:[%s11355_s30 + $0xf0] sm:$0xff] %v1302_v30  ;;  %v1366_v62 = vld [vmem:[%s11350_s29 + $0x3e0] sm:$0xff]  ;;  %v1368_v63 = vld [vmem:[%s11350_s29 + $0x3f0] sm:$0xff] }
  0x2f   : > { %1305 = vst [vmem:[%s11355_s30 + $0xf8] sm:$0xff] %v1304_v31  ;;  %v1370_v0 = vld [vmem:[%s11350_s29 + $0x400] sm:$0xff]  ;;  %v1372_v1 = vld [vmem:[%s11350_s29 + $0x410] sm:$0xff] }
  0x30   : > { %1307 = vst [vmem:[%s11355_s30 + $0x100] sm:$0xff] %v1306_v32  ;;  %v1374_v2 = vld [vmem:[%s11350_s29 + $0x420] sm:$0xff]  ;;  %v1376_v3 = vld [vmem:[%s11350_s29 + $0x430] sm:$0xff] }
  0x31   : > { %1309 = vst [vmem:[%s11355_s30 + $0x108] sm:$0xff] %v1308_v33  ;;  %v1378_v4 = vld [vmem:[%s11350_s29 + $0x440] sm:$0xff]  ;;  %v1380_v5 = vld [vmem:[%s11350_s29 + $0x450] sm:$0xff] }
  0x32   : > { %1311 = vst [vmem:[%s11355_s30 + $0x110] sm:$0xff] %v1310_v34  ;;  %v1382_v6 = vld [vmem:[%s11350_s29 + $0x460] sm:$0xff]  ;;  %v1384_v7 = vld [vmem:[%s11350_s29 + $0x470] sm:$0xff] }
  0x33   : > { %1313 = vst [vmem:[%s11355_s30 + $0x118] sm:$0xff] %v1312_v35  ;;  %v1386_v8 = vld [vmem:[%s11350_s29 + $0x480] sm:$0xff]  ;;  %v1388_v9 = vld [vmem:[%s11350_s29 + $0x490] sm:$0xff] }
  0x34   : > { %1315 = vst [vmem:[%s11355_s30 + $0x120] sm:$0xff] %v1314_v36  ;;  %v1390_v10 = vld [vmem:[%s11350_s29 + $0x4a0] sm:$0xff]  ;;  %v1392_v11 = vld [vmem:[%s11350_s29 + $0x4b0] sm:$0xff] }
  0x35   : > { %1317 = vst [vmem:[%s11355_s30 + $0x128] sm:$0xff] %v1316_v37  ;;  %v1394_v12 = vld [vmem:[%s11350_s29 + $0x4c0] sm:$0xff]  ;;  %v1396_v13 = vld [vmem:[%s11350_s29 + $0x4d0] sm:$0xff] }
  0x36   : > { %1319 = vst [vmem:[%s11355_s30 + $0x130] sm:$0xff] %v1318_v38  ;;  %v1398_v14 = vld [vmem:[%s11350_s29 + $0x4e0] sm:$0xff]  ;;  %v1400_v15 = vld [vmem:[%s11350_s29 + $0x4f0] sm:$0xff] }
  0x37   : > { %1321 = vst [vmem:[%s11355_s30 + $0x138] sm:$0xff] %v1320_v39  ;;  %v1402_v16 = vld [vmem:[%s11350_s29 + $0x500] sm:$0xff]  ;;  %v1404_v17 = vld [vmem:[%s11350_s29 + $0x510] sm:$0xff] }
  0x38   : > { %1323 = vst [vmem:[%s11355_s30 + $0x140] sm:$0xff] %v1322_v40  ;;  %v1406_v18 = vld [vmem:[%s11350_s29 + $0x520] sm:$0xff]  ;;  %v1408_v19 = vld [vmem:[%s11350_s29 + $0x530] sm:$0xff] }
  0x39   : > { %1325 = vst [vmem:[%s11355_s30 + $0x148] sm:$0xff] %v1324_v41  ;;  %v1410_v20 = vld [vmem:[%s11350_s29 + $0x540] sm:$0xff]  ;;  %v1412_v21 = vld [vmem:[%s11350_s29 + $0x550] sm:$0xff] }
  0x3a   : > { %1327 = vst [vmem:[%s11355_s30 + $0x150] sm:$0xff] %v1326_v42  ;;  %v1414_v22 = vld [vmem:[%s11350_s29 + $0x560] sm:$0xff]  ;;  %v1416_v23 = vld [vmem:[%s11350_s29 + $0x570] sm:$0xff] }
  0x3b   : > { %1329 = vst [vmem:[%s11355_s30 + $0x158] sm:$0xff] %v1328_v43  ;;  %v1418_v24 = vld [vmem:[%s11350_s29 + $0x580] sm:$0xff]  ;;  %v1420_v25 = vld [vmem:[%s11350_s29 + $0x590] sm:$0xff] }
  0x3c   : > { %1331 = vst [vmem:[%s11355_s30 + $0x160] sm:$0xff] %v1330_v44  ;;  %v1422_v26 = vld [vmem:[%s11350_s29 + $0x5a0] sm:$0xff]  ;;  %v1424_v27 = vld [vmem:[%s11350_s29 + $0x5b0] sm:$0xff] }
  0x3d   : > { %1333 = vst [vmem:[%s11355_s30 + $0x168] sm:$0xff] %v1332_v45  ;;  %v1426_v28 = vld [vmem:[%s11350_s29 + $0x5c0] sm:$0xff]  ;;  %v1428_v29 = vld [vmem:[%s11350_s29 + $0x5d0] sm:$0xff] }
  0x3e   : > { %1335 = vst [vmem:[%s11355_s30 + $0x170] sm:$0xff] %v1334_v46  ;;  %v1430_v30 = vld [vmem:[%s11350_s29 + $0x5e0] sm:$0xff]  ;;  %v1432_v31 = vld [vmem:[%s11350_s29 + $0x5f0] sm:$0xff] }
  0x3f   : > { %1337 = vst [vmem:[%s11355_s30 + $0x178] sm:$0xff] %v1336_v47  ;;  %v1434_v32 = vld [vmem:[%s11350_s29 + $0x600] sm:$0xff]  ;;  %v1436_v33 = vld [vmem:[%s11350_s29 + $0x610] sm:$0xff] }
  0x40   : > { %1339 = vst [vmem:[%s11355_s30 + $0x180] sm:$0xff] %v1338_v48  ;;  %v1438_v34 = vld [vmem:[%s11350_s29 + $0x620] sm:$0xff]  ;;  %v1440_v35 = vld [vmem:[%s11350_s29 + $0x630] sm:$0xff] }
  0x41   : > { %1341 = vst [vmem:[%s11355_s30 + $0x188] sm:$0xff] %v1340_v49  ;;  %v1442_v36 = vld [vmem:[%s11350_s29 + $0x640] sm:$0xff]  ;;  %v1444_v37 = vld [vmem:[%s11350_s29 + $0x650] sm:$0xff] }
  0x42   : > { %1343 = vst [vmem:[%s11355_s30 + $0x190] sm:$0xff] %v1342_v50  ;;  %v1446_v38 = vld [vmem:[%s11350_s29 + $0x660] sm:$0xff]  ;;  %v1448_v39 = vld [vmem:[%s11350_s29 + $0x670] sm:$0xff] }
  0x43   : > { %1345 = vst [vmem:[%s11355_s30 + $0x198] sm:$0xff] %v1344_v51  ;;  %v1450_v40 = vld [vmem:[%s11350_s29 + $0x680] sm:$0xff]  ;;  %v1452_v41 = vld [vmem:[%s11350_s29 + $0x690] sm:$0xff] }
  0x44   : > { %1347 = vst [vmem:[%s11355_s30 + $0x1a0] sm:$0xff] %v1346_v52  ;;  %v1454_v42 = vld [vmem:[%s11350_s29 + $0x6a0] sm:$0xff]  ;;  %v1456_v43 = vld [vmem:[%s11350_s29 + $0x6b0] sm:$0xff] }
  0x45   : > { %1349 = vst [vmem:[%s11355_s30 + $0x1a8] sm:$0xff] %v1348_v53  ;;  %v1458_v44 = vld [vmem:[%s11350_s29 + $0x6c0] sm:$0xff]  ;;  %v1460_v45 = vld [vmem:[%s11350_s29 + $0x6d0] sm:$0xff] }
  0x46   : > { %1351 = vst [vmem:[%s11355_s30 + $0x1b0] sm:$0xff] %v1350_v54  ;;  %v1462_v46 = vld [vmem:[%s11350_s29 + $0x6e0] sm:$0xff]  ;;  %v1464_v47 = vld [vmem:[%s11350_s29 + $0x6f0] sm:$0xff] }
  0x47   : > { %1353 = vst [vmem:[%s11355_s30 + $0x1b8] sm:$0xff] %v1352_v55  ;;  %v1466_v48 = vld [vmem:[%s11350_s29 + $0x700] sm:$0xff]  ;;  %v1468_v49 = vld [vmem:[%s11350_s29 + $0x710] sm:$0xff] }
  0x48   : > { %1355 = vst [vmem:[%s11355_s30 + $0x1c0] sm:$0xff] %v1354_v56  ;;  %v1470_v50 = vld [vmem:[%s11350_s29 + $0x720] sm:$0xff]  ;;  %v1472_v51 = vld [vmem:[%s11350_s29 + $0x730] sm:$0xff] }
  0x49   : > { %1357 = vst [vmem:[%s11355_s30 + $0x1c8] sm:$0xff] %v1356_v57  ;;  %v1474_v52 = vld [vmem:[%s11350_s29 + $0x740] sm:$0xff]  ;;  %v1476_v53 = vld [vmem:[%s11350_s29 + $0x750] sm:$0xff] }
  0x4a   : > { %1359 = vst [vmem:[%s11355_s30 + $0x1d0] sm:$0xff] %v1358_v58  ;;  %v1478_v54 = vld [vmem:[%s11350_s29 + $0x760] sm:$0xff]  ;;  %v1480_v55 = vld [vmem:[%s11350_s29 + $0x770] sm:$0xff] }
  0x4b   : > { %1361 = vst [vmem:[%s11355_s30 + $0x1d8] sm:$0xff] %v1360_v59  ;;  %v1482_v56 = vld [vmem:[%s11350_s29 + $0x780] sm:$0xff]  ;;  %v1484_v57 = vld [vmem:[%s11350_s29 + $0x790] sm:$0xff] }
  0x4c   : > { %1363 = vst [vmem:[%s11355_s30 + $0x1e0] sm:$0xff] %v1362_v60  ;;  %v1486_v58 = vld [vmem:[%s11350_s29 + $0x7a0] sm:$0xff]  ;;  %v1488_v59 = vld [vmem:[%s11350_s29 + $0x7b0] sm:$0xff] }
  0x4d   : > { %1365 = vst [vmem:[%s11355_s30 + $0x1e8] sm:$0xff] %v1364_v61  ;;  %v1490_v60 = vld [vmem:[%s11350_s29 + $0x7c0] sm:$0xff]  ;;  %v1492_v61 = vld [vmem:[%s11350_s29 + $0x7d0] sm:$0xff] }
  0x4e   : > { %1367 = vst [vmem:[%s11355_s30 + $0x1f0] sm:$0xff] %v1366_v62  ;;  %v1494_v62 = vld [vmem:[%s11350_s29 + $0x7e0] sm:$0xff] }
  0x4f   : > { %1369 = vst [vmem:[%s11355_s30 + $0x1f8] sm:$0xff] %v1368_v63  ;;  %v1496_v63 = vld [vmem:[%s11350_s29 + $0x7f0] sm:$0xff] }
  0x50   : > { %1371 = vst [vmem:[%s11355_s30 + $0x200] sm:$0xff] %v1370_v0  ;;  %v1498_v0 = vld [vmem:[%s11350_s29 + $0x800] sm:$0xff] }
  0x51   : > { %1373 = vst [vmem:[%s11355_s30 + $0x208] sm:$0xff] %v1372_v1  ;;  %v1500_v1 = vld [vmem:[%s11350_s29 + $0x810] sm:$0xff] }
  0x52   : > { %1375 = vst [vmem:[%s11355_s30 + $0x210] sm:$0xff] %v1374_v2  ;;  %v1502_v2 = vld [vmem:[%s11350_s29 + $0x820] sm:$0xff] }
  0x53   : > { %1377 = vst [vmem:[%s11355_s30 + $0x218] sm:$0xff] %v1376_v3  ;;  %v1504_v3 = vld [vmem:[%s11350_s29 + $0x830] sm:$0xff] }
  0x54   : > { %1379 = vst [vmem:[%s11355_s30 + $0x220] sm:$0xff] %v1378_v4  ;;  %v1506_v4 = vld [vmem:[%s11350_s29 + $0x840] sm:$0xff] }
  0x55   : > { %1381 = vst [vmem:[%s11355_s30 + $0x228] sm:$0xff] %v1380_v5  ;;  %v1508_v5 = vld [vmem:[%s11350_s29 + $0x850] sm:$0xff] }
  0x56   : > { %1383 = vst [vmem:[%s11355_s30 + $0x230] sm:$0xff] %v1382_v6  ;;  %v1510_v6 = vld [vmem:[%s11350_s29 + $0x860] sm:$0xff] }
  0x57   : > { %1385 = vst [vmem:[%s11355_s30 + $0x238] sm:$0xff] %v1384_v7  ;;  %v1512_v7 = vld [vmem:[%s11350_s29 + $0x870] sm:$0xff] }
  0x58   : > { %1387 = vst [vmem:[%s11355_s30 + $0x240] sm:$0xff] %v1386_v8  ;;  %v1514_v8 = vld [vmem:[%s11350_s29 + $0x880] sm:$0xff] }
  0x59   : > { %1389 = vst [vmem:[%s11355_s30 + $0x248] sm:$0xff] %v1388_v9  ;;  %v1516_v9 = vld [vmem:[%s11350_s29 + $0x890] sm:$0xff] }
  0x5a   : > { %1391 = vst [vmem:[%s11355_s30 + $0x250] sm:$0xff] %v1390_v10  ;;  %v1518_v10 = vld [vmem:[%s11350_s29 + $0x8a0] sm:$0xff] }
  0x5b   : > { %1393 = vst [vmem:[%s11355_s30 + $0x258] sm:$0xff] %v1392_v11  ;;  %v1520_v11 = vld [vmem:[%s11350_s29 + $0x8b0] sm:$0xff] }
  0x5c   : > { %1395 = vst [vmem:[%s11355_s30 + $0x260] sm:$0xff] %v1394_v12  ;;  %v1522_v12 = vld [vmem:[%s11350_s29 + $0x8c0] sm:$0xff] }
  0x5d   : > { %1397 = vst [vmem:[%s11355_s30 + $0x268] sm:$0xff] %v1396_v13  ;;  %v1524_v13 = vld [vmem:[%s11350_s29 + $0x8d0] sm:$0xff] }
  0x5e   : > { %1399 = vst [vmem:[%s11355_s30 + $0x270] sm:$0xff] %v1398_v14  ;;  %v1526_v14 = vld [vmem:[%s11350_s29 + $0x8e0] sm:$0xff] }
  0x5f   : > { %1401 = vst [vmem:[%s11355_s30 + $0x278] sm:$0xff] %v1400_v15  ;;  %v1528_v15 = vld [vmem:[%s11350_s29 + $0x8f0] sm:$0xff] }
  0x60   : > { %1403 = vst [vmem:[%s11355_s30 + $0x280] sm:$0xff] %v1402_v16  ;;  %v1530_v16 = vld [vmem:[%s11350_s29 + $0x900] sm:$0xff] }
  0x61   : > { %1405 = vst [vmem:[%s11355_s30 + $0x288] sm:$0xff] %v1404_v17  ;;  %v1532_v17 = vld [vmem:[%s11350_s29 + $0x910] sm:$0xff] }
  0x62   : > { %1407 = vst [vmem:[%s11355_s30 + $0x290] sm:$0xff] %v1406_v18  ;;  %v1534_v18 = vld [vmem:[%s11350_s29 + $0x920] sm:$0xff] }
  0x63   : > { %1409 = vst [vmem:[%s11355_s30 + $0x298] sm:$0xff] %v1408_v19  ;;  %v1536_v19 = vld [vmem:[%s11350_s29 + $0x930] sm:$0xff] }
  0x64   : > { %1411 = vst [vmem:[%s11355_s30 + $0x2a0] sm:$0xff] %v1410_v20  ;;  %v1538_v20 = vld [vmem:[%s11350_s29 + $0x940] sm:$0xff] }
  0x65   : > { %1413 = vst [vmem:[%s11355_s30 + $0x2a8] sm:$0xff] %v1412_v21  ;;  %v1540_v21 = vld [vmem:[%s11350_s29 + $0x950] sm:$0xff] }
  0x66   : > { %1415 = vst [vmem:[%s11355_s30 + $0x2b0] sm:$0xff] %v1414_v22  ;;  %v1542_v22 = vld [vmem:[%s11350_s29 + $0x960] sm:$0xff] }
  0x67   : > { %1417 = vst [vmem:[%s11355_s30 + $0x2b8] sm:$0xff] %v1416_v23  ;;  %v1544_v23 = vld [vmem:[%s11350_s29 + $0x970] sm:$0xff] }
  0x68   : > { %1419 = vst [vmem:[%s11355_s30 + $0x2c0] sm:$0xff] %v1418_v24  ;;  %v1546_v24 = vld [vmem:[%s11350_s29 + $0x980] sm:$0xff] }
  0x69   : > { %1421 = vst [vmem:[%s11355_s30 + $0x2c8] sm:$0xff] %v1420_v25  ;;  %v1548_v25 = vld [vmem:[%s11350_s29 + $0x990] sm:$0xff] }
  0x6a   : > { %1423 = vst [vmem:[%s11355_s30 + $0x2d0] sm:$0xff] %v1422_v26  ;;  %v1550_v26 = vld [vmem:[%s11350_s29 + $0x9a0] sm:$0xff] }
  0x6b   : > { %1425 = vst [vmem:[%s11355_s30 + $0x2d8] sm:$0xff] %v1424_v27  ;;  %v1552_v27 = vld [vmem:[%s11350_s29 + $0x9b0] sm:$0xff] }
  0x6c   : > { %1427 = vst [vmem:[%s11355_s30 + $0x2e0] sm:$0xff] %v1426_v28  ;;  %v1554_v28 = vld [vmem:[%s11350_s29 + $0x9c0] sm:$0xff] }
  0x6d   : > { %1429 = vst [vmem:[%s11355_s30 + $0x2e8] sm:$0xff] %v1428_v29  ;;  %v1556_v29 = vld [vmem:[%s11350_s29 + $0x9d0] sm:$0xff] }
  0x6e   : > { %1431 = vst [vmem:[%s11355_s30 + $0x2f0] sm:$0xff] %v1430_v30  ;;  %v1558_v30 = vld [vmem:[%s11350_s29 + $0x9e0] sm:$0xff] }
  0x6f   : > { %1433 = vst [vmem:[%s11355_s30 + $0x2f8] sm:$0xff] %v1432_v31  ;;  %v1560_v31 = vld [vmem:[%s11350_s29 + $0x9f0] sm:$0xff] }
  0x70   : > { %1435 = vst [vmem:[%s11355_s30 + $0x300] sm:$0xff] %v1434_v32  ;;  %v1562_v32 = vld [vmem:[%s11350_s29 + $0xa00] sm:$0xff] }
  0x71   : > { %1437 = vst [vmem:[%s11355_s30 + $0x308] sm:$0xff] %v1436_v33  ;;  %v1564_v33 = vld [vmem:[%s11350_s29 + $0xa10] sm:$0xff] }
  0x72   : > { %1439 = vst [vmem:[%s11355_s30 + $0x310] sm:$0xff] %v1438_v34  ;;  %v1566_v34 = vld [vmem:[%s11350_s29 + $0xa20] sm:$0xff] }
  0x73   : > { %1441 = vst [vmem:[%s11355_s30 + $0x318] sm:$0xff] %v1440_v35  ;;  %v1568_v35 = vld [vmem:[%s11350_s29 + $0xa30] sm:$0xff] }
  0x74   : > { %1443 = vst [vmem:[%s11355_s30 + $0x320] sm:$0xff] %v1442_v36  ;;  %v1570_v36 = vld [vmem:[%s11350_s29 + $0xa40] sm:$0xff] }
  0x75   : > { %1445 = vst [vmem:[%s11355_s30 + $0x328] sm:$0xff] %v1444_v37  ;;  %v1572_v37 = vld [vmem:[%s11350_s29 + $0xa50] sm:$0xff] }
  0x76   : > { %1447 = vst [vmem:[%s11355_s30 + $0x330] sm:$0xff] %v1446_v38  ;;  %v1574_v38 = vld [vmem:[%s11350_s29 + $0xa60] sm:$0xff] }
  0x77   : > { %1449 = vst [vmem:[%s11355_s30 + $0x338] sm:$0xff] %v1448_v39  ;;  %v1576_v39 = vld [vmem:[%s11350_s29 + $0xa70] sm:$0xff] }
  0x78   : > { %1451 = vst [vmem:[%s11355_s30 + $0x340] sm:$0xff] %v1450_v40  ;;  %v1578_v40 = vld [vmem:[%s11350_s29 + $0xa80] sm:$0xff] }
  0x79   : > { %1453 = vst [vmem:[%s11355_s30 + $0x348] sm:$0xff] %v1452_v41  ;;  %v1580_v41 = vld [vmem:[%s11350_s29 + $0xa90] sm:$0xff] }
  0x7a   : > { %1455 = vst [vmem:[%s11355_s30 + $0x350] sm:$0xff] %v1454_v42  ;;  %v1582_v42 = vld [vmem:[%s11350_s29 + $0xaa0] sm:$0xff] }
  0x7b   : > { %1457 = vst [vmem:[%s11355_s30 + $0x358] sm:$0xff] %v1456_v43  ;;  %v1584_v43 = vld [vmem:[%s11350_s29 + $0xab0] sm:$0xff] }
  0x7c   : > { %1459 = vst [vmem:[%s11355_s30 + $0x360] sm:$0xff] %v1458_v44  ;;  %v1586_v44 = vld [vmem:[%s11350_s29 + $0xac0] sm:$0xff] }
  0x7d   : > { %1461 = vst [vmem:[%s11355_s30 + $0x368] sm:$0xff] %v1460_v45  ;;  %v1588_v45 = vld [vmem:[%s11350_s29 + $0xad0] sm:$0xff] }
  0x7e   : > { %1463 = vst [vmem:[%s11355_s30 + $0x370] sm:$0xff] %v1462_v46  ;;  %v1590_v46 = vld [vmem:[%s11350_s29 + $0xae0] sm:$0xff] }
  0x7f   : > { %1465 = vst [vmem:[%s11355_s30 + $0x378] sm:$0xff] %v1464_v47  ;;  %v1592_v47 = vld [vmem:[%s11350_s29 + $0xaf0] sm:$0xff] }
  0x80   : > { %1467 = vst [vmem:[%s11355_s30 + $0x380] sm:$0xff] %v1466_v48  ;;  %v1594_v48 = vld [vmem:[%s11350_s29 + $0xb00] sm:$0xff] }
  0x81   : > { %1469 = vst [vmem:[%s11355_s30 + $0x388] sm:$0xff] %v1468_v49  ;;  %v1596_v49 = vld [vmem:[%s11350_s29 + $0xb10] sm:$0xff] }
  0x82   : > { %1471 = vst [vmem:[%s11355_s30 + $0x390] sm:$0xff] %v1470_v50  ;;  %v1598_v50 = vld [vmem:[%s11350_s29 + $0xb20] sm:$0xff] }
  0x83   : > { %1473 = vst [vmem:[%s11355_s30 + $0x398] sm:$0xff] %v1472_v51  ;;  %v1600_v51 = vld [vmem:[%s11350_s29 + $0xb30] sm:$0xff] }
  0x84   : > { %1475 = vst [vmem:[%s11355_s30 + $0x3a0] sm:$0xff] %v1474_v52  ;;  %v1602_v52 = vld [vmem:[%s11350_s29 + $0xb40] sm:$0xff] }
  0x85   : > { %1477 = vst [vmem:[%s11355_s30 + $0x3a8] sm:$0xff] %v1476_v53  ;;  %v1604_v53 = vld [vmem:[%s11350_s29 + $0xb50] sm:$0xff] }
  0x86   : > { %1479 = vst [vmem:[%s11355_s30 + $0x3b0] sm:$0xff] %v1478_v54  ;;  %v1606_v54 = vld [vmem:[%s11350_s29 + $0xb60] sm:$0xff] }
  0x87   : > { %1481 = vst [vmem:[%s11355_s30 + $0x3b8] sm:$0xff] %v1480_v55  ;;  %v1608_v55 = vld [vmem:[%s11350_s29 + $0xb70] sm:$0xff] }
  0x88   : > { %1483 = vst [vmem:[%s11355_s30 + $0x3c0] sm:$0xff] %v1482_v56  ;;  %v1610_v56 = vld [vmem:[%s11350_s29 + $0xb80] sm:$0xff] }
  0x89   : > { %1485 = vst [vmem:[%s11355_s30 + $0x3c8] sm:$0xff] %v1484_v57  ;;  %v1612_v57 = vld [vmem:[%s11350_s29 + $0xb90] sm:$0xff] }
  0x8a   : > { %1487 = vst [vmem:[%s11355_s30 + $0x3d0] sm:$0xff] %v1486_v58  ;;  %v1614_v58 = vld [vmem:[%s11350_s29 + $0xba0] sm:$0xff] }
  0x8b   : > { %1489 = vst [vmem:[%s11355_s30 + $0x3d8] sm:$0xff] %v1488_v59  ;;  %v1616_v59 = vld [vmem:[%s11350_s29 + $0xbb0] sm:$0xff] }
  0x8c   : > { %1491 = vst [vmem:[%s11355_s30 + $0x3e0] sm:$0xff] %v1490_v60  ;;  %v1618_v60 = vld [vmem:[%s11350_s29 + $0xbc0] sm:$0xff] }
  0x8d   : > { %1493 = vst [vmem:[%s11355_s30 + $0x3e8] sm:$0xff] %v1492_v61  ;;  %v1620_v61 = vld [vmem:[%s11350_s29 + $0xbd0] sm:$0xff] }
  0x8e   : > { %1495 = vst [vmem:[%s11355_s30 + $0x3f0] sm:$0xff] %v1494_v62  ;;  %v1622_v62 = vld [vmem:[%s11350_s29 + $0xbe0] sm:$0xff] }
  0x8f   : > { %1497 = vst [vmem:[%s11355_s30 + $0x3f8] sm:$0xff] %v1496_v63  ;;  %v1624_v63 = vld [vmem:[%s11350_s29 + $0xbf0] sm:$0xff] }
  0x90   : > { %1499 = vst [vmem:[%s11355_s30 + $0x400] sm:$0xff] %v1498_v0  ;;  %v1626_v0 = vld [vmem:[%s11350_s29 + $0xc00] sm:$0xff] }
  0x91   : > { %1501 = vst [vmem:[%s11355_s30 + $0x408] sm:$0xff] %v1500_v1  ;;  %v1628_v1 = vld [vmem:[%s11350_s29 + $0xc10] sm:$0xff] }
  0x92   : > { %1503 = vst [vmem:[%s11355_s30 + $0x410] sm:$0xff] %v1502_v2  ;;  %v1630_v2 = vld [vmem:[%s11350_s29 + $0xc20] sm:$0xff] }
  0x93   : > { %1505 = vst [vmem:[%s11355_s30 + $0x418] sm:$0xff] %v1504_v3  ;;  %v1632_v3 = vld [vmem:[%s11350_s29 + $0xc30] sm:$0xff] }
  0x94   : > { %1507 = vst [vmem:[%s11355_s30 + $0x420] sm:$0xff] %v1506_v4  ;;  %v1634_v4 = vld [vmem:[%s11350_s29 + $0xc40] sm:$0xff] }
  0x95   : > { %1509 = vst [vmem:[%s11355_s30 + $0x428] sm:$0xff] %v1508_v5  ;;  %v1636_v5 = vld [vmem:[%s11350_s29 + $0xc50] sm:$0xff] }
  0x96   : > { %1511 = vst [vmem:[%s11355_s30 + $0x430] sm:$0xff] %v1510_v6  ;;  %v1638_v6 = vld [vmem:[%s11350_s29 + $0xc60] sm:$0xff] }
  0x97   : > { %1513 = vst [vmem:[%s11355_s30 + $0x438] sm:$0xff] %v1512_v7  ;;  %v1640_v7 = vld [vmem:[%s11350_s29 + $0xc70] sm:$0xff] }
  0x98   : > { %1515 = vst [vmem:[%s11355_s30 + $0x440] sm:$0xff] %v1514_v8  ;;  %v1642_v8 = vld [vmem:[%s11350_s29 + $0xc80] sm:$0xff] }
  0x99   : > { %1517 = vst [vmem:[%s11355_s30 + $0x448] sm:$0xff] %v1516_v9  ;;  %v1644_v9 = vld [vmem:[%s11350_s29 + $0xc90] sm:$0xff] }
  0x9a   : > { %1519 = vst [vmem:[%s11355_s30 + $0x450] sm:$0xff] %v1518_v10  ;;  %v1646_v10 = vld [vmem:[%s11350_s29 + $0xca0] sm:$0xff] }
  0x9b   : > { %1521 = vst [vmem:[%s11355_s30 + $0x458] sm:$0xff] %v1520_v11  ;;  %v1648_v11 = vld [vmem:[%s11350_s29 + $0xcb0] sm:$0xff] }
  0x9c   : > { %1523 = vst [vmem:[%s11355_s30 + $0x460] sm:$0xff] %v1522_v12  ;;  %v1650_v12 = vld [vmem:[%s11350_s29 + $0xcc0] sm:$0xff] }
  0x9d   : > { %1525 = vst [vmem:[%s11355_s30 + $0x468] sm:$0xff] %v1524_v13  ;;  %v1652_v13 = vld [vmem:[%s11350_s29 + $0xcd0] sm:$0xff] }
  0x9e   : > { %1527 = vst [vmem:[%s11355_s30 + $0x470] sm:$0xff] %v1526_v14  ;;  %v1654_v14 = vld [vmem:[%s11350_s29 + $0xce0] sm:$0xff] }
  0x9f   : > { %1529 = vst [vmem:[%s11355_s30 + $0x478] sm:$0xff] %v1528_v15  ;;  %v1656_v15 = vld [vmem:[%s11350_s29 + $0xcf0] sm:$0xff] }
  0xa0   : > { %1531 = vst [vmem:[%s11355_s30 + $0x480] sm:$0xff] %v1530_v16  ;;  %v1658_v16 = vld [vmem:[%s11350_s29 + $0xd00] sm:$0xff] }
  0xa1   : > { %1533 = vst [vmem:[%s11355_s30 + $0x488] sm:$0xff] %v1532_v17  ;;  %v1660_v17 = vld [vmem:[%s11350_s29 + $0xd10] sm:$0xff] }
  0xa2   : > { %1535 = vst [vmem:[%s11355_s30 + $0x490] sm:$0xff] %v1534_v18  ;;  %v1662_v18 = vld [vmem:[%s11350_s29 + $0xd20] sm:$0xff] }
  0xa3   : > { %1537 = vst [vmem:[%s11355_s30 + $0x498] sm:$0xff] %v1536_v19  ;;  %v1664_v19 = vld [vmem:[%s11350_s29 + $0xd30] sm:$0xff] }
  0xa4   : > { %1539 = vst [vmem:[%s11355_s30 + $0x4a0] sm:$0xff] %v1538_v20  ;;  %v1666_v20 = vld [vmem:[%s11350_s29 + $0xd40] sm:$0xff] }
  0xa5   : > { %1541 = vst [vmem:[%s11355_s30 + $0x4a8] sm:$0xff] %v1540_v21  ;;  %v1668_v21 = vld [vmem:[%s11350_s29 + $0xd50] sm:$0xff] }
  0xa6   : > { %1543 = vst [vmem:[%s11355_s30 + $0x4b0] sm:$0xff] %v1542_v22  ;;  %v1670_v22 = vld [vmem:[%s11350_s29 + $0xd60] sm:$0xff] }
  0xa7   : > { %1545 = vst [vmem:[%s11355_s30 + $0x4b8] sm:$0xff] %v1544_v23  ;;  %v1672_v23 = vld [vmem:[%s11350_s29 + $0xd70] sm:$0xff] }
  0xa8   : > { %1547 = vst [vmem:[%s11355_s30 + $0x4c0] sm:$0xff] %v1546_v24  ;;  %v1674_v24 = vld [vmem:[%s11350_s29 + $0xd80] sm:$0xff] }
  0xa9   : > { %1549 = vst [vmem:[%s11355_s30 + $0x4c8] sm:$0xff] %v1548_v25  ;;  %v1676_v25 = vld [vmem:[%s11350_s29 + $0xd90] sm:$0xff] }
  0xaa   : > { %1551 = vst [vmem:[%s11355_s30 + $0x4d0] sm:$0xff] %v1550_v26  ;;  %v1678_v26 = vld [vmem:[%s11350_s29 + $0xda0] sm:$0xff] }
  0xab   : > { %1553 = vst [vmem:[%s11355_s30 + $0x4d8] sm:$0xff] %v1552_v27  ;;  %v1680_v27 = vld [vmem:[%s11350_s29 + $0xdb0] sm:$0xff] }
  0xac   : > { %1555 = vst [vmem:[%s11355_s30 + $0x4e0] sm:$0xff] %v1554_v28  ;;  %v1682_v28 = vld [vmem:[%s11350_s29 + $0xdc0] sm:$0xff] }
  0xad   : > { %1557 = vst [vmem:[%s11355_s30 + $0x4e8] sm:$0xff] %v1556_v29  ;;  %v1684_v29 = vld [vmem:[%s11350_s29 + $0xdd0] sm:$0xff] }
  0xae   : > { %1559 = vst [vmem:[%s11355_s30 + $0x4f0] sm:$0xff] %v1558_v30  ;;  %v1686_v30 = vld [vmem:[%s11350_s29 + $0xde0] sm:$0xff] }
  0xaf   : > { %1561 = vst [vmem:[%s11355_s30 + $0x4f8] sm:$0xff] %v1560_v31  ;;  %v1688_v31 = vld [vmem:[%s11350_s29 + $0xdf0] sm:$0xff] }
  0xb0   : > { %1563 = vst [vmem:[%s11355_s30 + $0x500] sm:$0xff] %v1562_v32  ;;  %v1690_v32 = vld [vmem:[%s11350_s29 + $0xe00] sm:$0xff] }
  0xb1   : > { %1565 = vst [vmem:[%s11355_s30 + $0x508] sm:$0xff] %v1564_v33  ;;  %v1692_v33 = vld [vmem:[%s11350_s29 + $0xe10] sm:$0xff] }
  0xb2   : > { %1567 = vst [vmem:[%s11355_s30 + $0x510] sm:$0xff] %v1566_v34  ;;  %v1694_v34 = vld [vmem:[%s11350_s29 + $0xe20] sm:$0xff] }
  0xb3   : > { %1569 = vst [vmem:[%s11355_s30 + $0x518] sm:$0xff] %v1568_v35  ;;  %v1696_v35 = vld [vmem:[%s11350_s29 + $0xe30] sm:$0xff] }
  0xb4   : > { %1571 = vst [vmem:[%s11355_s30 + $0x520] sm:$0xff] %v1570_v36  ;;  %v1698_v36 = vld [vmem:[%s11350_s29 + $0xe40] sm:$0xff] }
  0xb5   : > { %1573 = vst [vmem:[%s11355_s30 + $0x528] sm:$0xff] %v1572_v37  ;;  %v1700_v37 = vld [vmem:[%s11350_s29 + $0xe50] sm:$0xff] }
  0xb6   : > { %1575 = vst [vmem:[%s11355_s30 + $0x530] sm:$0xff] %v1574_v38  ;;  %v1702_v38 = vld [vmem:[%s11350_s29 + $0xe60] sm:$0xff] }
  0xb7   : > { %1577 = vst [vmem:[%s11355_s30 + $0x538] sm:$0xff] %v1576_v39  ;;  %v1704_v39 = vld [vmem:[%s11350_s29 + $0xe70] sm:$0xff] }
  0xb8   : > { %1579 = vst [vmem:[%s11355_s30 + $0x540] sm:$0xff] %v1578_v40  ;;  %v1706_v40 = vld [vmem:[%s11350_s29 + $0xe80] sm:$0xff] }
  0xb9   : > { %1581 = vst [vmem:[%s11355_s30 + $0x548] sm:$0xff] %v1580_v41  ;;  %v1708_v41 = vld [vmem:[%s11350_s29 + $0xe90] sm:$0xff] }
  0xba   : > { %1583 = vst [vmem:[%s11355_s30 + $0x550] sm:$0xff] %v1582_v42  ;;  %v1710_v42 = vld [vmem:[%s11350_s29 + $0xea0] sm:$0xff] }
  0xbb   : > { %1585 = vst [vmem:[%s11355_s30 + $0x558] sm:$0xff] %v1584_v43  ;;  %v1712_v43 = vld [vmem:[%s11350_s29 + $0xeb0] sm:$0xff] }
  0xbc   : > { %1587 = vst [vmem:[%s11355_s30 + $0x560] sm:$0xff] %v1586_v44  ;;  %v1714_v44 = vld [vmem:[%s11350_s29 + $0xec0] sm:$0xff] }
  0xbd   : > { %1589 = vst [vmem:[%s11355_s30 + $0x568] sm:$0xff] %v1588_v45  ;;  %v1716_v45 = vld [vmem:[%s11350_s29 + $0xed0] sm:$0xff] }
  0xbe   : > { %1591 = vst [vmem:[%s11355_s30 + $0x570] sm:$0xff] %v1590_v46  ;;  %v1718_v46 = vld [vmem:[%s11350_s29 + $0xee0] sm:$0xff] }
  0xbf   : > { %1593 = vst [vmem:[%s11355_s30 + $0x578] sm:$0xff] %v1592_v47  ;;  %v1720_v47 = vld [vmem:[%s11350_s29 + $0xef0] sm:$0xff] }
  0xc0   : > { %1595 = vst [vmem:[%s11355_s30 + $0x580] sm:$0xff] %v1594_v48  ;;  %v1722_v48 = vld [vmem:[%s11350_s29 + $0xf00] sm:$0xff] }
  0xc1   : > { %1597 = vst [vmem:[%s11355_s30 + $0x588] sm:$0xff] %v1596_v49  ;;  %v1724_v49 = vld [vmem:[%s11350_s29 + $0xf10] sm:$0xff] }
  0xc2   : > { %1599 = vst [vmem:[%s11355_s30 + $0x590] sm:$0xff] %v1598_v50  ;;  %v1726_v50 = vld [vmem:[%s11350_s29 + $0xf20] sm:$0xff] }
  0xc3   : > { %1601 = vst [vmem:[%s11355_s30 + $0x598] sm:$0xff] %v1600_v51  ;;  %v1728_v51 = vld [vmem:[%s11350_s29 + $0xf30] sm:$0xff] }
  0xc4   : > { %1603 = vst [vmem:[%s11355_s30 + $0x5a0] sm:$0xff] %v1602_v52  ;;  %v1730_v52 = vld [vmem:[%s11350_s29 + $0xf40] sm:$0xff] }
  0xc5   : > { %1605 = vst [vmem:[%s11355_s30 + $0x5a8] sm:$0xff] %v1604_v53  ;;  %v1732_v53 = vld [vmem:[%s11350_s29 + $0xf50] sm:$0xff] }
  0xc6   : > { %1607 = vst [vmem:[%s11355_s30 + $0x5b0] sm:$0xff] %v1606_v54  ;;  %v1734_v54 = vld [vmem:[%s11350_s29 + $0xf60] sm:$0xff] }
  0xc7   : > { %1609 = vst [vmem:[%s11355_s30 + $0x5b8] sm:$0xff] %v1608_v55  ;;  %v1736_v55 = vld [vmem:[%s11350_s29 + $0xf70] sm:$0xff] }
  0xc8   : > { %1611 = vst [vmem:[%s11355_s30 + $0x5c0] sm:$0xff] %v1610_v56  ;;  %v1738_v56 = vld [vmem:[%s11350_s29 + $0xf80] sm:$0xff] }
  0xc9   : > { %1613 = vst [vmem:[%s11355_s30 + $0x5c8] sm:$0xff] %v1612_v57  ;;  %v1740_v57 = vld [vmem:[%s11350_s29 + $0xf90] sm:$0xff] }
  0xca   : > { %1615 = vst [vmem:[%s11355_s30 + $0x5d0] sm:$0xff] %v1614_v58  ;;  %v1742_v58 = vld [vmem:[%s11350_s29 + $0xfa0] sm:$0xff] }
  0xcb   : > { %1617 = vst [vmem:[%s11355_s30 + $0x5d8] sm:$0xff] %v1616_v59  ;;  %v1744_v59 = vld [vmem:[%s11350_s29 + $0xfb0] sm:$0xff] }
  0xcc   : > { %1619 = vst [vmem:[%s11355_s30 + $0x5e0] sm:$0xff] %v1618_v60  ;;  %v1746_v60 = vld [vmem:[%s11350_s29 + $0xfc0] sm:$0xff] }
  0xcd   : > { %1621 = vst [vmem:[%s11355_s30 + $0x5e8] sm:$0xff] %v1620_v61  ;;  %v1748_v61 = vld [vmem:[%s11350_s29 + $0xfd0] sm:$0xff] }
  0xce   : > { %1623 = vst [vmem:[%s11355_s30 + $0x5f0] sm:$0xff] %v1622_v62  ;;  %v1750_v62 = vld [vmem:[%s11350_s29 + $0xfe0] sm:$0xff] }
  0xcf   : > { %1625 = vst [vmem:[%s11355_s30 + $0x5f8] sm:$0xff] %v1624_v63  ;;  %v1752_v63 = vld [vmem:[%s11350_s29 + $0xff0] sm:$0xff] }
  0xd0   : > { %1627 = vst [vmem:[%s11355_s30 + $0x600] sm:$0xff] %v1626_v0  ;;  %v1754_v0 = vld [vmem:[%s11350_s29 + $0x1000] sm:$0xff] }
  0xd1   : > { %1629 = vst [vmem:[%s11355_s30 + $0x608] sm:$0xff] %v1628_v1  ;;  %v1756_v1 = vld [vmem:[%s11350_s29 + $0x1010] sm:$0xff] }
  0xd2   : > { %1631 = vst [vmem:[%s11355_s30 + $0x610] sm:$0xff] %v1630_v2  ;;  %v1758_v2 = vld [vmem:[%s11350_s29 + $0x1020] sm:$0xff] }
  0xd3   : > { %1633 = vst [vmem:[%s11355_s30 + $0x618] sm:$0xff] %v1632_v3  ;;  %v1760_v3 = vld [vmem:[%s11350_s29 + $0x1030] sm:$0xff] }
  0xd4   : > { %1635 = vst [vmem:[%s11355_s30 + $0x620] sm:$0xff] %v1634_v4  ;;  %v1762_v4 = vld [vmem:[%s11350_s29 + $0x1040] sm:$0xff] }
  0xd5   : > { %1637 = vst [vmem:[%s11355_s30 + $0x628] sm:$0xff] %v1636_v5  ;;  %v1764_v5 = vld [vmem:[%s11350_s29 + $0x1050] sm:$0xff] }
  0xd6   : > { %1639 = vst [vmem:[%s11355_s30 + $0x630] sm:$0xff] %v1638_v6  ;;  %v1766_v6 = vld [vmem:[%s11350_s29 + $0x1060] sm:$0xff] }
  0xd7   : > { %1641 = vst [vmem:[%s11355_s30 + $0x638] sm:$0xff] %v1640_v7  ;;  %v1768_v7 = vld [vmem:[%s11350_s29 + $0x1070] sm:$0xff] }
  0xd8   : > { %1643 = vst [vmem:[%s11355_s30 + $0x640] sm:$0xff] %v1642_v8  ;;  %v1770_v8 = vld [vmem:[%s11350_s29 + $0x1080] sm:$0xff] }
  0xd9   : > { %1645 = vst [vmem:[%s11355_s30 + $0x648] sm:$0xff] %v1644_v9  ;;  %v1772_v9 = vld [vmem:[%s11350_s29 + $0x1090] sm:$0xff] }
  0xda   : > { %1647 = vst [vmem:[%s11355_s30 + $0x650] sm:$0xff] %v1646_v10  ;;  %v1774_v10 = vld [vmem:[%s11350_s29 + $0x10a0] sm:$0xff] }
  0xdb   : > { %1649 = vst [vmem:[%s11355_s30 + $0x658] sm:$0xff] %v1648_v11  ;;  %v1776_v11 = vld [vmem:[%s11350_s29 + $0x10b0] sm:$0xff] }
  0xdc   : > { %1651 = vst [vmem:[%s11355_s30 + $0x660] sm:$0xff] %v1650_v12  ;;  %v1778_v12 = vld [vmem:[%s11350_s29 + $0x10c0] sm:$0xff] }
  0xdd   : > { %1653 = vst [vmem:[%s11355_s30 + $0x668] sm:$0xff] %v1652_v13  ;;  %v1780_v13 = vld [vmem:[%s11350_s29 + $0x10d0] sm:$0xff] }
  0xde   : > { %1655 = vst [vmem:[%s11355_s30 + $0x670] sm:$0xff] %v1654_v14  ;;  %v1782_v14 = vld [vmem:[%s11350_s29 + $0x10e0] sm:$0xff] }
  0xdf   : > { %1657 = vst [vmem:[%s11355_s30 + $0x678] sm:$0xff] %v1656_v15  ;;  %v1784_v15 = vld [vmem:[%s11350_s29 + $0x10f0] sm:$0xff] }
  0xe0   : > { %1659 = vst [vmem:[%s11355_s30 + $0x680] sm:$0xff] %v1658_v16  ;;  %v1786_v16 = vld [vmem:[%s11350_s29 + $0x1100] sm:$0xff] }
  0xe1   : > { %1661 = vst [vmem:[%s11355_s30 + $0x688] sm:$0xff] %v1660_v17  ;;  %v1788_v17 = vld [vmem:[%s11350_s29 + $0x1110] sm:$0xff] }
  0xe2   : > { %1663 = vst [vmem:[%s11355_s30 + $0x690] sm:$0xff] %v1662_v18  ;;  %v1790_v18 = vld [vmem:[%s11350_s29 + $0x1120] sm:$0xff] }
  0xe3   : > { %1665 = vst [vmem:[%s11355_s30 + $0x698] sm:$0xff] %v1664_v19  ;;  %v1792_v19 = vld [vmem:[%s11350_s29 + $0x1130] sm:$0xff] }
  0xe4   : > { %1667 = vst [vmem:[%s11355_s30 + $0x6a0] sm:$0xff] %v1666_v20  ;;  %v1794_v20 = vld [vmem:[%s11350_s29 + $0x1140] sm:$0xff] }
  0xe5   : > { %1669 = vst [vmem:[%s11355_s30 + $0x6a8] sm:$0xff] %v1668_v21  ;;  %v1796_v21 = vld [vmem:[%s11350_s29 + $0x1150] sm:$0xff] }
  0xe6   : > { %1671 = vst [vmem:[%s11355_s30 + $0x6b0] sm:$0xff] %v1670_v22  ;;  %v1798_v22 = vld [vmem:[%s11350_s29 + $0x1160] sm:$0xff] }
  0xe7   : > { %1673 = vst [vmem:[%s11355_s30 + $0x6b8] sm:$0xff] %v1672_v23  ;;  %v1800_v23 = vld [vmem:[%s11350_s29 + $0x1170] sm:$0xff] }
  0xe8   : > { %1675 = vst [vmem:[%s11355_s30 + $0x6c0] sm:$0xff] %v1674_v24  ;;  %v1802_v24 = vld [vmem:[%s11350_s29 + $0x1180] sm:$0xff] }
  0xe9   : > { %1677 = vst [vmem:[%s11355_s30 + $0x6c8] sm:$0xff] %v1676_v25  ;;  %v1804_v25 = vld [vmem:[%s11350_s29 + $0x1190] sm:$0xff] }
  0xea   : > { %1679 = vst [vmem:[%s11355_s30 + $0x6d0] sm:$0xff] %v1678_v26  ;;  %v1806_v26 = vld [vmem:[%s11350_s29 + $0x11a0] sm:$0xff] }
  0xeb   : > { %1681 = vst [vmem:[%s11355_s30 + $0x6d8] sm:$0xff] %v1680_v27  ;;  %v1808_v27 = vld [vmem:[%s11350_s29 + $0x11b0] sm:$0xff] }
  0xec   : > { %1683 = vst [vmem:[%s11355_s30 + $0x6e0] sm:$0xff] %v1682_v28  ;;  %v1810_v28 = vld [vmem:[%s11350_s29 + $0x11c0] sm:$0xff] }
  0xed   : > { %1685 = vst [vmem:[%s11355_s30 + $0x6e8] sm:$0xff] %v1684_v29  ;;  %v1812_v29 = vld [vmem:[%s11350_s29 + $0x11d0] sm:$0xff] }
  0xee   : > { %1687 = vst [vmem:[%s11355_s30 + $0x6f0] sm:$0xff] %v1686_v30  ;;  %v1814_v30 = vld [vmem:[%s11350_s29 + $0x11e0] sm:$0xff] }
  0xef   : > { %1689 = vst [vmem:[%s11355_s30 + $0x6f8] sm:$0xff] %v1688_v31  ;;  %v1816_v31 = vld [vmem:[%s11350_s29 + $0x11f0] sm:$0xff] }
  0xf0   : > { %1691 = vst [vmem:[%s11355_s30 + $0x700] sm:$0xff] %v1690_v32  ;;  %v1818_v32 = vld [vmem:[%s11350_s29 + $0x1200] sm:$0xff] }
  0xf1   : > { %1693 = vst [vmem:[%s11355_s30 + $0x708] sm:$0xff] %v1692_v33  ;;  %v1820_v33 = vld [vmem:[%s11350_s29 + $0x1210] sm:$0xff] }
  0xf2   : > { %1695 = vst [vmem:[%s11355_s30 + $0x710] sm:$0xff] %v1694_v34  ;;  %v1822_v34 = vld [vmem:[%s11350_s29 + $0x1220] sm:$0xff] }
  0xf3   : > { %1697 = vst [vmem:[%s11355_s30 + $0x718] sm:$0xff] %v1696_v35  ;;  %v1824_v35 = vld [vmem:[%s11350_s29 + $0x1230] sm:$0xff] }
  0xf4   : > { %1699 = vst [vmem:[%s11355_s30 + $0x720] sm:$0xff] %v1698_v36  ;;  %v1826_v36 = vld [vmem:[%s11350_s29 + $0x1240] sm:$0xff] }
  0xf5   : > { %1701 = vst [vmem:[%s11355_s30 + $0x728] sm:$0xff] %v1700_v37  ;;  %v1828_v37 = vld [vmem:[%s11350_s29 + $0x1250] sm:$0xff] }
  0xf6   : > { %1703 = vst [vmem:[%s11355_s30 + $0x730] sm:$0xff] %v1702_v38  ;;  %v1830_v38 = vld [vmem:[%s11350_s29 + $0x1260] sm:$0xff] }
  0xf7   : > { %1705 = vst [vmem:[%s11355_s30 + $0x738] sm:$0xff] %v1704_v39  ;;  %v1832_v39 = vld [vmem:[%s11350_s29 + $0x1270] sm:$0xff] }
  0xf8   : > { %1707 = vst [vmem:[%s11355_s30 + $0x740] sm:$0xff] %v1706_v40  ;;  %v1834_v40 = vld [vmem:[%s11350_s29 + $0x1280] sm:$0xff] }
  0xf9   : > { %1709 = vst [vmem:[%s11355_s30 + $0x748] sm:$0xff] %v1708_v41  ;;  %v1836_v41 = vld [vmem:[%s11350_s29 + $0x1290] sm:$0xff] }
  0xfa   : > { %1711 = vst [vmem:[%s11355_s30 + $0x750] sm:$0xff] %v1710_v42  ;;  %v1838_v42 = vld [vmem:[%s11350_s29 + $0x12a0] sm:$0xff] }
  0xfb   : > { %1713 = vst [vmem:[%s11355_s30 + $0x758] sm:$0xff] %v1712_v43  ;;  %v1840_v43 = vld [vmem:[%s11350_s29 + $0x12b0] sm:$0xff] }
  0xfc   : > { %1715 = vst [vmem:[%s11355_s30 + $0x760] sm:$0xff] %v1714_v44  ;;  %v1842_v44 = vld [vmem:[%s11350_s29 + $0x12c0] sm:$0xff] }
  0xfd   : > { %1717 = vst [vmem:[%s11355_s30 + $0x768] sm:$0xff] %v1716_v45  ;;  %v1844_v45 = vld [vmem:[%s11350_s29 + $0x12d0] sm:$0xff] }
  0xfe   : > { %1719 = vst [vmem:[%s11355_s30 + $0x770] sm:$0xff] %v1718_v46  ;;  %v1846_v46 = vld [vmem:[%s11350_s29 + $0x12e0] sm:$0xff] }
  0xff   : > { %1721 = vst [vmem:[%s11355_s30 + $0x778] sm:$0xff] %v1720_v47  ;;  %v1848_v47 = vld [vmem:[%s11350_s29 + $0x12f0] sm:$0xff] }
 0x100   : > { %1723 = vst [vmem:[%s11355_s30 + $0x780] sm:$0xff] %v1722_v48  ;;  %v1850_v48 = vld [vmem:[%s11350_s29 + $0x1300] sm:$0xff] }
 0x101   : > { %1725 = vst [vmem:[%s11355_s30 + $0x788] sm:$0xff] %v1724_v49  ;;  %v1852_v49 = vld [vmem:[%s11350_s29 + $0x1310] sm:$0xff] }
 0x102   : > { %1727 = vst [vmem:[%s11355_s30 + $0x790] sm:$0xff] %v1726_v50  ;;  %v1854_v50 = vld [vmem:[%s11350_s29 + $0x1320] sm:$0xff] }
 0x103   : > { %1729 = vst [vmem:[%s11355_s30 + $0x798] sm:$0xff] %v1728_v51  ;;  %v1856_v51 = vld [vmem:[%s11350_s29 + $0x1330] sm:$0xff] }
 0x104   : > { %1731 = vst [vmem:[%s11355_s30 + $0x7a0] sm:$0xff] %v1730_v52  ;;  %v1858_v52 = vld [vmem:[%s11350_s29 + $0x1340] sm:$0xff] }
 0x105   : > { %1733 = vst [vmem:[%s11355_s30 + $0x7a8] sm:$0xff] %v1732_v53  ;;  %v1860_v53 = vld [vmem:[%s11350_s29 + $0x1350] sm:$0xff] }
 0x106   : > { %1735 = vst [vmem:[%s11355_s30 + $0x7b0] sm:$0xff] %v1734_v54  ;;  %v1862_v54 = vld [vmem:[%s11350_s29 + $0x1360] sm:$0xff] }
 0x107   : > { %1737 = vst [vmem:[%s11355_s30 + $0x7b8] sm:$0xff] %v1736_v55  ;;  %v1864_v55 = vld [vmem:[%s11350_s29 + $0x1370] sm:$0xff] }
 0x108   : > { %1739 = vst [vmem:[%s11355_s30 + $0x7c0] sm:$0xff] %v1738_v56  ;;  %v1866_v56 = vld [vmem:[%s11350_s29 + $0x1380] sm:$0xff] }
 0x109   : > { %1741 = vst [vmem:[%s11355_s30 + $0x7c8] sm:$0xff] %v1740_v57  ;;  %v1868_v57 = vld [vmem:[%s11350_s29 + $0x1390] sm:$0xff] }
 0x10a   : > { %1743 = vst [vmem:[%s11355_s30 + $0x7d0] sm:$0xff] %v1742_v58  ;;  %v1870_v58 = vld [vmem:[%s11350_s29 + $0x13a0] sm:$0xff] }
 0x10b   : > { %1745 = vst [vmem:[%s11355_s30 + $0x7d8] sm:$0xff] %v1744_v59  ;;  %v1872_v59 = vld [vmem:[%s11350_s29 + $0x13b0] sm:$0xff] }
 0x10c   : > { %1747 = vst [vmem:[%s11355_s30 + $0x7e0] sm:$0xff] %v1746_v60  ;;  %v1874_v60 = vld [vmem:[%s11350_s29 + $0x13c0] sm:$0xff] }
 0x10d   : > { %1749 = vst [vmem:[%s11355_s30 + $0x7e8] sm:$0xff] %v1748_v61  ;;  %v1876_v61 = vld [vmem:[%s11350_s29 + $0x13d0] sm:$0xff] }
 0x10e   : > { %1751 = vst [vmem:[%s11355_s30 + $0x7f0] sm:$0xff] %v1750_v62  ;;  %v1878_v62 = vld [vmem:[%s11350_s29 + $0x13e0] sm:$0xff] }
 0x10f   : > { %1753 = vst [vmem:[%s11355_s30 + $0x7f8] sm:$0xff] %v1752_v63  ;;  %v1880_v63 = vld [vmem:[%s11350_s29 + $0x13f0] sm:$0xff] }
 0x110   : > { %1755 = vst [vmem:[%s11355_s30 + $0x800] sm:$0xff] %v1754_v0  ;;  %v1882_v0 = vld [vmem:[%s11350_s29 + $0x1400] sm:$0xff] }
 0x111   : > { %1757 = vst [vmem:[%s11355_s30 + $0x808] sm:$0xff] %v1756_v1  ;;  %v1884_v1 = vld [vmem:[%s11350_s29 + $0x1410] sm:$0xff] }
 0x112   : > { %1759 = vst [vmem:[%s11355_s30 + $0x810] sm:$0xff] %v1758_v2  ;;  %v1886_v2 = vld [vmem:[%s11350_s29 + $0x1420] sm:$0xff] }
 0x113   : > { %1761 = vst [vmem:[%s11355_s30 + $0x818] sm:$0xff] %v1760_v3  ;;  %v1888_v3 = vld [vmem:[%s11350_s29 + $0x1430] sm:$0xff] }
 0x114   : > { %1763 = vst [vmem:[%s11355_s30 + $0x820] sm:$0xff] %v1762_v4  ;;  %v1890_v4 = vld [vmem:[%s11350_s29 + $0x1440] sm:$0xff] }
 0x115   : > { %1765 = vst [vmem:[%s11355_s30 + $0x828] sm:$0xff] %v1764_v5  ;;  %v1892_v5 = vld [vmem:[%s11350_s29 + $0x1450] sm:$0xff] }
 0x116   : > { %1767 = vst [vmem:[%s11355_s30 + $0x830] sm:$0xff] %v1766_v6  ;;  %v1894_v6 = vld [vmem:[%s11350_s29 + $0x1460] sm:$0xff] }
 0x117   : > { %1769 = vst [vmem:[%s11355_s30 + $0x838] sm:$0xff] %v1768_v7  ;;  %v1896_v7 = vld [vmem:[%s11350_s29 + $0x1470] sm:$0xff] }
 0x118   : > { %1771 = vst [vmem:[%s11355_s30 + $0x840] sm:$0xff] %v1770_v8  ;;  %v1898_v8 = vld [vmem:[%s11350_s29 + $0x1480] sm:$0xff] }
 0x119   : > { %1773 = vst [vmem:[%s11355_s30 + $0x848] sm:$0xff] %v1772_v9  ;;  %v1900_v9 = vld [vmem:[%s11350_s29 + $0x1490] sm:$0xff] }
 0x11a   : > { %1775 = vst [vmem:[%s11355_s30 + $0x850] sm:$0xff] %v1774_v10  ;;  %v1902_v10 = vld [vmem:[%s11350_s29 + $0x14a0] sm:$0xff] }
 0x11b   : > { %1777 = vst [vmem:[%s11355_s30 + $0x858] sm:$0xff] %v1776_v11  ;;  %v1904_v11 = vld [vmem:[%s11350_s29 + $0x14b0] sm:$0xff] }
 0x11c   : > { %1779 = vst [vmem:[%s11355_s30 + $0x860] sm:$0xff] %v1778_v12  ;;  %v1906_v12 = vld [vmem:[%s11350_s29 + $0x14c0] sm:$0xff] }
 0x11d   : > { %1781 = vst [vmem:[%s11355_s30 + $0x868] sm:$0xff] %v1780_v13  ;;  %v1908_v13 = vld [vmem:[%s11350_s29 + $0x14d0] sm:$0xff] }
 0x11e   : > { %1783 = vst [vmem:[%s11355_s30 + $0x870] sm:$0xff] %v1782_v14  ;;  %v1910_v14 = vld [vmem:[%s11350_s29 + $0x14e0] sm:$0xff] }
 0x11f   : > { %1785 = vst [vmem:[%s11355_s30 + $0x878] sm:$0xff] %v1784_v15  ;;  %v1912_v15 = vld [vmem:[%s11350_s29 + $0x14f0] sm:$0xff] }
 0x120   : > { %1787 = vst [vmem:[%s11355_s30 + $0x880] sm:$0xff] %v1786_v16  ;;  %v1914_v16 = vld [vmem:[%s11350_s29 + $0x1500] sm:$0xff] }
 0x121   : > { %1789 = vst [vmem:[%s11355_s30 + $0x888] sm:$0xff] %v1788_v17  ;;  %v1916_v17 = vld [vmem:[%s11350_s29 + $0x1510] sm:$0xff] }
 0x122   : > { %1791 = vst [vmem:[%s11355_s30 + $0x890] sm:$0xff] %v1790_v18  ;;  %v1918_v18 = vld [vmem:[%s11350_s29 + $0x1520] sm:$0xff] }
 0x123   : > { %1793 = vst [vmem:[%s11355_s30 + $0x898] sm:$0xff] %v1792_v19  ;;  %v1920_v19 = vld [vmem:[%s11350_s29 + $0x1530] sm:$0xff] }
 0x124   : > { %1795 = vst [vmem:[%s11355_s30 + $0x8a0] sm:$0xff] %v1794_v20  ;;  %v1922_v20 = vld [vmem:[%s11350_s29 + $0x1540] sm:$0xff] }
 0x125   : > { %1797 = vst [vmem:[%s11355_s30 + $0x8a8] sm:$0xff] %v1796_v21  ;;  %v1924_v21 = vld [vmem:[%s11350_s29 + $0x1550] sm:$0xff] }
 0x126   : > { %1799 = vst [vmem:[%s11355_s30 + $0x8b0] sm:$0xff] %v1798_v22  ;;  %v1926_v22 = vld [vmem:[%s11350_s29 + $0x1560] sm:$0xff] }
 0x127   : > { %1801 = vst [vmem:[%s11355_s30 + $0x8b8] sm:$0xff] %v1800_v23  ;;  %v1928_v23 = vld [vmem:[%s11350_s29 + $0x1570] sm:$0xff] }
 0x128   : > { %1803 = vst [vmem:[%s11355_s30 + $0x8c0] sm:$0xff] %v1802_v24  ;;  %v1930_v24 = vld [vmem:[%s11350_s29 + $0x1580] sm:$0xff] }
 0x129   : > { %1805 = vst [vmem:[%s11355_s30 + $0x8c8] sm:$0xff] %v1804_v25  ;;  %v1932_v25 = vld [vmem:[%s11350_s29 + $0x1590] sm:$0xff] }
 0x12a   : > { %1807 = vst [vmem:[%s11355_s30 + $0x8d0] sm:$0xff] %v1806_v26  ;;  %v1934_v26 = vld [vmem:[%s11350_s29 + $0x15a0] sm:$0xff] }
 0x12b   : > { %1809 = vst [vmem:[%s11355_s30 + $0x8d8] sm:$0xff] %v1808_v27  ;;  %v1936_v27 = vld [vmem:[%s11350_s29 + $0x15b0] sm:$0xff] }
 0x12c   : > { %1811 = vst [vmem:[%s11355_s30 + $0x8e0] sm:$0xff] %v1810_v28  ;;  %v1938_v28 = vld [vmem:[%s11350_s29 + $0x15c0] sm:$0xff] }
 0x12d   : > { %1813 = vst [vmem:[%s11355_s30 + $0x8e8] sm:$0xff] %v1812_v29  ;;  %v1940_v29 = vld [vmem:[%s11350_s29 + $0x15d0] sm:$0xff] }
 0x12e   : > { %1815 = vst [vmem:[%s11355_s30 + $0x8f0] sm:$0xff] %v1814_v30  ;;  %v1942_v30 = vld [vmem:[%s11350_s29 + $0x15e0] sm:$0xff] }
 0x12f   : > { %1817 = vst [vmem:[%s11355_s30 + $0x8f8] sm:$0xff] %v1816_v31  ;;  %v1944_v31 = vld [vmem:[%s11350_s29 + $0x15f0] sm:$0xff] }
 0x130   : > { %1819 = vst [vmem:[%s11355_s30 + $0x900] sm:$0xff] %v1818_v32  ;;  %v1946_v32 = vld [vmem:[%s11350_s29 + $0x1600] sm:$0xff] }
 0x131   : > { %1821 = vst [vmem:[%s11355_s30 + $0x908] sm:$0xff] %v1820_v33  ;;  %v1948_v33 = vld [vmem:[%s11350_s29 + $0x1610] sm:$0xff] }
 0x132   : > { %1823 = vst [vmem:[%s11355_s30 + $0x910] sm:$0xff] %v1822_v34  ;;  %v1950_v34 = vld [vmem:[%s11350_s29 + $0x1620] sm:$0xff] }
 0x133   : > { %1825 = vst [vmem:[%s11355_s30 + $0x918] sm:$0xff] %v1824_v35  ;;  %v1952_v35 = vld [vmem:[%s11350_s29 + $0x1630] sm:$0xff] }
 0x134   : > { %1827 = vst [vmem:[%s11355_s30 + $0x920] sm:$0xff] %v1826_v36  ;;  %v1954_v36 = vld [vmem:[%s11350_s29 + $0x1640] sm:$0xff] }
 0x135   : > { %1829 = vst [vmem:[%s11355_s30 + $0x928] sm:$0xff] %v1828_v37  ;;  %v1956_v37 = vld [vmem:[%s11350_s29 + $0x1650] sm:$0xff] }
 0x136   : > { %1831 = vst [vmem:[%s11355_s30 + $0x930] sm:$0xff] %v1830_v38  ;;  %v1958_v38 = vld [vmem:[%s11350_s29 + $0x1660] sm:$0xff] }
 0x137   : > { %1833 = vst [vmem:[%s11355_s30 + $0x938] sm:$0xff] %v1832_v39  ;;  %v1960_v39 = vld [vmem:[%s11350_s29 + $0x1670] sm:$0xff] }
 0x138   : > { %1835 = vst [vmem:[%s11355_s30 + $0x940] sm:$0xff] %v1834_v40  ;;  %v1962_v40 = vld [vmem:[%s11350_s29 + $0x1680] sm:$0xff] }
 0x139   : > { %1837 = vst [vmem:[%s11355_s30 + $0x948] sm:$0xff] %v1836_v41  ;;  %v1964_v41 = vld [vmem:[%s11350_s29 + $0x1690] sm:$0xff] }
 0x13a   : > { %1839 = vst [vmem:[%s11355_s30 + $0x950] sm:$0xff] %v1838_v42  ;;  %v1966_v42 = vld [vmem:[%s11350_s29 + $0x16a0] sm:$0xff] }
 0x13b   : > { %1841 = vst [vmem:[%s11355_s30 + $0x958] sm:$0xff] %v1840_v43  ;;  %v1968_v43 = vld [vmem:[%s11350_s29 + $0x16b0] sm:$0xff] }
 0x13c   : > { %1843 = vst [vmem:[%s11355_s30 + $0x960] sm:$0xff] %v1842_v44  ;;  %v1970_v44 = vld [vmem:[%s11350_s29 + $0x16c0] sm:$0xff] }
 0x13d   : > { %1845 = vst [vmem:[%s11355_s30 + $0x968] sm:$0xff] %v1844_v45  ;;  %v1972_v45 = vld [vmem:[%s11350_s29 + $0x16d0] sm:$0xff] }
 0x13e   : > { %1847 = vst [vmem:[%s11355_s30 + $0x970] sm:$0xff] %v1846_v46  ;;  %v1974_v46 = vld [vmem:[%s11350_s29 + $0x16e0] sm:$0xff] }
 0x13f   : > { %1849 = vst [vmem:[%s11355_s30 + $0x978] sm:$0xff] %v1848_v47  ;;  %v1976_v47 = vld [vmem:[%s11350_s29 + $0x16f0] sm:$0xff] }
 0x140   : > { %1851 = vst [vmem:[%s11355_s30 + $0x980] sm:$0xff] %v1850_v48  ;;  %v1978_v48 = vld [vmem:[%s11350_s29 + $0x1700] sm:$0xff] }
 0x141   : > { %1853 = vst [vmem:[%s11355_s30 + $0x988] sm:$0xff] %v1852_v49  ;;  %v1980_v49 = vld [vmem:[%s11350_s29 + $0x1710] sm:$0xff] }
 0x142   : > { %1855 = vst [vmem:[%s11355_s30 + $0x990] sm:$0xff] %v1854_v50  ;;  %v1982_v50 = vld [vmem:[%s11350_s29 + $0x1720] sm:$0xff] }
 0x143   : > { %1857 = vst [vmem:[%s11355_s30 + $0x998] sm:$0xff] %v1856_v51  ;;  %v1984_v51 = vld [vmem:[%s11350_s29 + $0x1730] sm:$0xff] }
 0x144   : > { %1859 = vst [vmem:[%s11355_s30 + $0x9a0] sm:$0xff] %v1858_v52  ;;  %v1986_v52 = vld [vmem:[%s11350_s29 + $0x1740] sm:$0xff] }
 0x145   : > { %1861 = vst [vmem:[%s11355_s30 + $0x9a8] sm:$0xff] %v1860_v53  ;;  %v1988_v53 = vld [vmem:[%s11350_s29 + $0x1750] sm:$0xff] }
 0x146   : > { %1863 = vst [vmem:[%s11355_s30 + $0x9b0] sm:$0xff] %v1862_v54  ;;  %v1990_v54 = vld [vmem:[%s11350_s29 + $0x1760] sm:$0xff] }
 0x147   : > { %1865 = vst [vmem:[%s11355_s30 + $0x9b8] sm:$0xff] %v1864_v55  ;;  %v1992_v55 = vld [vmem:[%s11350_s29 + $0x1770] sm:$0xff] }
 0x148   : > { %1867 = vst [vmem:[%s11355_s30 + $0x9c0] sm:$0xff] %v1866_v56  ;;  %v1994_v56 = vld [vmem:[%s11350_s29 + $0x1780] sm:$0xff] }
 0x149   : > { %1869 = vst [vmem:[%s11355_s30 + $0x9c8] sm:$0xff] %v1868_v57  ;;  %v1996_v57 = vld [vmem:[%s11350_s29 + $0x1790] sm:$0xff] }
 0x14a   : > { %1871 = vst [vmem:[%s11355_s30 + $0x9d0] sm:$0xff] %v1870_v58  ;;  %v1998_v58 = vld [vmem:[%s11350_s29 + $0x17a0] sm:$0xff] }
 0x14b   : > { %1873 = vst [vmem:[%s11355_s30 + $0x9d8] sm:$0xff] %v1872_v59  ;;  %v2000_v59 = vld [vmem:[%s11350_s29 + $0x17b0] sm:$0xff] }
 0x14c   : > { %1875 = vst [vmem:[%s11355_s30 + $0x9e0] sm:$0xff] %v1874_v60  ;;  %v2002_v60 = vld [vmem:[%s11350_s29 + $0x17c0] sm:$0xff] }
 0x14d   : > { %1877 = vst [vmem:[%s11355_s30 + $0x9e8] sm:$0xff] %v1876_v61  ;;  %v2004_v61 = vld [vmem:[%s11350_s29 + $0x17d0] sm:$0xff] }
 0x14e   : > { %1879 = vst [vmem:[%s11355_s30 + $0x9f0] sm:$0xff] %v1878_v62  ;;  %v2006_v62 = vld [vmem:[%s11350_s29 + $0x17e0] sm:$0xff] }
 0x14f   : > { %1881 = vst [vmem:[%s11355_s30 + $0x9f8] sm:$0xff] %v1880_v63  ;;  %v2008_v63 = vld [vmem:[%s11350_s29 + $0x17f0] sm:$0xff] }
 0x150   : > { %1883 = vst [vmem:[%s11355_s30 + $0xa00] sm:$0xff] %v1882_v0  ;;  %v2010_v0 = vld [vmem:[%s11350_s29 + $0x1800] sm:$0xff] }
 0x151   : > { %1885 = vst [vmem:[%s11355_s30 + $0xa08] sm:$0xff] %v1884_v1  ;;  %v2012_v1 = vld [vmem:[%s11350_s29 + $0x1810] sm:$0xff] }
 0x152   : > { %1887 = vst [vmem:[%s11355_s30 + $0xa10] sm:$0xff] %v1886_v2  ;;  %v2014_v2 = vld [vmem:[%s11350_s29 + $0x1820] sm:$0xff] }
 0x153   : > { %1889 = vst [vmem:[%s11355_s30 + $0xa18] sm:$0xff] %v1888_v3  ;;  %v2016_v3 = vld [vmem:[%s11350_s29 + $0x1830] sm:$0xff] }
 0x154   : > { %1891 = vst [vmem:[%s11355_s30 + $0xa20] sm:$0xff] %v1890_v4  ;;  %v2018_v4 = vld [vmem:[%s11350_s29 + $0x1840] sm:$0xff] }
 0x155   : > { %1893 = vst [vmem:[%s11355_s30 + $0xa28] sm:$0xff] %v1892_v5  ;;  %v2020_v5 = vld [vmem:[%s11350_s29 + $0x1850] sm:$0xff] }
 0x156   : > { %1895 = vst [vmem:[%s11355_s30 + $0xa30] sm:$0xff] %v1894_v6  ;;  %v2022_v6 = vld [vmem:[%s11350_s29 + $0x1860] sm:$0xff] }
 0x157   : > { %1897 = vst [vmem:[%s11355_s30 + $0xa38] sm:$0xff] %v1896_v7  ;;  %v2024_v7 = vld [vmem:[%s11350_s29 + $0x1870] sm:$0xff] }
 0x158   : > { %1899 = vst [vmem:[%s11355_s30 + $0xa40] sm:$0xff] %v1898_v8  ;;  %v2026_v8 = vld [vmem:[%s11350_s29 + $0x1880] sm:$0xff] }
 0x159   : > { %1901 = vst [vmem:[%s11355_s30 + $0xa48] sm:$0xff] %v1900_v9  ;;  %v2028_v9 = vld [vmem:[%s11350_s29 + $0x1890] sm:$0xff] }
 0x15a   : > { %1903 = vst [vmem:[%s11355_s30 + $0xa50] sm:$0xff] %v1902_v10  ;;  %v2030_v10 = vld [vmem:[%s11350_s29 + $0x18a0] sm:$0xff] }
 0x15b   : > { %1905 = vst [vmem:[%s11355_s30 + $0xa58] sm:$0xff] %v1904_v11  ;;  %v2032_v11 = vld [vmem:[%s11350_s29 + $0x18b0] sm:$0xff] }
 0x15c   : > { %1907 = vst [vmem:[%s11355_s30 + $0xa60] sm:$0xff] %v1906_v12  ;;  %v2034_v12 = vld [vmem:[%s11350_s29 + $0x18c0] sm:$0xff] }
 0x15d   : > { %1909 = vst [vmem:[%s11355_s30 + $0xa68] sm:$0xff] %v1908_v13  ;;  %v2036_v13 = vld [vmem:[%s11350_s29 + $0x18d0] sm:$0xff] }
 0x15e   : > { %1911 = vst [vmem:[%s11355_s30 + $0xa70] sm:$0xff] %v1910_v14  ;;  %v2038_v14 = vld [vmem:[%s11350_s29 + $0x18e0] sm:$0xff] }
 0x15f   : > { %1913 = vst [vmem:[%s11355_s30 + $0xa78] sm:$0xff] %v1912_v15  ;;  %v2040_v15 = vld [vmem:[%s11350_s29 + $0x18f0] sm:$0xff] }
 0x160   : > { %1915 = vst [vmem:[%s11355_s30 + $0xa80] sm:$0xff] %v1914_v16  ;;  %v2042_v16 = vld [vmem:[%s11350_s29 + $0x1900] sm:$0xff] }
 0x161   : > { %1917 = vst [vmem:[%s11355_s30 + $0xa88] sm:$0xff] %v1916_v17  ;;  %v2044_v17 = vld [vmem:[%s11350_s29 + $0x1910] sm:$0xff] }
 0x162   : > { %1919 = vst [vmem:[%s11355_s30 + $0xa90] sm:$0xff] %v1918_v18  ;;  %v2046_v18 = vld [vmem:[%s11350_s29 + $0x1920] sm:$0xff] }
 0x163   : > { %1921 = vst [vmem:[%s11355_s30 + $0xa98] sm:$0xff] %v1920_v19  ;;  %v2048_v19 = vld [vmem:[%s11350_s29 + $0x1930] sm:$0xff] }
 0x164   : > { %1923 = vst [vmem:[%s11355_s30 + $0xaa0] sm:$0xff] %v1922_v20  ;;  %v2050_v20 = vld [vmem:[%s11350_s29 + $0x1940] sm:$0xff] }
 0x165   : > { %1925 = vst [vmem:[%s11355_s30 + $0xaa8] sm:$0xff] %v1924_v21  ;;  %v2052_v21 = vld [vmem:[%s11350_s29 + $0x1950] sm:$0xff] }
 0x166   : > { %1927 = vst [vmem:[%s11355_s30 + $0xab0] sm:$0xff] %v1926_v22  ;;  %v2054_v22 = vld [vmem:[%s11350_s29 + $0x1960] sm:$0xff] }
 0x167   : > { %1929 = vst [vmem:[%s11355_s30 + $0xab8] sm:$0xff] %v1928_v23  ;;  %v2056_v23 = vld [vmem:[%s11350_s29 + $0x1970] sm:$0xff] }
 0x168   : > { %1931 = vst [vmem:[%s11355_s30 + $0xac0] sm:$0xff] %v1930_v24  ;;  %v2058_v24 = vld [vmem:[%s11350_s29 + $0x1980] sm:$0xff] }
 0x169   : > { %1933 = vst [vmem:[%s11355_s30 + $0xac8] sm:$0xff] %v1932_v25  ;;  %v2060_v25 = vld [vmem:[%s11350_s29 + $0x1990] sm:$0xff] }
 0x16a   : > { %1935 = vst [vmem:[%s11355_s30 + $0xad0] sm:$0xff] %v1934_v26  ;;  %v2062_v26 = vld [vmem:[%s11350_s29 + $0x19a0] sm:$0xff] }
 0x16b   : > { %1937 = vst [vmem:[%s11355_s30 + $0xad8] sm:$0xff] %v1936_v27  ;;  %v2064_v27 = vld [vmem:[%s11350_s29 + $0x19b0] sm:$0xff] }
 0x16c   : > { %1939 = vst [vmem:[%s11355_s30 + $0xae0] sm:$0xff] %v1938_v28  ;;  %v2066_v28 = vld [vmem:[%s11350_s29 + $0x19c0] sm:$0xff] }
 0x16d   : > { %1941 = vst [vmem:[%s11355_s30 + $0xae8] sm:$0xff] %v1940_v29  ;;  %v2068_v29 = vld [vmem:[%s11350_s29 + $0x19d0] sm:$0xff] }
 0x16e   : > { %1943 = vst [vmem:[%s11355_s30 + $0xaf0] sm:$0xff] %v1942_v30  ;;  %v2070_v30 = vld [vmem:[%s11350_s29 + $0x19e0] sm:$0xff] }
 0x16f   : > { %1945 = vst [vmem:[%s11355_s30 + $0xaf8] sm:$0xff] %v1944_v31  ;;  %v2072_v31 = vld [vmem:[%s11350_s29 + $0x19f0] sm:$0xff] }
 0x170   : > { %1947 = vst [vmem:[%s11355_s30 + $0xb00] sm:$0xff] %v1946_v32  ;;  %v2074_v32 = vld [vmem:[%s11350_s29 + $0x1a00] sm:$0xff] }
 0x171   : > { %1949 = vst [vmem:[%s11355_s30 + $0xb08] sm:$0xff] %v1948_v33  ;;  %v2076_v33 = vld [vmem:[%s11350_s29 + $0x1a10] sm:$0xff] }
 0x172   : > { %1951 = vst [vmem:[%s11355_s30 + $0xb10] sm:$0xff] %v1950_v34  ;;  %v2078_v34 = vld [vmem:[%s11350_s29 + $0x1a20] sm:$0xff] }
 0x173   : > { %1953 = vst [vmem:[%s11355_s30 + $0xb18] sm:$0xff] %v1952_v35  ;;  %v2080_v35 = vld [vmem:[%s11350_s29 + $0x1a30] sm:$0xff] }
 0x174   : > { %1955 = vst [vmem:[%s11355_s30 + $0xb20] sm:$0xff] %v1954_v36  ;;  %v2082_v36 = vld [vmem:[%s11350_s29 + $0x1a40] sm:$0xff] }
 0x175   : > { %1957 = vst [vmem:[%s11355_s30 + $0xb28] sm:$0xff] %v1956_v37  ;;  %v2084_v37 = vld [vmem:[%s11350_s29 + $0x1a50] sm:$0xff] }
 0x176   : > { %1959 = vst [vmem:[%s11355_s30 + $0xb30] sm:$0xff] %v1958_v38  ;;  %v2086_v38 = vld [vmem:[%s11350_s29 + $0x1a60] sm:$0xff] }
 0x177   : > { %1961 = vst [vmem:[%s11355_s30 + $0xb38] sm:$0xff] %v1960_v39  ;;  %v2088_v39 = vld [vmem:[%s11350_s29 + $0x1a70] sm:$0xff] }
 0x178   : > { %1963 = vst [vmem:[%s11355_s30 + $0xb40] sm:$0xff] %v1962_v40  ;;  %v2090_v40 = vld [vmem:[%s11350_s29 + $0x1a80] sm:$0xff] }
 0x179   : > { %1965 = vst [vmem:[%s11355_s30 + $0xb48] sm:$0xff] %v1964_v41  ;;  %v2092_v41 = vld [vmem:[%s11350_s29 + $0x1a90] sm:$0xff] }
 0x17a   : > { %1967 = vst [vmem:[%s11355_s30 + $0xb50] sm:$0xff] %v1966_v42  ;;  %v2094_v42 = vld [vmem:[%s11350_s29 + $0x1aa0] sm:$0xff] }
 0x17b   : > { %1969 = vst [vmem:[%s11355_s30 + $0xb58] sm:$0xff] %v1968_v43  ;;  %v2096_v43 = vld [vmem:[%s11350_s29 + $0x1ab0] sm:$0xff] }
 0x17c   : > { %1971 = vst [vmem:[%s11355_s30 + $0xb60] sm:$0xff] %v1970_v44  ;;  %v2098_v44 = vld [vmem:[%s11350_s29 + $0x1ac0] sm:$0xff] }
 0x17d   : > { %1973 = vst [vmem:[%s11355_s30 + $0xb68] sm:$0xff] %v1972_v45  ;;  %v2100_v45 = vld [vmem:[%s11350_s29 + $0x1ad0] sm:$0xff] }
 0x17e   : > { %1975 = vst [vmem:[%s11355_s30 + $0xb70] sm:$0xff] %v1974_v46  ;;  %v2102_v46 = vld [vmem:[%s11350_s29 + $0x1ae0] sm:$0xff] }
 0x17f   : > { %1977 = vst [vmem:[%s11355_s30 + $0xb78] sm:$0xff] %v1976_v47  ;;  %v2104_v47 = vld [vmem:[%s11350_s29 + $0x1af0] sm:$0xff] }
 0x180   : > { %1979 = vst [vmem:[%s11355_s30 + $0xb80] sm:$0xff] %v1978_v48  ;;  %v2106_v48 = vld [vmem:[%s11350_s29 + $0x1b00] sm:$0xff] }
 0x181   : > { %1981 = vst [vmem:[%s11355_s30 + $0xb88] sm:$0xff] %v1980_v49  ;;  %v2108_v49 = vld [vmem:[%s11350_s29 + $0x1b10] sm:$0xff] }
 0x182   : > { %1983 = vst [vmem:[%s11355_s30 + $0xb90] sm:$0xff] %v1982_v50  ;;  %v2110_v50 = vld [vmem:[%s11350_s29 + $0x1b20] sm:$0xff] }
 0x183   : > { %1985 = vst [vmem:[%s11355_s30 + $0xb98] sm:$0xff] %v1984_v51  ;;  %v2112_v51 = vld [vmem:[%s11350_s29 + $0x1b30] sm:$0xff] }
 0x184   : > { %1987 = vst [vmem:[%s11355_s30 + $0xba0] sm:$0xff] %v1986_v52  ;;  %v2114_v52 = vld [vmem:[%s11350_s29 + $0x1b40] sm:$0xff] }
 0x185   : > { %1989 = vst [vmem:[%s11355_s30 + $0xba8] sm:$0xff] %v1988_v53  ;;  %v2116_v53 = vld [vmem:[%s11350_s29 + $0x1b50] sm:$0xff] }
 0x186   : > { %1991 = vst [vmem:[%s11355_s30 + $0xbb0] sm:$0xff] %v1990_v54  ;;  %v2118_v54 = vld [vmem:[%s11350_s29 + $0x1b60] sm:$0xff] }
 0x187   : > { %1993 = vst [vmem:[%s11355_s30 + $0xbb8] sm:$0xff] %v1992_v55  ;;  %v2120_v55 = vld [vmem:[%s11350_s29 + $0x1b70] sm:$0xff] }
 0x188   : > { %1995 = vst [vmem:[%s11355_s30 + $0xbc0] sm:$0xff] %v1994_v56  ;;  %v2122_v56 = vld [vmem:[%s11350_s29 + $0x1b80] sm:$0xff] }
 0x189   : > { %1997 = vst [vmem:[%s11355_s30 + $0xbc8] sm:$0xff] %v1996_v57  ;;  %v2124_v57 = vld [vmem:[%s11350_s29 + $0x1b90] sm:$0xff] }
 0x18a   : > { %1999 = vst [vmem:[%s11355_s30 + $0xbd0] sm:$0xff] %v1998_v58  ;;  %v2126_v58 = vld [vmem:[%s11350_s29 + $0x1ba0] sm:$0xff] }
 0x18b   : > { %2001 = vst [vmem:[%s11355_s30 + $0xbd8] sm:$0xff] %v2000_v59  ;;  %v2128_v59 = vld [vmem:[%s11350_s29 + $0x1bb0] sm:$0xff] }
 0x18c   : > { %2003 = vst [vmem:[%s11355_s30 + $0xbe0] sm:$0xff] %v2002_v60  ;;  %v2130_v60 = vld [vmem:[%s11350_s29 + $0x1bc0] sm:$0xff] }
 0x18d   : > { %2005 = vst [vmem:[%s11355_s30 + $0xbe8] sm:$0xff] %v2004_v61  ;;  %v2132_v61 = vld [vmem:[%s11350_s29 + $0x1bd0] sm:$0xff] }
 0x18e   : > { %2007 = vst [vmem:[%s11355_s30 + $0xbf0] sm:$0xff] %v2006_v62  ;;  %v2134_v62 = vld [vmem:[%s11350_s29 + $0x1be0] sm:$0xff] }
 0x18f   : > { %2009 = vst [vmem:[%s11355_s30 + $0xbf8] sm:$0xff] %v2008_v63  ;;  %v2136_v63 = vld [vmem:[%s11350_s29 + $0x1bf0] sm:$0xff] }
 0x190   : > { %2011 = vst [vmem:[%s11355_s30 + $0xc00] sm:$0xff] %v2010_v0  ;;  %v2138_v0 = vld [vmem:[%s11350_s29 + $0x1c00] sm:$0xff] }
 0x191   : > { %2013 = vst [vmem:[%s11355_s30 + $0xc08] sm:$0xff] %v2012_v1  ;;  %v2140_v1 = vld [vmem:[%s11350_s29 + $0x1c10] sm:$0xff] }
 0x192   : > { %2015 = vst [vmem:[%s11355_s30 + $0xc10] sm:$0xff] %v2014_v2  ;;  %v2142_v2 = vld [vmem:[%s11350_s29 + $0x1c20] sm:$0xff] }
 0x193   : > { %2017 = vst [vmem:[%s11355_s30 + $0xc18] sm:$0xff] %v2016_v3  ;;  %v2144_v3 = vld [vmem:[%s11350_s29 + $0x1c30] sm:$0xff] }
 0x194   : > { %2019 = vst [vmem:[%s11355_s30 + $0xc20] sm:$0xff] %v2018_v4  ;;  %v2146_v4 = vld [vmem:[%s11350_s29 + $0x1c40] sm:$0xff] }
 0x195   : > { %2021 = vst [vmem:[%s11355_s30 + $0xc28] sm:$0xff] %v2020_v5  ;;  %v2148_v5 = vld [vmem:[%s11350_s29 + $0x1c50] sm:$0xff] }
 0x196   : > { %2023 = vst [vmem:[%s11355_s30 + $0xc30] sm:$0xff] %v2022_v6  ;;  %v2150_v6 = vld [vmem:[%s11350_s29 + $0x1c60] sm:$0xff] }
 0x197   : > { %2025 = vst [vmem:[%s11355_s30 + $0xc38] sm:$0xff] %v2024_v7  ;;  %v2152_v7 = vld [vmem:[%s11350_s29 + $0x1c70] sm:$0xff] }
 0x198   : > { %2027 = vst [vmem:[%s11355_s30 + $0xc40] sm:$0xff] %v2026_v8  ;;  %v2154_v8 = vld [vmem:[%s11350_s29 + $0x1c80] sm:$0xff] }
 0x199   : > { %2029 = vst [vmem:[%s11355_s30 + $0xc48] sm:$0xff] %v2028_v9  ;;  %v2156_v9 = vld [vmem:[%s11350_s29 + $0x1c90] sm:$0xff] }
 0x19a   : > { %2031 = vst [vmem:[%s11355_s30 + $0xc50] sm:$0xff] %v2030_v10  ;;  %v2158_v10 = vld [vmem:[%s11350_s29 + $0x1ca0] sm:$0xff] }
 0x19b   : > { %2033 = vst [vmem:[%s11355_s30 + $0xc58] sm:$0xff] %v2032_v11  ;;  %v2160_v11 = vld [vmem:[%s11350_s29 + $0x1cb0] sm:$0xff] }
 0x19c   : > { %2035 = vst [vmem:[%s11355_s30 + $0xc60] sm:$0xff] %v2034_v12  ;;  %v2162_v12 = vld [vmem:[%s11350_s29 + $0x1cc0] sm:$0xff] }
 0x19d   : > { %2037 = vst [vmem:[%s11355_s30 + $0xc68] sm:$0xff] %v2036_v13  ;;  %v2164_v13 = vld [vmem:[%s11350_s29 + $0x1cd0] sm:$0xff] }
 0x19e   : > { %2039 = vst [vmem:[%s11355_s30 + $0xc70] sm:$0xff] %v2038_v14  ;;  %v2166_v14 = vld [vmem:[%s11350_s29 + $0x1ce0] sm:$0xff] }
 0x19f   : > { %2041 = vst [vmem:[%s11355_s30 + $0xc78] sm:$0xff] %v2040_v15  ;;  %v2168_v15 = vld [vmem:[%s11350_s29 + $0x1cf0] sm:$0xff] }
 0x1a0   : > { %2043 = vst [vmem:[%s11355_s30 + $0xc80] sm:$0xff] %v2042_v16  ;;  %v2170_v16 = vld [vmem:[%s11350_s29 + $0x1d00] sm:$0xff] }
 0x1a1   : > { %2045 = vst [vmem:[%s11355_s30 + $0xc88] sm:$0xff] %v2044_v17  ;;  %v2172_v17 = vld [vmem:[%s11350_s29 + $0x1d10] sm:$0xff] }
 0x1a2   : > { %2047 = vst [vmem:[%s11355_s30 + $0xc90] sm:$0xff] %v2046_v18  ;;  %v2174_v18 = vld [vmem:[%s11350_s29 + $0x1d20] sm:$0xff] }
 0x1a3   : > { %2049 = vst [vmem:[%s11355_s30 + $0xc98] sm:$0xff] %v2048_v19  ;;  %v2176_v19 = vld [vmem:[%s11350_s29 + $0x1d30] sm:$0xff] }
 0x1a4   : > { %2051 = vst [vmem:[%s11355_s30 + $0xca0] sm:$0xff] %v2050_v20  ;;  %v2178_v20 = vld [vmem:[%s11350_s29 + $0x1d40] sm:$0xff] }
 0x1a5   : > { %2053 = vst [vmem:[%s11355_s30 + $0xca8] sm:$0xff] %v2052_v21  ;;  %v2180_v21 = vld [vmem:[%s11350_s29 + $0x1d50] sm:$0xff] }
 0x1a6   : > { %2055 = vst [vmem:[%s11355_s30 + $0xcb0] sm:$0xff] %v2054_v22  ;;  %v2182_v22 = vld [vmem:[%s11350_s29 + $0x1d60] sm:$0xff] }
 0x1a7   : > { %2057 = vst [vmem:[%s11355_s30 + $0xcb8] sm:$0xff] %v2056_v23  ;;  %v2184_v23 = vld [vmem:[%s11350_s29 + $0x1d70] sm:$0xff] }
 0x1a8   : > { %2059 = vst [vmem:[%s11355_s30 + $0xcc0] sm:$0xff] %v2058_v24  ;;  %v2186_v24 = vld [vmem:[%s11350_s29 + $0x1d80] sm:$0xff] }
 0x1a9   : > { %2061 = vst [vmem:[%s11355_s30 + $0xcc8] sm:$0xff] %v2060_v25  ;;  %v2188_v25 = vld [vmem:[%s11350_s29 + $0x1d90] sm:$0xff] }
 0x1aa   : > { %2063 = vst [vmem:[%s11355_s30 + $0xcd0] sm:$0xff] %v2062_v26  ;;  %v2190_v26 = vld [vmem:[%s11350_s29 + $0x1da0] sm:$0xff] }
 0x1ab   : > { %2065 = vst [vmem:[%s11355_s30 + $0xcd8] sm:$0xff] %v2064_v27  ;;  %v2192_v27 = vld [vmem:[%s11350_s29 + $0x1db0] sm:$0xff] }
 0x1ac   : > { %2067 = vst [vmem:[%s11355_s30 + $0xce0] sm:$0xff] %v2066_v28  ;;  %v2194_v28 = vld [vmem:[%s11350_s29 + $0x1dc0] sm:$0xff] }
 0x1ad   : > { %2069 = vst [vmem:[%s11355_s30 + $0xce8] sm:$0xff] %v2068_v29  ;;  %v2196_v29 = vld [vmem:[%s11350_s29 + $0x1dd0] sm:$0xff] }
 0x1ae   : > { %2071 = vst [vmem:[%s11355_s30 + $0xcf0] sm:$0xff] %v2070_v30  ;;  %v2198_v30 = vld [vmem:[%s11350_s29 + $0x1de0] sm:$0xff] }
 0x1af   : > { %2073 = vst [vmem:[%s11355_s30 + $0xcf8] sm:$0xff] %v2072_v31  ;;  %v2200_v31 = vld [vmem:[%s11350_s29 + $0x1df0] sm:$0xff] }
 0x1b0   : > { %2075 = vst [vmem:[%s11355_s30 + $0xd00] sm:$0xff] %v2074_v32  ;;  %v2202_v32 = vld [vmem:[%s11350_s29 + $0x1e00] sm:$0xff] }
 0x1b1   : > { %2077 = vst [vmem:[%s11355_s30 + $0xd08] sm:$0xff] %v2076_v33  ;;  %v2204_v33 = vld [vmem:[%s11350_s29 + $0x1e10] sm:$0xff] }
 0x1b2   : > { %2079 = vst [vmem:[%s11355_s30 + $0xd10] sm:$0xff] %v2078_v34  ;;  %v2206_v34 = vld [vmem:[%s11350_s29 + $0x1e20] sm:$0xff] }
 0x1b3   : > { %2081 = vst [vmem:[%s11355_s30 + $0xd18] sm:$0xff] %v2080_v35  ;;  %v2208_v35 = vld [vmem:[%s11350_s29 + $0x1e30] sm:$0xff] }
 0x1b4   : > { %2083 = vst [vmem:[%s11355_s30 + $0xd20] sm:$0xff] %v2082_v36  ;;  %v2210_v36 = vld [vmem:[%s11350_s29 + $0x1e40] sm:$0xff] }
 0x1b5   : > { %2085 = vst [vmem:[%s11355_s30 + $0xd28] sm:$0xff] %v2084_v37  ;;  %v2212_v37 = vld [vmem:[%s11350_s29 + $0x1e50] sm:$0xff] }
 0x1b6   : > { %2087 = vst [vmem:[%s11355_s30 + $0xd30] sm:$0xff] %v2086_v38  ;;  %v2214_v38 = vld [vmem:[%s11350_s29 + $0x1e60] sm:$0xff] }
 0x1b7   : > { %2089 = vst [vmem:[%s11355_s30 + $0xd38] sm:$0xff] %v2088_v39  ;;  %v2216_v39 = vld [vmem:[%s11350_s29 + $0x1e70] sm:$0xff] }
 0x1b8   : > { %2091 = vst [vmem:[%s11355_s30 + $0xd40] sm:$0xff] %v2090_v40  ;;  %v2218_v40 = vld [vmem:[%s11350_s29 + $0x1e80] sm:$0xff] }
 0x1b9   : > { %2093 = vst [vmem:[%s11355_s30 + $0xd48] sm:$0xff] %v2092_v41  ;;  %v2220_v41 = vld [vmem:[%s11350_s29 + $0x1e90] sm:$0xff] }
 0x1ba   : > { %2095 = vst [vmem:[%s11355_s30 + $0xd50] sm:$0xff] %v2094_v42  ;;  %v2222_v42 = vld [vmem:[%s11350_s29 + $0x1ea0] sm:$0xff] }
 0x1bb   : > { %2097 = vst [vmem:[%s11355_s30 + $0xd58] sm:$0xff] %v2096_v43  ;;  %v2224_v43 = vld [vmem:[%s11350_s29 + $0x1eb0] sm:$0xff] }
 0x1bc   : > { %2099 = vst [vmem:[%s11355_s30 + $0xd60] sm:$0xff] %v2098_v44  ;;  %v2226_v44 = vld [vmem:[%s11350_s29 + $0x1ec0] sm:$0xff] }
 0x1bd   : > { %2101 = vst [vmem:[%s11355_s30 + $0xd68] sm:$0xff] %v2100_v45  ;;  %v2228_v45 = vld [vmem:[%s11350_s29 + $0x1ed0] sm:$0xff] }
 0x1be   : > { %2103 = vst [vmem:[%s11355_s30 + $0xd70] sm:$0xff] %v2102_v46  ;;  %v2230_v46 = vld [vmem:[%s11350_s29 + $0x1ee0] sm:$0xff] }
 0x1bf   : > { %2105 = vst [vmem:[%s11355_s30 + $0xd78] sm:$0xff] %v2104_v47  ;;  %v2232_v47 = vld [vmem:[%s11350_s29 + $0x1ef0] sm:$0xff] }
 0x1c0   : > { %2107 = vst [vmem:[%s11355_s30 + $0xd80] sm:$0xff] %v2106_v48  ;;  %v2234_v48 = vld [vmem:[%s11350_s29 + $0x1f00] sm:$0xff] }
 0x1c1   : > { %2109 = vst [vmem:[%s11355_s30 + $0xd88] sm:$0xff] %v2108_v49  ;;  %v2236_v49 = vld [vmem:[%s11350_s29 + $0x1f10] sm:$0xff] }
 0x1c2   : > { %2111 = vst [vmem:[%s11355_s30 + $0xd90] sm:$0xff] %v2110_v50  ;;  %v2238_v50 = vld [vmem:[%s11350_s29 + $0x1f20] sm:$0xff] }
 0x1c3   : > { %2113 = vst [vmem:[%s11355_s30 + $0xd98] sm:$0xff] %v2112_v51  ;;  %v2240_v51 = vld [vmem:[%s11350_s29 + $0x1f30] sm:$0xff] }
 0x1c4   : > { %2115 = vst [vmem:[%s11355_s30 + $0xda0] sm:$0xff] %v2114_v52  ;;  %v2242_v52 = vld [vmem:[%s11350_s29 + $0x1f40] sm:$0xff] }
 0x1c5   : > { %2117 = vst [vmem:[%s11355_s30 + $0xda8] sm:$0xff] %v2116_v53  ;;  %v2244_v53 = vld [vmem:[%s11350_s29 + $0x1f50] sm:$0xff] }
 0x1c6   : > { %2119 = vst [vmem:[%s11355_s30 + $0xdb0] sm:$0xff] %v2118_v54  ;;  %v2246_v54 = vld [vmem:[%s11350_s29 + $0x1f60] sm:$0xff] }
 0x1c7   : > { %2121 = vst [vmem:[%s11355_s30 + $0xdb8] sm:$0xff] %v2120_v55  ;;  %v2248_v55 = vld [vmem:[%s11350_s29 + $0x1f70] sm:$0xff] }
 0x1c8   : > { %2123 = vst [vmem:[%s11355_s30 + $0xdc0] sm:$0xff] %v2122_v56  ;;  %v2250_v56 = vld [vmem:[%s11350_s29 + $0x1f80] sm:$0xff] }
 0x1c9   : > { %2125 = vst [vmem:[%s11355_s30 + $0xdc8] sm:$0xff] %v2124_v57  ;;  %v2252_v57 = vld [vmem:[%s11350_s29 + $0x1f90] sm:$0xff] }
 0x1ca   : > { %2127 = vst [vmem:[%s11355_s30 + $0xdd0] sm:$0xff] %v2126_v58  ;;  %v2254_v58 = vld [vmem:[%s11350_s29 + $0x1fa0] sm:$0xff] }
 0x1cb   : > { %2129 = vst [vmem:[%s11355_s30 + $0xdd8] sm:$0xff] %v2128_v59  ;;  %v2256_v59 = vld [vmem:[%s11350_s29 + $0x1fb0] sm:$0xff] }
 0x1cc   : > { %2131 = vst [vmem:[%s11355_s30 + $0xde0] sm:$0xff] %v2130_v60  ;;  %v2258_v60 = vld [vmem:[%s11350_s29 + $0x1fc0] sm:$0xff] }
 0x1cd   : > { %2133 = vst [vmem:[%s11355_s30 + $0xde8] sm:$0xff] %v2132_v61  ;;  %v2260_v61 = vld [vmem:[%s11350_s29 + $0x1fd0] sm:$0xff] }
 0x1ce   : > { %2135 = vst [vmem:[%s11355_s30 + $0xdf0] sm:$0xff] %v2134_v62  ;;  %v2262_v62 = vld [vmem:[%s11350_s29 + $0x1fe0] sm:$0xff] }
 0x1cf   : > { %2137 = vst [vmem:[%s11355_s30 + $0xdf8] sm:$0xff] %v2136_v63  ;;  %v2264_v63 = vld [vmem:[%s11350_s29 + $0x1ff0] sm:$0xff] }
 0x1d0   : > { %2139 = vst [vmem:[%s11355_s30 + $0xe00] sm:$0xff] %v2138_v0 }
 0x1d1   : > { %2141 = vst [vmem:[%s11355_s30 + $0xe08] sm:$0xff] %v2140_v1 }
 0x1d2   : > { %2143 = vst [vmem:[%s11355_s30 + $0xe10] sm:$0xff] %v2142_v2 }
 0x1d3   : > { %2145 = vst [vmem:[%s11355_s30 + $0xe18] sm:$0xff] %v2144_v3 }
 0x1d4   : > { %2147 = vst [vmem:[%s11355_s30 + $0xe20] sm:$0xff] %v2146_v4 }
 0x1d5   : > { %2149 = vst [vmem:[%s11355_s30 + $0xe28] sm:$0xff] %v2148_v5 }
 0x1d6   : > { %2151 = vst [vmem:[%s11355_s30 + $0xe30] sm:$0xff] %v2150_v6 }
 0x1d7   : > { %2153 = vst [vmem:[%s11355_s30 + $0xe38] sm:$0xff] %v2152_v7 }
 0x1d8   : > { %2155 = vst [vmem:[%s11355_s30 + $0xe40] sm:$0xff] %v2154_v8 }
 0x1d9   : > { %2157 = vst [vmem:[%s11355_s30 + $0xe48] sm:$0xff] %v2156_v9 }
 0x1da   : > { %2159 = vst [vmem:[%s11355_s30 + $0xe50] sm:$0xff] %v2158_v10 }
 0x1db   : > { %2161 = vst [vmem:[%s11355_s30 + $0xe58] sm:$0xff] %v2160_v11 }
 0x1dc   : > { %2163 = vst [vmem:[%s11355_s30 + $0xe60] sm:$0xff] %v2162_v12 }
 0x1dd   : > { %2165 = vst [vmem:[%s11355_s30 + $0xe68] sm:$0xff] %v2164_v13 }
 0x1de   : > { %2167 = vst [vmem:[%s11355_s30 + $0xe70] sm:$0xff] %v2166_v14 }
 0x1df   : > { %2169 = vst [vmem:[%s11355_s30 + $0xe78] sm:$0xff] %v2168_v15 }
 0x1e0   : > { %2171 = vst [vmem:[%s11355_s30 + $0xe80] sm:$0xff] %v2170_v16 }
 0x1e1   : > { %2173 = vst [vmem:[%s11355_s30 + $0xe88] sm:$0xff] %v2172_v17 }
 0x1e2   : > { %2175 = vst [vmem:[%s11355_s30 + $0xe90] sm:$0xff] %v2174_v18 }
 0x1e3   : > { %2177 = vst [vmem:[%s11355_s30 + $0xe98] sm:$0xff] %v2176_v19 }
 0x1e4   : > { %2179 = vst [vmem:[%s11355_s30 + $0xea0] sm:$0xff] %v2178_v20 }
 0x1e5   : > { %2181 = vst [vmem:[%s11355_s30 + $0xea8] sm:$0xff] %v2180_v21 }
 0x1e6   : > { %2183 = vst [vmem:[%s11355_s30 + $0xeb0] sm:$0xff] %v2182_v22 }
 0x1e7   : > { %2185 = vst [vmem:[%s11355_s30 + $0xeb8] sm:$0xff] %v2184_v23 }
 0x1e8   : > { %2187 = vst [vmem:[%s11355_s30 + $0xec0] sm:$0xff] %v2186_v24 }
 0x1e9   : > { %2189 = vst [vmem:[%s11355_s30 + $0xec8] sm:$0xff] %v2188_v25 }
 0x1ea   : > { %2191 = vst [vmem:[%s11355_s30 + $0xed0] sm:$0xff] %v2190_v26 }
 0x1eb   : > { %2193 = vst [vmem:[%s11355_s30 + $0xed8] sm:$0xff] %v2192_v27 }
 0x1ec   : > { %2195 = vst [vmem:[%s11355_s30 + $0xee0] sm:$0xff] %v2194_v28 }
 0x1ed   : > { %2197 = vst [vmem:[%s11355_s30 + $0xee8] sm:$0xff] %v2196_v29 }
 0x1ee   : > { %2199 = vst [vmem:[%s11355_s30 + $0xef0] sm:$0xff] %v2198_v30 }
 0x1ef   : > { %2201 = vst [vmem:[%s11355_s30 + $0xef8] sm:$0xff] %v2200_v31 }
 0x1f0   : > { %2203 = vst [vmem:[%s11355_s30 + $0xf00] sm:$0xff] %v2202_v32 }
 0x1f1   : > { %2205 = vst [vmem:[%s11355_s30 + $0xf08] sm:$0xff] %v2204_v33 }
 0x1f2   : > { %2207 = vst [vmem:[%s11355_s30 + $0xf10] sm:$0xff] %v2206_v34 }
 0x1f3   : > { %2209 = vst [vmem:[%s11355_s30 + $0xf18] sm:$0xff] %v2208_v35 }
 0x1f4   : > { %2211 = vst [vmem:[%s11355_s30 + $0xf20] sm:$0xff] %v2210_v36 }
 0x1f5   : > { %2213 = vst [vmem:[%s11355_s30 + $0xf28] sm:$0xff] %v2212_v37 }
 0x1f6   : > { %2215 = vst [vmem:[%s11355_s30 + $0xf30] sm:$0xff] %v2214_v38 }
 0x1f7   : > { %2217 = vst [vmem:[%s11355_s30 + $0xf38] sm:$0xff] %v2216_v39 }
 0x1f8   : > { %2219 = vst [vmem:[%s11355_s30 + $0xf40] sm:$0xff] %v2218_v40 }
 0x1f9   : > { %2221 = vst [vmem:[%s11355_s30 + $0xf48] sm:$0xff] %v2220_v41 }
 0x1fa   : > { %2223 = vst [vmem:[%s11355_s30 + $0xf50] sm:$0xff] %v2222_v42 }
 0x1fb   : > { %2225 = vst [vmem:[%s11355_s30 + $0xf58] sm:$0xff] %v2224_v43 }
 0x1fc   : > { %2227 = vst [vmem:[%s11355_s30 + $0xf60] sm:$0xff] %v2226_v44 }
 0x1fd   : > { %2229 = vst [vmem:[%s11355_s30 + $0xf68] sm:$0xff] %v2228_v45 }
 0x1fe   : > { %2231 = vst [vmem:[%s11355_s30 + $0xf70] sm:$0xff] %v2230_v46 }
 0x1ff   : > { %2233 = vst [vmem:[%s11355_s30 + $0xf78] sm:$0xff] %v2232_v47 }
 0x200   : > { %2235 = vst [vmem:[%s11355_s30 + $0xf80] sm:$0xff] %v2234_v48 }
 0x201   : > { %2237 = vst [vmem:[%s11355_s30 + $0xf88] sm:$0xff] %v2236_v49 }
 0x202   : > { %2239 = vst [vmem:[%s11355_s30 + $0xf90] sm:$0xff] %v2238_v50 }
 0x203   : > { %2241 = vst [vmem:[%s11355_s30 + $0xf98] sm:$0xff] %v2240_v51 }
 0x204   : > { %2243 = vst [vmem:[%s11355_s30 + $0xfa0] sm:$0xff] %v2242_v52 }
 0x205   : > { %2245 = vst [vmem:[%s11355_s30 + $0xfa8] sm:$0xff] %v2244_v53 }
 0x206   : > { %2247 = vst [vmem:[%s11355_s30 + $0xfb0] sm:$0xff] %v2246_v54 }
 0x207   : > { %2249 = vst [vmem:[%s11355_s30 + $0xfb8] sm:$0xff] %v2248_v55 }
 0x208   : > { %2251 = vst [vmem:[%s11355_s30 + $0xfc0] sm:$0xff] %v2250_v56 }
 0x209   : > { %2253 = vst [vmem:[%s11355_s30 + $0xfc8] sm:$0xff] %v2252_v57 }
 0x20a   : > { %2255 = vst [vmem:[%s11355_s30 + $0xfd0] sm:$0xff] %v2254_v58 }
 0x20b   : > { %2257 = vst [vmem:[%s11355_s30 + $0xfd8] sm:$0xff] %v2256_v59 }
 0x20c   : > { %2259 = vst [vmem:[%s11355_s30 + $0xfe0] sm:$0xff] %v2258_v60 }
 0x20d   : > { %2261 = vst [vmem:[%s11355_s30 + $0xfe8] sm:$0xff] %v2260_v61 }
 0x20e   : > { %2263 = vst [vmem:[%s11355_s30 + $0xff0] sm:$0xff] %v2262_v62 }
 0x20f   : > { %2265 = vst [vmem:[%s11355_s30 + $0xff8] sm:$0xff] %v2264_v63 }
 0x210 PF: > { %p8633_p6 = scmp.ge.s32.totalorder %s11280_s19, 1  ;;  %p4369_p7 = scmp.lt.s32.totalorder %s11280_s19, 3 }
 0x212   : > { %p4370_p8 = pnand %p8633_p6, %p4369_p7 }
 0x213   : > { %s4376_s5 = sand.u32 (!%p4370_p8), 1, %s11264_s15  }
 0x214   : > { %4373 = sbr.rel (%p4370_p8) target bundleno = 1198 (0x4ae), region = 84  ;;  %s8634_s6 = sshll.u32 (!%p4370_p8), %s4376_s5, 12 }
 0x215   : > { %s12381_s7 = scalar_lea.vmem (!%p4370_p8), [#allocation2], %s8634_s6 }
 0x219   : > { %v8697_v0 = vld [vmem:[%s12381_s7 + $0x70] sm:$0xf]  ;;  %v10705_v1 = vld [vmem:[%s12381_s7 + $0x74] sm:$0xf0]  ;;  %v8689_v11 = vld [vmem:[%s12381_s7 + $0x60] sm:$0xf] }
 0x21a   : > { %v8761_v2 = vld [vmem:[%s12381_s7 + $0xf0] sm:$0xf]  ;;  %v8698_v3 = vor.u32 %v10705_v1, %v8697_v0  ;;  %v10721_v4 = vld [vmem:[%s12381_s7 + $0xf4] sm:$0xf0]  ;;  %v10703_v13 = vld [vmem:[%s12381_s7 + $0x64] sm:$0xf0] }
 0x21b   : > { %v8825_v5 = vld [vmem:[%s12381_s7 + $0x170] sm:$0xf]  ;;  %v10737_v6 = vld [vmem:[%s12381_s7 + $0x174] sm:$0xf0]  ;;  %v8762_v7 = vor.u32 %v10721_v4, %v8761_v2  ;;  %v8753_v14 = vld [vmem:[%s12381_s7 + $0xe0] sm:$0xf]  ;;  %v8690_v16 = vor.u32 %v10703_v13, %v8689_v11 }
 0x21c   : > { %v8826_v8 = vor.u32 %v10737_v6, %v8825_v5  ;;  %v8889_v9 = vld [vmem:[%s12381_s7 + $0x1f0] sm:$0xf]  ;;  %v10753_v10 = vld [vmem:[%s12381_s7 + $0x1f4] sm:$0xf0]  ;;  %7644 = vmatpush.bf16.msra.mxu0 %v8698_v3  ;;  %v10719_v15 = vld [vmem:[%s12381_s7 + $0xe4] sm:$0xf0] }
 0x21d   : > { %v8890_v12 = vor.u32 %v10753_v10, %v8889_v9  ;;  %7657 = vmatpush.bf16.msra.mxu1 %v8762_v7  ;;  %v8754_v17 = vor.u32 %v10719_v15, %v8753_v14  ;;  %v8817_v18 = vld [vmem:[%s12381_s7 + $0x160] sm:$0xf]  ;;  %v10735_v19 = vld [vmem:[%s12381_s7 + $0x164] sm:$0xf0]  ;;  %v8681_v23 = vld [vmem:[%s12381_s7 + $0x50] sm:$0xf] }
 0x21e   : > { %7670 = vmatpush.bf16.msra.mxu2 %v8826_v8  ;;  %v8881_v20 = vld [vmem:[%s12381_s7 + $0x1e0] sm:$0xf]  ;;  %v8818_v21 = vor.u32 %v10735_v19, %v8817_v18  ;;  %v10751_v22 = vld [vmem:[%s12381_s7 + $0x1e4] sm:$0xf0]  ;;  %v10701_v24 = vld [vmem:[%s12381_s7 + $0x54] sm:$0xf0] }
 0x21f   : > { %7683 = vmatpush.bf16.msra.mxu3 %v8890_v12  ;;  %v8882_v25 = vor.u32 %v10751_v22, %v8881_v20  ;;  %v8745_v26 = vld [vmem:[%s12381_s7 + $0xd0] sm:$0xf]  ;;  %v10717_v27 = vld [vmem:[%s12381_s7 + $0xd4] sm:$0xf0]  ;;  %v8682_v29 = vor.u32 %v10701_v24, %v8681_v23  ;;  %v8673_v35 = vld [vmem:[%s12381_s7 + $0x40] sm:$0xf] }
 0x220   : > { %v8809_v28 = vld [vmem:[%s12381_s7 + $0x150] sm:$0xf]  ;;  %7645 = vmatpush.bf16.msra.mxu0 %v8690_v16  ;;  %v10733_v30 = vld [vmem:[%s12381_s7 + $0x154] sm:$0xf0]  ;;  %v8746_v33 = vor.u32 %v10717_v27, %v8745_v26  ;;  %v10699_v36 = vld [vmem:[%s12381_s7 + $0x44] sm:$0xf0] }
 0x221   : > { %v8873_v31 = vld [vmem:[%s12381_s7 + $0x1d0] sm:$0xf]  ;;  %v10749_v32 = vld [vmem:[%s12381_s7 + $0x1d4] sm:$0xf0]  ;;  %7658 = vmatpush.bf16.msra.mxu1 %v8754_v17  ;;  %v8810_v34 = vor.u32 %v10733_v30, %v8809_v28  ;;  %v8737_v37 = vld [vmem:[%s12381_s7 + $0xc0] sm:$0xf]  ;;  %v8674_v44 = vor.u32 %v10699_v36, %v8673_v35 }
 0x222   : > { %7671 = vmatpush.bf16.msra.mxu2 %v8818_v21  ;;  %v8874_v38 = vor.u32 %v10749_v32, %v8873_v31  ;;  %v10715_v39 = vld [vmem:[%s12381_s7 + $0xc4] sm:$0xf0]  ;;  %v8801_v40 = vld [vmem:[%s12381_s7 + $0x140] sm:$0xf]  ;;  %v8665_v47 = vld [vmem:[%s12381_s7 + $0x30] sm:$0xf] }
 0x223   : > { %7684 = vmatpush.bf16.msra.mxu3 %v8882_v25  ;;  %v10731_v41 = vld [vmem:[%s12381_s7 + $0x144] sm:$0xf0]  ;;  %v8865_v42 = vld [vmem:[%s12381_s7 + $0x1c0] sm:$0xf]  ;;  %v8738_v45 = vor.u32 %v10715_v39, %v8737_v37  ;;  %v10697_v48 = vld [vmem:[%s12381_s7 + $0x34] sm:$0xf0] }
 0x224   : > { %v10747_v43 = vld [vmem:[%s12381_s7 + $0x1c4] sm:$0xf0]  ;;  %7646 = vmatpush.bf16.msra.mxu0 %v8682_v29  ;;  %v8802_v46 = vor.u32 %v10731_v41, %v8801_v40  ;;  %v8729_v49 = vld [vmem:[%s12381_s7 + $0xb0] sm:$0xf]  ;;  %v10713_v51 = vld [vmem:[%s12381_s7 + $0xb4] sm:$0xf0]  ;;  %v8666_v56 = vor.u32 %v10697_v48, %v8665_v47 }
 0x225   : > { %7659 = vmatpush.bf16.msra.mxu1 %v8746_v33  ;;  %v8866_v50 = vor.u32 %v10747_v43, %v8865_v42  ;;  %v8793_v52 = vld [vmem:[%s12381_s7 + $0x130] sm:$0xf]  ;;  %v10729_v53 = vld [vmem:[%s12381_s7 + $0x134] sm:$0xf0]  ;;  %v8730_v57 = vor.u32 %v10713_v51, %v8729_v49  ;;  %v8657_v59 = vld [vmem:[%s12381_s7 + $0x20] sm:$0xf] }
 0x226   : > { %7672 = vmatpush.bf16.msra.mxu2 %v8810_v34  ;;  %v8857_v54 = vld [vmem:[%s12381_s7 + $0x1b0] sm:$0xf]  ;;  %v10745_v55 = vld [vmem:[%s12381_s7 + $0x1b4] sm:$0xf0]  ;;  %v8794_v58 = vor.u32 %v10729_v53, %v8793_v52  ;;  %v10695_v60 = vld [vmem:[%s12381_s7 + $0x24] sm:$0xf0] }
 0x227   : > { %7685 = vmatpush.bf16.msra.mxu3 %v8874_v38  ;;  %v8721_v61 = vld [vmem:[%s12381_s7 + $0xa0] sm:$0xf]  ;;  %v8858_v62 = vor.u32 %v10745_v55, %v8857_v54  ;;  %v10711_v63 = vld [vmem:[%s12381_s7 + $0xa4] sm:$0xf0]  ;;  %v8658_v4 = vor.u32 %v10695_v60, %v8657_v59  ;;  %v8649_v7 = vld [vmem:[%s12381_s7 + $0x10] sm:$0xf] }
 0x228   : > { %7647 = vmatpush.bf16.msra.mxu0 %v8674_v44  ;;  %v8785_v0 = vld [vmem:[%s12381_s7 + $0x120] sm:$0xf]  ;;  %v10727_v1 = vld [vmem:[%s12381_s7 + $0x124] sm:$0xf0]  ;;  %v8722_v5 = vor.u32 %v10711_v63, %v8721_v61  ;;  %v10693_v8 = vld [vmem:[%s12381_s7 + $0x14] sm:$0xf0] }
 0x229   : > { %7660 = vmatpush.bf16.msra.mxu1 %v8738_v45  ;;  %v8849_v2 = vld [vmem:[%s12381_s7 + $0x1a0] sm:$0xf]  ;;  %v10743_v3 = vld [vmem:[%s12381_s7 + $0x1a4] sm:$0xf0]  ;;  %v8786_v6 = vor.u32 %v10727_v1, %v8785_v0  ;;  %v8713_v9 = vld [vmem:[%s12381_s7 + $0x90] sm:$0xf]  ;;  %v8650_v16 = vor.u32 %v10693_v8, %v8649_v7 }
 0x22a   : > { %7673 = vmatpush.bf16.msra.mxu2 %v8802_v46  ;;  %v8850_v10 = vor.u32 %v10743_v3, %v8849_v2  ;;  %v10709_v11 = vld [vmem:[%s12381_s7 + $0x94] sm:$0xf0]  ;;  %v8777_v12 = vld [vmem:[%s12381_s7 + $0x110] sm:$0xf]  ;;  %v8641_v17 = vld [vmem:[%s12381_s7] sm:$0xf] }
 0x22b   : > { %7686 = vmatpush.bf16.msra.mxu3 %v8866_v50  ;;  %v10725_v13 = vld [vmem:[%s12381_s7 + $0x114] sm:$0xf0]  ;;  %v8841_v14 = vld [vmem:[%s12381_s7 + $0x190] sm:$0xf]  ;;  %v10691_v18 = vld [vmem:[%s12381_s7 + $0x4] sm:$0xf0]  ;;  %v8714_v19 = vor.u32 %v10709_v11, %v8713_v9 }
 0x22c   : > { %7648 = vmatpush.bf16.msra.mxu0 %v8666_v56  ;;  %v10741_v15 = vld [vmem:[%s12381_s7 + $0x194] sm:$0xf0]  ;;  %v8778_v20 = vor.u32 %v10725_v13, %v8777_v12  ;;  %v8705_v21 = vld [vmem:[%s12381_s7 + $0x80] sm:$0xf]  ;;  %v10707_v22 = vld [vmem:[%s12381_s7 + $0x84] sm:$0xf0]  ;;  %v8642_v31 = vor.u32 %v10691_v18, %v8641_v17 }
 0x22d   : > { %7661 = vmatpush.bf16.msra.mxu1 %v8730_v57  ;;  %v8769_v23 = vld [vmem:[%s12381_s7 + $0x100] sm:$0xf]  ;;  %v8842_v24 = vor.u32 %v10741_v15, %v8841_v14  ;;  %v10723_v25 = vld [vmem:[%s12381_s7 + $0x104] sm:$0xf0]  ;;  %v8953_v28 = vld [vmem:[%s12381_s7 + $0x270] sm:$0xf]  ;;  %v8706_v35 = vor.u32 %v10707_v22, %v8705_v21 }
 0x22e   : > { %7674 = vmatpush.bf16.msra.mxu2 %v8794_v58  ;;  %v8833_v26 = vld [vmem:[%s12381_s7 + $0x180] sm:$0xf]  ;;  %v10739_v27 = vld [vmem:[%s12381_s7 + $0x184] sm:$0xf0]  ;;  %v10769_v29 = vld [vmem:[%s12381_s7 + $0x274] sm:$0xf0]  ;;  %v8770_v36 = vor.u32 %v10723_v25, %v8769_v23 }
 0x22f   : > { %7687 = vmatpush.bf16.msra.mxu3 %v8858_v62  ;;  %v9017_v30 = vld [vmem:[%s12381_s7 + $0x2f0] sm:$0xf]  ;;  %v10785_v32 = vld [vmem:[%s12381_s7 + $0x2f4] sm:$0xf0]  ;;  %v8834_v39 = vor.u32 %v10739_v27, %v8833_v26  ;;  %v8954_v40 = vor.u32 %v10769_v29, %v8953_v28  ;;  %v8945_v43 = vld [vmem:[%s12381_s7 + $0x260] sm:$0xf] }
 0x230   : > { %7649 = vmatpush.bf16.msra.mxu0 %v8658_v4  ;;  %v9081_v33 = vld [vmem:[%s12381_s7 + $0x370] sm:$0xf]  ;;  %v10801_v34 = vld [vmem:[%s12381_s7 + $0x374] sm:$0xf0]  ;;  %v9018_v41 = vor.u32 %v10785_v32, %v9017_v30  ;;  %v10767_v44 = vld [vmem:[%s12381_s7 + $0x264] sm:$0xf0] }
 0x231   : > { %7662 = vmatpush.bf16.msra.mxu1 %v8722_v5  ;;  %v9145_v37 = vld [vmem:[%s12381_s7 + $0x3f0] sm:$0xf]  ;;  %v10817_v38 = vld [vmem:[%s12381_s7 + $0x3f4] sm:$0xf0]  ;;  %v9082_v42 = vor.u32 %v10801_v34, %v9081_v33  ;;  %v9009_v45 = vld [vmem:[%s12381_s7 + $0x2e0] sm:$0xf]  ;;  %v8946_v52 = vor.u32 %v10767_v44, %v8945_v43 }
 0x232   : > { %7675 = vmatpush.bf16.msra.mxu2 %v8786_v6  ;;  %v9146_v46 = vor.u32 %v10817_v38, %v9145_v37  ;;  %v10783_v47 = vld [vmem:[%s12381_s7 + $0x2e4] sm:$0xf0]  ;;  %v9073_v48 = vld [vmem:[%s12381_s7 + $0x360] sm:$0xf]  ;;  %v8937_v53 = vld [vmem:[%s12381_s7 + $0x250] sm:$0xf] }
 0x233   : > { %7688 = vmatpush.bf16.msra.mxu3 %v8850_v10  ;;  %v10799_v49 = vld [vmem:[%s12381_s7 + $0x364] sm:$0xf0]  ;;  %v9137_v50 = vld [vmem:[%s12381_s7 + $0x3e0] sm:$0xf]  ;;  %v9010_v54 = vor.u32 %v10783_v47, %v9009_v45  ;;  %v10765_v56 = vld [vmem:[%s12381_s7 + $0x254] sm:$0xf0] }
 0x234   : > { %7650 = vmatpush.bf16.msra.mxu0 %v8650_v16  ;;  %v10815_v51 = vld [vmem:[%s12381_s7 + $0x3e4] sm:$0xf0]  ;;  %v9074_v55 = vor.u32 %v10799_v49, %v9073_v48  ;;  %v9001_v57 = vld [vmem:[%s12381_s7 + $0x2d0] sm:$0xf]  ;;  %v10781_v60 = vld [vmem:[%s12381_s7 + $0x2d4] sm:$0xf0]  ;;  %v8938_v3 = vor.u32 %v10765_v56, %v8937_v53 }
 0x235   : > { %7663 = vmatpush.bf16.msra.mxu1 %v8714_v19  ;;  %v4445_v58 = vld [vmem:[%s13643_s0 + $0x8] sm:$0xff]  ;;  %v9138_v59 = vor.u32 %v10815_v51, %v9137_v50  ;;  %v9065_v61 = vld [vmem:[%s12381_s7 + $0x350] sm:$0xf]  ;;  %v10797_v62 = vld [vmem:[%s12381_s7 + $0x354] sm:$0xf0]  ;;  %v9002_v7 = vor.u32 %v10781_v60, %v9001_v57 }
 0x236   : > { %7676 = vmatpush.bf16.msra.mxu2 %v8778_v20  ;;  %v4990_v63 = vunpack.c.l.b16 %v4445_v58  ;;  %v4991_v0 = vunpack.c.h.b16 %v4445_v58  ;;  %v9129_v1 = vld [vmem:[%s12381_s7 + $0x3d0] sm:$0xf]  ;;  %v10813_v2 = vld [vmem:[%s12381_s7 + $0x3d4] sm:$0xf0]  ;;  %v4444_v5 = vld [vmem:[%s13643_s0] sm:$0xff]  ;;  %v9066_v8 = vor.u32 %v10797_v62, %v9065_v61 }
 0x237   : > { %7689 = vmatpush.bf16.msra.mxu3 %v8842_v24  ;;  %v8929_v9 = vld [vmem:[%s12381_s7 + $0x240] sm:$0xf]  ;;  %v10763_v10 = vld [vmem:[%s12381_s7 + $0x244] sm:$0xf0]  ;;  %v4988_v12 = vunpack.c.l.b16 %v4444_v5  ;;  %v4989_v13 = vunpack.c.h.b16 %v4444_v5  ;;  %v9130_v14 = vor.u32 %v10813_v2, %v9129_v1  ;;  %v8921_v25 = vld [vmem:[%s12381_s7 + $0x230] sm:$0xf] }
 0x238   : > { %7651 = vmatpush.bf16.msra.mxu0 %v8642_v31  ;;  %v12474_v4 = vpack.c.b16 %v4990_v63, %v4990_v63  ;;  %v12479_v6 = vpack.c.b16 %v4991_v0, %v4991_v0  ;;  %v8993_v11 = vld [vmem:[%s12381_s7 + $0x2c0] sm:$0xf]  ;;  %v10779_v15 = vld [vmem:[%s12381_s7 + $0x2c4] sm:$0xf0]  ;;  %v8930_v22 = vor.u32 %v10763_v10, %v8929_v9  ;;  %v10761_v26 = vld [vmem:[%s12381_s7 + $0x234] sm:$0xf0] }
 0x239   : > { %7664 = vmatpush.bf16.msra.mxu1 %v8706_v35  ;;  %v9057_v16 = vld [vmem:[%s12381_s7 + $0x340] sm:$0xf]  ;;  %v10795_v17 = vld [vmem:[%s12381_s7 + $0x344] sm:$0xf0]  ;;  %v12490_v20 = vpack.c.b16 %v4988_v12, %v4988_v12  ;;  %v12493_v21 = vpack.c.b16 %v4989_v13, %v4989_v13  ;;  %v8994_v23 = vor.u32 %v10779_v15, %v8993_v11  ;;  %v8985_v27 = vld [vmem:[%s12381_s7 + $0x2b0] sm:$0xf]  ;;  %v8922_v34 = vor.u32 %v10761_v26, %v8921_v25 }
 0x23a   : > { %7677 = vmatpush.bf16.msra.mxu2 %v8770_v36  ;;  %v9121_v18 = vld [vmem:[%s12381_s7 + $0x3c0] sm:$0xf]  ;;  %v10811_v19 = vld [vmem:[%s12381_s7 + $0x3c4] sm:$0xf0]  ;;  %v9058_v24 = vor.u32 %v10795_v17, %v9057_v16  ;;  %v10777_v29 = vld [vmem:[%s12381_s7 + $0x2b4] sm:$0xf0] }
 0x23b   : > { %7690 = vmatpush.bf16.msra.mxu3 %v8834_v39  ;;  %v9122_v28 = vor.u32 %v10811_v19, %v9121_v18  ;;  %v9049_v30 = vld [vmem:[%s12381_s7 + $0x330] sm:$0xf]  ;;  %v10793_v31 = vld [vmem:[%s12381_s7 + $0x334] sm:$0xf0]  ;;  %7652 = vmatmul.bf16.vlgmr.msra.gmra.mxu0 %v12490_v20  ;;  %v8986_v35 = vor.u32 %v10777_v29, %v8985_v27  ;;  %v8913_v37 = vld [vmem:[%s12381_s7 + $0x220] sm:$0xf] }
 0x23c   : > { %7696 = vmatpush.bf16.msrb.mxu0 %v8954_v40  ;;  %v9113_v32 = vld [vmem:[%s12381_s7 + $0x3b0] sm:$0xf]  ;;  %v10809_v33 = vld [vmem:[%s12381_s7 + $0x3b4] sm:$0xf0]  ;;  %7665 = vmatmul.bf16.vlgmr.msra.gmra.mxu1 %v12493_v21  ;;  %v9050_v36 = vor.u32 %v10793_v31, %v9049_v30  ;;  %v10759_v38 = vld [vmem:[%s12381_s7 + $0x224] sm:$0xf0] }
 0x23d   : > { %7709 = vmatpush.bf16.msrb.mxu1 %v9018_v41  ;;  %7678 = vmatmul.bf16.vlgmr.msra.gmra.mxu2 %v12474_v4  ;;  %v8977_v39 = vld [vmem:[%s12381_s7 + $0x2a0] sm:$0xf]  ;;  %v9114_v40 = vor.u32 %v10809_v33, %v9113_v32  ;;  %v10775_v41 = vld [vmem:[%s12381_s7 + $0x2a4] sm:$0xf0]  ;;  %v8905_v49 = vld [vmem:[%s12381_s7 + $0x210] sm:$0xf] }
 0x23e   : > { %7722 = vmatpush.bf16.msrb.mxu2 %v9082_v42  ;;  %7691 = vmatmul.bf16.vlgmr.msra.gmra.mxu3 %v12479_v6  ;;  %v9041_v42 = vld [vmem:[%s12381_s7 + $0x320] sm:$0xf]  ;;  %v10791_v43 = vld [vmem:[%s12381_s7 + $0x324] sm:$0xf0]  ;;  %v8978_v47 = vor.u32 %v10775_v41, %v8977_v39  ;;  %v10757_v50 = vld [vmem:[%s12381_s7 + $0x214] sm:$0xf0] }
 0x23f   : > { %7735 = vmatpush.bf16.msrb.mxu3 %v9146_v46  ;;  %v9105_v44 = vld [vmem:[%s12381_s7 + $0x3a0] sm:$0xf]  ;;  %v10807_v45 = vld [vmem:[%s12381_s7 + $0x3a4] sm:$0xf0]  ;;  %v8914_v46 = vor.u32 %v10759_v38, %v8913_v37  ;;  %v9042_v48 = vor.u32 %v10791_v43, %v9041_v42  ;;  %v8969_v51 = vld [vmem:[%s12381_s7 + $0x290] sm:$0xf] }
 0x240   : > { %7697 = vmatpush.bf16.msrb.mxu0 %v8946_v52  ;;  %v9106_v52 = vor.u32 %v10807_v45, %v9105_v44  ;;  %v10773_v53 = vld [vmem:[%s12381_s7 + $0x294] sm:$0xf0]  ;;  %v9097_v56 = vld [vmem:[%s12381_s7 + $0x390] sm:$0xf]  ;;  %v8897_v58 = vld [vmem:[%s12381_s7 + $0x200] sm:$0xf] }
 0x241   : > { %7710 = vmatpush.bf16.msrb.mxu1 %v9010_v54  ;;  %v9033_v54 = vld [vmem:[%s12381_s7 + $0x310] sm:$0xf]  ;;  %v10805_v57 = vld [vmem:[%s12381_s7 + $0x394] sm:$0xf0]  ;;  %v10755_v60 = vld [vmem:[%s12381_s7 + $0x204] sm:$0xf0]  ;;  %v8970_v63 = vor.u32 %v10773_v53, %v8969_v51 }
 0x242   : > { %7723 = vmatpush.bf16.msrb.mxu2 %v9074_v55  ;;  %v10789_v55 = vld [vmem:[%s12381_s7 + $0x314] sm:$0xf0]  ;;  %v8961_v61 = vld [vmem:[%s12381_s7 + $0x280] sm:$0xf]  ;;  %v10771_v62 = vld [vmem:[%s12381_s7 + $0x284] sm:$0xf0]  ;;  %v9098_v5 = vor.u32 %v10805_v57, %v9097_v56  ;;  %v8898_v13 = vor.u32 %v10755_v60, %v8897_v58 }
 0x243   : > { %7736 = vmatpush.bf16.msrb.mxu3 %v9138_v59  ;;  %v8906_v59 = vor.u32 %v10757_v50, %v8905_v49  ;;  %v9034_v0 = vor.u32 %v10789_v55, %v9033_v54  ;;  %v9025_v1 = vld [vmem:[%s12381_s7 + $0x300] sm:$0xf]  ;;  %v10787_v2 = vld [vmem:[%s12381_s7 + $0x304] sm:$0xf0]  ;;  %v4446_v9 = vld [vmem:[%s13643_s0 + $0x10] sm:$0xff]  ;;  %v8962_v18 = vor.u32 %v10771_v62, %v8961_v61 }
 0x244   : > { %7698 = vmatpush.bf16.msrb.mxu0 %v8938_v3  ;;  %v4447_v3 = vld [vmem:[%s13643_s0 + $0x18] sm:$0xff]  ;;  %v9209_v10 = vld [vmem:[%s12381_s7 + $0x470] sm:$0xf]  ;;  %v9026_v19 = vor.u32 %v10787_v2, %v9025_v1  ;;  %v9201_v31 = vld [vmem:[%s12381_s7 + $0x460] sm:$0xf] }
 0x245   : > { %7711 = vmatpush.bf16.msrb.mxu1 %v9002_v7  ;;  %v9089_v7 = vld [vmem:[%s12381_s7 + $0x380] sm:$0xf]  ;;  %v10833_v11 = vld [vmem:[%s12381_s7 + $0x474] sm:$0xf0]  ;;  %v9273_v12 = vld [vmem:[%s12381_s7 + $0x4f0] sm:$0xf]  ;;  %v4994_v17 = vunpack.c.l.b16 %v4447_v3  ;;  %v4995_v25 = vunpack.c.h.b16 %v4447_v3 }
 0x246   : > { %7724 = vmatpush.bf16.msrb.mxu2 %v9066_v8  ;;  %v10803_v8 = vld [vmem:[%s12381_s7 + $0x384] sm:$0xf0]  ;;  %v9337_v15 = vld [vmem:[%s12381_s7 + $0x570] sm:$0xf]  ;;  %v10865_v16 = vld [vmem:[%s12381_s7 + $0x574] sm:$0xf0]  ;;  %v9210_v27 = vor.u32 %v10833_v11, %v9209_v10 }
 0x247   : > { %7737 = vmatpush.bf16.msrb.mxu3 %v9130_v14  ;;  %v10849_v14 = vld [vmem:[%s12381_s7 + $0x4f4] sm:$0xf0]  ;;  %v9090_v26 = vor.u32 %v10803_v8, %v9089_v7  ;;  %v9338_v30 = vor.u32 %v10865_v16, %v9337_v15  ;;  %v10831_v32 = vld [vmem:[%s12381_s7 + $0x464] sm:$0xf0]  ;;  %v9265_v33 = vld [vmem:[%s12381_s7 + $0x4e0] sm:$0xf]  ;;  %v12549_v38 = vpack.c.b16 %v4994_v17, %v4994_v17  ;;  %v12555_v42 = vpack.c.b16 %v4995_v25, %v4995_v25 }
 0x248   : > { %7699 = vmatpush.bf16.msrb.mxu0 %v8930_v22  ;;  %v9401_v22 = vld [vmem:[%s12381_s7 + $0x5f0] sm:$0xf]  ;;  %v9274_v29 = vor.u32 %v10849_v14, %v9273_v12  ;;  %v10863_v37 = vld [vmem:[%s12381_s7 + $0x564] sm:$0xf0]  ;;  %v9393_v39 = vld [vmem:[%s12381_s7 + $0x5e0] sm:$0xf]  ;;  %v9202_v43 = vor.u32 %v10831_v32, %v9201_v31 }
 0x249   : > { %7712 = vmatpush.bf16.msrb.mxu1 %v8994_v23  ;;  %v10881_v23 = vld [vmem:[%s12381_s7 + $0x5f4] sm:$0xf0]  ;;  %v9257_v49 = vld [vmem:[%s12381_s7 + $0x4d0] sm:$0xf]  ;;  %v10827_v60 = vld [vmem:[%s12381_s7 + $0x444] sm:$0xf0] }
 0x24a   : > { %7725 = vmatpush.bf16.msrb.mxu2 %v9058_v24  ;;  %v4992_v24 = vunpack.c.l.b16 %v4446_v9  ;;  %v10845_v51 = vld [vmem:[%s12381_s7 + $0x4d4] sm:$0xf0]  ;;  %v9385_v54 = vld [vmem:[%s12381_s7 + $0x5d0] sm:$0xf]  ;;  %v9249_v61 = vld [vmem:[%s12381_s7 + $0x4c0] sm:$0xf] }
 0x24b   : > { %7738 = vmatpush.bf16.msrb.mxu3 %v9122_v28  ;;  %v4993_v28 = vunpack.c.h.b16 %v4446_v9  ;;  %v10861_v53 = vld [vmem:[%s12381_s7 + $0x554] sm:$0xf0]  ;;  %v9258_v57 = vor.u32 %v10845_v51, %v9257_v49  ;;  %v10859_v1 = vld [vmem:[%s12381_s7 + $0x544] sm:$0xf0]  ;;  %v9377_v2 = vld [vmem:[%s12381_s7 + $0x5c0] sm:$0xf] }
 0x24c   : > { %7700 = vmatpush.bf16.msrb.mxu0 %v8922_v34  ;;  %v9402_v34 = vor.u32 %v10881_v23, %v9401_v22  ;;  %v12553_v41 = vpack.c.b16 %v4992_v24, %v4992_v24  ;;  %v10877_v55 = vld [vmem:[%s12381_s7 + $0x5d4] sm:$0xf0]  ;;  %v10875_v3 = vld [vmem:[%s12381_s7 + $0x5c4] sm:$0xf0]  ;;  %v9177_v9 = vld [vmem:[%s12381_s7 + $0x430] sm:$0xf] }
 0x24d   : > { %7713 = vmatpush.bf16.msrb.mxu1 %v8986_v35  ;;  %v10847_v35 = vld [vmem:[%s12381_s7 + $0x4e4] sm:$0xf0]  ;;  %v12557_v44 = vpack.c.b16 %v4993_v28, %v4993_v28  ;;  %v9386_v62 = vor.u32 %v10877_v55, %v9385_v54  ;;  %v10825_v10 = vld [vmem:[%s12381_s7 + $0x434] sm:$0xf0]  ;;  %v9241_v11 = vld [vmem:[%s12381_s7 + $0x4b0] sm:$0xf]  ;;  %v9378_v12 = vor.u32 %v10875_v3, %v9377_v2 }
 0x24e   : > { %7726 = vmatpush.bf16.msrb.mxu2 %v9050_v36  ;;  %v9329_v36 = vld [vmem:[%s12381_s7 + $0x560] sm:$0xf]  ;;  %v9266_v45 = vor.u32 %v10847_v35, %v9265_v33  ;;  %v9305_v14 = vld [vmem:[%s12381_s7 + $0x530] sm:$0xf]  ;;  %v10857_v15 = vld [vmem:[%s12381_s7 + $0x534] sm:$0xf0] }
 0x24f   : > { %7739 = vmatpush.bf16.msrb.mxu3 %v9114_v40  ;;  %v10879_v40 = vld [vmem:[%s12381_s7 + $0x5e4] sm:$0xf0]  ;;  %v9369_v16 = vld [vmem:[%s12381_s7 + $0x5b0] sm:$0xf]  ;;  %v10873_v17 = vld [vmem:[%s12381_s7 + $0x5b4] sm:$0xf0]  ;;  %v9306_v22 = vor.u32 %v10857_v15, %v9305_v14 }
 0x250   : > { %7701 = vmatpush.bf16.msrb.mxu0 %v8914_v46  ;;  %v9330_v46 = vor.u32 %v10863_v37, %v9329_v36  ;;  %v9394_v50 = vor.u32 %v10879_v40, %v9393_v39  ;;  %v9169_v23 = vld [vmem:[%s12381_s7 + $0x420] sm:$0xf]  ;;  %v10823_v24 = vld [vmem:[%s12381_s7 + $0x424] sm:$0xf0]  ;;  %v9161_v35 = vld [vmem:[%s12381_s7 + $0x410] sm:$0xf] }
 0x251   : > { %7714 = vmatpush.bf16.msrb.mxu1 %v8978_v47  ;;  %v9193_v47 = vld [vmem:[%s12381_s7 + $0x450] sm:$0xf]  ;;  %v9233_v25 = vld [vmem:[%s12381_s7 + $0x4a0] sm:$0xf]  ;;  %v10871_v31 = vld [vmem:[%s12381_s7 + $0x5a4] sm:$0xf0]  ;;  %v9170_v32 = vor.u32 %v10823_v24, %v9169_v23 }
 0x252   : > { %7727 = vmatpush.bf16.msrb.mxu2 %v9042_v48  ;;  %v10829_v48 = vld [vmem:[%s12381_s7 + $0x454] sm:$0xf0]  ;;  %v9297_v28 = vld [vmem:[%s12381_s7 + $0x520] sm:$0xf]  ;;  %v9225_v37 = vld [vmem:[%s12381_s7 + $0x490] sm:$0xf] }
 0x253   : > { %7740 = vmatpush.bf16.msrb.mxu3 %v9106_v52  ;;  %v9321_v52 = vld [vmem:[%s12381_s7 + $0x550] sm:$0xf]  ;;  %v9194_v56 = vor.u32 %v10829_v48, %v9193_v47  ;;  %v10821_v36 = vld [vmem:[%s12381_s7 + $0x414] sm:$0xf0]  ;;  %v9153_v48 = vld [vmem:[%s12381_s7 + $0x400] sm:$0xf] }
 0x254   : > { %7702 = vmatpush.bf16.msrb.mxu0 %v8906_v59  ;;  %v9322_v58 = vor.u32 %v10861_v53, %v9321_v52  ;;  %v9185_v59 = vld [vmem:[%s12381_s7 + $0x440] sm:$0xf]  ;;  %v10837_v40 = vld [vmem:[%s12381_s7 + $0x494] sm:$0xf0]  ;;  %v9162_v49 = vor.u32 %v10821_v36, %v9161_v35  ;;  %v10835_v52 = vld [vmem:[%s12381_s7 + $0x484] sm:$0xf0] }
 0x255   : > { %7715 = vmatpush.bf16.msrb.mxu1 %v8970_v63  ;;  %v10843_v63 = vld [vmem:[%s12381_s7 + $0x4c4] sm:$0xf0]  ;;  %v10869_v47 = vld [vmem:[%s12381_s7 + $0x594] sm:$0xf0]  ;;  %v9217_v51 = vld [vmem:[%s12381_s7 + $0x480] sm:$0xf]  ;;  %v9226_v53 = vor.u32 %v10837_v40, %v9225_v37 }
 0x256   : > { %7728 = vmatpush.bf16.msrb.mxu2 %v9034_v0  ;;  %v9313_v0 = vld [vmem:[%s12381_s7 + $0x540] sm:$0xf]  ;;  %v9250_v7 = vor.u32 %v10843_v63, %v9249_v61  ;;  %v4449_v61 = vld [vmem:[%s13643_s0 + $0x28] sm:$0xff]  ;;  %v10897_v63 = vld [vmem:[%s12381_s7 + $0x674] sm:$0xf0] }
 0x257   : > { %7741 = vmatpush.bf16.msrb.mxu3 %v9098_v5  ;;  %v9186_v5 = vor.u32 %v10827_v60, %v9185_v59  ;;  %v9314_v8 = vor.u32 %v10859_v1, %v9313_v0  ;;  %v9281_v55 = vld [vmem:[%s12381_s7 + $0x500] sm:$0xf]  ;;  %v10867_v60 = vld [vmem:[%s12381_s7 + $0x584] sm:$0xf0]  ;;  %v9529_v0 = vld [vmem:[%s12381_s7 + $0x6f0] sm:$0xf] }
 0x258   : > { %7703 = vmatpush.bf16.msrb.mxu0 %v8898_v13  ;;  %v10841_v13 = vld [vmem:[%s12381_s7 + $0x4b4] sm:$0xf0]  ;;  %v9345_v59 = vld [vmem:[%s12381_s7 + $0x580] sm:$0xf]  ;;  %v9593_v3 = vld [vmem:[%s12381_s7 + $0x770] sm:$0xf] }
 0x259   : > { %7716 = vmatpush.bf16.msrb.mxu1 %v8962_v18  ;;  %v9178_v18 = vor.u32 %v10825_v10, %v9177_v9  ;;  %v10913_v2 = vld [vmem:[%s12381_s7 + $0x6f4] sm:$0xf0]  ;;  %v9657_v10 = vld [vmem:[%s12381_s7 + $0x7f0] sm:$0xf]  ;;  %v9346_v14 = vor.u32 %v10867_v60, %v9345_v59  ;;  %v9521_v23 = vld [vmem:[%s12381_s7 + $0x6e0] sm:$0xf] }
 0x25a   : > { %7729 = vmatpush.bf16.msrb.mxu2 %v9026_v19  ;;  %v9242_v19 = vor.u32 %v10841_v13, %v9241_v11  ;;  %v10945_v11 = vld [vmem:[%s12381_s7 + $0x7f4] sm:$0xf0]  ;;  %v9449_v37 = vld [vmem:[%s12381_s7 + $0x650] sm:$0xf]  ;;  %v10923_v59 = vld [vmem:[%s12381_s7 + $0x744] sm:$0xf0] }
 0x25b   : > { %7742 = vmatpush.bf16.msrb.mxu3 %v9090_v26  ;;  %7704 = vmatmul.bf16.vlgmr.msrb.gmra.mxu0 %v12553_v41  ;;  %v9370_v26 = vor.u32 %v10873_v17, %v9369_v16  ;;  %v4999_v16 = vunpack.c.h.b16 %v4449_v61  ;;  %v9530_v17 = vor.u32 %v10913_v2, %v9529_v0  ;;  %v9658_v24 = vor.u32 %v10945_v11, %v9657_v10  ;;  %v9513_v40 = vld [vmem:[%s12381_s7 + $0x6d0] sm:$0xf]  ;;  %v9633_v60 = vld [vmem:[%s12381_s7 + $0x7c0] sm:$0xf]  ;;  %v10889_v2 = vld [vmem:[%s12381_s7 + $0x634] sm:$0xf0] }
 0x25c   : > { %7748 = vmatpush.bf16.msra.mxu0 %v9210_v27  ;;  %7717 = vmatmul.bf16.vlgmr.msrb.gmra.mxu1 %v12557_v44  ;;  %v10839_v27 = vld [vmem:[%s12381_s7 + $0x4a4] sm:$0xf0]  ;;  %v9625_v10 = vld [vmem:[%s12381_s7 + $0x7b0] sm:$0xf]  ;;  %v10937_v11 = vld [vmem:[%s12381_s7 + $0x7b4] sm:$0xf0] }
 0x25d   : > { %7761 = vmatpush.bf16.msra.mxu1 %v9274_v29  ;;  %7730 = vmatmul.bf16.vlgmr.msrb.gmra.mxu2 %v12549_v38  ;;  %v10855_v29 = vld [vmem:[%s12381_s7 + $0x524] sm:$0xf0]  ;;  %v9234_v33 = vor.u32 %v10839_v27, %v9233_v25  ;;  %v9585_v27 = vld [vmem:[%s12381_s7 + $0x760] sm:$0xf] }
 0x25e   : > { %7774 = vmatpush.bf16.msra.mxu2 %v9338_v30  ;;  %7743 = vmatmul.bf16.vlgmr.msrb.gmra.mxu3 %v12555_v42  ;;  %v9361_v30 = vld [vmem:[%s12381_s7 + $0x5a0] sm:$0xf] }
 0x25f   : > { %7787 = vmatpush.bf16.msra.mxu3 %v9402_v34  ;;  %v9298_v34 = vor.u32 %v10855_v29, %v9297_v28  ;;  %v9362_v39 = vor.u32 %v10871_v31, %v9361_v30  ;;  %v10927_v28 = vld [vmem:[%s12381_s7 + $0x764] sm:$0xf0]  ;;  %v9649_v31 = vld [vmem:[%s12381_s7 + $0x7e0] sm:$0xf] }
 0x260   : > { %7749 = vmatpush.bf16.msra.mxu0 %v9202_v43  ;;  %v9289_v43 = vld [vmem:[%s12381_s7 + $0x510] sm:$0xf]  ;;  %v9586_v36 = vor.u32 %v10927_v28, %v9585_v27 }
 0x261   : > { %7762 = vmatpush.bf16.msra.mxu1 %v9266_v45  ;;  %v10853_v45 = vld [vmem:[%s12381_s7 + $0x514] sm:$0xf0] }
 0x262   : > { %7775 = vmatpush.bf16.msra.mxu2 %v9330_v46  ;;  %v9353_v46 = vld [vmem:[%s12381_s7 + $0x590] sm:$0xf]  ;;  %v9290_v54 = vor.u32 %v10853_v45, %v9289_v43  ;;  %v10909_v45 = vld [vmem:[%s12381_s7 + $0x6d4] sm:$0xf0] }
 0x263   : > { %7788 = vmatpush.bf16.msra.mxu3 %v9394_v50  ;;  %v10819_v50 = vld [vmem:[%s12381_s7 + $0x404] sm:$0xf0] }
 0x264   : > { %7750 = vmatpush.bf16.msra.mxu0 %v9194_v56  ;;  %v10851_v56 = vld [vmem:[%s12381_s7 + $0x504] sm:$0xf0]  ;;  %v9154_v1 = vor.u32 %v10819_v50, %v9153_v48  ;;  %v9641_v48 = vld [vmem:[%s12381_s7 + $0x7d0] sm:$0xf] }
 0x265   : > { %7763 = vmatpush.bf16.msra.mxu1 %v9258_v57  ;;  %v4448_v57 = vld [vmem:[%s13643_s0 + $0x20] sm:$0xff]  ;;  %v9282_v9 = vor.u32 %v10851_v56, %v9281_v55 }
 0x266   : > { %7776 = vmatpush.bf16.msra.mxu2 %v9322_v58  ;;  %v9354_v58 = vor.u32 %v10869_v47, %v9353_v46  ;;  %v4997_v13 = vunpack.c.h.b16 %v4448_v57  ;;  %v9577_v46 = vld [vmem:[%s12381_s7 + $0x750] sm:$0xf]  ;;  %v10925_v47 = vld [vmem:[%s12381_s7 + $0x754] sm:$0xf0]  ;;  %v9505_v55 = vld [vmem:[%s12381_s7 + $0x6c0] sm:$0xf] }
 0x267   : > { %7789 = vmatpush.bf16.msra.mxu3 %v9386_v62  ;;  %v9465_v62 = vld [vmem:[%s12381_s7 + $0x670] sm:$0xf] }
 0x268   : > { %7751 = vmatpush.bf16.msra.mxu0 %v9186_v5  ;;  %v10929_v5 = vld [vmem:[%s12381_s7 + $0x774] sm:$0xf0]  ;;  %v9466_v15 = vor.u32 %v10897_v63, %v9465_v62  ;;  %v12635_v30 = vpack.c.b16 %v4997_v13, %v4997_v13 }
 0x269   : > { %7764 = vmatpush.bf16.msra.mxu1 %v9250_v7  ;;  %v4996_v7 = vunpack.c.l.b16 %v4448_v57  ;;  %v10907_v57 = vld [vmem:[%s12381_s7 + $0x6c4] sm:$0xf0] }
 0x26a   : > { %7777 = vmatpush.bf16.msra.mxu2 %v9314_v8  ;;  %v9218_v8 = vor.u32 %v10835_v52, %v9217_v51  ;;  %v9514_v51 = vor.u32 %v10909_v45, %v9513_v40  ;;  %v9578_v52 = vor.u32 %v10925_v47, %v9577_v46  ;;  %v9506_v63 = vor.u32 %v10907_v57, %v9505_v55  ;;  %v10917_v40 = vld [vmem:[%s12381_s7 + $0x714] sm:$0xf0]  ;;  %v9409_v46 = vld [vmem:[%s12381_s7 + $0x600] sm:$0xf]  ;;  %v4450_v55 = vld [vmem:[%s13643_s0 + $0x30] sm:$0xff] }
 0x26b   : > { %7790 = vmatpush.bf16.msra.mxu3 %v9378_v12  ;;  %v4998_v12 = vunpack.c.l.b16 %v4449_v61  ;;  %v12628_v25 = vpack.c.b16 %v4996_v7, %v4996_v7  ;;  %v10939_v61 = vld [vmem:[%s12381_s7 + $0x7c4] sm:$0xf0]  ;;  %v10905_v7 = vld [vmem:[%s12381_s7 + $0x6b4] sm:$0xf0]  ;;  %v9601_v57 = vld [vmem:[%s12381_s7 + $0x780] sm:$0xf] }
 0x26c   : > { %7752 = vmatpush.bf16.msra.mxu0 %v9178_v18  ;;  %v9594_v18 = vor.u32 %v10929_v5, %v9593_v3  ;;  %v9497_v3 = vld [vmem:[%s12381_s7 + $0x6b0] sm:$0xf]  ;;  %v9634_v5 = vor.u32 %v10939_v61, %v9633_v60  ;;  %v10933_v45 = vld [vmem:[%s12381_s7 + $0x794] sm:$0xf0] }
 0x26d   : > { %7765 = vmatpush.bf16.msra.mxu1 %v9242_v19  ;;  %v9457_v19 = vld [vmem:[%s12381_s7 + $0x660] sm:$0xf]  ;;  %v12633_v29 = vpack.c.b16 %v4998_v12, %v4998_v12  ;;  %v9498_v13 = vor.u32 %v10905_v7, %v9497_v3  ;;  %v9721_v60 = vld [vmem:[%s12381_s7 + $0x870] sm:$0xf]  ;;  %v10961_v61 = vld [vmem:[%s12381_s7 + $0x874] sm:$0xf0]  ;;  %v5000_v3 = vunpack.c.l.b16 %v4450_v55 }
 0x26e   : > { %7778 = vmatpush.bf16.msra.mxu2 %v9306_v22  ;;  %v10895_v22 = vld [vmem:[%s12381_s7 + $0x664] sm:$0xf0] }
 0x26f   : > { %7791 = vmatpush.bf16.msra.mxu3 %v9370_v26  ;;  %v10911_v26 = vld [vmem:[%s12381_s7 + $0x6e4] sm:$0xf0] }
 0x270   : > { %7753 = vmatpush.bf16.msra.mxu0 %v9170_v32  ;;  %v10943_v32 = vld [vmem:[%s12381_s7 + $0x7e4] sm:$0xf0]  ;;  %v9522_v35 = vor.u32 %v10911_v26, %v9521_v23 }
 0x271   : > { %7766 = vmatpush.bf16.msra.mxu1 %v9234_v33  ;;  %v12639_v33 = vpack.c.b16 %v4999_v16, %v4999_v16  ;;  %v9650_v43 = vor.u32 %v10943_v32, %v9649_v31  ;;  %v10887_v16 = vld [vmem:[%s12381_s7 + $0x624] sm:$0xf0]  ;;  %v9417_v32 = vld [vmem:[%s12381_s7 + $0x610] sm:$0xf] }
 0x272   : > { %7779 = vmatpush.bf16.msra.mxu2 %v9298_v34  ;;  %v9458_v34 = vor.u32 %v10895_v22, %v9457_v19  ;;  %v10903_v19 = vld [vmem:[%s12381_s7 + $0x6a4] sm:$0xf0]  ;;  %v9553_v22 = vld [vmem:[%s12381_s7 + $0x720] sm:$0xf] }
 0x273   : > { %7792 = vmatpush.bf16.msra.mxu3 %v9362_v39  ;;  %v10893_v39 = vld [vmem:[%s12381_s7 + $0x654] sm:$0xf0]  ;;  %v10919_v23 = vld [vmem:[%s12381_s7 + $0x724] sm:$0xf0] }
 0x274   : > { %7754 = vmatpush.bf16.msra.mxu0 %v9162_v49  ;;  %v10941_v49 = vld [vmem:[%s12381_s7 + $0x7d4] sm:$0xf0]  ;;  %v9450_v50 = vor.u32 %v10893_v39, %v9449_v37  ;;  %v10935_v26 = vld [vmem:[%s12381_s7 + $0x7a4] sm:$0xf0]  ;;  %v9554_v31 = vor.u32 %v10919_v23, %v9553_v22  ;;  %v9545_v39 = vld [vmem:[%s12381_s7 + $0x710] sm:$0xf]  ;;  %v12710_v23 = vpack.c.b16 %v5000_v3, %v5000_v3 }
 0x275   : > { %7767 = vmatpush.bf16.msra.mxu1 %v9226_v53  ;;  %v9441_v53 = vld [vmem:[%s12381_s7 + $0x640] sm:$0xf]  ;;  %v9642_v56 = vor.u32 %v10941_v49, %v9641_v48  ;;  %v10901_v37 = vld [vmem:[%s12381_s7 + $0x694] sm:$0xf0]  ;;  %v10883_v48 = vld [vmem:[%s12381_s7 + $0x604] sm:$0xf0] }
 0x276   : > { %7780 = vmatpush.bf16.msra.mxu2 %v9290_v54  ;;  %v10891_v54 = vld [vmem:[%s12381_s7 + $0x644] sm:$0xf0]  ;;  %v9473_v49 = vld [vmem:[%s12381_s7 + $0x680] sm:$0xf]  ;;  %v9689_v3 = vld [vmem:[%s12381_s7 + $0x830] sm:$0xf] }
 0x277   : > { %7793 = vmatpush.bf16.msra.mxu3 %v9354_v58  ;;  %v9569_v58 = vld [vmem:[%s12381_s7 + $0x740] sm:$0xf]  ;;  %v9442_v62 = vor.u32 %v10891_v54, %v9441_v53  ;;  %v10915_v54 = vld [vmem:[%s12381_s7 + $0x704] sm:$0xf0] }
 0x278   : > { %7755 = vmatpush.bf16.msra.mxu0 %v9154_v1  ;;  %v9570_v0 = vor.u32 %v10923_v59, %v9569_v58  ;;  %v9433_v1 = vld [vmem:[%s12381_s7 + $0x630] sm:$0xf]  ;;  %v9537_v53 = vld [vmem:[%s12381_s7 + $0x700] sm:$0xf]  ;;  %v10931_v58 = vld [vmem:[%s12381_s7 + $0x784] sm:$0xf0] }
 0x279   : > { %7768 = vmatpush.bf16.msra.mxu1 %v9218_v8  ;;  %v9561_v8 = vld [vmem:[%s12381_s7 + $0x730] sm:$0xf]  ;;  %v9434_v12 = vor.u32 %v10889_v2, %v9433_v1  ;;  %v4451_v59 = vld [vmem:[%s13643_s0 + $0x38] sm:$0xff]  ;;  %v9538_v7 = vor.u32 %v10915_v54, %v9537_v53 }
 0x27a   : > { %7781 = vmatpush.bf16.msra.mxu2 %v9282_v9  ;;  %v10921_v9 = vld [vmem:[%s12381_s7 + $0x734] sm:$0xf0]  ;;  %v9849_v1 = vld [vmem:[%s12381_s7 + $0x970] sm:$0xf] }
 0x27b   : > { %7794 = vmatpush.bf16.msra.mxu3 %v9346_v14  ;;  %7756 = vmatmul.bf16.vlgmr.msra.gmra.mxu0 %v12628_v25  ;;  %v9562_v14 = vor.u32 %v10921_v9, %v9561_v8  ;;  %v10993_v2 = vld [vmem:[%s12381_s7 + $0x974] sm:$0xf0]  ;;  %v9913_v8 = vld [vmem:[%s12381_s7 + $0x9f0] sm:$0xf] }
 0x27c   : > { %7800 = vmatpush.bf16.msrb.mxu0 %v9466_v15  ;;  %7769 = vmatmul.bf16.vlgmr.msra.gmra.mxu1 %v12635_v30  ;;  %v9425_v15 = vld [vmem:[%s12381_s7 + $0x620] sm:$0xf]  ;;  %v11009_v9 = vld [vmem:[%s12381_s7 + $0x9f4] sm:$0xf0] }
 0x27d   : > { %7813 = vmatpush.bf16.msrb.mxu1 %v9530_v17  ;;  %7782 = vmatmul.bf16.vlgmr.msra.gmra.mxu2 %v12633_v29  ;;  %v9489_v17 = vld [vmem:[%s12381_s7 + $0x6a0] sm:$0xf]  ;;  %v9426_v27 = vor.u32 %v10887_v16, %v9425_v15  ;;  %v9850_v16 = vor.u32 %v10993_v2, %v9849_v1  ;;  %v9914_v22 = vor.u32 %v11009_v9, %v9913_v8  ;;  %v10969_v9 = vld [vmem:[%s12381_s7 + $0x8b4] sm:$0xf0] }
 0x27e   : > { %7826 = vmatpush.bf16.msrb.mxu2 %v9594_v18  ;;  %7795 = vmatmul.bf16.vlgmr.msra.gmra.mxu3 %v12639_v33  ;;  %v9626_v18 = vor.u32 %v10937_v11, %v9625_v10  ;;  %v9490_v28 = vor.u32 %v10903_v19, %v9489_v17  ;;  %v5002_v10 = vunpack.c.l.b16 %v4451_v59  ;;  %v5001_v11 = vunpack.c.h.b16 %v4450_v55  ;;  %v9713_v17 = vld [vmem:[%s12381_s7 + $0x860] sm:$0xf] }
 0x27f   : > { %7839 = vmatpush.bf16.msrb.mxu3 %v9658_v24  ;;  %v9617_v24 = vld [vmem:[%s12381_s7 + $0x7a0] sm:$0xf] }
 0x280   : > { %7801 = vmatpush.bf16.msrb.mxu0 %v9458_v34  ;;  %v10885_v34 = vld [vmem:[%s12381_s7 + $0x614] sm:$0xf0]  ;;  %v9777_v19 = vld [vmem:[%s12381_s7 + $0x8e0] sm:$0xf] }
 0x281   : > { %7814 = vmatpush.bf16.msrb.mxu1 %v9522_v35  ;;  %v9481_v35 = vld [vmem:[%s12381_s7 + $0x690] sm:$0xf]  ;;  %v9418_v47 = vor.u32 %v10885_v34, %v9417_v32  ;;  %v9905_v32 = vld [vmem:[%s12381_s7 + $0x9e0] sm:$0xf]  ;;  %v11007_v34 = vld [vmem:[%s12381_s7 + $0x9e4] sm:$0xf0] }
 0x282   : > { %7827 = vmatpush.bf16.msrb.mxu2 %v9586_v36  ;;  %v9618_v36 = vor.u32 %v10935_v26, %v9617_v24  ;;  %v10975_v24 = vld [vmem:[%s12381_s7 + $0x8e4] sm:$0xf0]  ;;  %v9841_v26 = vld [vmem:[%s12381_s7 + $0x960] sm:$0xf] }
 0x283   : > { %7840 = vmatpush.bf16.msrb.mxu3 %v9650_v43  ;;  %v9609_v43 = vld [vmem:[%s12381_s7 + $0x790] sm:$0xf]  ;;  %v9697_v55 = vld [vmem:[%s12381_s7 + $0x840] sm:$0xf] }
 0x284   : > { %7802 = vmatpush.bf16.msrb.mxu0 %v9450_v50  ;;  %v10899_v50 = vld [vmem:[%s12381_s7 + $0x684] sm:$0xf0] }
 0x285   : > { %7815 = vmatpush.bf16.msrb.mxu1 %v9514_v51  ;;  %v9482_v51 = vor.u32 %v10901_v37, %v9481_v35  ;;  %v9778_v37 = vor.u32 %v10975_v24, %v9777_v19  ;;  %v9745_v19 = vld [vmem:[%s12381_s7 + $0x8a0] sm:$0xf]  ;;  %v10967_v24 = vld [vmem:[%s12381_s7 + $0x8a4] sm:$0xf0] }
 0x286   : > { %7828 = vmatpush.bf16.msrb.mxu2 %v9578_v52  ;;  %v9546_v52 = vor.u32 %v10917_v40, %v9545_v39  ;;  %v9705_v40 = vld [vmem:[%s12381_s7 + $0x850] sm:$0xf] }
 0x287   : > { %7841 = vmatpush.bf16.msrb.mxu3 %v9642_v56  ;;  %v9610_v56 = vor.u32 %v10933_v45, %v9609_v43  ;;  %v10957_v43 = vld [vmem:[%s12381_s7 + $0x854] sm:$0xf0]  ;;  %v9769_v45 = vld [vmem:[%s12381_s7 + $0x8d0] sm:$0xf] }
 0x288   : > { %7803 = vmatpush.bf16.msrb.mxu0 %v9442_v62  ;;  %v9785_v62 = vld [vmem:[%s12381_s7 + $0x8f0] sm:$0xf] }
 0x289   : > { %7816 = vmatpush.bf16.msrb.mxu1 %v9506_v63  ;;  %v9410_v63 = vor.u32 %v10883_v48, %v9409_v46  ;;  %v9906_v46 = vor.u32 %v11007_v34, %v9905_v32  ;;  %v9833_v48 = vld [vmem:[%s12381_s7 + $0x950] sm:$0xf]  ;;  %v9873_v32 = vld [vmem:[%s12381_s7 + $0x9a0] sm:$0xf]  ;;  %v10999_v34 = vld [vmem:[%s12381_s7 + $0x9a4] sm:$0xf0] }
 0x28a   : > { %7829 = vmatpush.bf16.msrb.mxu2 %v9570_v0  ;;  %v10977_v0 = vld [vmem:[%s12381_s7 + $0x8f4] sm:$0xf0] }
 0x28b   : > { %7842 = vmatpush.bf16.msrb.mxu3 %v9634_v5  ;;  %v9474_v5 = vor.u32 %v10899_v50, %v9473_v49  ;;  %v9786_v15 = vor.u32 %v10977_v0, %v9785_v62  ;;  %v10989_v49 = vld [vmem:[%s12381_s7 + $0x954] sm:$0xf0]  ;;  %v9897_v50 = vld [vmem:[%s12381_s7 + $0x9d0] sm:$0xf]  ;;  %v9889_v62 = vld [vmem:[%s12381_s7 + $0x9c0] sm:$0xf] }
 0x28c   : > { %7804 = vmatpush.bf16.msrb.mxu0 %v9434_v12  ;;  %v9602_v12 = vor.u32 %v10931_v58, %v9601_v57  ;;  %v9834_v54 = vor.u32 %v10989_v49, %v9833_v48  ;;  %v9761_v57 = vld [vmem:[%s12381_s7 + $0x8c0] sm:$0xf]  ;;  %v9801_v48 = vld [vmem:[%s12381_s7 + $0x910] sm:$0xf]  ;;  %v10981_v49 = vld [vmem:[%s12381_s7 + $0x914] sm:$0xf0] }
 0x28d   : > { %7817 = vmatpush.bf16.msrb.mxu1 %v9498_v13  ;;  %v9722_v13 = vor.u32 %v10961_v61, %v9721_v60  ;;  %v9825_v60 = vld [vmem:[%s12381_s7 + $0x940] sm:$0xf]  ;;  %v10987_v61 = vld [vmem:[%s12381_s7 + $0x944] sm:$0xf0] }
 0x28e   : > { %7830 = vmatpush.bf16.msrb.mxu2 %v9562_v14  ;;  %v5003_v14 = vunpack.c.h.b16 %v4451_v59  ;;  %v10971_v59 = vld [vmem:[%s12381_s7 + $0x8c4] sm:$0xf0]  ;;  %v9826_v2 = vor.u32 %v10987_v61, %v9825_v60  ;;  %v4452_v61 = vld [vmem:[%s13643_s0 + $0x40] sm:$0xff] }
 0x28f   : > { %7843 = vmatpush.bf16.msrb.mxu3 %v9626_v18  ;;  %v10959_v18 = vld [vmem:[%s12381_s7 + $0x864] sm:$0xf0]  ;;  %v9762_v1 = vor.u32 %v10971_v59, %v9761_v57  ;;  %v9793_v59 = vld [vmem:[%s12381_s7 + $0x900] sm:$0xf] }
 0x290   : > { %7805 = vmatpush.bf16.msrb.mxu0 %v9426_v27  ;;  %v10991_v27 = vld [vmem:[%s12381_s7 + $0x964] sm:$0xf0]  ;;  %v12721_v35 = vpack.c.b16 %v5003_v14, %v5003_v14 }
 0x291   : > { %7818 = vmatpush.bf16.msrb.mxu1 %v9490_v28  ;;  %v12715_v28 = vpack.c.b16 %v5002_v10, %v5002_v10  ;;  %v9842_v39 = vor.u32 %v10991_v27, %v9841_v26  ;;  %v9817_v10 = vld [vmem:[%s12381_s7 + $0x930] sm:$0xf]  ;;  %v9809_v26 = vld [vmem:[%s12381_s7 + $0x920] sm:$0xf]  ;;  %v10983_v27 = vld [vmem:[%s12381_s7 + $0x924] sm:$0xf0] }
 0x292   : > { %7831 = vmatpush.bf16.msrb.mxu2 %v9554_v31  ;;  %v12717_v31 = vpack.c.b16 %v5001_v11, %v5001_v11  ;;  %v10985_v11 = vld [vmem:[%s12381_s7 + $0x934] sm:$0xf0]  ;;  %v10979_v60 = vld [vmem:[%s12381_s7 + $0x904] sm:$0xf0] }
 0x293   : > { %7844 = vmatpush.bf16.msrb.mxu3 %v9618_v36  ;;  %v9714_v36 = vor.u32 %v10959_v18, %v9713_v17  ;;  %v9681_v17 = vld [vmem:[%s12381_s7 + $0x820] sm:$0xf]  ;;  %v10951_v18 = vld [vmem:[%s12381_s7 + $0x824] sm:$0xf0] }
 0x294   : > { %7806 = vmatpush.bf16.msrb.mxu0 %v9418_v47  ;;  %v10973_v47 = vld [vmem:[%s12381_s7 + $0x8d4] sm:$0xf0] }
 0x295   : > { %7819 = vmatpush.bf16.msrb.mxu1 %v9482_v51  ;;  %v11005_v51 = vld [vmem:[%s12381_s7 + $0x9d4] sm:$0xf0]  ;;  %v9770_v53 = vor.u32 %v10973_v47, %v9769_v45  ;;  %v9737_v45 = vld [vmem:[%s12381_s7 + $0x890] sm:$0xf] }
 0x296   : > { %7832 = vmatpush.bf16.msrb.mxu2 %v9546_v52  ;;  %v9706_v52 = vor.u32 %v10957_v43, %v9705_v40  ;;  %v9898_v58 = vor.u32 %v11005_v51, %v9897_v50  ;;  %v9673_v40 = vld [vmem:[%s12381_s7 + $0x810] sm:$0xf]  ;;  %v10949_v43 = vld [vmem:[%s12381_s7 + $0x814] sm:$0xf0] }
 0x297   : > { %7845 = vmatpush.bf16.msrb.mxu3 %v9610_v56  ;;  %v10955_v56 = vld [vmem:[%s12381_s7 + $0x844] sm:$0xf0]  ;;  %v10965_v47 = vld [vmem:[%s12381_s7 + $0x894] sm:$0xf0]  ;;  %v9865_v50 = vld [vmem:[%s12381_s7 + $0x990] sm:$0xf] }
 0x298   : > { %7807 = vmatpush.bf16.msrb.mxu0 %v9410_v63  ;;  %v11003_v63 = vld [vmem:[%s12381_s7 + $0x9c4] sm:$0xf0]  ;;  %v9698_v0 = vor.u32 %v10955_v56, %v9697_v55  ;;  %v10997_v51 = vld [vmem:[%s12381_s7 + $0x994] sm:$0xf0]  ;;  %v9729_v55 = vld [vmem:[%s12381_s7 + $0x880] sm:$0xf]  ;;  %v9738_v57 = vor.u32 %v10965_v47, %v9737_v45 }
 0x299   : > { %7820 = vmatpush.bf16.msrb.mxu1 %v9474_v5  ;;  %v10953_v5 = vld [vmem:[%s12381_s7 + $0x834] sm:$0xf0]  ;;  %v9890_v8 = vor.u32 %v11003_v63, %v9889_v62  ;;  %v10963_v56 = vld [vmem:[%s12381_s7 + $0x884] sm:$0xf0]  ;;  %v9866_v62 = vor.u32 %v10997_v51, %v9865_v50  ;;  %v9857_v63 = vld [vmem:[%s12381_s7 + $0x980] sm:$0xf] }
 0x29a   : > { %7833 = vmatpush.bf16.msrb.mxu2 %v9538_v7  ;;  %v9753_v7 = vld [vmem:[%s12381_s7 + $0x8b0] sm:$0xf]  ;;  %v9690_v14 = vor.u32 %v10953_v5, %v9689_v3  ;;  %v11025_v3 = vld [vmem:[%s12381_s7 + $0xa74] sm:$0xf0]  ;;  %v10161_v47 = vld [vmem:[%s12381_s7 + $0xbe0] sm:$0xf] }
 0x29b   : > { %7846 = vmatpush.bf16.msrb.mxu3 %v9602_v12  ;;  %7808 = vmatmul.bf16.vlgmr.msrb.gmra.mxu0 %v12710_v23  ;;  %v9881_v12 = vld [vmem:[%s12381_s7 + $0x9b0] sm:$0xf] }
 0x29c   : > { %7852 = vmatpush.bf16.msra.mxu0 %v9722_v13  ;;  %7821 = vmatmul.bf16.vlgmr.msrb.gmra.mxu1 %v12717_v31  ;;  %v11001_v13 = vld [vmem:[%s12381_s7 + $0x9b4] sm:$0xf0]  ;;  %v10041_v5 = vld [vmem:[%s12381_s7 + $0xaf0] sm:$0xf] }
 0x29d   : > { %7865 = vmatpush.bf16.msra.mxu1 %v9786_v15  ;;  %7834 = vmatmul.bf16.vlgmr.msrb.gmra.mxu2 %v12715_v28  ;;  %v9754_v15 = vor.u32 %v10969_v9, %v9753_v7  ;;  %v10105_v9 = vld [vmem:[%s12381_s7 + $0xb70] sm:$0xf] }
 0x29e   : > { %7878 = vmatpush.bf16.msra.mxu2 %v9850_v16  ;;  %7847 = vmatmul.bf16.vlgmr.msrb.gmra.mxu3 %v12721_v35  ;;  %v9818_v16 = vor.u32 %v10985_v11, %v9817_v10  ;;  %v11057_v10 = vld [vmem:[%s12381_s7 + $0xb74] sm:$0xf0]  ;;  %v5004_v11 = vunpack.c.l.b16 %v4452_v61 }
 0x29f   : > { %7891 = vmatpush.bf16.msra.mxu3 %v9914_v22  ;;  %v9882_v22 = vor.u32 %v11001_v13, %v9881_v12  ;;  %v9730_v12 = vor.u32 %v10963_v56, %v9729_v55  ;;  %v9794_v13 = vor.u32 %v10979_v60, %v9793_v59  ;;  %v10025_v55 = vld [vmem:[%s12381_s7 + $0xad0] sm:$0xf]  ;;  %v11053_v59 = vld [vmem:[%s12381_s7 + $0xb54] sm:$0xf0] }
 0x2a0   : > { %7853 = vmatpush.bf16.msra.mxu0 %v9714_v36  ;;  %v9682_v36 = vor.u32 %v10951_v18, %v9681_v17  ;;  %v5005_v17 = vunpack.c.h.b16 %v4452_v61  ;;  %v10153_v60 = vld [vmem:[%s12381_s7 + $0xbd0] sm:$0xf]  ;;  %v11069_v61 = vld [vmem:[%s12381_s7 + $0xbd4] sm:$0xf0] }
 0x2a1   : > { %7866 = vmatpush.bf16.msra.mxu1 %v9778_v37  ;;  %v9746_v37 = vor.u32 %v10967_v24, %v9745_v19 }
 0x2a2   : > { %7879 = vmatpush.bf16.msra.mxu2 %v9842_v39  ;;  %v9810_v39 = vor.u32 %v10983_v27, %v9809_v26  ;;  %v10106_v26 = vor.u32 %v11057_v10, %v10105_v9  ;;  %v9969_v27 = vld [vmem:[%s12381_s7 + $0xa60] sm:$0xf]  ;;  %v11051_v9 = vld [vmem:[%s12381_s7 + $0xb44] sm:$0xf0] }
 0x2a3   : > { %7892 = vmatpush.bf16.msra.mxu3 %v9906_v46  ;;  %v9874_v46 = vor.u32 %v10999_v34, %v9873_v32  ;;  %v11023_v32 = vld [vmem:[%s12381_s7 + $0xa64] sm:$0xf0]  ;;  %v10033_v34 = vld [vmem:[%s12381_s7 + $0xae0] sm:$0xf] }
 0x2a4   : > { %7854 = vmatpush.bf16.msra.mxu0 %v9706_v52  ;;  %v9665_v52 = vld [vmem:[%s12381_s7 + $0x800] sm:$0xf]  ;;  %v9970_v50 = vor.u32 %v11023_v32, %v9969_v27  ;;  %v11065_v27 = vld [vmem:[%s12381_s7 + $0xbb4] sm:$0xf0] }
 0x2a5   : > { %7867 = vmatpush.bf16.msra.mxu1 %v9770_v53  ;;  %v9674_v53 = vor.u32 %v10949_v43, %v9673_v40  ;;  %v10097_v40 = vld [vmem:[%s12381_s7 + $0xb60] sm:$0xf]  ;;  %v11055_v43 = vld [vmem:[%s12381_s7 + $0xb64] sm:$0xf0] }
 0x2a6   : > { %7880 = vmatpush.bf16.msra.mxu2 %v9834_v54  ;;  %v10947_v54 = vld [vmem:[%s12381_s7 + $0x804] sm:$0xf0]  ;;  %v10145_v10 = vld [vmem:[%s12381_s7 + $0xbc0] sm:$0xf] }
 0x2a7   : > { %7893 = vmatpush.bf16.msra.mxu3 %v9898_v58  ;;  %v9802_v58 = vor.u32 %v10981_v49, %v9801_v48  ;;  %v9666_v7 = vor.u32 %v10947_v54, %v9665_v52  ;;  %v11071_v48 = vld [vmem:[%s12381_s7 + $0xbe4] sm:$0xf0]  ;;  %v10098_v52 = vor.u32 %v11055_v43, %v10097_v40  ;;  %v11021_v54 = vld [vmem:[%s12381_s7 + $0xa54] sm:$0xf0]  ;;  %v10001_v43 = vld [vmem:[%s12381_s7 + $0xaa0] sm:$0xf] }
 0x2a8   : > { %7855 = vmatpush.bf16.msra.mxu0 %v9698_v0  ;;  %v10995_v0 = vld [vmem:[%s12381_s7 + $0x984] sm:$0xf0]  ;;  %v10162_v56 = vor.u32 %v11071_v48, %v10161_v47 }
 0x2a9   : > { %7868 = vmatpush.bf16.msra.mxu1 %v9762_v1  ;;  %v4453_v1 = vld [vmem:[%s13643_s0 + $0x48] sm:$0xff]  ;;  %v9858_v18 = vor.u32 %v10995_v0, %v9857_v63 }
 0x2aa   : > { %7881 = vmatpush.bf16.msra.mxu2 %v9826_v2  ;;  %v9977_v2 = vld [vmem:[%s12381_s7 + $0xa70] sm:$0xf]  ;;  %v11015_v40 = vld [vmem:[%s12381_s7 + $0xa24] sm:$0xf0] }
 0x2ab   : > { %7894 = vmatpush.bf16.msra.mxu3 %v9890_v8  ;;  %v11041_v8 = vld [vmem:[%s12381_s7 + $0xaf4] sm:$0xf0]  ;;  %v9978_v19 = vor.u32 %v11025_v3, %v9977_v2  ;;  %v11019_v2 = vld [vmem:[%s12381_s7 + $0xa44] sm:$0xf0]  ;;  %v10017_v3 = vld [vmem:[%s12381_s7 + $0xac0] sm:$0xf] }
 0x2ac   : > { %7856 = vmatpush.bf16.msra.mxu0 %v9690_v14  ;;  %v10169_v14 = vld [vmem:[%s12381_s7 + $0xbf0] sm:$0xf]  ;;  %v10042_v24 = vor.u32 %v11041_v8, %v10041_v5  ;;  %v10154_v5 = vor.u32 %v11069_v61, %v10153_v60  ;;  %v10081_v8 = vld [vmem:[%s12381_s7 + $0xb40] sm:$0xf]  ;;  %v11031_v48 = vld [vmem:[%s12381_s7 + $0xaa4] sm:$0xf0] }
 0x2ad   : > { %7869 = vmatpush.bf16.msra.mxu1 %v9754_v15  ;;  %v11073_v15 = vld [vmem:[%s12381_s7 + $0xbf4] sm:$0xf0]  ;;  %v9993_v61 = vld [vmem:[%s12381_s7 + $0xa90] sm:$0xf] }
 0x2ae   : > { %7882 = vmatpush.bf16.msra.mxu2 %v9818_v16  ;;  %v5006_v16 = vunpack.c.l.b16 %v4453_v1  ;;  %v11013_v60 = vld [vmem:[%s12381_s7 + $0xa14] sm:$0xf0] }
 0x2af   : > { %7895 = vmatpush.bf16.msra.mxu3 %v9882_v22  ;;  %v5007_v22 = vunpack.c.h.b16 %v4453_v1  ;;  %v9953_v1 = vld [vmem:[%s12381_s7 + $0xa40] sm:$0xf] }
 0x2b0   : > { %7857 = vmatpush.bf16.msra.mxu0 %v9682_v36  ;;  %v10170_v36 = vor.u32 %v11073_v15, %v10169_v14  ;;  %v12797_v45 = vpack.c.b16 %v5006_v16, %v5006_v16  ;;  %v10082_v14 = vor.u32 %v11051_v9, %v10081_v8  ;;  %v9945_v15 = vld [vmem:[%s12381_s7 + $0xa30] sm:$0xf]  ;;  %v11017_v16 = vld [vmem:[%s12381_s7 + $0xa34] sm:$0xf0]  ;;  %v9921_v9 = vld [vmem:[%s12381_s7 + $0xa00] sm:$0xf] }
 0x2b1   : > { %7870 = vmatpush.bf16.msra.mxu1 %v9746_v37  ;;  %v12792_v37 = vpack.c.b16 %v5004_v11, %v5004_v11  ;;  %v12803_v49 = vpack.c.b16 %v5007_v22, %v5007_v22  ;;  %v11067_v11 = vld [vmem:[%s12381_s7 + $0xbc4] sm:$0xf0]  ;;  %v10073_v22 = vld [vmem:[%s12381_s7 + $0xb30] sm:$0xf]  ;;  %v9946_v32 = vor.u32 %v11017_v16, %v9945_v15  ;;  %v11061_v8 = vld [vmem:[%s12381_s7 + $0xb94] sm:$0xf0] }
 0x2b2   : > { %7883 = vmatpush.bf16.msra.mxu2 %v9810_v39  ;;  %v11039_v39 = vld [vmem:[%s12381_s7 + $0xae4] sm:$0xf0] }
 0x2b3   : > { %7896 = vmatpush.bf16.msra.mxu3 %v9874_v46  ;;  %v12799_v46 = vpack.c.b16 %v5005_v17, %v5005_v17  ;;  %v10034_v51 = vor.u32 %v11039_v39, %v10033_v34  ;;  %v10009_v17 = vld [vmem:[%s12381_s7 + $0xab0] sm:$0xf]  ;;  %v9937_v39 = vld [vmem:[%s12381_s7 + $0xa20] sm:$0xf] }
 0x2b4   : > { %7858 = vmatpush.bf16.msra.mxu0 %v9674_v53  ;;  %v9961_v53 = vld [vmem:[%s12381_s7 + $0xa50] sm:$0xf] }
 0x2b5   : > { %7871 = vmatpush.bf16.msra.mxu1 %v9738_v57  ;;  %v11037_v57 = vld [vmem:[%s12381_s7 + $0xad4] sm:$0xf0] }
 0x2b6   : > { %7884 = vmatpush.bf16.msra.mxu2 %v9802_v58  ;;  %v10089_v58 = vld [vmem:[%s12381_s7 + $0xb50] sm:$0xf]  ;;  %v10026_v63 = vor.u32 %v11037_v57, %v10025_v55  ;;  %v9938_v55 = vor.u32 %v11015_v40, %v9937_v39  ;;  %v10002_v57 = vor.u32 %v11031_v48, %v10001_v43 }
 0x2b7   : > { %7897 = vmatpush.bf16.msra.mxu3 %v9866_v62  ;;  %v9962_v62 = vor.u32 %v11021_v54, %v9961_v53  ;;  %v10090_v0 = vor.u32 %v11053_v59, %v10089_v58  ;;  %v11063_v53 = vld [vmem:[%s12381_s7 + $0xba4] sm:$0xf0]  ;;  %v9929_v59 = vld [vmem:[%s12381_s7 + $0xa10] sm:$0xf] }
 0x2b8   : > { %7859 = vmatpush.bf16.msra.mxu0 %v9666_v7  ;;  %v11035_v7 = vld [vmem:[%s12381_s7 + $0xac4] sm:$0xf0]  ;;  %v7653_v54 = vpop.f32.mrf.mxu0  ;;  %v10297_v39 = vld [vmem:[%s12381_s7 + $0xcf0] sm:$0xf] }
 0x2b9   : > { %7872 = vmatpush.bf16.msra.mxu1 %v9730_v12  ;;  %v9954_v12 = vor.u32 %v11019_v2, %v9953_v1  ;;  %v11029_v1 = vld [vmem:[%s12381_s7 + $0xa94] sm:$0xf0]  ;;  %v10057_v2 = vld [vmem:[%s12381_s7 + $0xb10] sm:$0xf] }
 0x2ba   : > { %7885 = vmatpush.bf16.msra.mxu2 %v9794_v13  ;;  %v10018_v13 = vor.u32 %v11035_v7, %v10017_v3  ;;  %v11045_v3 = vld [vmem:[%s12381_s7 + $0xb14] sm:$0xf0]  ;;  %v10121_v7 = vld [vmem:[%s12381_s7 + $0xb90] sm:$0xf]  ;;  %v9994_v15 = vor.u32 %v11029_v1, %v9993_v61 }
 0x2bb   : > { %7898 = vmatpush.bf16.msra.mxu3 %v9858_v18  ;;  %7860 = vmatmul.bf16.vlgmr.msra.gmra.mxu0 %v12792_v37  ;;  %v10146_v18 = vor.u32 %v11067_v11, %v10145_v10  ;;  %v9930_v11 = vor.u32 %v11013_v60, %v9929_v59  ;;  %v10058_v16 = vor.u32 %v11045_v3, %v10057_v2  ;;  %v10361_v48 = vld [vmem:[%s12381_s7 + $0xd70] sm:$0xf]  ;;  %v10225_v2 = vld [vmem:[%s12381_s7 + $0xc60] sm:$0xf]  ;;  %v11087_v3 = vld [vmem:[%s12381_s7 + $0xc64] sm:$0xf0] }
 0x2bc   : > { %7904 = vmatpush.bf16.msrb.mxu0 %v9978_v19  ;;  %7873 = vmatmul.bf16.vlgmr.msra.gmra.mxu1 %v12799_v46  ;;  %v11033_v19 = vld [vmem:[%s12381_s7 + $0xab4] sm:$0xf0] }
 0x2bd   : > { %7917 = vmatpush.bf16.msrb.mxu1 %v10042_v24  ;;  %7886 = vmatmul.bf16.vlgmr.msra.gmra.mxu2 %v12797_v45  ;;  %v11049_v24 = vld [vmem:[%s12381_s7 + $0xb34] sm:$0xf0]  ;;  %v10010_v34 = vor.u32 %v11033_v19, %v10009_v17  ;;  %v10049_v17 = vld [vmem:[%s12381_s7 + $0xb00] sm:$0xf]  ;;  %v4454_v19 = vld [vmem:[%s13643_s0 + $0x50] sm:$0xff] }
 0x2be   : > { %7930 = vmatpush.bf16.msrb.mxu2 %v10106_v26  ;;  %7899 = vmatmul.bf16.vlgmr.msra.gmra.mxu3 %v12803_v49  ;;  %v10137_v26 = vld [vmem:[%s12381_s7 + $0xbb0] sm:$0xf] }
 0x2bf   : > { %7943 = vmatpush.bf16.msrb.mxu3 %v10170_v36  ;;  %v10074_v36 = vor.u32 %v11049_v24, %v10073_v22  ;;  %v10138_v47 = vor.u32 %v11065_v27, %v10137_v26  ;;  %v10122_v24 = vor.u32 %v11061_v8, %v10121_v7  ;;  %v10113_v26 = vld [vmem:[%s12381_s7 + $0xb80] sm:$0xf]  ;;  %v11059_v27 = vld [vmem:[%s12381_s7 + $0xb84] sm:$0xf0] }
 0x2c0   : > { %7905 = vmatpush.bf16.msrb.mxu0 %v9970_v50  ;;  %v10065_v50 = vld [vmem:[%s12381_s7 + $0xb20] sm:$0xf]  ;;  %v7655_v40 = vpop.f32.mrf.mxu0  ;;  %v10114_v60 = vor.u32 %v11059_v27, %v10113_v26  ;;  %v11085_v26 = vld [vmem:[%s12381_s7 + $0xc54] sm:$0xf0]  ;;  %v10281_v27 = vld [vmem:[%s12381_s7 + $0xcd0] sm:$0xf] }
 0x2c1   : > { %7918 = vmatpush.bf16.msrb.mxu1 %v10034_v51  ;;  %v11047_v51 = vld [vmem:[%s12381_s7 + $0xb24] sm:$0xf0]  ;;  %v10409_v40 = vld [vmem:[%s12381_s7 + $0xdd0] sm:$0xf] }
 0x2c2   : > { %7931 = vmatpush.bf16.msrb.mxu2 %v10098_v52  ;;  %v10129_v52 = vld [vmem:[%s12381_s7 + $0xba0] sm:$0xf]  ;;  %v10066_v58 = vor.u32 %v11047_v51, %v10065_v50  ;;  %v11121_v50 = vld [vmem:[%s12381_s7 + $0xd74] sm:$0xf0]  ;;  %v5008_v51 = vunpack.c.l.b16 %v4454_v19 }
 0x2c3   : > { %7944 = vmatpush.bf16.msrb.mxu3 %v10162_v56  ;;  %v7666_v56 = vpop.f32.mrf.mxu1  ;;  %v10362_v1 = vor.u32 %v11121_v50, %v10361_v48 }
 0x2c4   : > { %7906 = vmatpush.bf16.msrb.mxu0 %v9962_v62  ;;  %v7667_v62 = vadd.f32 %v7666_v56, %v7653_v54  ;;  %v11137_v56 = vld [vmem:[%s12381_s7 + $0xdf4] sm:$0xf0]  ;;  %v12876_v8 = vpack.c.b16 %v5008_v51, %v5008_v51  ;;  %v10209_v51 = vld [vmem:[%s12381_s7 + $0xc40] sm:$0xf] }
 0x2c5   : > { %7919 = vmatpush.bf16.msrb.mxu1 %v10026_v63  ;;  %v7679_v63 = vpop.f32.mrf.mxu2 }
 0x2c6   : > { %7932 = vmatpush.bf16.msrb.mxu2 %v10090_v0  ;;  %v10130_v0 = vor.u32 %v11063_v53, %v10129_v52  ;;  %v7680_v10 = vadd.f32 %v7679_v63, %v7667_v62 }
 0x2c7   : > { %7945 = vmatpush.bf16.msrb.mxu3 %v10154_v5  ;;  %v7692_v5 = vpop.f32.mrf.mxu3 }
 0x2c8   : > { %7907 = vmatpush.bf16.msrb.mxu0 %v9954_v12  ;;  %v11011_v12 = vld [vmem:[%s12381_s7 + $0xa04] sm:$0xf0]  ;;  %v12858_v22 = vadd.f32 %v7692_v5, %v7680_v10  ;;  %v10289_v5 = vld [vmem:[%s12381_s7 + $0xce0] sm:$0xf] }
 0x2c9   : > { %7920 = vmatpush.bf16.msrb.mxu1 %v10018_v13  ;;  %v9985_v13 = vld [vmem:[%s12381_s7 + $0xa80] sm:$0xf]  ;;  %v9922_v43 = vor.u32 %v11011_v12, %v9921_v9  ;;  %v11103_v9 = vld [vmem:[%s12381_s7 + $0xce4] sm:$0xf0] }
 0x2ca   : > { %7933 = vmatpush.bf16.msrb.mxu2 %v10082_v14  ;;  %v11027_v14 = vld [vmem:[%s12381_s7 + $0xa84] sm:$0xf0]  ;;  %v10353_v10 = vld [vmem:[%s12381_s7 + $0xd60] sm:$0xf] }
 0x2cb   : > { %7946 = vmatpush.bf16.msrb.mxu3 %v10146_v18  ;;  %v11043_v18 = vld [vmem:[%s12381_s7 + $0xb04] sm:$0xf0]  ;;  %v7668_v52 = vpop.f32.mrf.mxu1  ;;  %v9986_v53 = vor.u32 %v11027_v14, %v9985_v13  ;;  %v10417_v14 = vld [vmem:[%s12381_s7 + $0xde0] sm:$0xf] }
 0x2cc   : > { %7908 = vmatpush.bf16.msrb.mxu0 %v9946_v32  ;;  %v4455_v32 = vld [vmem:[%s13643_s0 + $0x58] sm:$0xff]  ;;  %v10050_v54 = vor.u32 %v11043_v18, %v10049_v17  ;;  %v10226_v17 = vor.u32 %v11087_v3, %v10225_v2  ;;  %v10290_v18 = vor.u32 %v11103_v9, %v10289_v5  ;;  %v11083_v52 = vld [vmem:[%s12381_s7 + $0xc44] sm:$0xf0]  ;;  %v10265_v2 = vld [vmem:[%s12381_s7 + $0xcb0] sm:$0xf] }
 0x2cd   : > { %7921 = vmatpush.bf16.msrb.mxu1 %v10010_v34  ;;  %v10233_v34 = vld [vmem:[%s12381_s7 + $0xc70] sm:$0xf]  ;;  %v7681_v59 = vpop.f32.mrf.mxu2  ;;  %v5011_v62 = vunpack.c.h.b16 %v4455_v32  ;;  %v11097_v9 = vld [vmem:[%s12381_s7 + $0xcb4] sm:$0xf0] }
 0x2ce   : > { %7934 = vmatpush.bf16.msrb.mxu2 %v10074_v36  ;;  %v11089_v36 = vld [vmem:[%s12381_s7 + $0xc74] sm:$0xf0]  ;;  %v11131_v59 = vld [vmem:[%s12381_s7 + $0xdc4] sm:$0xf0] }
 0x2cf   : > { %7947 = vmatpush.bf16.msrb.mxu3 %v10138_v47  ;;  %v11105_v47 = vld [vmem:[%s12381_s7 + $0xcf4] sm:$0xf0]  ;;  %v10234_v61 = vor.u32 %v11089_v36, %v10233_v34  ;;  %v7694_v63 = vpop.f32.mrf.mxu3  ;;  %v10345_v36 = vld [vmem:[%s12381_s7 + $0xd50] sm:$0xf] }
 0x2d0   : > { %7909 = vmatpush.bf16.msrb.mxu0 %v9938_v55  ;;  %v10425_v55 = vld [vmem:[%s12381_s7 + $0xdf0] sm:$0xf]  ;;  %v11101_v34 = vld [vmem:[%s12381_s7 + $0xcd4] sm:$0xf0] }
 0x2d1   : > { %7922 = vmatpush.bf16.msrb.mxu1 %v10002_v57  ;;  %v5010_v57 = vunpack.c.l.b16 %v4455_v32  ;;  %v10426_v7 = vor.u32 %v11137_v56, %v10425_v55  ;;  %v10282_v48 = vor.u32 %v11101_v34, %v10281_v27  ;;  %v11099_v55 = vld [vmem:[%s12381_s7 + $0xcc4] sm:$0xf0]  ;;  %v10337_v56 = vld [vmem:[%s12381_s7 + $0xd40] sm:$0xf] }
 0x2d2   : > { %7935 = vmatpush.bf16.msrb.mxu2 %v10066_v58  ;;  %v5009_v58 = vunpack.c.h.b16 %v4454_v19  ;;  %v10257_v27 = vld [vmem:[%s12381_s7 + $0xca0] sm:$0xf] }
 0x2d3   : > { %7948 = vmatpush.bf16.msrb.mxu3 %v10130_v0  ;;  %v10298_v0 = vor.u32 %v11105_v47, %v10297_v39  ;;  %v12881_v12 = vpack.c.b16 %v5010_v57, %v5010_v57  ;;  %v11117_v39 = vld [vmem:[%s12381_s7 + $0xd54] sm:$0xf0]  ;;  %v11115_v57 = vld [vmem:[%s12381_s7 + $0xd44] sm:$0xf0] }
 0x2d4   : > { %7910 = vmatpush.bf16.msrb.mxu0 %v9930_v11  ;;  %v11119_v11 = vld [vmem:[%s12381_s7 + $0xd64] sm:$0xf0]  ;;  %v12883_v13 = vpack.c.b16 %v5009_v58, %v5009_v58  ;;  %v10346_v50 = vor.u32 %v11117_v39, %v10345_v36  ;;  %v10401_v58 = vld [vmem:[%s12381_s7 + $0xdc0] sm:$0xf]  ;;  %v10338_v63 = vor.u32 %v11115_v57, %v10337_v56  ;;  %v10185_v56 = vld [vmem:[%s12381_s7 + $0xc10] sm:$0xf] }
 0x2d5   : > { %7923 = vmatpush.bf16.msrb.mxu1 %v9994_v15  ;;  %v11135_v15 = vld [vmem:[%s12381_s7 + $0xde4] sm:$0xf0]  ;;  %v10354_v19 = vor.u32 %v11119_v11, %v10353_v10  ;;  %v10329_v10 = vld [vmem:[%s12381_s7 + $0xd30] sm:$0xf]  ;;  %v11113_v11 = vld [vmem:[%s12381_s7 + $0xd34] sm:$0xf0] }
 0x2d6   : > { %7936 = vmatpush.bf16.msrb.mxu2 %v10058_v16  ;;  %v12887_v16 = vpack.c.b16 %v5011_v62, %v5011_v62  ;;  %v10418_v32 = vor.u32 %v11135_v15, %v10417_v14  ;;  %v10393_v14 = vld [vmem:[%s12381_s7 + $0xdb0] sm:$0xf]  ;;  %v11129_v15 = vld [vmem:[%s12381_s7 + $0xdb4] sm:$0xf0]  ;;  %v11095_v36 = vld [vmem:[%s12381_s7 + $0xca4] sm:$0xf0] }
 0x2d7   : > { %7949 = vmatpush.bf16.msrb.mxu3 %v10122_v24  ;;  %v10217_v24 = vld [vmem:[%s12381_s7 + $0xc50] sm:$0xf]  ;;  %v10394_v34 = vor.u32 %v11129_v15, %v10393_v14  ;;  %v10321_v39 = vld [vmem:[%s12381_s7 + $0xd20] sm:$0xf]  ;;  %v11077_v57 = vld [vmem:[%s12381_s7 + $0xc14] sm:$0xf0] }
 0x2d8   : > { %7911 = vmatpush.bf16.msrb.mxu0 %v9922_v43  ;;  %v11133_v43 = vld [vmem:[%s12381_s7 + $0xdd4] sm:$0xf0]  ;;  %v10218_v47 = vor.u32 %v11085_v26, %v10217_v24  ;;  %v10193_v24 = vld [vmem:[%s12381_s7 + $0xc20] sm:$0xf]  ;;  %v11079_v26 = vld [vmem:[%s12381_s7 + $0xc24] sm:$0xf0] }
 0x2d9   : > { %7924 = vmatpush.bf16.msrb.mxu1 %v9986_v53  ;;  %v10273_v53 = vld [vmem:[%s12381_s7 + $0xcc0] sm:$0xf]  ;;  %v7718_v5 = vpop.f32.mrf.mxu1  ;;  %v11107_v15 = vld [vmem:[%s12381_s7 + $0xd04] sm:$0xf0] }
 0x2da   : > { %7937 = vmatpush.bf16.msrb.mxu2 %v10050_v54  ;;  %v10410_v54 = vor.u32 %v11133_v43, %v10409_v40  ;;  %v10274_v62 = vor.u32 %v11099_v55, %v10273_v53  ;;  %v11111_v40 = vld [vmem:[%s12381_s7 + $0xd24] sm:$0xf0]  ;;  %v10305_v14 = vld [vmem:[%s12381_s7 + $0xd00] sm:$0xf] }
 0x2db   : > { %7950 = vmatpush.bf16.msrb.mxu3 %v10114_v60  ;;  %7912 = vmatmul.bf16.vlgmr.msrb.gmra.mxu0 %v12876_v8  ;;  %v10210_v60 = vor.u32 %v11083_v52, %v10209_v51  ;;  %v10194_v51 = vor.u32 %v11079_v26, %v10193_v24  ;;  %v10322_v55 = vor.u32 %v11111_v40, %v10321_v39  ;;  %v11123_v24 = vld [vmem:[%s12381_s7 + $0xd84] sm:$0xf0]  ;;  %v11169_v40 = vld [vmem:[%s12381_s7 + $0xef4] sm:$0xf0] }
 0x2dc   : > { %7956 = vmatpush.bf16.msra.mxu0 %v10234_v61  ;;  %7925 = vmatmul.bf16.vlgmr.msrb.gmra.mxu1 %v12883_v13  ;;  %v7705_v61 = vpop.f32.mrf.mxu0  ;;  %v4457_v26 = vld [vmem:[%s13643_s0 + $0x68] sm:$0xff] }
 0x2dd   : > { %7969 = vmatpush.bf16.msra.mxu1 %v10298_v0  ;;  %7938 = vmatmul.bf16.vlgmr.msrb.gmra.mxu2 %v12881_v12  ;;  %v10201_v0 = vld [vmem:[%s12381_s7 + $0xc30] sm:$0xf]  ;;  %v7706_v3 = vadd.f32 %v7705_v61, %v12858_v22  ;;  %v10266_v22 = vor.u32 %v11097_v9, %v10265_v2  ;;  %v11093_v61 = vld [vmem:[%s12381_s7 + $0xc94] sm:$0xf0]  ;;  %v10177_v2 = vld [vmem:[%s12381_s7 + $0xc00] sm:$0xf] }
 0x2de   : > { %7982 = vmatpush.bf16.msra.mxu2 %v10362_v1  ;;  %7951 = vmatmul.bf16.vlgmr.msrb.gmra.mxu3 %v12887_v16  ;;  %v11081_v1 = vld [vmem:[%s12381_s7 + $0xc34] sm:$0xf0]  ;;  %v11091_v9 = vld [vmem:[%s12381_s7 + $0xc84] sm:$0xf0] }
 0x2df   : > { %7995 = vmatpush.bf16.msra.mxu3 %v10426_v7  ;;  %v10402_v7 = vor.u32 %v11131_v59, %v10401_v58  ;;  %v10249_v58 = vld [vmem:[%s12381_s7 + $0xc90] sm:$0xf] }
 0x2e0   : > { %7957 = vmatpush.bf16.msra.mxu0 %v10226_v17  ;;  %v7719_v17 = vadd.f32 %v7718_v5, %v7706_v3  ;;  %v10186_v3 = vor.u32 %v11077_v57, %v10185_v56  ;;  %v11075_v5 = vld [vmem:[%s12381_s7 + $0xc04] sm:$0xf0] }
 0x2e1   : > { %7970 = vmatpush.bf16.msra.mxu1 %v10290_v18  ;;  %v10202_v18 = vor.u32 %v11081_v1, %v10201_v0  ;;  %v7720_v59 = vpop.f32.mrf.mxu1  ;;  %v10377_v0 = vld [vmem:[%s12381_s7 + $0xd90] sm:$0xf]  ;;  %v11125_v1 = vld [vmem:[%s12381_s7 + $0xd94] sm:$0xf0]  ;;  %v10178_v39 = vor.u32 %v11075_v5, %v10177_v2  ;;  %v10609_v5 = vld [vmem:[%s12381_s7 + $0xf60] sm:$0xf] }
 0x2e2   : > { %7983 = vmatpush.bf16.msra.mxu2 %v10354_v19  ;;  %v10330_v19 = vor.u32 %v11113_v11, %v10329_v10  ;;  %v10250_v10 = vor.u32 %v11093_v61, %v10249_v58  ;;  %v5015_v59 = vunpack.c.h.b16 %v4457_v26 }
 0x2e3   : > { %7996 = vmatpush.bf16.msra.mxu3 %v10418_v32  ;;  %v7731_v32 = vpop.f32.mrf.mxu2 }
 0x2e4   : > { %7958 = vmatpush.bf16.msra.mxu0 %v10218_v47  ;;  %v7732_v43 = vadd.f32 %v7731_v32, %v7719_v17  ;;  %v7744_v47 = vpop.f32.mrf.mxu3  ;;  %v7707_v53 = vpop.f32.mrf.mxu0  ;;  %v4456_v17 = vld [vmem:[%s13643_s0 + $0x60] sm:$0xff]  ;;  %v10489_v32 = vld [vmem:[%s12381_s7 + $0xe70] sm:$0xf] }
 0x2e5   : > { %7971 = vmatpush.bf16.msra.mxu1 %v10282_v48  ;;  %v10385_v48 = vld [vmem:[%s12381_s7 + $0xda0] sm:$0xf]  ;;  %v10681_v53 = vld [vmem:[%s12381_s7 + $0xff0] sm:$0xf]  ;;  %v5013_v56 = vunpack.c.h.b16 %v4456_v17 }
 0x2e6   : > { %7984 = vmatpush.bf16.msra.mxu2 %v10346_v50  ;;  %v11127_v50 = vld [vmem:[%s12381_s7 + $0xda4] sm:$0xf0]  ;;  %v12926_v52 = vadd.f32 %v7744_v47, %v7732_v43  ;;  %v10617_v43 = vld [vmem:[%s12381_s7 + $0xf70] sm:$0xf]  ;;  %v11185_v47 = vld [vmem:[%s12381_s7 + $0xf74] sm:$0xf0] }
 0x2e7   : > { %7997 = vmatpush.bf16.msra.mxu3 %v10410_v54  ;;  %v10258_v54 = vor.u32 %v11095_v36, %v10257_v27  ;;  %v10553_v36 = vld [vmem:[%s12381_s7 + $0xef0] sm:$0xf]  ;;  %v10618_v61 = vor.u32 %v11185_v47, %v10617_v43 }
 0x2e8   : > { %7959 = vmatpush.bf16.msra.mxu0 %v10210_v60  ;;  %v10386_v60 = vor.u32 %v11127_v50, %v10385_v48  ;;  %v5012_v48 = vunpack.c.l.b16 %v4456_v17 }
 0x2e9   : > { %7972 = vmatpush.bf16.msra.mxu1 %v10274_v62  ;;  %v10313_v62 = vld [vmem:[%s12381_s7 + $0xd10] sm:$0xf] }
 0x2ea   : > { %7985 = vmatpush.bf16.msra.mxu2 %v10338_v63  ;;  %v11109_v63 = vld [vmem:[%s12381_s7 + $0xd14] sm:$0xf0]  ;;  %v12961_v2 = vpack.c.b16 %v5012_v48, %v5012_v48 }
 0x2eb   : > { %7998 = vmatpush.bf16.msra.mxu3 %v10402_v7  ;;  %v10241_v7 = vld [vmem:[%s12381_s7 + $0xc80] sm:$0xf]  ;;  %v10314_v11 = vor.u32 %v11109_v63, %v10313_v62  ;;  %v11151_v63 = vld [vmem:[%s12381_s7 + $0xe64] sm:$0xf0] }
 0x2ec   : > { %7960 = vmatpush.bf16.msra.mxu0 %v10202_v18  ;;  %v7733_v18 = vpop.f32.mrf.mxu2  ;;  %v7746_v27 = vpop.f32.mrf.mxu3  ;;  %v10242_v50 = vor.u32 %v11091_v9, %v10241_v7  ;;  %v10481_v62 = vld [vmem:[%s12381_s7 + $0xe60] sm:$0xf]  ;;  %v11183_v7 = vld [vmem:[%s12381_s7 + $0xf64] sm:$0xf0] }
 0x2ed   : > { %7973 = vmatpush.bf16.msra.mxu1 %v10266_v22  ;;  %v10378_v22 = vor.u32 %v11125_v1, %v10377_v0  ;;  %v10545_v0 = vld [vmem:[%s12381_s7 + $0xee0] sm:$0xf]  ;;  %v10482_v17 = vor.u32 %v11151_v63, %v10481_v62 }
 0x2ee   : > { %7986 = vmatpush.bf16.msra.mxu2 %v10330_v19  ;;  %v10369_v19 = vld [vmem:[%s12381_s7 + $0xd80] sm:$0xf] }
 0x2ef   : > { %7999 = vmatpush.bf16.msra.mxu3 %v10394_v34  ;;  %v11153_v34 = vld [vmem:[%s12381_s7 + $0xe74] sm:$0xf0]  ;;  %v10370_v57 = vor.u32 %v11123_v24, %v10369_v19  ;;  %v10473_v19 = vld [vmem:[%s12381_s7 + $0xe50] sm:$0xf] }
 0x2f0   : > { %7961 = vmatpush.bf16.msra.mxu0 %v10194_v51  ;;  %v10306_v51 = vor.u32 %v11107_v15, %v10305_v14  ;;  %v10490_v58 = vor.u32 %v11153_v34, %v10489_v32  ;;  %v11199_v14 = vld [vmem:[%s12381_s7 + $0xfe4] sm:$0xf0]  ;;  %v12972_v15 = vpack.c.b16 %v5015_v59, %v5015_v59  ;;  %v11149_v24 = vld [vmem:[%s12381_s7 + $0xe54] sm:$0xf0]  ;;  %v10601_v34 = vld [vmem:[%s12381_s7 + $0xf50] sm:$0xf] }
 0x2f1   : > { %7974 = vmatpush.bf16.msra.mxu1 %v10258_v54  ;;  %v11201_v54 = vld [vmem:[%s12381_s7 + $0xff4] sm:$0xf0]  ;;  %v10474_v43 = vor.u32 %v11149_v24, %v10473_v19  ;;  %v10657_v59 = vld [vmem:[%s12381_s7 + $0xfc0] sm:$0xf] }
 0x2f2   : > { %7987 = vmatpush.bf16.msra.mxu2 %v10322_v55  ;;  %v5014_v55 = vunpack.c.l.b16 %v4457_v26  ;;  %v10682_v1 = vor.u32 %v11201_v54, %v10681_v53  ;;  %v10537_v26 = vld [vmem:[%s12381_s7 + $0xed0] sm:$0xf]  ;;  %v11165_v32 = vld [vmem:[%s12381_s7 + $0xed4] sm:$0xf0]  ;;  %v10529_v53 = vld [vmem:[%s12381_s7 + $0xec0] sm:$0xf] }
 0x2f3   : > { %8000 = vmatpush.bf16.msra.mxu3 %v10386_v60  ;;  %v10554_v60 = vor.u32 %v11169_v40, %v10553_v36  ;;  %v11181_v36 = vld [vmem:[%s12381_s7 + $0xf54] sm:$0xf0]  ;;  %v10538_v47 = vor.u32 %v11165_v32, %v10537_v26  ;;  %v10449_v32 = vld [vmem:[%s12381_s7 + $0xe20] sm:$0xf] }
 0x2f4   : > { %7962 = vmatpush.bf16.msra.mxu0 %v10186_v3  ;;  %v11167_v3 = vld [vmem:[%s12381_s7 + $0xee4] sm:$0xf0]  ;;  %v12966_v9 = vpack.c.b16 %v5014_v55, %v5014_v55  ;;  %v11197_v40 = vld [vmem:[%s12381_s7 + $0xfd4] sm:$0xf0]  ;;  %v10602_v48 = vor.u32 %v11181_v36, %v10601_v34  ;;  %v10513_v36 = vld [vmem:[%s12381_s7 + $0xea0] sm:$0xf] }
 0x2f5   : > { %7975 = vmatpush.bf16.msra.mxu1 %v10250_v10  ;;  %v12968_v10 = vpack.c.b16 %v5013_v56, %v5013_v56  ;;  %v10546_v18 = vor.u32 %v11167_v3, %v10545_v0  ;;  %v11163_v55 = vld [vmem:[%s12381_s7 + $0xec4] sm:$0xf0]  ;;  %v10593_v56 = vld [vmem:[%s12381_s7 + $0xf40] sm:$0xf]  ;;  %v10457_v3 = vld [vmem:[%s12381_s7 + $0xe30] sm:$0xf] }
 0x2f6   : > { %7988 = vmatpush.bf16.msra.mxu2 %v10314_v11  ;;  %v10673_v11 = vld [vmem:[%s12381_s7 + $0xfe0] sm:$0xf]  ;;  %v10530_v0 = vor.u32 %v11163_v55, %v10529_v53  ;;  %v11193_v19 = vld [vmem:[%s12381_s7 + $0xfb4] sm:$0xf0]  ;;  %v11143_v34 = vld [vmem:[%s12381_s7 + $0xe24] sm:$0xf0] }
 0x2f7   : > { %8001 = vmatpush.bf16.msra.mxu3 %v10378_v22  ;;  %v10610_v22 = vor.u32 %v11183_v7, %v10609_v5  ;;  %v10674_v27 = vor.u32 %v11199_v14, %v10673_v11  ;;  %v11145_v5 = vld [vmem:[%s12381_s7 + $0xe34] sm:$0xf0]  ;;  %v10521_v7 = vld [vmem:[%s12381_s7 + $0xeb0] sm:$0xf]  ;;  %v10641_v53 = vld [vmem:[%s12381_s7 + $0xfa0] sm:$0xf] }
 0x2f8   : > { %7963 = vmatpush.bf16.msra.mxu0 %v10178_v39  ;;  %v10665_v39 = vld [vmem:[%s12381_s7 + $0xfd0] sm:$0xf]  ;;  %v10458_v24 = vor.u32 %v11145_v5, %v10457_v3  ;;  %v11173_v5 = vld [vmem:[%s12381_s7 + $0xf14] sm:$0xf0] }
 0x2f9   : > { %7976 = vmatpush.bf16.msra.mxu1 %v10242_v50  ;;  %v10465_v50 = vld [vmem:[%s12381_s7 + $0xe40] sm:$0xf]  ;;  %v10666_v54 = vor.u32 %v11197_v40, %v10665_v39  ;;  %v7770_v63 = vpop.f32.mrf.mxu1  ;;  %v10569_v3 = vld [vmem:[%s12381_s7 + $0xf10] sm:$0xf] }
 0x2fa   : > { %7989 = vmatpush.bf16.msra.mxu2 %v10306_v51  ;;  %v11147_v51 = vld [vmem:[%s12381_s7 + $0xe44] sm:$0xf0] }
 0x2fb   : > { %8002 = vmatpush.bf16.msra.mxu3 %v10370_v57  ;;  %7964 = vmatmul.bf16.vlgmr.msra.gmra.mxu0 %v12961_v2  ;;  %v11179_v57 = vld [vmem:[%s12381_s7 + $0xf44] sm:$0xf0]  ;;  %v10466_v62 = vor.u32 %v11147_v51, %v10465_v50 }
 0x2fc   : > { %8008 = vmatpush.bf16.msrb.mxu0 %v10490_v58  ;;  %7977 = vmatmul.bf16.vlgmr.msra.gmra.mxu1 %v12968_v10  ;;  %v7757_v58 = vpop.f32.mrf.mxu0 }
 0x2fd   : > { %8021 = vmatpush.bf16.msrb.mxu1 %v10554_v60  ;;  %7990 = vmatmul.bf16.vlgmr.msra.gmra.mxu2 %v12966_v9  ;;  %v11195_v60 = vld [vmem:[%s12381_s7 + $0xfc4] sm:$0xf0] }
 0x2fe   : > { %8034 = vmatpush.bf16.msrb.mxu2 %v10618_v61  ;;  %8003 = vmatmul.bf16.vlgmr.msra.gmra.mxu3 %v12972_v15  ;;  %v7758_v61 = vadd.f32 %v7757_v58, %v12926_v52  ;;  %v10658_v11 = vor.u32 %v11195_v60, %v10657_v59  ;;  %v11177_v52 = vld [vmem:[%s12381_s7 + $0xf34] sm:$0xf0] }
 0x2ff   : > { %8047 = vmatpush.bf16.msrb.mxu3 %v10682_v1  ;;  %v10594_v1 = vor.u32 %v11179_v57, %v10593_v56  ;;  %v10450_v56 = vor.u32 %v11143_v34, %v10449_v32  ;;  %v4458_v32 = vld [vmem:[%s13643_s0 + $0x70] sm:$0xff] }
 0x300   : > { %8009 = vmatpush.bf16.msrb.mxu0 %v10482_v17  ;;  %v7771_v14 = vadd.f32 %v7770_v63, %v7758_v61  ;;  %v11161_v17 = vld [vmem:[%s12381_s7 + $0xeb4] sm:$0xf0]  ;;  %v7783_v40 = vpop.f32.mrf.mxu2  ;;  %v10441_v61 = vld [vmem:[%s12381_s7 + $0xe10] sm:$0xf] }
 0x301   : > { %8022 = vmatpush.bf16.msrb.mxu1 %v10546_v18  ;;  %v10585_v18 = vld [vmem:[%s12381_s7 + $0xf30] sm:$0xf]  ;;  %v10522_v26 = vor.u32 %v11161_v17, %v10521_v7  ;;  %v7796_v51 = vpop.f32.mrf.mxu3  ;;  %v7772_v57 = vpop.f32.mrf.mxu1 }
 0x302   : > { %8035 = vmatpush.bf16.msrb.mxu2 %v10610_v22  ;;  %v10649_v22 = vld [vmem:[%s12381_s7 + $0xfb0] sm:$0xf]  ;;  %v7784_v50 = vadd.f32 %v7783_v40, %v7771_v14  ;;  %v10433_v14 = vld [vmem:[%s12381_s7 + $0xe00] sm:$0xf]  ;;  %v4459_v40 = vld [vmem:[%s13643_s0 + $0x78] sm:$0xff]  ;;  %v5016_v57 = vunpack.c.l.b16 %v4458_v32 }
 0x303   : > { %8048 = vmatpush.bf16.msrb.mxu3 %v10674_v27  ;;  %v10586_v27 = vor.u32 %v11177_v52, %v10585_v18  ;;  %v10650_v39 = vor.u32 %v11193_v19, %v10649_v22  ;;  %v10505_v63 = vld [vmem:[%s12381_s7 + $0xe90] sm:$0xf]  ;;  %v11139_v18 = vld [vmem:[%s12381_s7 + $0xe04] sm:$0xf0]  ;;  %v10497_v52 = vld [vmem:[%s12381_s7 + $0xe80] sm:$0xf] }
 0x304   : > { %8010 = vmatpush.bf16.msrb.mxu0 %v10474_v43  ;;  %v11159_v43 = vld [vmem:[%s12381_s7 + $0xea4] sm:$0xf0]  ;;  %v7759_v55 = vpop.f32.mrf.mxu0  ;;  %v13011_v58 = vadd.f32 %v7796_v51, %v7784_v50  ;;  %v10633_v7 = vld [vmem:[%s12381_s7 + $0xf90] sm:$0xf]  ;;  %v10720_v50 = vld [vmem:[%s12381_s7 + $0xf4] sm:$0xf] }
 0x305   : > { %8023 = vmatpush.bf16.msrb.mxu1 %v10538_v47  ;;  %v10577_v47 = vld [vmem:[%s12381_s7 + $0xf20] sm:$0xf]  ;;  %v10514_v59 = vor.u32 %v11159_v43, %v10513_v36  ;;  %v11155_v22 = vld [vmem:[%s12381_s7 + $0xe84] sm:$0xf0]  ;;  %v10736_v55 = vld [vmem:[%s12381_s7 + $0x174] sm:$0xf] }
 0x306   : > { %8036 = vmatpush.bf16.msrb.mxu2 %v10602_v48  ;;  %v11175_v48 = vld [vmem:[%s12381_s7 + $0xf24] sm:$0xf0]  ;;  %v10625_v36 = vld [vmem:[%s12381_s7 + $0xf80] sm:$0xf] }
 0x307   : > { %8049 = vmatpush.bf16.msrb.mxu3 %v10666_v54  ;;  %v11191_v54 = vld [vmem:[%s12381_s7 + $0xfa4] sm:$0xf0]  ;;  %v10578_v60 = vor.u32 %v11175_v48, %v10577_v47  ;;  %v10704_v47 = vld [vmem:[%s12381_s7 + $0x74] sm:$0xf]  ;;  %v8699_v48 = vld [vmem:[%s12381_s7 + $0x78] sm:$0xf0] }
 0x308   : > { %8011 = vmatpush.bf16.msrb.mxu0 %v10466_v62  ;;  %v11141_v62 = vld [vmem:[%s12381_s7 + $0xe14] sm:$0xf0]  ;;  %v7785_v43 = vpop.f32.mrf.mxu2 }
 0x309   : > { %8024 = vmatpush.bf16.msrb.mxu1 %v10530_v0  ;;  %v10642_v0 = vor.u32 %v11191_v54, %v10641_v53  ;;  %v10442_v17 = vor.u32 %v11141_v62, %v10441_v61  ;;  %v7798_v51 = vpop.f32.mrf.mxu3  ;;  %v10434_v53 = vor.u32 %v11139_v18, %v10433_v14  ;;  %v8763_v54 = vld [vmem:[%s12381_s7 + $0xf8] sm:$0xf0]  ;;  %v10752_v61 = vld [vmem:[%s12381_s7 + $0x1f4] sm:$0xf]  ;;  %v10702_v14 = vld [vmem:[%s12381_s7 + $0x64] sm:$0xf] }
 0x30a   : > { %8037 = vmatpush.bf16.msrb.mxu2 %v10594_v1  ;;  %v11157_v1 = vld [vmem:[%s12381_s7 + $0xe94] sm:$0xf0]  ;;  %v8891_v62 = vld [vmem:[%s12381_s7 + $0x1f8] sm:$0xf0]  ;;  %v10718_v18 = vld [vmem:[%s12381_s7 + $0xe4] sm:$0xf] }
 0x30b   : > { %8050 = vmatpush.bf16.msrb.mxu3 %v10658_v11  ;;  %v11189_v11 = vld [vmem:[%s12381_s7 + $0xf94] sm:$0xf0]  ;;  %v10506_v19 = vor.u32 %v11157_v1, %v10505_v63  ;;  %v5018_v63 = vunpack.c.l.b16 %v4459_v40  ;;  %v10716_v51 = vld [vmem:[%s12381_s7 + $0xd4] sm:$0xf] }
 0x30c   : > { %8012 = vmatpush.bf16.msrb.mxu0 %v10458_v24  ;;  %v10570_v24 = vor.u32 %v11173_v5, %v10569_v3  ;;  %v10634_v34 = vor.u32 %v11189_v11, %v10633_v7  ;;  %v8702_v3 = vor.u32 %v10704_v47, %v8699_v48  ;;  %v5019_v5 = vunpack.c.h.b16 %v4459_v40  ;;  %v10700_v48 = vld [vmem:[%s12381_s7 + $0x54] sm:$0xf] }
 0x30d   : > { %8025 = vmatpush.bf16.msrb.mxu1 %v10522_v26  ;;  %v10561_v26 = vld [vmem:[%s12381_s7 + $0xf00] sm:$0xf]  ;;  %v8766_v7 = vor.u32 %v10720_v50, %v8763_v54  ;;  %v8683_v50 = vld [vmem:[%s12381_s7 + $0x58] sm:$0xf0] }
 0x30e   : > { %8038 = vmatpush.bf16.msrb.mxu2 %v10586_v27  ;;  %v11171_v27 = vld [vmem:[%s12381_s7 + $0xf04] sm:$0xf0]  ;;  %v8747_v54 = vld [vmem:[%s12381_s7 + $0xd8] sm:$0xf0] }
 0x30f   : > { %8051 = vmatpush.bf16.msrb.mxu3 %v10650_v39  ;;  %v11187_v39 = vld [vmem:[%s12381_s7 + $0xf84] sm:$0xf0] }
 0x310   : > { %8013 = vmatpush.bf16.msrb.mxu0 %v10450_v56  ;;  %v8827_v56 = vld [vmem:[%s12381_s7 + $0x178] sm:$0xf0]  ;;  %v10626_v1 = vor.u32 %v11187_v39, %v10625_v36  ;;  %v8883_v36 = vld [vmem:[%s12381_s7 + $0x1e8] sm:$0xf0]  ;;  %v13057_v39 = vpack.c.b16 %v5019_v5, %v5019_v5 }
 0x311   : > { %8026 = vmatpush.bf16.msrb.mxu1 %v10514_v59  ;;  %v10498_v59 = vor.u32 %v11155_v22, %v10497_v52  ;;  %v8830_v11 = vor.u32 %v10736_v55, %v8827_v56  ;;  %v8894_v52 = vor.u32 %v10752_v61, %v8891_v62  ;;  %v13046_v22 = vpack.c.b16 %v5016_v57, %v5016_v57  ;;  %v10732_v55 = vld [vmem:[%s12381_s7 + $0x154] sm:$0xf]  ;;  %v8811_v56 = vld [vmem:[%s12381_s7 + $0x158] sm:$0xf0]  ;;  %v8739_v5 = vld [vmem:[%s12381_s7 + $0xc8] sm:$0xf0] }
 0x312   : > { %8039 = vmatpush.bf16.msrb.mxu2 %v10578_v60  ;;  %v10562_v60 = vor.u32 %v11171_v27, %v10561_v26  ;;  %v8819_v26 = vld [vmem:[%s12381_s7 + $0x168] sm:$0xf0]  ;;  %v13051_v27 = vpack.c.b16 %v5018_v63, %v5018_v63  ;;  %v10748_v57 = vld [vmem:[%s12381_s7 + $0x1d4] sm:$0xf]  ;;  %v8750_v61 = vor.u32 %v10716_v51, %v8747_v54  ;;  %v8814_v62 = vor.u32 %v10732_v55, %v8811_v56  ;;  %v10698_v63 = vld [vmem:[%s12381_s7 + $0x44] sm:$0xf] }
 0x313   : > { %8052 = vmatpush.bf16.msrb.mxu3 %v10642_v0  ;;  %v5017_v0 = vunpack.c.h.b16 %v4458_v32  ;;  %v10728_v51 = vld [vmem:[%s12381_s7 + $0x134] sm:$0xf]  ;;  %v8859_v54 = vld [vmem:[%s12381_s7 + $0x1b8] sm:$0xf0] }
 0x314   : > { %8014 = vmatpush.bf16.msrb.mxu0 %v10442_v17  ;;  %v8691_v17 = vld [vmem:[%s12381_s7 + $0x68] sm:$0xf0] }
 0x315   : > { %8027 = vmatpush.bf16.msrb.mxu1 %v10506_v19  ;;  %v8755_v19 = vld [vmem:[%s12381_s7 + $0xe8] sm:$0xf0]  ;;  %v13053_v32 = vpack.c.b16 %v5017_v0, %v5017_v0  ;;  %v8694_v40 = vor.u32 %v10702_v14, %v8691_v17  ;;  %v10746_v17 = vld [vmem:[%s12381_s7 + $0x1c4] sm:$0xf] }
 0x316   : > { %8040 = vmatpush.bf16.msrb.mxu2 %v10570_v24  ;;  %v10734_v24 = vld [vmem:[%s12381_s7 + $0x164] sm:$0xf]  ;;  %v8758_v43 = vor.u32 %v10718_v18, %v8755_v19  ;;  %v8675_v0 = vld [vmem:[%s12381_s7 + $0x48] sm:$0xf0] }
 0x317   : > { %8053 = vmatpush.bf16.msrb.mxu3 %v10634_v34  ;;  %v10750_v34 = vld [vmem:[%s12381_s7 + $0x1e4] sm:$0xf]  ;;  %v8822_v47 = vor.u32 %v10734_v24, %v8819_v26  ;;  %v8867_v18 = vld [vmem:[%s12381_s7 + $0x1c8] sm:$0xf0]  ;;  %v8678_v19 = vor.u32 %v10698_v63, %v8675_v0 }
 0x318   : > { %8015 = vmatpush.bf16.msrb.mxu0 %v10434_v53  ;;  %v8886_v53 = vor.u32 %v10750_v34, %v8883_v36  ;;  %v7809_v14 = vpop.f32.mrf.mxu0  ;;  %v10696_v36 = vld [vmem:[%s12381_s7 + $0x34] sm:$0xf]  ;;  %v8723_v0 = vld [vmem:[%s12381_s7 + $0xa8] sm:$0xf0] }
 0x319   : > { %8028 = vmatpush.bf16.msrb.mxu1 %v10498_v59  ;;  %v8875_v59 = vld [vmem:[%s12381_s7 + $0x1d8] sm:$0xf0]  ;;  %v7822_v24 = vpop.f32.mrf.mxu1 }
 0x31a   : > { %8041 = vmatpush.bf16.msrb.mxu2 %v10562_v60  ;;  %v8686_v60 = vor.u32 %v10700_v48, %v8683_v50  ;;  %v8731_v50 = vld [vmem:[%s12381_s7 + $0xb8] sm:$0xf0] }
 0x31b   : > { %8054 = vmatpush.bf16.msrb.mxu3 %v10626_v1  ;;  %8016 = vmatmul.bf16.vlgmr.msrb.gmra.mxu0 %v13046_v22  ;;  %v10714_v1 = vld [vmem:[%s12381_s7 + $0xc4] sm:$0xf] }
 0x31c   : > { %8060 = vmatpush.bf16.msra.mxu0 %v8702_v3  ;;  %8029 = vmatmul.bf16.vlgmr.msrb.gmra.mxu1 %v13053_v32  ;;  %v8878_v3 = vor.u32 %v10748_v57, %v8875_v59  ;;  %v8742_v26 = vor.u32 %v10714_v1, %v8739_v5  ;;  %v10694_v59 = vld [vmem:[%s12381_s7 + $0x24] sm:$0xf] }
 0x31d   : > { %8073 = vmatpush.bf16.msra.mxu1 %v8766_v7  ;;  %8042 = vmatmul.bf16.vlgmr.msrb.gmra.mxu2 %v13051_v27  ;;  %v10730_v7 = vld [vmem:[%s12381_s7 + $0x144] sm:$0xf] }
 0x31e   : > { %8086 = vmatpush.bf16.msra.mxu2 %v8830_v11  ;;  %8055 = vmatmul.bf16.vlgmr.msrb.gmra.mxu3 %v13057_v39  ;;  %v8803_v11 = vld [vmem:[%s12381_s7 + $0x148] sm:$0xf0]  ;;  %v10726_v1 = vld [vmem:[%s12381_s7 + $0x124] sm:$0xf] }
 0x31f   : > { %8099 = vmatpush.bf16.msra.mxu3 %v8894_v52  ;;  %v7810_v52 = vadd.f32 %v7809_v14, %v13011_v58  ;;  %v8806_v34 = vor.u32 %v10730_v7, %v8803_v11  ;;  %v8795_v58 = vld [vmem:[%s12381_s7 + $0x138] sm:$0xf0]  ;;  %v10742_v11 = vld [vmem:[%s12381_s7 + $0x1a4] sm:$0xf]  ;;  %v8851_v14 = vld [vmem:[%s12381_s7 + $0x1a8] sm:$0xf0] }
 0x320   : > { %8061 = vmatpush.bf16.msra.mxu0 %v8694_v40  ;;  %v8667_v40 = vld [vmem:[%s12381_s7 + $0x38] sm:$0xf0]  ;;  %v8798_v57 = vor.u32 %v10728_v51, %v8795_v58  ;;  %v7835_v63 = vpop.f32.mrf.mxu2  ;;  %v10740_v51 = vld [vmem:[%s12381_s7 + $0x194] sm:$0xf] }
 0x321   : > { %8074 = vmatpush.bf16.msra.mxu1 %v8758_v43  ;;  %v10712_v43 = vld [vmem:[%s12381_s7 + $0xb4] sm:$0xf]  ;;  %v7823_v48 = vadd.f32 %v7822_v24, %v7810_v52  ;;  %v8670_v55 = vor.u32 %v10696_v36, %v8667_v40  ;;  %v7848_v7 = vpop.f32.mrf.mxu3  ;;  %v7824_v52 = vpop.f32.mrf.mxu1  ;;  %v8651_v36 = vld [vmem:[%s12381_s7 + $0x18] sm:$0xf0] }
 0x322   : > { %8087 = vmatpush.bf16.msra.mxu2 %v8822_v47  ;;  %v8870_v47 = vor.u32 %v10746_v17, %v8867_v18  ;;  %v8734_v56 = vor.u32 %v10712_v43, %v8731_v50  ;;  %v7811_v17 = vpop.f32.mrf.mxu0  ;;  %v10708_v40 = vld [vmem:[%s12381_s7 + $0x94] sm:$0xf]  ;;  %v8854_v43 = vor.u32 %v10742_v11, %v8851_v14  ;;  %v8779_v50 = vld [vmem:[%s12381_s7 + $0x118] sm:$0xf0] }
 0x323   : > { %8100 = vmatpush.bf16.msra.mxu3 %v8886_v53  ;;  %v10744_v53 = vld [vmem:[%s12381_s7 + $0x1b4] sm:$0xf]  ;;  %v7836_v5 = vadd.f32 %v7835_v63, %v7823_v48  ;;  %v8843_v58 = vld [vmem:[%s12381_s7 + $0x198] sm:$0xf0]  ;;  %v8771_v63 = vld [vmem:[%s12381_s7 + $0x108] sm:$0xf0] }
 0x324   : > { %8062 = vmatpush.bf16.msra.mxu0 %v8686_v60  ;;  %v8659_v60 = vld [vmem:[%s12381_s7 + $0x28] sm:$0xf0]  ;;  %v10724_v48 = vld [vmem:[%s12381_s7 + $0x114] sm:$0xf] }
 0x325   : > { %8075 = vmatpush.bf16.msra.mxu1 %v8750_v61  ;;  %v10710_v61 = vld [vmem:[%s12381_s7 + $0xa4] sm:$0xf]  ;;  %v8662_v18 = vor.u32 %v10694_v59, %v8659_v60  ;;  %v8707_v60 = vld [vmem:[%s12381_s7 + $0x88] sm:$0xf0]  ;;  %v10784_v11 = vld [vmem:[%s12381_s7 + $0x2f4] sm:$0xf] }
 0x326   : > { %8088 = vmatpush.bf16.msra.mxu2 %v8814_v62  ;;  %v8862_v62 = vor.u32 %v10744_v53, %v8859_v54  ;;  %v8726_v24 = vor.u32 %v10710_v61, %v8723_v0  ;;  %v10690_v54 = vld [vmem:[%s12381_s7 + $0x4] sm:$0xf]  ;;  %v10800_v52 = vld [vmem:[%s12381_s7 + $0x374] sm:$0xf] }
 0x327   : > { %8101 = vmatpush.bf16.msra.mxu3 %v8878_v3  ;;  %v8787_v3 = vld [vmem:[%s12381_s7 + $0x128] sm:$0xf0]  ;;  %v10706_v59 = vld [vmem:[%s12381_s7 + $0x84] sm:$0xf] }
 0x328   : > { %8063 = vmatpush.bf16.msra.mxu0 %v8678_v19  ;;  %v13096_v19 = vadd.f32 %v7848_v7, %v7836_v5  ;;  %v10722_v61 = vld [vmem:[%s12381_s7 + $0x104] sm:$0xf]  ;;  %v10768_v5 = vld [vmem:[%s12381_s7 + $0x274] sm:$0xf]  ;;  %v8955_v7 = vld [vmem:[%s12381_s7 + $0x278] sm:$0xf0] }
 0x329   : > { %8076 = vmatpush.bf16.msra.mxu1 %v8742_v26  ;;  %v8790_v26 = vor.u32 %v10726_v1, %v8787_v3  ;;  %v10738_v0 = vld [vmem:[%s12381_s7 + $0x184] sm:$0xf]  ;;  %v8835_v1 = vld [vmem:[%s12381_s7 + $0x188] sm:$0xf0]  ;;  %v7837_v3 = vpop.f32.mrf.mxu2  ;;  %v7850_v14 = vpop.f32.mrf.mxu3 }
 0x32a   : > { %8089 = vmatpush.bf16.msra.mxu2 %v8806_v34  ;;  %v10692_v34 = vld [vmem:[%s12381_s7 + $0x14] sm:$0xf]  ;;  %v9067_v14 = vld [vmem:[%s12381_s7 + $0x358] sm:$0xf0] }
 0x32b   : > { %8102 = vmatpush.bf16.msra.mxu3 %v8870_v47  ;;  %v8715_v47 = vld [vmem:[%s12381_s7 + $0x98] sm:$0xf0]  ;;  %v8654_v53 = vor.u32 %v10692_v34, %v8651_v36  ;;  %v8774_v34 = vor.u32 %v10722_v61, %v8771_v63  ;;  %v10816_v36 = vld [vmem:[%s12381_s7 + $0x3f4] sm:$0xf] }
 0x32c   : > { %8064 = vmatpush.bf16.msra.mxu0 %v8670_v55  ;;  %v8643_v55 = vld [vmem:[%s12381_s7 + $0x8] sm:$0xf0]  ;;  %v10780_v3 = vld [vmem:[%s12381_s7 + $0x2d4] sm:$0xf] }
 0x32d   : > { %8077 = vmatpush.bf16.msra.mxu1 %v8734_v56  ;;  %v8718_v56 = vor.u32 %v10708_v40, %v8715_v47  ;;  %v8646_v17 = vor.u32 %v10690_v54, %v8643_v55  ;;  %v9147_v40 = vld [vmem:[%s12381_s7 + $0x3f8] sm:$0xf0]  ;;  %v8958_v47 = vor.u32 %v10768_v5, %v8955_v7  ;;  %v9011_v55 = vld [vmem:[%s12381_s7 + $0x2e8] sm:$0xf0] }
 0x32e   : > { %8090 = vmatpush.bf16.msra.mxu2 %v8798_v57  ;;  %v8782_v57 = vor.u32 %v10724_v48, %v8779_v50  ;;  %v9150_v54 = vor.u32 %v10816_v36, %v9147_v40  ;;  %v9003_v7 = vld [vmem:[%s12381_s7 + $0x2d8] sm:$0xf0]  ;;  %v10778_v36 = vld [vmem:[%s12381_s7 + $0x2c4] sm:$0xf] }
 0x32f   : > { %8103 = vmatpush.bf16.msra.mxu3 %v8862_v62  ;;  %v8846_v62 = vor.u32 %v10740_v51, %v8843_v58  ;;  %v10766_v51 = vld [vmem:[%s12381_s7 + $0x264] sm:$0xf]  ;;  %v8947_v58 = vld [vmem:[%s12381_s7 + $0x268] sm:$0xf0] }
 0x330   : > { %8065 = vmatpush.bf16.msra.mxu0 %v8662_v18  ;;  %v9019_v18 = vld [vmem:[%s12381_s7 + $0x2f8] sm:$0xf0]  ;;  %v8950_v61 = vor.u32 %v10766_v51, %v8947_v58 }
 0x331   : > { %8078 = vmatpush.bf16.msra.mxu1 %v8726_v24  ;;  %v9083_v24 = vld [vmem:[%s12381_s7 + $0x378] sm:$0xf0]  ;;  %v9022_v48 = vor.u32 %v10784_v11, %v9019_v18  ;;  %v10796_v11 = vld [vmem:[%s12381_s7 + $0x354] sm:$0xf] }
 0x332   : > { %8091 = vmatpush.bf16.msra.mxu2 %v8790_v26  ;;  %v8710_v26 = vor.u32 %v10706_v59, %v8707_v60  ;;  %v9086_v50 = vor.u32 %v10800_v52, %v9083_v24  ;;  %v10814_v59 = vld [vmem:[%s12381_s7 + $0x3e4] sm:$0xf]  ;;  %v9139_v60 = vld [vmem:[%s12381_s7 + $0x3e8] sm:$0xf0]  ;;  %v9131_v18 = vld [vmem:[%s12381_s7 + $0x3d8] sm:$0xf0]  ;;  %v9006_v24 = vor.u32 %v10780_v3, %v9003_v7 }
 0x333   : > { %8104 = vmatpush.bf16.msra.mxu3 %v8854_v43  ;;  %v8838_v43 = vor.u32 %v10738_v0, %v8835_v1  ;;  %v10764_v0 = vld [vmem:[%s12381_s7 + $0x254] sm:$0xf]  ;;  %v8939_v1 = vld [vmem:[%s12381_s7 + $0x258] sm:$0xf0]  ;;  %v9142_v5 = vor.u32 %v10814_v59, %v9139_v60  ;;  %v10758_v7 = vld [vmem:[%s12381_s7 + $0x224] sm:$0xf] }
 0x334   : > { %8066 = vmatpush.bf16.msra.mxu0 %v8654_v53  ;;  %v10782_v53 = vld [vmem:[%s12381_s7 + $0x2e4] sm:$0xf]  ;;  %v8942_v52 = vor.u32 %v10764_v0, %v8939_v1  ;;  %v9115_v0 = vld [vmem:[%s12381_s7 + $0x3b8] sm:$0xf0] }
 0x335   : > { %8079 = vmatpush.bf16.msra.mxu1 %v8718_v56  ;;  %v10798_v56 = vld [vmem:[%s12381_s7 + $0x364] sm:$0xf] }
 0x336   : > { %8092 = vmatpush.bf16.msra.mxu2 %v8782_v57  ;;  %v9075_v57 = vld [vmem:[%s12381_s7 + $0x368] sm:$0xf0] }
 0x337   : > { %8105 = vmatpush.bf16.msra.mxu3 %v8846_v62  ;;  %v9014_v62 = vor.u32 %v10782_v53, %v9011_v55  ;;  %v9078_v63 = vor.u32 %v10798_v56, %v9075_v57  ;;  %v10760_v55 = vld [vmem:[%s12381_s7 + $0x234] sm:$0xf]  ;;  %v8923_v56 = vld [vmem:[%s12381_s7 + $0x238] sm:$0xf0] }
 0x338   : > { %8067 = vmatpush.bf16.msra.mxu0 %v8646_v17  ;;  %v10812_v17 = vld [vmem:[%s12381_s7 + $0x3d4] sm:$0xf]  ;;  %v8926_v1 = vor.u32 %v10760_v55, %v8923_v56  ;;  %v9035_v56 = vld [vmem:[%s12381_s7 + $0x318] sm:$0xf0] }
 0x339   : > { %8080 = vmatpush.bf16.msra.mxu1 %v8710_v26  ;;  %v9070_v26 = vor.u32 %v10796_v11, %v9067_v14  ;;  %v9134_v40 = vor.u32 %v10812_v17, %v9131_v18  ;;  %v7874_v58 = vpop.f32.mrf.mxu1  ;;  %v10776_v57 = vld [vmem:[%s12381_s7 + $0x2b4] sm:$0xf]  ;;  %v8915_v11 = vld [vmem:[%s12381_s7 + $0x228] sm:$0xf0]  ;;  %v10774_v14 = vld [vmem:[%s12381_s7 + $0x2a4] sm:$0xf] }
 0x33a   : > { %8093 = vmatpush.bf16.msra.mxu2 %v8774_v34  ;;  %v8931_v34 = vld [vmem:[%s12381_s7 + $0x248] sm:$0xf0]  ;;  %v10788_v55 = vld [vmem:[%s12381_s7 + $0x314] sm:$0xf] }
 0x33b   : > { %8106 = vmatpush.bf16.msra.mxu3 %v8838_v43  ;;  %8068 = vmatmul.bf16.vlgmr.msra.gmra.mxu0 %v12490_v20  ;;  %v8995_v20 = vld [vmem:[%s12381_s7 + $0x2c8] sm:$0xf0] }
 0x33c   : > { %8112 = vmatpush.bf16.msrb.mxu0 %v8958_v47  ;;  %8081 = vmatmul.bf16.vlgmr.msra.gmra.mxu1 %v12493_v21  ;;  %v9059_v43 = vld [vmem:[%s12381_s7 + $0x348] sm:$0xf0]  ;;  %v7861_v47 = vpop.f32.mrf.mxu0  ;;  %v8998_v53 = vor.u32 %v10778_v36, %v8995_v20  ;;  %v10806_v36 = vld [vmem:[%s12381_s7 + $0x3a4] sm:$0xf] }
 0x33d   : > { %8125 = vmatpush.bf16.msrb.mxu1 %v9022_v48  ;;  %8094 = vmatmul.bf16.vlgmr.msra.gmra.mxu2 %v12474_v4  ;;  %v10762_v4 = vld [vmem:[%s12381_s7 + $0x244] sm:$0xf]  ;;  %v7862_v21 = vadd.f32 %v7861_v47, %v13096_v19  ;;  %v9051_v19 = vld [vmem:[%s12381_s7 + $0x338] sm:$0xf0] }
 0x33e   : > { %8138 = vmatpush.bf16.msrb.mxu2 %v9086_v50  ;;  %8107 = vmatmul.bf16.vlgmr.msra.gmra.mxu3 %v12479_v6  ;;  %v10794_v6 = vld [vmem:[%s12381_s7 + $0x344] sm:$0xf]  ;;  %v9123_v50 = vld [vmem:[%s12381_s7 + $0x3c8] sm:$0xf0]  ;;  %v8934_v51 = vor.u32 %v10762_v4, %v8931_v34 }
 0x33f   : > { %8151 = vmatpush.bf16.msrb.mxu3 %v9150_v54  ;;  %v10810_v48 = vld [vmem:[%s12381_s7 + $0x3c4] sm:$0xf]  ;;  %v9062_v54 = vor.u32 %v10794_v6, %v9059_v43  ;;  %v7875_v60 = vadd.f32 %v7874_v58, %v7862_v21  ;;  %v8918_v6 = vor.u32 %v10758_v7, %v8915_v11  ;;  %v10756_v21 = vld [vmem:[%s12381_s7 + $0x214] sm:$0xf]  ;;  %v9027_v7 = vld [vmem:[%s12381_s7 + $0x308] sm:$0xf0] }
 0x340   : > { %8113 = vmatpush.bf16.msrb.mxu0 %v8950_v61  ;;  %v9126_v59 = vor.u32 %v10810_v48, %v9123_v50  ;;  %v8987_v61 = vld [vmem:[%s12381_s7 + $0x2b8] sm:$0xf0]  ;;  %v7887_v18 = vpop.f32.mrf.mxu2  ;;  %v10772_v58 = vld [vmem:[%s12381_s7 + $0x294] sm:$0xf]  ;;  %v10802_v11 = vld [vmem:[%s12381_s7 + $0x384] sm:$0xf] }
 0x341   : > { %8126 = vmatpush.bf16.msrb.mxu1 %v9014_v62  ;;  %v10792_v62 = vld [vmem:[%s12381_s7 + $0x334] sm:$0xf]  ;;  %v8990_v3 = vor.u32 %v10776_v57, %v8987_v61  ;;  %v7888_v4 = vadd.f32 %v7887_v18, %v7875_v60  ;;  %v7900_v34 = vpop.f32.mrf.mxu3  ;;  %v7876_v43 = vpop.f32.mrf.mxu1  ;;  %v10754_v61 = vld [vmem:[%s12381_s7 + $0x204] sm:$0xf] }
 0x342   : > { %8139 = vmatpush.bf16.msrb.mxu2 %v9078_v63  ;;  %v10808_v63 = vld [vmem:[%s12381_s7 + $0x3b4] sm:$0xf] }
 0x343   : > { %8152 = vmatpush.bf16.msrb.mxu3 %v9142_v5  ;;  %v9054_v5 = vor.u32 %v10792_v62, %v9051_v19  ;;  %v9118_v17 = vor.u32 %v10808_v63, %v9115_v0  ;;  %v13167_v47 = vadd.f32 %v7900_v34, %v7888_v4  ;;  %v10804_v57 = vld [vmem:[%s12381_s7 + $0x394] sm:$0xf]  ;;  %v8899_v62 = vld [vmem:[%s12381_s7 + $0x208] sm:$0xf0]  ;;  %v9038_v63 = vor.u32 %v10788_v55, %v9035_v56  ;;  %v10770_v0 = vld [vmem:[%s12381_s7 + $0x284] sm:$0xf] }
 0x344   : > { %8114 = vmatpush.bf16.msrb.mxu0 %v8942_v52  ;;  %v8979_v52 = vld [vmem:[%s12381_s7 + $0x2a8] sm:$0xf0]  ;;  %v7863_v20 = vpop.f32.mrf.mxu0  ;;  %v10832_v18 = vld [vmem:[%s12381_s7 + $0x474] sm:$0xf]  ;;  %v8902_v4 = vor.u32 %v10754_v61, %v8899_v62  ;;  %v9275_v34 = vld [vmem:[%s12381_s7 + $0x4f8] sm:$0xf0] }
 0x345   : > { %8127 = vmatpush.bf16.msrb.mxu1 %v9006_v24  ;;  %v10790_v24 = vld [vmem:[%s12381_s7 + $0x324] sm:$0xf]  ;;  %v8982_v48 = vor.u32 %v10774_v14, %v8979_v52  ;;  %v9091_v14 = vld [vmem:[%s12381_s7 + $0x388] sm:$0xf0]  ;;  %v9211_v52 = vld [vmem:[%s12381_s7 + $0x478] sm:$0xf0] }
 0x346   : > { %8140 = vmatpush.bf16.msrb.mxu2 %v9070_v26  ;;  %v9043_v26 = vld [vmem:[%s12381_s7 + $0x328] sm:$0xf0]  ;;  %v10880_v43 = vld [vmem:[%s12381_s7 + $0x5f4] sm:$0xf]  ;;  %v10846_v55 = vld [vmem:[%s12381_s7 + $0x4e4] sm:$0xf] }
 0x347   : > { %8153 = vmatpush.bf16.msrb.mxu3 %v9134_v40  ;;  %v9107_v40 = vld [vmem:[%s12381_s7 + $0x3a8] sm:$0xf0]  ;;  %v9046_v50 = vor.u32 %v10790_v24, %v9043_v26  ;;  %v10848_v24 = vld [vmem:[%s12381_s7 + $0x4f4] sm:$0xf]  ;;  %v10878_v61 = vld [vmem:[%s12381_s7 + $0x5e4] sm:$0xf] }
 0x348   : > { %8115 = vmatpush.bf16.msrb.mxu0 %v8934_v51  ;;  %v8907_v51 = vld [vmem:[%s12381_s7 + $0x218] sm:$0xf0]  ;;  %v9395_v62 = vld [vmem:[%s12381_s7 + $0x5e8] sm:$0xf0] }
 0x349   : > { %8128 = vmatpush.bf16.msrb.mxu1 %v8998_v53  ;;  %v9110_v53 = vor.u32 %v10806_v36, %v9107_v40  ;;  %v8910_v60 = vor.u32 %v10756_v21, %v8907_v51  ;;  %v7902_v26 = vpop.f32.mrf.mxu3  ;;  %v10864_v36 = vld [vmem:[%s12381_s7 + $0x574] sm:$0xf]  ;;  %v9339_v40 = vld [vmem:[%s12381_s7 + $0x578] sm:$0xf0]  ;;  %v9214_v21 = vor.u32 %v10832_v18, %v9211_v52  ;;  %v9278_v51 = vor.u32 %v10848_v24, %v9275_v34  ;;  %v9187_v34 = vld [vmem:[%s12381_s7 + $0x448] sm:$0xf0] }
 0x34a   : > { %8141 = vmatpush.bf16.msrb.mxu2 %v9062_v54  ;;  %v8971_v54 = vld [vmem:[%s12381_s7 + $0x298] sm:$0xf0]  ;;  %v10876_v18 = vld [vmem:[%s12381_s7 + $0x5d4] sm:$0xf] }
 0x34b   : > { %8154 = vmatpush.bf16.msrb.mxu3 %v9126_v59  ;;  %v9099_v59 = vld [vmem:[%s12381_s7 + $0x398] sm:$0xf0]  ;;  %v8974_v19 = vor.u32 %v10772_v58, %v8971_v54  ;;  %v9342_v58 = vor.u32 %v10864_v36, %v9339_v40  ;;  %v9203_v54 = vld [vmem:[%s12381_s7 + $0x468] sm:$0xf0]  ;;  %v10858_v40 = vld [vmem:[%s12381_s7 + $0x544] sm:$0xf] }
 0x34c   : > { %8116 = vmatpush.bf16.msrb.mxu0 %v8926_v1  ;;  %v8963_v1 = vld [vmem:[%s12381_s7 + $0x288] sm:$0xf0]  ;;  %v9387_v52 = vld [vmem:[%s12381_s7 + $0x5d8] sm:$0xf0] }
 0x34d   : > { %8129 = vmatpush.bf16.msrb.mxu1 %v8990_v3  ;;  %v10786_v3 = vld [vmem:[%s12381_s7 + $0x304] sm:$0xf]  ;;  %v8966_v20 = vor.u32 %v10770_v0, %v8963_v1  ;;  %v10828_v1 = vld [vmem:[%s12381_s7 + $0x454] sm:$0xf]  ;;  %v9251_v36 = vld [vmem:[%s12381_s7 + $0x4c8] sm:$0xf0] }
 0x34e   : > { %8142 = vmatpush.bf16.msrb.mxu2 %v9054_v5  ;;  %v9102_v5 = vor.u32 %v10804_v57, %v9099_v59  ;;  %v9267_v57 = vld [vmem:[%s12381_s7 + $0x4e8] sm:$0xf0]  ;;  %v10862_v59 = vld [vmem:[%s12381_s7 + $0x564] sm:$0xf] }
 0x34f   : > { %8155 = vmatpush.bf16.msrb.mxu3 %v9118_v17  ;;  %v7889_v17 = vpop.f32.mrf.mxu2 }
 0x350   : > { %8117 = vmatpush.bf16.msrb.mxu0 %v8918_v6  ;;  %v9030_v6 = vor.u32 %v10786_v3, %v9027_v7  ;;  %v9195_v3 = vld [vmem:[%s12381_s7 + $0x458] sm:$0xf0]  ;;  %v9398_v7 = vor.u32 %v10878_v61, %v9395_v62  ;;  %v10872_v61 = vld [vmem:[%s12381_s7 + $0x5b4] sm:$0xf] }
 0x351   : > { %8130 = vmatpush.bf16.msrb.mxu1 %v8982_v48  ;;  %v9403_v48 = vld [vmem:[%s12381_s7 + $0x5f8] sm:$0xf0]  ;;  %v9198_v24 = vor.u32 %v10828_v1, %v9195_v3  ;;  %v10822_v1 = vld [vmem:[%s12381_s7 + $0x424] sm:$0xf]  ;;  %v9171_v3 = vld [vmem:[%s12381_s7 + $0x428] sm:$0xf0] }
 0x352   : > { %8143 = vmatpush.bf16.msrb.mxu2 %v9046_v50  ;;  %v9094_v50 = vor.u32 %v10802_v11, %v9091_v14  ;;  %v9406_v56 = vor.u32 %v10880_v43, %v9403_v48  ;;  %v9259_v11 = vld [vmem:[%s12381_s7 + $0x4d8] sm:$0xf0]  ;;  %v10860_v14 = vld [vmem:[%s12381_s7 + $0x554] sm:$0xf]  ;;  %v10874_v43 = vld [vmem:[%s12381_s7 + $0x5c4] sm:$0xf] }
 0x353   : > { %8156 = vmatpush.bf16.msrb.mxu3 %v9110_v53  ;;  %v10830_v53 = vld [vmem:[%s12381_s7 + $0x464] sm:$0xf]  ;;  %v9323_v17 = vld [vmem:[%s12381_s7 + $0x558] sm:$0xf0]  ;;  %v9379_v48 = vld [vmem:[%s12381_s7 + $0x5c8] sm:$0xf0] }
 0x354   : > { %8118 = vmatpush.bf16.msrb.mxu0 %v8910_v60  ;;  %v9331_v60 = vld [vmem:[%s12381_s7 + $0x568] sm:$0xf0]  ;;  %v9326_v26 = vor.u32 %v10860_v14, %v9323_v17  ;;  %v9371_v62 = vld [vmem:[%s12381_s7 + $0x5b8] sm:$0xf0]  ;;  %v10854_v17 = vld [vmem:[%s12381_s7 + $0x524] sm:$0xf] }
 0x355   : > { %8131 = vmatpush.bf16.msrb.mxu1 %v8974_v19  ;;  %v9206_v19 = vor.u32 %v10830_v53, %v9203_v54  ;;  %v9334_v0 = vor.u32 %v10862_v59, %v9331_v60  ;;  %v10824_v53 = vld [vmem:[%s12381_s7 + $0x434] sm:$0xf]  ;;  %v9179_v54 = vld [vmem:[%s12381_s7 + $0x438] sm:$0xf0]  ;;  %v9235_v14 = vld [vmem:[%s12381_s7 + $0x4a8] sm:$0xf0] }
 0x356   : > { %8144 = vmatpush.bf16.msrb.mxu2 %v9038_v63  ;;  %v9270_v63 = vor.u32 %v10846_v55, %v9267_v57  ;;  %v10840_v55 = vld [vmem:[%s12381_s7 + $0x4b4] sm:$0xf]  ;;  %v9243_v59 = vld [vmem:[%s12381_s7 + $0x4b8] sm:$0xf0] }
 0x357   : > { %8157 = vmatpush.bf16.msrb.mxu3 %v9102_v5  ;;  %v10844_v5 = vld [vmem:[%s12381_s7 + $0x4d4] sm:$0xf] }
 0x358   : > { %8119 = vmatpush.bf16.msrb.mxu0 %v8902_v4  ;;  %v10826_v4 = vld [vmem:[%s12381_s7 + $0x444] sm:$0xf]  ;;  %v10856_v60 = vld [vmem:[%s12381_s7 + $0x534] sm:$0xf] }
 0x359   : > { %8132 = vmatpush.bf16.msrb.mxu1 %v8966_v20  ;;  %v9315_v20 = vld [vmem:[%s12381_s7 + $0x548] sm:$0xf0] }
 0x35a   : > { %8145 = vmatpush.bf16.msrb.mxu2 %v9030_v6  ;;  %v7913_v6 = vpop.f32.mrf.mxu0 }
 0x35b   : > { %8158 = vmatpush.bf16.msrb.mxu3 %v9094_v50  ;;  %8120 = vmatmul.bf16.vlgmr.msrb.gmra.mxu0 %v12553_v41  ;;  %v10842_v41 = vld [vmem:[%s12381_s7 + $0x4c4] sm:$0xf]  ;;  %v9190_v50 = vor.u32 %v10826_v4, %v9187_v34  ;;  %v9174_v34 = vor.u32 %v10822_v1, %v9171_v3  ;;  %v10896_v1 = vld [vmem:[%s12381_s7 + $0x674] sm:$0xf]  ;;  %v9467_v3 = vld [vmem:[%s12381_s7 + $0x678] sm:$0xf0] }
 0x35c   : > { %8164 = vmatpush.bf16.msra.mxu0 %v9214_v21  ;;  %8133 = vmatmul.bf16.vlgmr.msrb.gmra.mxu1 %v12557_v44  ;;  %v7914_v44 = vadd.f32 %v7913_v6, %v13167_v47  ;;  %v7926_v21 = vpop.f32.mrf.mxu1  ;;  %v9307_v47 = vld [vmem:[%s12381_s7 + $0x538] sm:$0xf0] }
 0x35d   : > { %8177 = vmatpush.bf16.msra.mxu1 %v9278_v51  ;;  %8146 = vmatmul.bf16.vlgmr.msrb.gmra.mxu2 %v12549_v38  ;;  %v9262_v38 = vor.u32 %v10844_v5, %v9259_v11  ;;  %v9254_v51 = vor.u32 %v10842_v41, %v9251_v36  ;;  %v10838_v5 = vld [vmem:[%s12381_s7 + $0x4a4] sm:$0xf]  ;;  %v9163_v6 = vld [vmem:[%s12381_s7 + $0x418] sm:$0xf0] }
 0x35e   : > { %8190 = vmatpush.bf16.msra.mxu2 %v9342_v58  ;;  %8159 = vmatmul.bf16.vlgmr.msrb.gmra.mxu3 %v12555_v42  ;;  %v9390_v42 = vor.u32 %v10876_v18, %v9387_v52  ;;  %v9318_v58 = vor.u32 %v10858_v40, %v9315_v20  ;;  %v7927_v57 = vadd.f32 %v7926_v21, %v7914_v44  ;;  %v9299_v18 = vld [vmem:[%s12381_s7 + $0x528] sm:$0xf0]  ;;  %v10820_v20 = vld [vmem:[%s12381_s7 + $0x414] sm:$0xf]  ;;  %v9227_v44 = vld [vmem:[%s12381_s7 + $0x498] sm:$0xf0] }
 0x35f   : > { %8203 = vmatpush.bf16.msra.mxu3 %v9406_v56  ;;  %v9382_v56 = vor.u32 %v10874_v43, %v9379_v48  ;;  %v9238_v36 = vor.u32 %v10838_v5, %v9235_v14  ;;  %v9302_v40 = vor.u32 %v10854_v17, %v9299_v18  ;;  %v10836_v43 = vld [vmem:[%s12381_s7 + $0x494] sm:$0xf]  ;;  %v9291_v21 = vld [vmem:[%s12381_s7 + $0x518] sm:$0xf0] }
 0x360   : > { %8165 = vmatpush.bf16.msra.mxu0 %v9206_v19  ;;  %v9182_v19 = vor.u32 %v10824_v53, %v9179_v54  ;;  %v7939_v11 = vpop.f32.mrf.mxu2  ;;  %v9166_v53 = vor.u32 %v10820_v20, %v9163_v6  ;;  %v10818_v54 = vld [vmem:[%s12381_s7 + $0x404] sm:$0xf]  ;;  %v10912_v5 = vld [vmem:[%s12381_s7 + $0x6f4] sm:$0xf]  ;;  %v9531_v14 = vld [vmem:[%s12381_s7 + $0x6f8] sm:$0xf0] }
 0x361   : > { %8178 = vmatpush.bf16.msra.mxu1 %v9270_v63  ;;  %v9246_v63 = vor.u32 %v10840_v55, %v9243_v59  ;;  %v7940_v52 = vadd.f32 %v7939_v11, %v7927_v57  ;;  %v9155_v55 = vld [vmem:[%s12381_s7 + $0x408] sm:$0xf0]  ;;  %v10834_v59 = vld [vmem:[%s12381_s7 + $0x484] sm:$0xf]  ;;  %v10928_v17 = vld [vmem:[%s12381_s7 + $0x774] sm:$0xf] }
 0x362   : > { %8191 = vmatpush.bf16.msra.mxu2 %v9334_v0  ;;  %v9310_v0 = vor.u32 %v10856_v60, %v9307_v47  ;;  %v7915_v4 = vpop.f32.mrf.mxu0  ;;  %v9219_v60 = vld [vmem:[%s12381_s7 + $0x488] sm:$0xf0]  ;;  %v10850_v47 = vld [vmem:[%s12381_s7 + $0x504] sm:$0xf]  ;;  %v9158_v11 = vor.u32 %v10818_v54, %v9155_v55  ;;  %v9595_v18 = vld [vmem:[%s12381_s7 + $0x778] sm:$0xf0] }
 0x363   : > { %8204 = vmatpush.bf16.msra.mxu3 %v9398_v7  ;;  %v9374_v7 = vor.u32 %v10872_v61, %v9371_v62  ;;  %v9283_v62 = vld [vmem:[%s12381_s7 + $0x508] sm:$0xf0]  ;;  %v10910_v6 = vld [vmem:[%s12381_s7 + $0x6e4] sm:$0xf]  ;;  %v10892_v55 = vld [vmem:[%s12381_s7 + $0x654] sm:$0xf] }
 0x364   : > { %8166 = vmatpush.bf16.msra.mxu0 %v9198_v24  ;;  %v7952_v24 = vpop.f32.mrf.mxu3  ;;  %v7928_v41 = vpop.f32.mrf.mxu1  ;;  %v9459_v20 = vld [vmem:[%s12381_s7 + $0x668] sm:$0xf0] }
 0x365   : > { %8179 = vmatpush.bf16.msra.mxu1 %v9262_v38  ;;  %v10870_v38 = vld [vmem:[%s12381_s7 + $0x5a4] sm:$0xf]  ;;  %v9534_v41 = vor.u32 %v10912_v5, %v9531_v14  ;;  %v9507_v5 = vld [vmem:[%s12381_s7 + $0x6c8] sm:$0xf0] }
 0x366   : > { %8192 = vmatpush.bf16.msra.mxu2 %v9326_v26  ;;  %v9363_v26 = vld [vmem:[%s12381_s7 + $0x5a8] sm:$0xf0]  ;;  %v10938_v14 = vld [vmem:[%s12381_s7 + $0x7c4] sm:$0xf] }
 0x367   : > { %8205 = vmatpush.bf16.msra.mxu3 %v9390_v42  ;;  %v13238_v42 = vadd.f32 %v7952_v24, %v7940_v52  ;;  %v9366_v48 = vor.u32 %v10870_v38, %v9363_v26  ;;  %v9222_v52 = vor.u32 %v10834_v59, %v9219_v60  ;;  %v9286_v24 = vor.u32 %v10850_v47, %v9283_v62  ;;  %v10944_v38 = vld [vmem:[%s12381_s7 + $0x7f4] sm:$0xf]  ;;  %v9659_v26 = vld [vmem:[%s12381_s7 + $0x7f8] sm:$0xf0] }
 0x368   : > { %8167 = vmatpush.bf16.msra.mxu0 %v9190_v50  ;;  %v10852_v50 = vld [vmem:[%s12381_s7 + $0x514] sm:$0xf]  ;;  %v9515_v60 = vld [vmem:[%s12381_s7 + $0x6d8] sm:$0xf0] }
 0x369   : > { %8180 = vmatpush.bf16.msra.mxu1 %v9254_v51  ;;  %v10868_v51 = vld [vmem:[%s12381_s7 + $0x594] sm:$0xf]  ;;  %v9294_v57 = vor.u32 %v10852_v50, %v9291_v21  ;;  %v9587_v50 = vld [vmem:[%s12381_s7 + $0x768] sm:$0xf0]  ;;  %v10942_v21 = vld [vmem:[%s12381_s7 + $0x7e4] sm:$0xf] }
 0x36a   : > { %8193 = vmatpush.bf16.msra.mxu2 %v9318_v58  ;;  %v9355_v58 = vld [vmem:[%s12381_s7 + $0x598] sm:$0xf0]  ;;  %v10924_v47 = vld [vmem:[%s12381_s7 + $0x754] sm:$0xf] }
 0x36b   : > { %8206 = vmatpush.bf16.msra.mxu3 %v9382_v56  ;;  %v9230_v56 = vor.u32 %v10836_v43, %v9227_v44  ;;  %v9358_v61 = vor.u32 %v10868_v51, %v9355_v58  ;;  %v9662_v43 = vor.u32 %v10944_v38, %v9659_v26  ;;  %v10926_v44 = vld [vmem:[%s12381_s7 + $0x764] sm:$0xf]  ;;  %v9651_v51 = vld [vmem:[%s12381_s7 + $0x7e8] sm:$0xf0]  ;;  %v10940_v62 = vld [vmem:[%s12381_s7 + $0x7d4] sm:$0xf] }
 0x36c   : > { %8168 = vmatpush.bf16.msra.mxu0 %v9182_v19  ;;  %v10866_v19 = vld [vmem:[%s12381_s7 + $0x584] sm:$0xf]  ;;  %v9590_v54 = vor.u32 %v10926_v44, %v9587_v50  ;;  %v9654_v59 = vor.u32 %v10942_v21, %v9651_v51 }
 0x36d   : > { %8181 = vmatpush.bf16.msra.mxu1 %v9246_v63  ;;  %v9347_v63 = vld [vmem:[%s12381_s7 + $0x588] sm:$0xf0]  ;;  %v10886_v51 = vld [vmem:[%s12381_s7 + $0x624] sm:$0xf] }
 0x36e   : > { %8194 = vmatpush.bf16.msra.mxu2 %v9310_v0  ;;  %v7941_v0 = vpop.f32.mrf.mxu2  ;;  %v9350_v4 = vor.u32 %v10866_v19, %v9347_v63  ;;  %v9643_v19 = vld [vmem:[%s12381_s7 + $0x7d8] sm:$0xf0] }
 0x36f   : > { %8207 = vmatpush.bf16.msra.mxu3 %v9374_v7  ;;  %v7954_v7 = vpop.f32.mrf.mxu3 }
 0x370   : > { %8169 = vmatpush.bf16.msra.mxu0 %v9174_v34  ;;  %v9470_v34 = vor.u32 %v10896_v1, %v9467_v3  ;;  %v10890_v1 = vld [vmem:[%s12381_s7 + $0x644] sm:$0xf]  ;;  %v9443_v3 = vld [vmem:[%s12381_s7 + $0x648] sm:$0xf0] }
 0x371   : > { %8182 = vmatpush.bf16.msra.mxu1 %v9238_v36  ;;  %v9598_v36 = vor.u32 %v10928_v17, %v9595_v18  ;;  %v10922_v7 = vld [vmem:[%s12381_s7 + $0x744] sm:$0xf]  ;;  %v9635_v17 = vld [vmem:[%s12381_s7 + $0x7c8] sm:$0xf0] }
 0x372   : > { %8195 = vmatpush.bf16.msra.mxu2 %v9302_v40  ;;  %v10894_v40 = vld [vmem:[%s12381_s7 + $0x664] sm:$0xf] }
 0x373   : > { %8208 = vmatpush.bf16.msra.mxu3 %v9366_v48  ;;  %v9523_v48 = vld [vmem:[%s12381_s7 + $0x6e8] sm:$0xf0]  ;;  %v9462_v58 = vor.u32 %v10894_v40, %v9459_v20  ;;  %v9499_v20 = vld [vmem:[%s12381_s7 + $0x6b8] sm:$0xf0] }
 0x374   : > { %8170 = vmatpush.bf16.msra.mxu0 %v9166_v53  ;;  %v9526_v53 = vor.u32 %v10910_v6, %v9523_v48  ;;  %v10920_v6 = vld [vmem:[%s12381_s7 + $0x734] sm:$0xf]  ;;  %v9627_v48 = vld [vmem:[%s12381_s7 + $0x7b8] sm:$0xf0] }
 0x375   : > { %8183 = vmatpush.bf16.msra.mxu1 %v9230_v56  ;;  %v9451_v56 = vld [vmem:[%s12381_s7 + $0x658] sm:$0xf0] }
 0x376   : > { %8196 = vmatpush.bf16.msra.mxu2 %v9294_v57  ;;  %v10908_v57 = vld [vmem:[%s12381_s7 + $0x6d4] sm:$0xf] }
 0x377   : > { %8209 = vmatpush.bf16.msra.mxu3 %v9358_v61  ;;  %v9579_v61 = vld [vmem:[%s12381_s7 + $0x758] sm:$0xf0]  ;;  %v9518_v63 = vor.u32 %v10908_v57, %v9515_v60  ;;  %v10918_v57 = vld [vmem:[%s12381_s7 + $0x724] sm:$0xf] }
 0x378   : > { %8171 = vmatpush.bf16.msra.mxu0 %v9158_v11  ;;  %v9582_v0 = vor.u32 %v10924_v47, %v9579_v61  ;;  %v9571_v11 = vld [vmem:[%s12381_s7 + $0x748] sm:$0xf0]  ;;  %v10934_v61 = vld [vmem:[%s12381_s7 + $0x7a4] sm:$0xf] }
 0x379   : > { %8184 = vmatpush.bf16.msra.mxu1 %v9222_v52  ;;  %v9446_v52 = vor.u32 %v10890_v1, %v9443_v3  ;;  %v9574_v26 = vor.u32 %v10922_v7, %v9571_v11  ;;  %v9483_v11 = vld [vmem:[%s12381_s7 + $0x698] sm:$0xf0] }
 0x37a   : > { %8197 = vmatpush.bf16.msra.mxu2 %v9286_v24  ;;  %v7978_v24 = vpop.f32.mrf.mxu1 }
 0x37b   : > { %8210 = vmatpush.bf16.msra.mxu3 %v9350_v4  ;;  %8172 = vmatmul.bf16.vlgmr.msra.gmra.mxu0 %v12628_v25  ;;  %v9454_v25 = vor.u32 %v10892_v55, %v9451_v56  ;;  %v10888_v4 = vld [vmem:[%s12381_s7 + $0x634] sm:$0xf]  ;;  %v9491_v56 = vld [vmem:[%s12381_s7 + $0x6a8] sm:$0xf0] }
 0x37c   : > { %8216 = vmatpush.bf16.msrb.mxu0 %v9470_v34  ;;  %8185 = vmatmul.bf16.vlgmr.msra.gmra.mxu1 %v12635_v30  ;;  %v9646_v30 = vor.u32 %v10940_v62, %v9643_v19  ;;  %v9435_v34 = vld [vmem:[%s12381_s7 + $0x638] sm:$0xf0]  ;;  %v9619_v62 = vld [vmem:[%s12381_s7 + $0x7a8] sm:$0xf0] }
 0x37d   : > { %8229 = vmatpush.bf16.msrb.mxu1 %v9534_v41  ;;  %8198 = vmatmul.bf16.vlgmr.msra.gmra.mxu2 %v12633_v29  ;;  %v10906_v29 = vld [vmem:[%s12381_s7 + $0x6c4] sm:$0xf]  ;;  %v10904_v41 = vld [vmem:[%s12381_s7 + $0x6b4] sm:$0xf]  ;;  %v9438_v44 = vor.u32 %v10888_v4, %v9435_v34  ;;  %v9622_v7 = vor.u32 %v10934_v61, %v9619_v62 }
 0x37e   : > { %8242 = vmatpush.bf16.msrb.mxu2 %v9598_v36  ;;  %8211 = vmatmul.bf16.vlgmr.msra.gmra.mxu3 %v12639_v33  ;;  %v7965_v33 = vpop.f32.mrf.mxu0  ;;  %v9510_v38 = vor.u32 %v10906_v29, %v9507_v5  ;;  %v9638_v36 = vor.u32 %v10938_v14, %v9635_v17  ;;  %v9502_v50 = vor.u32 %v10904_v41, %v9499_v20  ;;  %v10884_v29 = vld [vmem:[%s12381_s7 + $0x614] sm:$0xf]  ;;  %v9547_v14 = vld [vmem:[%s12381_s7 + $0x718] sm:$0xf0]  ;;  %v10898_v34 = vld [vmem:[%s12381_s7 + $0x684] sm:$0xf] }
 0x37f   : > { %8255 = vmatpush.bf16.msrb.mxu3 %v9662_v43  ;;  %v7966_v18 = vadd.f32 %v7965_v33, %v13238_v42  ;;  %v9563_v42 = vld [vmem:[%s12381_s7 + $0x738] sm:$0xf0]  ;;  %v10936_v43 = vld [vmem:[%s12381_s7 + $0x7b4] sm:$0xf]  ;;  %v9475_v41 = vld [vmem:[%s12381_s7 + $0x688] sm:$0xf0] }
 0x380   : > { %8217 = vmatpush.bf16.msrb.mxu0 %v9462_v58  ;;  %v9566_v21 = vor.u32 %v10920_v6, %v9563_v42  ;;  %v9427_v58 = vld [vmem:[%s12381_s7 + $0x628] sm:$0xf0]  ;;  %v7991_v55 = vpop.f32.mrf.mxu2  ;;  %v10900_v5 = vld [vmem:[%s12381_s7 + $0x694] sm:$0xf]  ;;  %v10930_v6 = vld [vmem:[%s12381_s7 + $0x784] sm:$0xf] }
 0x381   : > { %8230 = vmatpush.bf16.msrb.mxu1 %v9526_v53  ;;  %v7979_v40 = vadd.f32 %v7978_v24, %v7966_v18  ;;  %v10902_v53 = vld [vmem:[%s12381_s7 + $0x6a4] sm:$0xf]  ;;  %v8004_v47 = vpop.f32.mrf.mxu3  ;;  %v10916_v33 = vld [vmem:[%s12381_s7 + $0x714] sm:$0xf]  ;;  %v9611_v18 = vld [vmem:[%s12381_s7 + $0x798] sm:$0xf0] }
 0x382   : > { %8243 = vmatpush.bf16.msrb.mxu2 %v9590_v54  ;;  %v9630_v54 = vor.u32 %v10936_v43, %v9627_v48  ;;  %v9494_v1 = vor.u32 %v10902_v53, %v9491_v56  ;;  %v10932_v17 = vld [vmem:[%s12381_s7 + $0x794] sm:$0xf]  ;;  %v10882_v24 = vld [vmem:[%s12381_s7 + $0x604] sm:$0xf]  ;;  %v9550_v4 = vor.u32 %v10916_v33, %v9547_v14  ;;  %v9539_v20 = vld [vmem:[%s12381_s7 + $0x708] sm:$0xf0] }
 0x383   : > { %8256 = vmatpush.bf16.msrb.mxu3 %v9654_v59  ;;  %v9555_v59 = vld [vmem:[%s12381_s7 + $0x728] sm:$0xf0]  ;;  %v7992_v60 = vadd.f32 %v7991_v55, %v7979_v40  ;;  %v9614_v40 = vor.u32 %v10932_v17, %v9611_v18  ;;  %v10960_v48 = vld [vmem:[%s12381_s7 + $0x874] sm:$0xf]  ;;  %v9478_v55 = vor.u32 %v10898_v34, %v9475_v41  ;;  %v9707_v18 = vld [vmem:[%s12381_s7 + $0x858] sm:$0xf0] }
 0x384   : > { %8218 = vmatpush.bf16.msrb.mxu0 %v9454_v25  ;;  %v9430_v25 = vor.u32 %v10886_v51, %v9427_v58  ;;  %v9558_v3 = vor.u32 %v10918_v57, %v9555_v59  ;;  %v9603_v42 = vld [vmem:[%s12381_s7 + $0x788] sm:$0xf0]  ;;  %v9787_v58 = vld [vmem:[%s12381_s7 + $0x8f8] sm:$0xf0]  ;;  %v10992_v53 = vld [vmem:[%s12381_s7 + $0x974] sm:$0xf] }
 0x385   : > { %8231 = vmatpush.bf16.msrb.mxu1 %v9518_v63  ;;  %v7980_v63 = vpop.f32.mrf.mxu1  ;;  %v11008_v57 = vld [vmem:[%s12381_s7 + $0x9f4] sm:$0xf]  ;;  %v9915_v59 = vld [vmem:[%s12381_s7 + $0x9f8] sm:$0xf0] }
 0x386   : > { %8244 = vmatpush.bf16.msrb.mxu2 %v9582_v0  ;;  %v7967_v19 = vpop.f32.mrf.mxu0  ;;  %v13309_v0 = vadd.f32 %v8004_v47, %v7992_v60  ;;  %v9606_v60 = vor.u32 %v10930_v6, %v9603_v42  ;;  %v10974_v63 = vld [vmem:[%s12381_s7 + $0x8e4] sm:$0xf]  ;;  %v10956_v17 = vld [vmem:[%s12381_s7 + $0x854] sm:$0xf]  ;;  %v9899_v41 = vld [vmem:[%s12381_s7 + $0x9d8] sm:$0xf0] }
 0x387   : > { %8257 = vmatpush.bf16.msrb.mxu3 %v9646_v30  ;;  %v9419_v30 = vld [vmem:[%s12381_s7 + $0x618] sm:$0xf0]  ;;  %v10958_v19 = vld [vmem:[%s12381_s7 + $0x864] sm:$0xf]  ;;  %v11004_v34 = vld [vmem:[%s12381_s7 + $0x9d4] sm:$0xf] }
 0x388   : > { %8219 = vmatpush.bf16.msrb.mxu0 %v9446_v52  ;;  %v9422_v52 = vor.u32 %v10884_v29, %v9419_v30  ;;  %v7993_v43 = vpop.f32.mrf.mxu2  ;;  %v10990_v29 = vld [vmem:[%s12381_s7 + $0x964] sm:$0xf]  ;;  %v9843_v30 = vld [vmem:[%s12381_s7 + $0x968] sm:$0xf0] }
 0x389   : > { %8232 = vmatpush.bf16.msrb.mxu1 %v9510_v38  ;;  %v9411_v38 = vld [vmem:[%s12381_s7 + $0x608] sm:$0xf0]  ;;  %v9846_v14 = vor.u32 %v10990_v29, %v9843_v30  ;;  %v10986_v43 = vld [vmem:[%s12381_s7 + $0x944] sm:$0xf] }
 0x38a   : > { %8245 = vmatpush.bf16.msrb.mxu2 %v9574_v26  ;;  %v9486_v26 = vor.u32 %v10900_v5, %v9483_v11  ;;  %v9414_v51 = vor.u32 %v10882_v24, %v9411_v38  ;;  %v11006_v5 = vld [vmem:[%s12381_s7 + $0x9e4] sm:$0xf]  ;;  %v9771_v38 = vld [vmem:[%s12381_s7 + $0x8d8] sm:$0xf0]  ;;  %v9699_v6 = vld [vmem:[%s12381_s7 + $0x848] sm:$0xf0] }
 0x38b   : > { %8258 = vmatpush.bf16.msrb.mxu3 %v9638_v36  ;;  %v10914_v36 = vld [vmem:[%s12381_s7 + $0x704] sm:$0xf]  ;;  %v9763_v42 = vld [vmem:[%s12381_s7 + $0x8c8] sm:$0xf0] }
 0x38c   : > { %8220 = vmatpush.bf16.msrb.mxu0 %v9438_v44  ;;  %v9723_v44 = vld [vmem:[%s12381_s7 + $0x878] sm:$0xf0]  ;;  %v9542_v56 = vor.u32 %v10914_v36, %v9539_v20  ;;  %v10954_v20 = vld [vmem:[%s12381_s7 + $0x844] sm:$0xf]  ;;  %v9683_v29 = vld [vmem:[%s12381_s7 + $0x828] sm:$0xf0] }
 0x38d   : > { %8233 = vmatpush.bf16.msrb.mxu1 %v9502_v50  ;;  %v10976_v50 = vld [vmem:[%s12381_s7 + $0x8f4] sm:$0xf]  ;;  %v9726_v47 = vor.u32 %v10960_v48, %v9723_v44  ;;  %v9827_v48 = vld [vmem:[%s12381_s7 + $0x948] sm:$0xf0]  ;;  %v11002_v44 = vld [vmem:[%s12381_s7 + $0x9c4] sm:$0xf] }
 0x38e   : > { %8246 = vmatpush.bf16.msrb.mxu2 %v9566_v21  ;;  %v8006_v21 = vpop.f32.mrf.mxu3  ;;  %v9790_v61 = vor.u32 %v10976_v50, %v9787_v58  ;;  %v9891_v50 = vld [vmem:[%s12381_s7 + $0x9c8] sm:$0xf0]  ;;  %v10966_v30 = vld [vmem:[%s12381_s7 + $0x8a4] sm:$0xf] }
 0x38f   : > { %8259 = vmatpush.bf16.msrb.mxu3 %v9630_v54  ;;  %v9851_v54 = vld [vmem:[%s12381_s7 + $0x978] sm:$0xf0] }
 0x390   : > { %8221 = vmatpush.bf16.msrb.mxu0 %v9430_v25  ;;  %v9854_v62 = vor.u32 %v10992_v53, %v9851_v54  ;;  %v9715_v25 = vld [vmem:[%s12381_s7 + $0x868] sm:$0xf0]  ;;  %v9830_v54 = vor.u32 %v10986_v43, %v9827_v48  ;;  %v10996_v43 = vld [vmem:[%s12381_s7 + $0x994] sm:$0xf]  ;;  %v9867_v48 = vld [vmem:[%s12381_s7 + $0x998] sm:$0xf0] }
 0x391   : > { %8234 = vmatpush.bf16.msrb.mxu1 %v9494_v1  ;;  %v9918_v1 = vor.u32 %v11008_v57, %v9915_v59  ;;  %v9718_v11 = vor.u32 %v10958_v19, %v9715_v25  ;;  %v10968_v57 = vld [vmem:[%s12381_s7 + $0x8b4] sm:$0xf]  ;;  %v9894_v59 = vor.u32 %v11002_v44, %v9891_v50  ;;  %v9883_v19 = vld [vmem:[%s12381_s7 + $0x9b8] sm:$0xf0]  ;;  %v10946_v44 = vld [vmem:[%s12381_s7 + $0x804] sm:$0xf] }
 0x392   : > { %8247 = vmatpush.bf16.msrb.mxu2 %v9558_v3  ;;  %v9779_v3 = vld [vmem:[%s12381_s7 + $0x8e8] sm:$0xf0] }
 0x393   : > { %8260 = vmatpush.bf16.msrb.mxu3 %v9622_v7  ;;  %v9907_v7 = vld [vmem:[%s12381_s7 + $0x9e8] sm:$0xf0]  ;;  %v9782_v33 = vor.u32 %v10974_v63, %v9779_v3  ;;  %v10950_v3 = vld [vmem:[%s12381_s7 + $0x824] sm:$0xf] }
 0x394   : > { %8222 = vmatpush.bf16.msrb.mxu0 %v9422_v52  ;;  %v10972_v52 = vld [vmem:[%s12381_s7 + $0x8d4] sm:$0xf]  ;;  %v9910_v24 = vor.u32 %v11006_v5, %v9907_v7  ;;  %v9667_v50 = vld [vmem:[%s12381_s7 + $0x808] sm:$0xf0] }
 0x395   : > { %8235 = vmatpush.bf16.msrb.mxu1 %v9486_v26  ;;  %v10988_v26 = vld [vmem:[%s12381_s7 + $0x954] sm:$0xf]  ;;  %v9774_v36 = vor.u32 %v10972_v52, %v9771_v38  ;;  %v10998_v52 = vld [vmem:[%s12381_s7 + $0x9a4] sm:$0xf] }
 0x396   : > { %8248 = vmatpush.bf16.msrb.mxu2 %v9550_v4  ;;  %v9835_v4 = vld [vmem:[%s12381_s7 + $0x958] sm:$0xf0] }
 0x397   : > { %8261 = vmatpush.bf16.msrb.mxu3 %v9614_v40  ;;  %v9838_v40 = vor.u32 %v10988_v26, %v9835_v4  ;;  %v9686_v26 = vor.u32 %v10950_v3, %v9683_v29 }
 0x398   : > { %8223 = vmatpush.bf16.msrb.mxu0 %v9414_v51  ;;  %v9702_v51 = vor.u32 %v10954_v20, %v9699_v6  ;;  %v10964_v20 = vld [vmem:[%s12381_s7 + $0x894] sm:$0xf] }
 0x399   : > { %8236 = vmatpush.bf16.msrb.mxu1 %v9478_v55  ;;  %v8030_v58 = vpop.f32.mrf.mxu1  ;;  %v10952_v55 = vld [vmem:[%s12381_s7 + $0x834] sm:$0xf] }
 0x39a   : > { %8249 = vmatpush.bf16.msrb.mxu2 %v9542_v56  ;;  %v9691_v56 = vld [vmem:[%s12381_s7 + $0x838] sm:$0xf0] }
 0x39b   : > { %8262 = vmatpush.bf16.msrb.mxu3 %v9606_v60  ;;  %8224 = vmatmul.bf16.vlgmr.msrb.gmra.mxu0 %v12710_v23  ;;  %v9710_v23 = vor.u32 %v10956_v17, %v9707_v18  ;;  %v9694_v25 = vor.u32 %v10952_v55, %v9691_v56  ;;  %v9870_v55 = vor.u32 %v10996_v43, %v9867_v48  ;;  %v9795_v56 = vld [vmem:[%s12381_s7 + $0x908] sm:$0xf0]  ;;  %v10027_v43 = vld [vmem:[%s12381_s7 + $0xad8] sm:$0xf0]  ;;  %v11052_v48 = vld [vmem:[%s12381_s7 + $0xb54] sm:$0xf] }
 0x39c   : > { %8268 = vmatpush.bf16.msra.mxu0 %v9726_v47  ;;  %8237 = vmatmul.bf16.vlgmr.msrb.gmra.mxu1 %v12717_v31  ;;  %v9902_v31 = vor.u32 %v11004_v34, %v9899_v41  ;;  %v9755_v47 = vld [vmem:[%s12381_s7 + $0x8b8] sm:$0xf0] }
 0x39d   : > { %8281 = vmatpush.bf16.msra.mxu1 %v9790_v61  ;;  %8250 = vmatmul.bf16.vlgmr.msrb.gmra.mxu2 %v12715_v28  ;;  %v10970_v28 = vld [vmem:[%s12381_s7 + $0x8c4] sm:$0xf]  ;;  %v10984_v61 = vld [vmem:[%s12381_s7 + $0x934] sm:$0xf]  ;;  %v9758_v63 = vor.u32 %v10968_v57, %v9755_v47 }
 0x39e   : > { %8294 = vmatpush.bf16.msra.mxu2 %v9854_v62  ;;  %8263 = vmatmul.bf16.vlgmr.msrb.gmra.mxu3 %v12721_v35  ;;  %v8017_v35 = vpop.f32.mrf.mxu0  ;;  %v9766_v53 = vor.u32 %v10970_v28, %v9763_v42  ;;  %v11000_v62 = vld [vmem:[%s12381_s7 + $0x9b4] sm:$0xf]  ;;  %v9739_v28 = vld [vmem:[%s12381_s7 + $0x898] sm:$0xf0]  ;;  %v10994_v57 = vld [vmem:[%s12381_s7 + $0x984] sm:$0xf] }
 0x39f   : > { %8307 = vmatpush.bf16.msra.mxu3 %v9918_v1  ;;  %v8018_v21 = vadd.f32 %v8017_v35, %v13309_v0  ;;  %v9819_v0 = vld [vmem:[%s12381_s7 + $0x938] sm:$0xf0]  ;;  %v9886_v5 = vor.u32 %v11000_v62, %v9883_v19  ;;  %v11024_v47 = vld [vmem:[%s12381_s7 + $0xa74] sm:$0xf]  ;;  %v9670_v19 = vor.u32 %v10946_v44, %v9667_v50 }
 0x3a0   : > { %8269 = vmatpush.bf16.msra.mxu0 %v9718_v11  ;;  %v9822_v1 = vor.u32 %v10984_v61, %v9819_v0  ;;  %v8043_v7 = vpop.f32.mrf.mxu2  ;;  %v9747_v11 = vld [vmem:[%s12381_s7 + $0x8a8] sm:$0xf0]  ;;  %v9803_v42 = vld [vmem:[%s12381_s7 + $0x918] sm:$0xf0]  ;;  %v11040_v0 = vld [vmem:[%s12381_s7 + $0xaf4] sm:$0xf] }
 0x3a1   : > { %8282 = vmatpush.bf16.msra.mxu1 %v9782_v33  ;;  %v8031_v60 = vadd.f32 %v8030_v58, %v8018_v21  ;;  %v10982_v33 = vld [vmem:[%s12381_s7 + $0x924] sm:$0xf]  ;;  %v8056_v18 = vpop.f32.mrf.mxu3  ;;  %v8032_v4 = vpop.f32.mrf.mxu1  ;;  %v9750_v41 = vor.u32 %v10966_v30, %v9747_v11  ;;  %v9742_v21 = vor.u32 %v10964_v20, %v9739_v28  ;;  %v9979_v61 = vld [vmem:[%s12381_s7 + $0xa78] sm:$0xf0]  ;;  %v11072_v30 = vld [vmem:[%s12381_s7 + $0xbf4] sm:$0xf] }
 0x3a2   : > { %8295 = vmatpush.bf16.msra.mxu2 %v9846_v14  ;;  %v9811_v14 = vld [vmem:[%s12381_s7 + $0x928] sm:$0xf0]  ;;  %v10962_v58 = vld [vmem:[%s12381_s7 + $0x884] sm:$0xf]  ;;  %v9982_v11 = vor.u32 %v11024_v47, %v9979_v61  ;;  %v9963_v28 = vld [vmem:[%s12381_s7 + $0xa58] sm:$0xf0] }
 0x3a3   : > { %8308 = vmatpush.bf16.msra.mxu3 %v9910_v24  ;;  %v8044_v17 = vadd.f32 %v8043_v7, %v8031_v60  ;;  %v9875_v24 = vld [vmem:[%s12381_s7 + $0x9a8] sm:$0xf0]  ;;  %v11068_v44 = vld [vmem:[%s12381_s7 + $0xbd4] sm:$0xf]  ;;  %v10155_v50 = vld [vmem:[%s12381_s7 + $0xbd8] sm:$0xf0] }
 0x3a4   : > { %8270 = vmatpush.bf16.msra.mxu0 %v9710_v23  ;;  %v9814_v23 = vor.u32 %v10982_v33, %v9811_v14  ;;  %v9878_v6 = vor.u32 %v10998_v52, %v9875_v24  ;;  %v11038_v52 = vld [vmem:[%s12381_s7 + $0xae4] sm:$0xf]  ;;  %v10099_v4 = vld [vmem:[%s12381_s7 + $0xb68] sm:$0xf0] }
 0x3a5   : > { %8283 = vmatpush.bf16.msra.mxu1 %v9774_v36  ;;  %v13380_v34 = vadd.f32 %v8056_v18, %v8044_v17  ;;  %v10948_v36 = vld [vmem:[%s12381_s7 + $0x814] sm:$0xf]  ;;  %v11022_v17 = vld [vmem:[%s12381_s7 + $0xa64] sm:$0xf]  ;;  %v9971_v18 = vld [vmem:[%s12381_s7 + $0xa68] sm:$0xf0] }
 0x3a6   : > { %8296 = vmatpush.bf16.msra.mxu2 %v9838_v40  ;;  %v8019_v38 = vpop.f32.mrf.mxu0  ;;  %v9675_v40 = vld [vmem:[%s12381_s7 + $0x818] sm:$0xf0] }
 0x3a7   : > { %8309 = vmatpush.bf16.msra.mxu3 %v9902_v31  ;;  %v10980_v31 = vld [vmem:[%s12381_s7 + $0x914] sm:$0xf]  ;;  %v9678_v35 = vor.u32 %v10948_v36, %v9675_v40  ;;  %v10035_v38 = vld [vmem:[%s12381_s7 + $0xae8] sm:$0xf0]  ;;  %v9974_v36 = vor.u32 %v11022_v17, %v9971_v18  ;;  %v11014_v17 = vld [vmem:[%s12381_s7 + $0xa24] sm:$0xf] }
 0x3a8   : > { %8271 = vmatpush.bf16.msra.mxu0 %v9702_v51  ;;  %v9806_v51 = vor.u32 %v10980_v31, %v9803_v42  ;;  %v8045_v60 = vpop.f32.mrf.mxu2  ;;  %v10038_v40 = vor.u32 %v11038_v52, %v10035_v38  ;;  %v11036_v31 = vld [vmem:[%s12381_s7 + $0xad4] sm:$0xf]  ;;  %v9939_v18 = vld [vmem:[%s12381_s7 + $0xa28] sm:$0xf0]  ;;  %v11030_v52 = vld [vmem:[%s12381_s7 + $0xaa4] sm:$0xf] }
 0x3a9   : > { %8284 = vmatpush.bf16.msra.mxu1 %v9766_v53  ;;  %v9731_v53 = vld [vmem:[%s12381_s7 + $0x888] sm:$0xf0]  ;;  %v8058_v62 = vpop.f32.mrf.mxu3 }
 0x3aa   : > { %8297 = vmatpush.bf16.msra.mxu2 %v9830_v54  ;;  %v10978_v54 = vld [vmem:[%s12381_s7 + $0x904] sm:$0xf]  ;;  %v9734_v3 = vor.u32 %v10962_v58, %v9731_v53  ;;  %v9955_v53 = vld [vmem:[%s12381_s7 + $0xa48] sm:$0xf0]  ;;  %v9947_v62 = vld [vmem:[%s12381_s7 + $0xa38] sm:$0xf0] }
 0x3ab   : > { %8310 = vmatpush.bf16.msra.mxu3 %v9894_v59  ;;  %v9859_v59 = vld [vmem:[%s12381_s7 + $0x988] sm:$0xf0]  ;;  %v9798_v29 = vor.u32 %v10978_v54, %v9795_v56  ;;  %v11018_v58 = vld [vmem:[%s12381_s7 + $0xa44] sm:$0xf] }
 0x3ac   : > { %8272 = vmatpush.bf16.msra.mxu0 %v9694_v25  ;;  %v10043_v25 = vld [vmem:[%s12381_s7 + $0xaf8] sm:$0xf0]  ;;  %v9862_v7 = vor.u32 %v10994_v57, %v9859_v59  ;;  %v10019_v54 = vld [vmem:[%s12381_s7 + $0xac8] sm:$0xf0]  ;;  %v9958_v59 = vor.u32 %v11018_v58, %v9955_v53  ;;  %v11060_v53 = vld [vmem:[%s12381_s7 + $0xb94] sm:$0xf] }
 0x3ad   : > { %8285 = vmatpush.bf16.msra.mxu1 %v9758_v63  ;;  %v11056_v63 = vld [vmem:[%s12381_s7 + $0xb74] sm:$0xf]  ;;  %v10046_v33 = vor.u32 %v11040_v0, %v10043_v25  ;;  %v10083_v56 = vld [vmem:[%s12381_s7 + $0xb48] sm:$0xf0]  ;;  %v10059_v58 = vld [vmem:[%s12381_s7 + $0xb18] sm:$0xf0] }
 0x3ae   : > { %8298 = vmatpush.bf16.msra.mxu2 %v9822_v1  ;;  %v10107_v1 = vld [vmem:[%s12381_s7 + $0xb78] sm:$0xf0]  ;;  %v10147_v57 = vld [vmem:[%s12381_s7 + $0xbc8] sm:$0xf0]  ;;  %v11016_v0 = vld [vmem:[%s12381_s7 + $0xa34] sm:$0xf] }
 0x3af   : > { %8311 = vmatpush.bf16.msra.mxu3 %v9886_v5  ;;  %v10171_v5 = vld [vmem:[%s12381_s7 + $0xbf8] sm:$0xf0]  ;;  %v10110_v14 = vor.u32 %v11056_v63, %v10107_v1 }
 0x3b0   : > { %8273 = vmatpush.bf16.msra.mxu0 %v9686_v26  ;;  %v10174_v24 = vor.u32 %v11072_v30, %v10171_v5  ;;  %v11054_v26 = vld [vmem:[%s12381_s7 + $0xb64] sm:$0xf]  ;;  %v10011_v1 = vld [vmem:[%s12381_s7 + $0xab8] sm:$0xf0]  ;;  %v11064_v5 = vld [vmem:[%s12381_s7 + $0xbb4] sm:$0xf] }
 0x3b1   : > { %8286 = vmatpush.bf16.msra.mxu1 %v9750_v41  ;;  %v11070_v41 = vld [vmem:[%s12381_s7 + $0xbe4] sm:$0xf]  ;;  %v10102_v20 = vor.u32 %v11054_v26, %v10099_v4  ;;  %v10003_v26 = vld [vmem:[%s12381_s7 + $0xaa8] sm:$0xf0] }
 0x3b2   : > { %8299 = vmatpush.bf16.msra.mxu2 %v9814_v23  ;;  %v10163_v23 = vld [vmem:[%s12381_s7 + $0xbe8] sm:$0xf0]  ;;  %v11046_v4 = vld [vmem:[%s12381_s7 + $0xb24] sm:$0xf] }
 0x3b3   : > { %8312 = vmatpush.bf16.msra.mxu3 %v9878_v6  ;;  %v11020_v6 = vld [vmem:[%s12381_s7 + $0xa54] sm:$0xf]  ;;  %v10166_v42 = vor.u32 %v11070_v41, %v10163_v23  ;;  %v10067_v41 = vld [vmem:[%s12381_s7 + $0xb28] sm:$0xf0] }
 0x3b4   : > { %8274 = vmatpush.bf16.msra.mxu0 %v9678_v35  ;;  %v10091_v35 = vld [vmem:[%s12381_s7 + $0xb58] sm:$0xf0] }
 0x3b5   : > { %8287 = vmatpush.bf16.msra.mxu1 %v9742_v21  ;;  %v10030_v21 = vor.u32 %v11036_v31, %v10027_v43  ;;  %v10070_v43 = vor.u32 %v11046_v4, %v10067_v41  ;;  %v10227_v4 = vld [vmem:[%s12381_s7 + $0xc68] sm:$0xf0]  ;;  %v11102_v41 = vld [vmem:[%s12381_s7 + $0xce4] sm:$0xf] }
 0x3b6   : > { %8300 = vmatpush.bf16.msra.mxu2 %v9806_v51  ;;  %v10094_v51 = vor.u32 %v11052_v48, %v10091_v35  ;;  %v11012_v48 = vld [vmem:[%s12381_s7 + $0xa14] sm:$0xf]  ;;  %v9931_v35 = vld [vmem:[%s12381_s7 + $0xa18] sm:$0xf0] }
 0x3b7   : > { %8313 = vmatpush.bf16.msra.mxu3 %v9870_v55  ;;  %v11050_v55 = vld [vmem:[%s12381_s7 + $0xb44] sm:$0xf] }
 0x3b8   : > { %8275 = vmatpush.bf16.msra.mxu0 %v9670_v19  ;;  %v8069_v60 = vpop.f32.mrf.mxu0  ;;  %v10086_v61 = vor.u32 %v11050_v55, %v10083_v56  ;;  %v11032_v19 = vld [vmem:[%s12381_s7 + $0xab4] sm:$0xf]  ;;  %v9923_v55 = vld [vmem:[%s12381_s7 + $0xa08] sm:$0xf0] }
 0x3b9   : > { %8288 = vmatpush.bf16.msra.mxu1 %v9734_v3  ;;  %v8082_v25 = vpop.f32.mrf.mxu1  ;;  %v11048_v3 = vld [vmem:[%s12381_s7 + $0xb34] sm:$0xf] }
 0x3ba   : > { %8301 = vmatpush.bf16.msra.mxu2 %v9798_v29  ;;  %v10075_v29 = vld [vmem:[%s12381_s7 + $0xb38] sm:$0xf0]  ;;  %v8083_v30 = vadd.f32 %v8082_v25, %v8069_v60  ;;  %v11042_v60 = vld [vmem:[%s12381_s7 + $0xb04] sm:$0xf] }
 0x3bb   : > { %8314 = vmatpush.bf16.msra.mxu3 %v9862_v7  ;;  %8276 = vmatmul.bf16.vlgmr.msra.gmra.mxu0 %v12792_v37  ;;  %v9966_v37 = vor.u32 %v11020_v6, %v9963_v28  ;;  %v10139_v7 = vld [vmem:[%s12381_s7 + $0xbb8] sm:$0xf0]  ;;  %v9942_v6 = vor.u32 %v11014_v17, %v9939_v18 }
 0x3bc   : > { %8320 = vmatpush.bf16.msrb.mxu0 %v9982_v11  ;;  %8289 = vmatmul.bf16.vlgmr.msra.gmra.mxu1 %v12799_v46  ;;  %v10158_v46 = vor.u32 %v11068_v44, %v10155_v50  ;;  %v9950_v11 = vor.u32 %v11016_v0, %v9947_v62  ;;  %v10142_v38 = vor.u32 %v11064_v5, %v10139_v7  ;;  %v11028_v44 = vld [vmem:[%s12381_s7 + $0xa94] sm:$0xf]  ;;  %v10051_v0 = vld [vmem:[%s12381_s7 + $0xb08] sm:$0xf0]  ;;  %v11058_v62 = vld [vmem:[%s12381_s7 + $0xb84] sm:$0xf] }
 0x3bd   : > { %8333 = vmatpush.bf16.msrb.mxu1 %v10046_v33  ;;  %8302 = vmatmul.bf16.vlgmr.msra.gmra.mxu2 %v12797_v45  ;;  %v11034_v45 = vld [vmem:[%s12381_s7 + $0xac4] sm:$0xf]  ;;  %v10014_v33 = vor.u32 %v11032_v19, %v10011_v1  ;;  %v10115_v19 = vld [vmem:[%s12381_s7 + $0xb88] sm:$0xf0]  ;;  %v10235_v1 = vld [vmem:[%s12381_s7 + $0xc78] sm:$0xf0] }
 0x3be   : > { %8346 = vmatpush.bf16.msrb.mxu2 %v10110_v14  ;;  %8315 = vmatmul.bf16.vlgmr.msra.gmra.mxu3 %v12803_v49  ;;  %v11066_v49 = vld [vmem:[%s12381_s7 + $0xbc4] sm:$0xf]  ;;  %v10022_v47 = vor.u32 %v11034_v45, %v10019_v54  ;;  %v10078_v14 = vor.u32 %v11048_v3, %v10075_v29  ;;  %v10123_v45 = vld [vmem:[%s12381_s7 + $0xb98] sm:$0xf0]  ;;  %v11104_v3 = vld [vmem:[%s12381_s7 + $0xcf4] sm:$0xf]  ;;  %v10118_v18 = vor.u32 %v11058_v62, %v10115_v19 }
 0x3bf   : > { %8359 = vmatpush.bf16.msrb.mxu3 %v10174_v24  ;;  %v10150_v63 = vor.u32 %v11066_v49, %v10147_v57  ;;  %v11010_v54 = vld [vmem:[%s12381_s7 + $0xa04] sm:$0xf]  ;;  %v11120_v5 = vld [vmem:[%s12381_s7 + $0xd74] sm:$0xf]  ;;  %v10363_v7 = vld [vmem:[%s12381_s7 + $0xd78] sm:$0xf0] }
 0x3c0   : > { %8321 = vmatpush.bf16.msrb.mxu0 %v9974_v36  ;;  %v8095_v24 = vpop.f32.mrf.mxu2  ;;  %v8071_v31 = vpop.f32.mrf.mxu0  ;;  %v11026_v57 = vld [vmem:[%s12381_s7 + $0xa84] sm:$0xf]  ;;  %v9926_v29 = vor.u32 %v11010_v54, %v9923_v55  ;;  %v10427_v17 = vld [vmem:[%s12381_s7 + $0xdf8] sm:$0xf0]  ;;  %v11080_v19 = vld [vmem:[%s12381_s7 + $0xc34] sm:$0xf] }
 0x3c1   : > { %8334 = vmatpush.bf16.msrb.mxu1 %v10038_v40  ;;  %v8096_v23 = vadd.f32 %v8095_v24, %v8083_v30  ;;  %v8108_v36 = vpop.f32.mrf.mxu3  ;;  %v11062_v40 = vld [vmem:[%s12381_s7 + $0xba4] sm:$0xf]  ;;  %v8084_v50 = vpop.f32.mrf.mxu1  ;;  %v10299_v30 = vld [vmem:[%s12381_s7 + $0xcf8] sm:$0xf0]  ;;  %v10419_v31 = vld [vmem:[%s12381_s7 + $0xde8] sm:$0xf0] }
 0x3c2   : > { %8347 = vmatpush.bf16.msrb.mxu2 %v10102_v20  ;;  %v10131_v20 = vld [vmem:[%s12381_s7 + $0xba8] sm:$0xf0]  ;;  %v10302_v24 = vor.u32 %v11104_v3, %v10299_v30  ;;  %v11100_v50 = vld [vmem:[%s12381_s7 + $0xcd4] sm:$0xf]  ;;  %v11082_v55 = vld [vmem:[%s12381_s7 + $0xc44] sm:$0xf] }
 0x3c3   : > { %8360 = vmatpush.bf16.msrb.mxu3 %v10166_v42  ;;  %v13450_v28 = vadd.f32 %v8108_v36, %v8096_v23  ;;  %v10006_v42 = vor.u32 %v11030_v52, %v10003_v26  ;;  %v11086_v26 = vld [vmem:[%s12381_s7 + $0xc64] sm:$0xf]  ;;  %v10291_v36 = vld [vmem:[%s12381_s7 + $0xce8] sm:$0xf0]  ;;  %v10267_v30 = vld [vmem:[%s12381_s7 + $0xcb8] sm:$0xf0] }
 0x3c4   : > { %8322 = vmatpush.bf16.msrb.mxu0 %v9966_v37  ;;  %v10134_v37 = vor.u32 %v11062_v40, %v10131_v20  ;;  %v11118_v40 = vld [vmem:[%s12381_s7 + $0xd64] sm:$0xf]  ;;  %v10355_v20 = vld [vmem:[%s12381_s7 + $0xd68] sm:$0xf0] }
 0x3c5   : > { %8335 = vmatpush.bf16.msrb.mxu1 %v10030_v21  ;;  %v9995_v21 = vld [vmem:[%s12381_s7 + $0xa98] sm:$0xf0] }
 0x3c6   : > { %8348 = vmatpush.bf16.msrb.mxu2 %v10094_v51  ;;  %v11044_v51 = vld [vmem:[%s12381_s7 + $0xb14] sm:$0xf]  ;;  %v9998_v56 = vor.u32 %v11028_v44, %v9995_v21  ;;  %v10219_v44 = vld [vmem:[%s12381_s7 + $0xc58] sm:$0xf0] }
 0x3c7   : > { %8361 = vmatpush.bf16.msrb.mxu3 %v10158_v46  ;;  %v9934_v46 = vor.u32 %v11012_v48, %v9931_v35  ;;  %v10062_v49 = vor.u32 %v11044_v51, %v10059_v58  ;;  %v10358_v48 = vor.u32 %v11118_v40, %v10355_v20  ;;  %v11084_v35 = vld [vmem:[%s12381_s7 + $0xc54] sm:$0xf]  ;;  %v10283_v21 = vld [vmem:[%s12381_s7 + $0xcd8] sm:$0xf0] }
 0x3c8   : > { %8323 = vmatpush.bf16.msrb.mxu0 %v9958_v59  ;;  %v9987_v59 = vld [vmem:[%s12381_s7 + $0xa88] sm:$0xf0]  ;;  %v11116_v51 = vld [vmem:[%s12381_s7 + $0xd54] sm:$0xf]  ;;  %v10347_v58 = vld [vmem:[%s12381_s7 + $0xd58] sm:$0xf0] }
 0x3c9   : > { %8336 = vmatpush.bf16.msrb.mxu1 %v10022_v47  ;;  %v8097_v47 = vpop.f32.mrf.mxu2  ;;  %v8110_v25 = vpop.f32.mrf.mxu3  ;;  %v10350_v54 = vor.u32 %v11116_v51, %v10347_v58 }
 0x3ca   : > { %8349 = vmatpush.bf16.msrb.mxu2 %v10086_v61  ;;  %v10126_v61 = vor.u32 %v11060_v53, %v10123_v45  ;;  %v11132_v53 = vld [vmem:[%s12381_s7 + $0xdd4] sm:$0xf]  ;;  %v10411_v45 = vld [vmem:[%s12381_s7 + $0xdd8] sm:$0xf0] }
 0x3cb   : > { %8362 = vmatpush.bf16.msrb.mxu3 %v10150_v63  ;;  %v11088_v63 = vld [vmem:[%s12381_s7 + $0xc74] sm:$0xf]  ;;  %v10203_v25 = vld [vmem:[%s12381_s7 + $0xc38] sm:$0xf0] }
 0x3cc   : > { %8324 = vmatpush.bf16.msrb.mxu0 %v9950_v11  ;;  %v9990_v11 = vor.u32 %v11026_v57, %v9987_v59  ;;  %v10238_v52 = vor.u32 %v11088_v63, %v10235_v1  ;;  %v11114_v57 = vld [vmem:[%s12381_s7 + $0xd44] sm:$0xf]  ;;  %v10339_v59 = vld [vmem:[%s12381_s7 + $0xd48] sm:$0xf0]  ;;  %v11096_v63 = vld [vmem:[%s12381_s7 + $0xcb4] sm:$0xf] }
 0x3cd   : > { %8337 = vmatpush.bf16.msrb.mxu1 %v10014_v33  ;;  %v10054_v33 = vor.u32 %v11042_v60, %v10051_v0  ;;  %v11130_v60 = vld [vmem:[%s12381_s7 + $0xdc4] sm:$0xf]  ;;  %v10342_v62 = vor.u32 %v11114_v57, %v10339_v59  ;;  %v10243_v59 = vld [vmem:[%s12381_s7 + $0xc88] sm:$0xf0] }
 0x3ce   : > { %8350 = vmatpush.bf16.msrb.mxu2 %v10078_v14  ;;  %v11136_v14 = vld [vmem:[%s12381_s7 + $0xdf4] sm:$0xf]  ;;  %v11090_v57 = vld [vmem:[%s12381_s7 + $0xc84] sm:$0xf] }
 0x3cf   : > { %8363 = vmatpush.bf16.msrb.mxu3 %v10142_v38  ;;  %v10366_v38 = vor.u32 %v11120_v5, %v10363_v7  ;;  %v10430_v23 = vor.u32 %v11136_v14, %v10427_v17  ;;  %v11112_v5 = vld [vmem:[%s12381_s7 + $0xd34] sm:$0xf]  ;;  %v10331_v7 = vld [vmem:[%s12381_s7 + $0xd38] sm:$0xf0]  ;;  %v10206_v17 = vor.u32 %v11080_v19, %v10203_v25 }
 0x3d0   : > { %8325 = vmatpush.bf16.msrb.mxu0 %v9942_v6  ;;  %v11134_v6 = vld [vmem:[%s12381_s7 + $0xde4] sm:$0xf]  ;;  %v11152_v25 = vld [vmem:[%s12381_s7 + $0xe74] sm:$0xf] }
 0x3d1   : > { %8338 = vmatpush.bf16.msrb.mxu1 %v10006_v42  ;;  %v10230_v42 = vor.u32 %v11086_v26, %v10227_v4 }
 0x3d2   : > { %8351 = vmatpush.bf16.msrb.mxu2 %v10070_v43  ;;  %v10294_v43 = vor.u32 %v11102_v41, %v10291_v36  ;;  %v10259_v41 = vld [vmem:[%s12381_s7 + $0xca8] sm:$0xf0] }
 0x3d3   : > { %8364 = vmatpush.bf16.msrb.mxu3 %v10134_v37  ;;  %v10422_v37 = vor.u32 %v11134_v6, %v10419_v31  ;;  %v10323_v36 = vld [vmem:[%s12381_s7 + $0xd28] sm:$0xf0]  ;;  %v11126_v6 = vld [vmem:[%s12381_s7 + $0xda4] sm:$0xf] }
 0x3d4   : > { %8326 = vmatpush.bf16.msrb.mxu0 %v9934_v46  ;;  %v10286_v46 = vor.u32 %v11100_v50, %v10283_v21  ;;  %v10387_v31 = vld [vmem:[%s12381_s7 + $0xda8] sm:$0xf0]  ;;  %v11076_v50 = vld [vmem:[%s12381_s7 + $0xc14] sm:$0xf] }
 0x3d5   : > { %8339 = vmatpush.bf16.msrb.mxu1 %v9998_v56  ;;  %v10211_v56 = vld [vmem:[%s12381_s7 + $0xc48] sm:$0xf0]  ;;  %v11092_v21 = vld [vmem:[%s12381_s7 + $0xc94] sm:$0xf]  ;;  %v10390_v58 = vor.u32 %v11126_v6, %v10387_v31 }
 0x3d6   : > { %8352 = vmatpush.bf16.msrb.mxu2 %v10062_v49  ;;  %v10275_v49 = vld [vmem:[%s12381_s7 + $0xcc8] sm:$0xf0]  ;;  %v10214_v47 = vor.u32 %v11082_v55, %v10211_v56  ;;  %v11074_v56 = vld [vmem:[%s12381_s7 + $0xc04] sm:$0xf] }
 0x3d7   : > { %8365 = vmatpush.bf16.msrb.mxu3 %v10126_v61 }
 0x3d8   : > { %8327 = vmatpush.bf16.msrb.mxu0 %v9926_v29  ;;  %v8121_v61 = vpop.f32.mrf.mxu0 }
 0x3d9   : > { %8340 = vmatpush.bf16.msrb.mxu1 %v9990_v11  ;;  %v8122_v1 = vadd.f32 %v8121_v61, %v13450_v28  ;;  %v8134_v3 = vpop.f32.mrf.mxu1  ;;  %v11128_v11 = vld [vmem:[%s12381_s7 + $0xdb4] sm:$0xf]  ;;  %v10270_v28 = vor.u32 %v11096_v63, %v10267_v30  ;;  %v10307_v61 = vld [vmem:[%s12381_s7 + $0xd08] sm:$0xf0]  ;;  %v10491_v63 = vld [vmem:[%s12381_s7 + $0xe78] sm:$0xf0] }
 0x3da   : > { %8353 = vmatpush.bf16.msrb.mxu2 %v10054_v33  ;;  %v10395_v33 = vld [vmem:[%s12381_s7 + $0xdb8] sm:$0xf0]  ;;  %v11184_v30 = vld [vmem:[%s12381_s7 + $0xf74] sm:$0xf] }
 0x3db   : > { %8366 = vmatpush.bf16.msrb.mxu3 %v10118_v18  ;;  %8328 = vmatmul.bf16.vlgmr.msrb.gmra.mxu0 %v12876_v8  ;;  %v10222_v8 = vor.u32 %v11084_v35, %v10219_v44  ;;  %v8135_v14 = vadd.f32 %v8134_v3, %v8122_v1  ;;  %v10334_v18 = vor.u32 %v11112_v5, %v10331_v7  ;;  %v11168_v1 = vld [vmem:[%s12381_s7 + $0xef4] sm:$0xf]  ;;  %v10619_v5 = vld [vmem:[%s12381_s7 + $0xf78] sm:$0xf0] }
 0x3dc   : > { %8372 = vmatpush.bf16.msra.mxu0 %v10238_v52  ;;  %8341 = vmatmul.bf16.vlgmr.msrb.gmra.mxu1 %v12883_v13  ;;  %v10414_v13 = vor.u32 %v11132_v53, %v10411_v45  ;;  %v11078_v52 = vld [vmem:[%s12381_s7 + $0xc24] sm:$0xf]  ;;  %v10398_v4 = vor.u32 %v11128_v11, %v10395_v33  ;;  %v10251_v53 = vld [vmem:[%s12381_s7 + $0xc98] sm:$0xf0]  ;;  %v11108_v45 = vld [vmem:[%s12381_s7 + $0xd14] sm:$0xf]  ;;  %v10246_v7 = vor.u32 %v11090_v57, %v10243_v59 }
 0x3dd   : > { %8385 = vmatpush.bf16.msra.mxu1 %v10302_v24  ;;  %8354 = vmatmul.bf16.vlgmr.msrb.gmra.mxu2 %v12881_v12  ;;  %v11098_v12 = vld [vmem:[%s12381_s7 + $0xcc4] sm:$0xf]  ;;  %v10195_v24 = vld [vmem:[%s12381_s7 + $0xc28] sm:$0xf0]  ;;  %v11200_v33 = vld [vmem:[%s12381_s7 + $0xff4] sm:$0xf] }
 0x3de   : > { %8398 = vmatpush.bf16.msra.mxu2 %v10366_v38  ;;  %8367 = vmatmul.bf16.vlgmr.msrb.gmra.mxu3 %v12887_v16  ;;  %v10403_v16 = vld [vmem:[%s12381_s7 + $0xdc8] sm:$0xf0]  ;;  %v10278_v0 = vor.u32 %v11098_v12, %v10275_v49  ;;  %v11094_v38 = vld [vmem:[%s12381_s7 + $0xca4] sm:$0xf] }
 0x3df   : > { %8411 = vmatpush.bf16.msra.mxu3 %v10430_v23  ;;  %v10406_v29 = vor.u32 %v11130_v60, %v10403_v16  ;;  %v11110_v23 = vld [vmem:[%s12381_s7 + $0xd24] sm:$0xf]  ;;  %v10262_v35 = vor.u32 %v11094_v38, %v10259_v41  ;;  %v10179_v12 = vld [vmem:[%s12381_s7 + $0xc08] sm:$0xf0] }
 0x3e0   : > { %8373 = vmatpush.bf16.msra.mxu0 %v10230_v42  ;;  %v8147_v26 = vpop.f32.mrf.mxu2  ;;  %v10198_v42 = vor.u32 %v11078_v52, %v10195_v24  ;;  %v10326_v44 = vor.u32 %v11110_v23, %v10323_v36  ;;  %v11106_v60 = vld [vmem:[%s12381_s7 + $0xd04] sm:$0xf]  ;;  %v10182_v3 = vor.u32 %v11074_v56, %v10179_v12  ;;  %v10622_v52 = vor.u32 %v11184_v30, %v10619_v5  ;;  %v10483_v38 = vld [vmem:[%s12381_s7 + $0xe68] sm:$0xf0] }
 0x3e1   : > { %8386 = vmatpush.bf16.msra.mxu1 %v10294_v43  ;;  %v8148_v40 = vadd.f32 %v8147_v26, %v8135_v14  ;;  %v8160_v20 = vpop.f32.mrf.mxu3  ;;  %v8136_v51 = vpop.f32.mrf.mxu1  ;;  %v10310_v11 = vor.u32 %v11106_v60, %v10307_v61  ;;  %v10683_v14 = vld [vmem:[%s12381_s7 + $0xff8] sm:$0xf0]  ;;  %v11150_v24 = vld [vmem:[%s12381_s7 + $0xe64] sm:$0xf]  ;;  %v10547_v41 = vld [vmem:[%s12381_s7 + $0xee8] sm:$0xf0] }
 0x3e2   : > { %8399 = vmatpush.bf16.msra.mxu2 %v10358_v48  ;;  %v8123_v48 = vpop.f32.mrf.mxu0  ;;  %v11166_v26 = vld [vmem:[%s12381_s7 + $0xee4] sm:$0xf]  ;;  %v10611_v36 = vld [vmem:[%s12381_s7 + $0xf68] sm:$0xf0]  ;;  %v10486_v6 = vor.u32 %v11150_v24, %v10483_v38  ;;  %v10603_v51 = vld [vmem:[%s12381_s7 + $0xf58] sm:$0xf0] }
 0x3e3   : > { %8412 = vmatpush.bf16.msra.mxu3 %v10422_v37  ;;  %v13521_v43 = vadd.f32 %v8160_v20, %v8148_v40  ;;  %v10187_v37 = vld [vmem:[%s12381_s7 + $0xc18] sm:$0xf0]  ;;  %v11182_v23 = vld [vmem:[%s12381_s7 + $0xf64] sm:$0xf]  ;;  %v10675_v20 = vld [vmem:[%s12381_s7 + $0xfe8] sm:$0xf0]  ;;  %v10550_v31 = vor.u32 %v11166_v26, %v10547_v41 }
 0x3e4   : > { %8374 = vmatpush.bf16.msra.mxu0 %v10222_v8  ;;  %v10315_v8 = vld [vmem:[%s12381_s7 + $0xd18] sm:$0xf0]  ;;  %v10190_v55 = vor.u32 %v11076_v50, %v10187_v37  ;;  %v11198_v40 = vld [vmem:[%s12381_s7 + $0xfe4] sm:$0xf]  ;;  %v11148_v48 = vld [vmem:[%s12381_s7 + $0xe54] sm:$0xf] }
 0x3e5   : > { %8387 = vmatpush.bf16.msra.mxu1 %v10286_v46  ;;  %v11124_v46 = vld [vmem:[%s12381_s7 + $0xd94] sm:$0xf]  ;;  %v10318_v49 = vor.u32 %v11108_v45, %v10315_v8  ;;  %v10678_v50 = vor.u32 %v11198_v40, %v10675_v20  ;;  %v10539_v37 = vld [vmem:[%s12381_s7 + $0xed8] sm:$0xf0]  ;;  %v11178_v56 = vld [vmem:[%s12381_s7 + $0xf44] sm:$0xf] }
 0x3e6   : > { %8400 = vmatpush.bf16.msra.mxu2 %v10350_v54  ;;  %v10379_v54 = vld [vmem:[%s12381_s7 + $0xd98] sm:$0xf0]  ;;  %v10595_v12 = vld [vmem:[%s12381_s7 + $0xf48] sm:$0xf0]  ;;  %v11144_v61 = vld [vmem:[%s12381_s7 + $0xe34] sm:$0xf] }
 0x3e7   : > { %8413 = vmatpush.bf16.msra.mxu3 %v10414_v13  ;;  %v10254_v13 = vor.u32 %v11092_v21, %v10251_v53  ;;  %v11180_v21 = vld [vmem:[%s12381_s7 + $0xf54] sm:$0xf]  ;;  %v10667_v53 = vld [vmem:[%s12381_s7 + $0xfd8] sm:$0xf0]  ;;  %v10579_v24 = vld [vmem:[%s12381_s7 + $0xf28] sm:$0xf0] }
 0x3e8   : > { %8375 = vmatpush.bf16.msra.mxu0 %v10214_v47  ;;  %v8149_v16 = vpop.f32.mrf.mxu2  ;;  %v10382_v47 = vor.u32 %v11124_v46, %v10379_v54  ;;  %v10606_v8 = vor.u32 %v11180_v21, %v10603_v51  ;;  %v11146_v46 = vld [vmem:[%s12381_s7 + $0xe44] sm:$0xf]  ;;  %v10467_v54 = vld [vmem:[%s12381_s7 + $0xe48] sm:$0xf0]  ;;  %v10571_v21 = vld [vmem:[%s12381_s7 + $0xf18] sm:$0xf0] }
 0x3e9   : > { %8388 = vmatpush.bf16.msra.mxu1 %v10278_v0  ;;  %v11122_v0 = vld [vmem:[%s12381_s7 + $0xd84] sm:$0xf]  ;;  %v8162_v19 = vpop.f32.mrf.mxu3  ;;  %v10470_v59 = vor.u32 %v11146_v46, %v10467_v54  ;;  %v10643_v41 = vld [vmem:[%s12381_s7 + $0xfa8] sm:$0xf0]  ;;  %v11188_v51 = vld [vmem:[%s12381_s7 + $0xf94] sm:$0xf] }
 0x3ea   : > { %8401 = vmatpush.bf16.msra.mxu2 %v10342_v62  ;;  %v10371_v62 = vld [vmem:[%s12381_s7 + $0xd88] sm:$0xf0]  ;;  %v11154_v54 = vld [vmem:[%s12381_s7 + $0xe84] sm:$0xf] }
 0x3eb   : > { %8414 = vmatpush.bf16.msra.mxu3 %v10406_v29  ;;  %v10555_v29 = vld [vmem:[%s12381_s7 + $0xef8] sm:$0xf0]  ;;  %v10435_v46 = vld [vmem:[%s12381_s7 + $0xe08] sm:$0xf0] }
 0x3ec   : > { %8376 = vmatpush.bf16.msra.mxu0 %v10206_v17  ;;  %v10374_v17 = vor.u32 %v11122_v0, %v10371_v62  ;;  %v10459_v0 = vld [vmem:[%s12381_s7 + $0xe38] sm:$0xf0]  ;;  %v11160_v62 = vld [vmem:[%s12381_s7 + $0xeb4] sm:$0xf] }
 0x3ed   : > { %8389 = vmatpush.bf16.msra.mxu1 %v10270_v28  ;;  %v10494_v28 = vor.u32 %v11152_v25, %v10491_v63  ;;  %v10523_v63 = vld [vmem:[%s12381_s7 + $0xeb8] sm:$0xf0]  ;;  %v10462_v30 = vor.u32 %v11144_v61, %v10459_v0 }
 0x3ee   : > { %8402 = vmatpush.bf16.msra.mxu2 %v10334_v18  ;;  %v10558_v18 = vor.u32 %v11168_v1, %v10555_v29  ;;  %v11176_v1 = vld [vmem:[%s12381_s7 + $0xf34] sm:$0xf]  ;;  %v10651_v29 = vld [vmem:[%s12381_s7 + $0xfb8] sm:$0xf0]  ;;  %v10526_v5 = vor.u32 %v11160_v62, %v10523_v63 }
 0x3ef   : > { %8415 = vmatpush.bf16.msra.mxu3 %v10398_v4  ;;  %v10686_v4 = vor.u32 %v11200_v33, %v10683_v14  ;;  %v10451_v33 = vld [vmem:[%s12381_s7 + $0xe28] sm:$0xf0]  ;;  %v11158_v14 = vld [vmem:[%s12381_s7 + $0xea4] sm:$0xf] }
 0x3f0   : > { %8377 = vmatpush.bf16.msra.mxu0 %v10198_v42  ;;  %v10614_v42 = vor.u32 %v11182_v23, %v10611_v36 }
 0x3f1   : > { %8390 = vmatpush.bf16.msra.mxu1 %v10262_v35  ;;  %v10475_v35 = vld [vmem:[%s12381_s7 + $0xe58] sm:$0xf0] }
 0x3f2   : > { %8403 = vmatpush.bf16.msra.mxu2 %v10326_v44  ;;  %v11164_v44 = vld [vmem:[%s12381_s7 + $0xed4] sm:$0xf] }
 0x3f3   : > { %8416 = vmatpush.bf16.msra.mxu3 %v10390_v58  ;;  %v11196_v58 = vld [vmem:[%s12381_s7 + $0xfd4] sm:$0xf]  ;;  %v10542_v45 = vor.u32 %v11164_v44, %v10539_v37 }
 0x3f4   : > { %8378 = vmatpush.bf16.msra.mxu0 %v10190_v55  ;;  %v10531_v55 = vld [vmem:[%s12381_s7 + $0xec8] sm:$0xf0]  ;;  %v11172_v37 = vld [vmem:[%s12381_s7 + $0xf14] sm:$0xf] }
 0x3f5   : > { %8391 = vmatpush.bf16.msra.mxu1 %v10254_v13  ;;  %v11194_v13 = vld [vmem:[%s12381_s7 + $0xfc4] sm:$0xf] }
 0x3f6   : > { %8404 = vmatpush.bf16.msra.mxu2 %v10318_v49  ;;  %v10659_v49 = vld [vmem:[%s12381_s7 + $0xfc8] sm:$0xf0] }
 0x3f7   : > { %8417 = vmatpush.bf16.msra.mxu3 %v10382_v47  ;;  %v10598_v47 = vor.u32 %v11178_v56, %v10595_v12  ;;  %v10662_v19 = vor.u32 %v11194_v13, %v10659_v49  ;;  %v10563_v56 = vld [vmem:[%s12381_s7 + $0xf08] sm:$0xf0] }
 0x3f8   : > { %8379 = vmatpush.bf16.msra.mxu0 %v10182_v3  ;;  %v11192_v3 = vld [vmem:[%s12381_s7 + $0xfb4] sm:$0xf]  ;;  %v10627_v13 = vld [vmem:[%s12381_s7 + $0xf88] sm:$0xf0] }
 0x3f9   : > { %8392 = vmatpush.bf16.msra.mxu1 %v10246_v7  ;;  %v8186_v60 = vpop.f32.mrf.mxu1 }
 0x3fa   : > { %8405 = vmatpush.bf16.msra.mxu2 %v10310_v11  ;;  %v11142_v11 = vld [vmem:[%s12381_s7 + $0xe24] sm:$0xf] }
 0x3fb   : > { %8418 = vmatpush.bf16.msra.mxu3 %v10374_v17  ;;  %8380 = vmatmul.bf16.vlgmr.msra.gmra.mxu0 %v12961_v2  ;;  %v10478_v2 = vor.u32 %v11148_v48, %v10475_v35  ;;  %v10654_v17 = vor.u32 %v11192_v3, %v10651_v29  ;;  %v10454_v36 = vor.u32 %v11142_v11, %v10451_v33  ;;  %v10443_v48 = vld [vmem:[%s12381_s7 + $0xe18] sm:$0xf0]  ;;  %v11156_v35 = vld [vmem:[%s12381_s7 + $0xe94] sm:$0xf] }
 0x3fc   : > { %8424 = vmatpush.bf16.msrb.mxu0 %v10494_v28  ;;  %8393 = vmatmul.bf16.vlgmr.msra.gmra.mxu1 %v12968_v10  ;;  %v10670_v10 = vor.u32 %v11196_v58, %v10667_v53  ;;  %v10635_v58 = vld [vmem:[%s12381_s7 + $0xf98] sm:$0xf0] }
 0x3fd   : > { %8437 = vmatpush.bf16.msrb.mxu1 %v10558_v18  ;;  %8406 = vmatmul.bf16.vlgmr.msra.gmra.mxu2 %v12966_v9  ;;  %v11162_v9 = vld [vmem:[%s12381_s7 + $0xec4] sm:$0xf]  ;;  %v10515_v18 = vld [vmem:[%s12381_s7 + $0xea8] sm:$0xf0] }
 0x3fe   : > { %8450 = vmatpush.bf16.msrb.mxu2 %v10622_v52  ;;  %8419 = vmatmul.bf16.vlgmr.msra.gmra.mxu3 %v12972_v15  ;;  %v8173_v15 = vpop.f32.mrf.mxu0  ;;  %v10534_v16 = vor.u32 %v11162_v9, %v10531_v55  ;;  %v11174_v52 = vld [vmem:[%s12381_s7 + $0xf24] sm:$0xf]  ;;  %v10638_v9 = vor.u32 %v11188_v51, %v10635_v58 }
 0x3ff   : > { %8463 = vmatpush.bf16.msrb.mxu3 %v10686_v4  ;;  %v8174_v57 = vadd.f32 %v8173_v15, %v13521_v43  ;;  %v10587_v43 = vld [vmem:[%s12381_s7 + $0xf38] sm:$0xf0]  ;;  %v11190_v4 = vld [vmem:[%s12381_s7 + $0xfa4] sm:$0xf] }
 0x400   : > { %8425 = vmatpush.bf16.msrb.mxu0 %v10486_v6  ;;  %v10590_v7 = vor.u32 %v11176_v1, %v10587_v43  ;;  %v8199_v28 = vpop.f32.mrf.mxu2  ;;  %v10518_v6 = vor.u32 %v11158_v14, %v10515_v18  ;;  %v10646_v44 = vor.u32 %v11190_v4, %v10643_v41  ;;  %v11170_v55 = vld [vmem:[%s12381_s7 + $0xf04] sm:$0xf] }
 0x401   : > { %8438 = vmatpush.bf16.msrb.mxu1 %v10550_v31  ;;  %v8187_v25 = vadd.f32 %v8186_v60, %v8174_v57  ;;  %v8212_v26 = vpop.f32.mrf.mxu3  ;;  %v8188_v40 = vpop.f32.mrf.mxu1  ;;  %v10582_v31 = vor.u32 %v11174_v52, %v10579_v24  ;;  %v11186_v15 = vld [vmem:[%s12381_s7 + $0xf84] sm:$0xf]  ;;  %v10566_v60 = vor.u32 %v11170_v55, %v10563_v56 }
 0x402   : > { %8451 = vmatpush.bf16.msrb.mxu2 %v10614_v42  ;;  %v11140_v42 = vld [vmem:[%s12381_s7 + $0xe14] sm:$0xf] }
 0x403   : > { %8464 = vmatpush.bf16.msrb.mxu3 %v10678_v50  ;;  %v8200_v38 = vadd.f32 %v8199_v28, %v8187_v25  ;;  %v10507_v50 = vld [vmem:[%s12381_s7 + $0xe98] sm:$0xf0]  ;;  %v10446_v53 = vor.u32 %v11140_v42, %v10443_v48 }
 0x404   : > { %8426 = vmatpush.bf16.msrb.mxu0 %v10478_v2  ;;  %v10510_v2 = vor.u32 %v11156_v35, %v10507_v50 }
 0x405   : > { %8439 = vmatpush.bf16.msrb.mxu1 %v10542_v45  ;;  %v8213_v20 = vadd.f32 %v8212_v26, %v8200_v38  ;;  %v10574_v45 = vor.u32 %v11172_v37, %v10571_v21 }
 0x406   : > { %8452 = vmatpush.bf16.msrb.mxu2 %v10606_v8  ;;  %v8175_v23 = vpop.f32.mrf.mxu0  ;;  %v11138_v8 = vld [vmem:[%s12381_s7 + $0xe04] sm:$0xf] }
 0x407   : > { %8465 = vmatpush.bf16.msrb.mxu3 %v10670_v10  ;;  %v10499_v10 = vld [vmem:[%s12381_s7 + $0xe88] sm:$0xf0]  ;;  %v10438_v57 = vor.u32 %v11138_v8, %v10435_v46  ;;  %s8635_s7 = sshll.u32 %s11272_s17, 1 }
 0x408   : > { %8427 = vmatpush.bf16.msrb.mxu0 %v10470_v59  ;;  %v8201_v12 = vpop.f32.mrf.mxu2  ;;  %v10502_v59 = vor.u32 %v11154_v54, %v10499_v10  ;;  %p4425_p9 = scmp.lt.s32.totalorder %s8635_s7, 3 }
 0x409   : > { %8440 = vmatpush.bf16.msrb.mxu1 %v10534_v16  ;;  %v8214_v49 = vpop.f32.mrf.mxu3  ;;  %v10630_v16 = vor.u32 %v11186_v15, %v10627_v13 }
 0x40a   : > { %8453 = vmatpush.bf16.msrb.mxu2 %v10598_v47  ;;  %s13655_s7 = smov (!%p4425_p9, %s8635_s7), 3 }
 0x40b   : > { %8466 = vmatpush.bf16.msrb.mxu3 %v10662_v19  ;;  %s4427_s29 = scalar_lea.vmem %s13645_s2, %s13655_s7  ;;  %s4432_s5 = scalar_lea.vmem %s13646_s3, %s13655_s7 }
 0x40c   : > { %8428 = vmatpush.bf16.msrb.mxu0 %v10462_v30  ;;  %v8476_v46 = vld [vmem:[%s4427_s29] sm:$0x3]  ;;  %s8638_s6 = sshll.u32 %s13655_s7, 2 }
 0x40d   : > { %8441 = vmatpush.bf16.msrb.mxu1 %v10526_v5  ;;  %v8479_v10 = vperm.slane %v8476_v46, 0  ;;  %v8477_v55 = vld [vmem:[%s4432_s5] sm:$0x3]  ;;  %s4442_s10 = scalar_lea.vmem %s13647_s4, %s8638_s6 }
 0x40e   : > { %8454 = vmatpush.bf16.msrb.mxu2 %v10590_v7  ;;  %v8486_v13 = vperm.slane %v8477_v55, 0 }
 0x40f   : > { %8467 = vmatpush.bf16.msrb.mxu3 %v10654_v17  ;;  %v8483_v15 = vmul.f32 %v8479_v10, %v13380_v34 }
 0x410   : > { %8429 = vmatpush.bf16.msrb.mxu0 %v10454_v36 }
 0x411   : > { %8442 = vmatpush.bf16.msrb.mxu1 %v10518_v6 }
 0x412   : > { %8455 = vmatpush.bf16.msrb.mxu2 %v10582_v31 }
 0x413   : > { %8468 = vmatpush.bf16.msrb.mxu3 %v10646_v44 }
 0x414   : > { %8430 = vmatpush.bf16.msrb.mxu0 %v10446_v53 }
 0x415   : > { %8443 = vmatpush.bf16.msrb.mxu1 %v10510_v2 }
 0x416   : > { %8456 = vmatpush.bf16.msrb.mxu2 %v10574_v45 }
 0x417   : > { %8469 = vmatpush.bf16.msrb.mxu3 %v10638_v9 }
 0x418   : > { %8431 = vmatpush.bf16.msrb.mxu0 %v10438_v57  ;;  %v8225_v47 = vpop.f32.mrf.mxu0 }
 0x419   : > { %8444 = vmatpush.bf16.msrb.mxu1 %v10502_v59  ;;  %v8226_v61 = vadd.f32 %v8225_v47, %v8213_v20  ;;  %v8238_v0 = vpop.f32.mrf.mxu1  ;;  %v8480_v59 = vperm.slane %v8476_v46, 1 }
 0x41a   : > { %8457 = vmatpush.bf16.msrb.mxu2 %v10566_v60 }
 0x41b   : > { %8470 = vmatpush.bf16.msrb.mxu3 %v10630_v16  ;;  %8432 = vmatmul.bf16.vlgmr.msrb.gmra.mxu0 %v13046_v22  ;;  %v8239_v62 = vadd.f32 %v8238_v0, %v8226_v61  ;;  %v8487_v61 = vperm.slane %v8477_v55, 1  ;;  %v8490_v0 = vadd.f32 %v8486_v13, %v8483_v15 }
 0x41c   : > { %8445 = vmatmul.bf16.vlgmr.msrb.gmra.mxu1 %v13053_v32 }
 0x41d   : > { %8458 = vmatmul.bf16.vlgmr.msrb.gmra.mxu2 %v13051_v27 }
 0x41e   : > { %8471 = vmatmul.bf16.vlgmr.msrb.gmra.mxu3 %v13057_v39 }
 0x420   : > { %v8251_v19 = vpop.f32.mrf.mxu2  ;;  %v8227_v1 = vpop.f32.mrf.mxu0 }
 0x421   : > { %v8252_v25 = vadd.f32 %v8251_v19, %v8239_v62  ;;  %v8264_v63 = vpop.f32.mrf.mxu3  ;;  %v8240_v43 = vpop.f32.mrf.mxu1 }
 0x423   : > { %v8265_v3 = vadd.f32 %v8264_v63, %v8252_v25  ;;  %v8492_v63 = vmax.f32 %v8490_v0, 0.0 }
 0x428   : > { %v8253_v29 = vpop.f32.mrf.mxu2 }
 0x429   : > { %v8266_v30 = vpop.f32.mrf.mxu3 }
 0x438   : > { %v8277_v5 = vpop.f32.mrf.mxu0 }
 0x439   : > { %v8278_v22 = vadd.f32 %v8277_v5, %v8265_v3  ;;  %v8290_v7 = vpop.f32.mrf.mxu1 }
 0x43b   : > { %v8291_v32 = vadd.f32 %v8290_v7, %v8278_v22 }
 0x440   : > { %v8303_v11 = vpop.f32.mrf.mxu2  ;;  %v8279_v39 = vpop.f32.mrf.mxu0 }
 0x441   : > { %v8304_v27 = vadd.f32 %v8303_v11, %v8291_v32  ;;  %v8316_v33 = vpop.f32.mrf.mxu3  ;;  %v8292_v14 = vpop.f32.mrf.mxu1 }
 0x443   : > { %v8317_v17 = vadd.f32 %v8316_v33, %v8304_v27 }
 0x448   : > { %v8305_v28 = vpop.f32.mrf.mxu2 }
 0x449   : > { %v8318_v18 = vpop.f32.mrf.mxu3 }
 0x458   : > { %v8329_v52 = vpop.f32.mrf.mxu0 }
 0x459   : > { %v8342_v24 = vpop.f32.mrf.mxu1  ;;  %v8330_v6 = vadd.f32 %v8329_v52, %v8317_v17 }
 0x45b   : > { %v8343_v44 = vadd.f32 %v8342_v24, %v8330_v6 }
 0x460   : > { %v8355_v38 = vpop.f32.mrf.mxu2  ;;  %v8331_v4 = vpop.f32.mrf.mxu0 }
 0x461   : > { %v8368_v26 = vpop.f32.mrf.mxu3  ;;  %v8344_v41 = vpop.f32.mrf.mxu1  ;;  %v8356_v50 = vadd.f32 %v8355_v38, %v8343_v44 }
 0x463   : > { %v8369_v51 = vadd.f32 %v8368_v26, %v8356_v50 }
 0x468   : > { %v8357_v23 = vpop.f32.mrf.mxu2 }
 0x469   : > { %v8370_v36 = vpop.f32.mrf.mxu3 }
 0x478   : > { %v8381_v40 = vpop.f32.mrf.mxu0 }
 0x479   : > { %v8394_v20 = vpop.f32.mrf.mxu1  ;;  %v8382_v58 = vadd.f32 %v8381_v40, %v8369_v51 }
 0x47b   : > { %v8395_v53 = vadd.f32 %v8394_v20, %v8382_v58 }
 0x480   : > { %v8407_v31 = vpop.f32.mrf.mxu2  ;;  %v8383_v48 = vpop.f32.mrf.mxu0 }
 0x481   : > { %v8420_v42 = vpop.f32.mrf.mxu3  ;;  %v8396_v35 = vpop.f32.mrf.mxu1  ;;  %v8408_v2 = vadd.f32 %v8407_v31, %v8395_v53 }
 0x483   : > { %v8421_v45 = vadd.f32 %v8420_v42, %v8408_v2 }
 0x488   : > { %v8409_v37 = vpop.f32.mrf.mxu2 }
 0x489   : > { %v8422_v21 = vpop.f32.mrf.mxu3 }
 0x498   : > { %v8433_v8 = vpop.f32.mrf.mxu0 }
 0x499   : > { %v8446_v54 = vpop.f32.mrf.mxu1  ;;  %v8434_v9 = vadd.f32 %v8433_v8, %v8421_v45 }
 0x49b   : > { %v8447_v56 = vadd.f32 %v8446_v54, %v8434_v9 }
 0x4a0   : > { %v8459_v12 = vpop.f32.mrf.mxu2  ;;  %v8435_v60 = vpop.f32.mrf.mxu0 }
 0x4a1   : > { %v8460_v49 = vadd.f32 %v8459_v12, %v8447_v56  ;;  %v8472_v57 = vpop.f32.mrf.mxu3  ;;  %v8448_v16 = vpop.f32.mrf.mxu1 }
 0x4a3   : > { %v8473_v47 = vadd.f32 %v8472_v57, %v8460_v49 }
 0x4a5   : > { %v8484_v62 = vmul.f32 %v8480_v59, %v8473_v47 }
 0x4a7   : > { %v8491_v19 = vadd.f32 %v8487_v61, %v8484_v62 }
 0x4a8   : > { %v8461_v25 = vpop.f32.mrf.mxu2 }
 0x4a9   : > { %v8493_v1 = vmax.f32 %v8491_v19, 0.0  ;;  %v8474_v43 = vpop.f32.mrf.mxu3 }
 0x4ab   : > { %v8494_v34 = vpack.c.bf16 %v8493_v1, %v8492_v63 }
 0x4ad   : > { %8495 = vst [vmem:[%s4442_s10] sm:$0xff] %v8494_v34 }
 0x4ae PF: > { %s14_s19 = sadd.s32 1, %s11280_s19   ;;  %s13648_s15 = smov %s11268_s16 }
 0x4af   : > { %p11_p10 = scmp.ge.s32.totalorder %s14_s19, 4   ;;  %s13649_s16 = smov %s11342_s23 }
 0x4b0   : > { %s13650_s17 = smov %s11276_s18  ;;  %s13651_s18 = smov %s13653_s20 }
 0x4b1   :  { %13 = sbr.rel (!%p11_p10) target bundleno = 3 (0x3), region = 138 }

</bundles_post_ra>
